<compile_context>
chip_gen: v7x
topology: tpu7x:2x2x1
jax: 0.10.0
libtpu: 0.0.40
codegen_flags: <defaults>
</compile_context>

<pallas_src>
import functools

import jax
import jax.numpy as jnp
from jax.experimental import pallas as pl
from jax.experimental.pallas import tpu as pltpu


def _round_up(x, m):
    return (x + m - 1) // m * m


def _pick_tile_m(m):
    return min(256, _round_up(m, 8))


def _pick_tile_n(n):
    if n % 256 == 0:
        return 256
    if n % 128 == 0:
        return 128
    return n  # full dim (allowed by the (8,128) rule)


def _pick_tile_k(k):
    for cand in (512, 384, 256, 128):
        if k % cand == 0:
            return cand
    return k  # full dim (allowed by the (8,128) rule)


# ----------------------------------------------------------------------------
# Pallas kernels
# ----------------------------------------------------------------------------
def _matmul_affine_kernel(*refs, relu, has_res):
    # Tiled (tm,tk)@(tk,tn) MXU matmul with f32 accumulator; epilogue applies
    # per-column affine (+ optional residual add, + optional ReLU) at k==last.
    if has_res:
        a_ref, b_ref, s_ref, t_ref, r_ref, o_ref, acc_ref = refs
    else:
        a_ref, b_ref, s_ref, t_ref, o_ref, acc_ref = refs
        r_ref = None

    k = pl.program_id(2)

    @pl.when(k == 0)
    def _():
        acc_ref[...] = jnp.zeros_like(acc_ref)

    acc_ref[...] += jnp.dot(a_ref[...], b_ref[...],
                            preferred_element_type=jnp.float32)

    @pl.when(k == pl.num_programs(2) - 1)
    def _():
        y = acc_ref[...] * s_ref[...] + t_ref[...]
        if has_res:
            y = y + r_ref[...].astype(jnp.float32)
        if relu:
            y = jnp.maximum(y, 0.0)
        o_ref[...] = y.astype(o_ref.dtype)


def matmul_affine(a, b, scale, shift, *, relu=False, residual=None,
                  out_dtype=jnp.float32):
    """y = relu_opt((a @ b) * scale + shift [+ residual]).

    a: (M, K), b: (K, N) (bf16 on the MXU), scale/shift: (N,) f32 broadcast
    over rows, residual (optional): (M, N) added before the ReLU.
    """
    M, K = a.shape
    K2, N = b.shape
    assert K == K2

    a = a.astype(jnp.bfloat16)
    b = b.astype(jnp.bfloat16)
    if residual is not None:
        residual = residual.astype(jnp.bfloat16)

    tm = _pick_tile_m(M)
    tn = _pick_tile_n(N)
    tk = _pick_tile_k(K)
    Mp = _round_up(M, tm)
    if Mp != M:  # rare: only when M is not a tile multiple (tiny pad)
        a = jnp.pad(a, ((0, Mp - M), (0, 0)))
        if residual is not None:
            residual = jnp.pad(residual, ((0, Mp - M), (0, 0)))

    s2 = scale.reshape(1, N).astype(jnp.float32)
    t2 = shift.reshape(1, N).astype(jnp.float32)

    has_res = residual is not None
    in_specs = [
        pl.BlockSpec((tm, tk), lambda i, j, k: (i, k)),
        pl.BlockSpec((tk, tn), lambda i, j, k: (k, j)),
        pl.BlockSpec((1, tn), lambda i, j, k: (0, j)),
        pl.BlockSpec((1, tn), lambda i, j, k: (0, j)),
    ]
    args = [a, b, s2, t2]
    if has_res:
        in_specs.append(pl.BlockSpec((tm, tn), lambda i, j, k: (i, j)))
        args.append(residual)

    out = pl.pallas_call(
        functools.partial(_matmul_affine_kernel, relu=relu, has_res=has_res),
        out_shape=jax.ShapeDtypeStruct((Mp, N), out_dtype),
        grid_spec=pltpu.PrefetchScalarGridSpec(
            num_scalar_prefetch=0,
            grid=(Mp // tm, N // tn, K // tk),
            in_specs=in_specs,
            out_specs=pl.BlockSpec((tm, tn), lambda i, j, k: (i, j)),
            scratch_shapes=[pltpu.VMEM((tm, tn), jnp.float32)],
        ),
        compiler_params=pltpu.CompilerParams(
            dimension_semantics=("parallel", "parallel", "arbitrary"),
            vmem_limit_bytes=48 * 1024 * 1024,   # fits v7x's 64 MiB VMEM
        ),
    )(*args)
    if Mp != M:
        out = out[:M]
    return out


def _max_reduce_kernel(x_ref, o_ref):
    o_ref[...] = jnp.max(x_ref[...], axis=0)


def maxpool3x3_s2(x):
    """3x3 max pool, stride 2, pad 1 (PyTorch semantics). x: NHWC bf16."""
    N, H, W, C = x.shape
    k, s, pad = 3, 2, 1
    Ho = (H + 2 * pad - k) // s + 1
    Wo = (W + 2 * pad - k) // s + 1
    neg = float(jnp.finfo(x.dtype).min)
    xp = jnp.pad(x, ((0, 0), (pad, pad), (pad, pad), (0, 0)),
                 constant_values=neg)
    cols = []
    for i in range(k):
        for j in range(k):
            cols.append(xp[:, i:i + s * Ho:s, j:j + s * Wo:s, :])
    M = N * Ho * Wo
    stk = jnp.stack(cols, axis=0).reshape(k * k, M, C)

    tm = min(512, _round_up(M, 8))
    Mp = _round_up(M, tm)
    if Mp != M:
        stk = jnp.pad(stk, ((0, 0), (0, Mp - M), (0, 0)))

    out = pl.pallas_call(
        _max_reduce_kernel,
        out_shape=jax.ShapeDtypeStruct((Mp, C), x.dtype),
        grid=(Mp // tm,),
        in_specs=[pl.BlockSpec((k * k, tm, C), lambda i: (0, i, 0))],
        out_specs=pl.BlockSpec((tm, C), lambda i: (i, 0)),
        compiler_params=pltpu.CompilerParams(
            dimension_semantics=("parallel",),
        ),
    )(stk)
    if Mp != M:
        out = out[:M]
    return out.reshape(N, Ho, Wo, C)


# ----------------------------------------------------------------------------
# Conv = im2col (glue) + tiled Pallas matmul with fused BN/residual/ReLU
# ----------------------------------------------------------------------------
def conv_bn(x, w_mat, kh, kw, stride, pad, scale, shift, *, relu,
            residual=None, out_dtype=jnp.bfloat16):
    """x: NHWC bf16, w_mat: (kh*kw*Cin, Cout) bf16. Returns NHWC."""
    N, H, W, C = x.shape
    Ho = (H + 2 * pad - kh) // stride + 1
    Wo = (W + 2 * pad - kw) // stride + 1
    Cout = w_mat.shape[1]
    M = N * Ho * Wo

    if kh == 1 and kw == 1 and pad == 0:
        patches = x[:, ::stride, ::stride, :].reshape(M, C)
    else:
        xp = jnp.pad(x, ((0, 0), (pad, pad), (pad, pad), (0, 0)))
        cols = []
        for i in range(kh):
            for j in range(kw):
                cols.append(xp[:, i:i + stride * Ho:stride,
                               j:j + stride * Wo:stride, :])
        patches = jnp.concatenate(cols, axis=-1).reshape(M, kh * kw * C)

    res2d = residual.reshape(M, Cout) if residual is not None else None
    out = matmul_affine(patches, w_mat, scale, shift, relu=relu,
                        residual=res2d, out_dtype=out_dtype)
    return out.reshape(N, Ho, Wo, Cout)


# ----------------------------------------------------------------------------
# Deterministic synthetic parameters (no checkpoint loading)
# ----------------------------------------------------------------------------
class ParamGen:
    def __init__(self, key):
        self.key = key
        self.i = 0

    def _next(self):
        self.i += 1
        return jax.random.fold_in(self.key, self.i)

    def conv(self, kh, kw, cin, cout):
        w = jax.random.normal(self._next(), (kh, kw, cin, cout), jnp.float32) * 0.05
        return w.reshape(kh * kw * cin, cout).astype(jnp.bfloat16)

    def bn(self, c):
        gamma = 1.0 + 0.1 * jax.random.normal(self._next(), (c,), jnp.float32)
        beta = 0.1 * jax.random.normal(self._next(), (c,), jnp.float32)
        mean = 0.1 * jax.random.normal(self._next(), (c,), jnp.float32)
        var = 0.5 + jax.random.uniform(self._next(), (c,), jnp.float32)
        scale = gamma / jnp.sqrt(var + 1e-5)
        shift = beta - mean * scale
        return scale, shift

    def linear(self, cin, cout):
        w = jax.random.normal(self._next(), (cin, cout), jnp.float32) * 0.02
        b = 0.01 * jax.random.normal(self._next(), (cout,), jnp.float32)
        return w.astype(jnp.bfloat16), b


def init_resnet18(key, n_class=2):
    g = ParamGen(key)
    P = {"conv1_w": g.conv(7, 7, 3, 64), "bn1": g.bn(64)}
    specs = [(64, 64, 1), (64, 128, 2), (128, 256, 2), (256, 512, 2)]
    layers = []
    for (cin, cout, stride) in specs:
        blocks = []
        for b in range(2):
            s = stride if b == 0 else 1
            ci = cin if b == 0 else cout
            blk = {
                "conv1_w": g.conv(3, 3, ci, cout), "bn1": g.bn(cout),
                "conv2_w": g.conv(3, 3, cout, cout), "bn2": g.bn(cout),
            }
            if b == 0 and (s != 1 or ci != cout):
                blk["down_w"] = g.conv(1, 1, ci, cout)
                blk["down_bn"] = g.bn(cout)
            blocks.append(blk)
        layers.append(blocks)
    P["layers"] = layers

    # resnet18 final fc: 512 -> 1000; pad to 1024 lanes once at init
    # (lane-dense output, 128-aligned K for the l0 head).
    wf, bf = g.linear(512, 1000)
    nf_pad = _round_up(1000, 128)
    P["fc"] = (jnp.pad(wf, ((0, 0), (0, nf_pad - 1000))),
               jnp.pad(bf, ((0, nf_pad - 1000),)))

    # extra head: 1000 -> n_class; pad K to 1024 and N to a lane multiple.
    wl, bl = g.linear(1000, n_class)
    nl_pad = _round_up(max(n_class, 1), 128)
    P["l0"] = (jnp.pad(wl, ((0, nf_pad - 1000), (0, nl_pad - n_class))),
               jnp.pad(bl, ((0, nl_pad - n_class),)))
    return P


# ----------------------------------------------------------------------------
# Forward pass (ResNet-18 + l0 head)
# ----------------------------------------------------------------------------
def resnet18_forward(P, image_nchw, n_class=2):
    # PyTorch NCHW -> internal NHWC bf16
    x = jnp.transpose(image_nchw.astype(jnp.float32), (0, 2, 3, 1))
    x = x.astype(jnp.bfloat16)

    s, t = P["bn1"]
    x = conv_bn(x, P["conv1_w"], 7, 7, 2, 3, s, t, relu=True)
    x = maxpool3x3_s2(x)

    for li, blocks in enumerate(P["layers"]):
        for bi, blk in enumerate(blocks):
            stride = 2 if (li > 0 and bi == 0) else 1
            identity = x
            s1, t1 = blk["bn1"]
            y = conv_bn(x, blk["conv1_w"], 3, 3, stride, 1, s1, t1, relu=True)
            if "down_w" in blk:
                sd, td = blk["down_bn"]
                identity = conv_bn(x, blk["down_w"], 1, 1, stride, 0, sd, td,
                                   relu=False)
            s2, t2 = blk["bn2"]
            # residual add + ReLU fused into conv2's matmul epilogue
            x = conv_bn(y, blk["conv2_w"], 3, 3, 1, 1, s2, t2, relu=True,
                        residual=identity)

    # adaptive average pool to 1x1 (spatial is tiny here; plain-JAX glue)
    x = jnp.mean(x.astype(jnp.float32), axis=(1, 2)).astype(jnp.bfloat16)

    wf, bf = P["fc"]
    x = matmul_affine(x, wf, jnp.ones((wf.shape[1],), jnp.float32), bf,
                      relu=False, out_dtype=jnp.bfloat16)
    wl, bl = P["l0"]
    out = matmul_affine(x, wl, jnp.ones((wl.shape[1],), jnp.float32), bl,
                        relu=False, out_dtype=jnp.float32)
    return out[:, :n_class]  # (N, n_class)


if __name__ == "__main__":
    key = jax.random.PRNGKey(0)
    pkey, xkey = jax.random.split(key)
    params = init_resnet18(pkey, n_class=2)
    # Small NCHW input consistent with resnet18 (3 input channels).
    image = jax.random.normal(xkey, (2, 3, 32, 32), jnp.float32)

    out = jax.jit(resnet18_forward)(params, image)
    out = jax.block_until_ready(out)
    assert out.shape == (2, 2) and out.dtype == jnp.float32
    print("KERNEL_OK")
</pallas_src>

<mosaic_0001>
module attributes {stable_mosaic.version = 11 : i64} {
  func.func @_matmul_affine_kernel(%arg0: i32, %arg1: i32, %arg2: i32, %arg3: memref<256x147xbf16, #tpu.memory_space<vmem>>, %arg4: memref<147x64xbf16, #tpu.memory_space<vmem>>, %arg5: memref<1x64xf32, #tpu.memory_space<vmem>>, %arg6: memref<1x64xf32, #tpu.memory_space<vmem>>, %arg7: memref<256x64xbf16, #tpu.memory_space<vmem>>, %arg8: memref<256x64xf32, #tpu.memory_space<vmem>>) attributes {dimension_semantics = [#tpu.dimension_semantics<parallel>, #tpu.dimension_semantics<parallel>, #tpu.dimension_semantics<arbitrary>], iteration_bounds = array<i64: 2, 1, 1>, scalar_prefetch = 0 : i64, scratch_operands = 1 : i64, tpu.core_type = #tpu.core_type<tc>, window_params = [{transform_indices = @transform_0, window_bounds = array<i64: 256, 147>}, {transform_indices = @transform_1, window_bounds = array<i64: 147, 64>}, {transform_indices = @transform_2, window_bounds = array<i64: 1, 64>}, {transform_indices = @transform_3, window_bounds = array<i64: 1, 64>}, {transform_indices = @transform_4, window_bounds = array<i64: 256, 64>}]} {
    %c0_i32 = arith.constant 0 : i32
    %0 = arith.cmpi eq, %arg2, %c0_i32 : i32
    %1 = arith.extui %0 : i1 to i32
    %c0_i32_0 = arith.constant 0 : i32
    %2 = arith.cmpi ne, %1, %c0_i32_0 : i32
    scf.if %2 {
      %cst_10 = arith.constant 0.000000e+00 : f32
      %12 = vector.broadcast %cst_10 : f32 to vector<256x64xf32>
      %c0_11 = arith.constant 0 : index
      %c0_12 = arith.constant 0 : index
      %13 = vector.load %arg8[%c0_11, %c0_12] : memref<256x64xf32, #tpu.memory_space<vmem>>, vector<256x64xf32>
      tpu.vector_store %arg8[%c0_11, %c0_12], %12 {strides = array<i32>} : memref<256x64xf32, #tpu.memory_space<vmem>>, vector<256x64xf32>,
    } else {
    }
    %c0 = arith.constant 0 : index
    %c0_1 = arith.constant 0 : index
    %3 = vector.load %arg8[%c0, %c0_1] : memref<256x64xf32, #tpu.memory_space<vmem>>, vector<256x64xf32>
    %c0_2 = arith.constant 0 : index
    %c0_3 = arith.constant 0 : index
    %4 = vector.load %arg3[%c0_2, %c0_3] : memref<256x147xbf16, #tpu.memory_space<vmem>>, vector<256x147xbf16>
    %c0_4 = arith.constant 0 : index
    %c0_5 = arith.constant 0 : index
    %5 = vector.load %arg4[%c0_4, %c0_5] : memref<147x64xbf16, #tpu.memory_space<vmem>>, vector<147x64xbf16>
    %cst = arith.constant dense<0.000000e+00> : vector<256x64xf32>
    %6 = tpu.matmul %4, %5, %cst {dimension_numbers = #tpu.dot_dimension_numbers<[1], [0], [0], [1], [0, 0, 1, 1], [], []>} : vector<256x147xbf16>, vector<147x64xbf16>, vector<256x64xf32> -> vector<256x64xf32>
    %7 = arith.addf %3, %6 : vector<256x64xf32>
    %c0_6 = arith.constant 0 : index
    %c0_7 = arith.constant 0 : index
    %8 = vector.load %arg8[%c0_6, %c0_7] : memref<256x64xf32, #tpu.memory_space<vmem>>, vector<256x64xf32>
    tpu.vector_store %arg8[%c0_6, %c0_7], %7 {strides = array<i32>} : memref<256x64xf32, #tpu.memory_space<vmem>>, vector<256x64xf32>,
    %c0_i32_8 = arith.constant 0 : i32
    %9 = arith.cmpi eq, %arg2, %c0_i32_8 : i32
    %10 = arith.extui %9 : i1 to i32
    %c0_i32_9 = arith.constant 0 : i32
    %11 = arith.cmpi ne, %10, %c0_i32_9 : i32
    scf.if %11 {
      %c0_10 = arith.constant 0 : index
      %c0_11 = arith.constant 0 : index
      %12 = vector.load %arg8[%c0_10, %c0_11] : memref<256x64xf32, #tpu.memory_space<vmem>>, vector<256x64xf32>
      %c0_12 = arith.constant 0 : index
      %c0_13 = arith.constant 0 : index
      %13 = vector.load %arg5[%c0_12, %c0_13] : memref<1x64xf32, #tpu.memory_space<vmem>>, vector<1x64xf32>
      %14 = vector.broadcast %13 : vector<1x64xf32> to vector<256x64xf32>
      %15 = arith.mulf %12, %14 : vector<256x64xf32>
      %c0_14 = arith.constant 0 : index
      %c0_15 = arith.constant 0 : index
      %16 = vector.load %arg6[%c0_14, %c0_15] : memref<1x64xf32, #tpu.memory_space<vmem>>, vector<1x64xf32>
      %17 = vector.broadcast %16 : vector<1x64xf32> to vector<256x64xf32>
      %18 = arith.addf %15, %17 : vector<256x64xf32>
      %cst_16 = arith.constant 0.000000e+00 : f32
      %19 = vector.broadcast %cst_16 : f32 to vector<256x64xf32>
      %20 = arith.maximumf %18, %19 : vector<256x64xf32>
      %21 = arith.truncf %20 : vector<256x64xf32> to vector<256x64xbf16>
      %c0_17 = arith.constant 0 : index
      %c0_18 = arith.constant 0 : index
      %22 = vector.load %arg7[%c0_17, %c0_18] : memref<256x64xbf16, #tpu.memory_space<vmem>>, vector<256x64xbf16>
      tpu.vector_store %arg7[%c0_17, %c0_18], %21 {strides = array<i32>} : memref<256x64xbf16, #tpu.memory_space<vmem>>, vector<256x64xbf16>,
    } else {
    }
    return
  }
  func.func @transform_0(%arg0: i32, %arg1: i32, %arg2: i32) -> (i32, i32) {
    %c0_i32 = arith.constant 0 : i32
    return %arg0, %arg2 : i32, i32
  }
  func.func @transform_1(%arg0: i32, %arg1: i32, %arg2: i32) -> (i32, i32) {
    %c0_i32 = arith.constant 0 : i32
    return %arg2, %arg1 : i32, i32
  }
  func.func @transform_2(%arg0: i32, %arg1: i32, %arg2: i32) -> (i32, i32) {
    %c0_i32 = arith.constant 0 : i32
    %c0_i32_0 = arith.constant 0 : i32
    return %c0_i32, %arg1 : i32, i32
  }
  func.func @transform_3(%arg0: i32, %arg1: i32, %arg2: i32) -> (i32, i32) {
    %c0_i32 = arith.constant 0 : i32
    %c0_i32_0 = arith.constant 0 : i32
    return %c0_i32, %arg1 : i32, i32
  }
  func.func @transform_4(%arg0: i32, %arg1: i32, %arg2: i32) -> (i32, i32) {
    %c0_i32 = arith.constant 0 : i32
    return %arg0, %arg1 : i32, i32
  }
}

module attributes {stable_mosaic.version = 11 : i64} {
  func.func @_max_reduce_kernel(%arg0: i32, %arg1: memref<9x128x64xbf16, #tpu.memory_space<vmem>>, %arg2: memref<128x64xbf16, #tpu.memory_space<vmem>>) attributes {dimension_semantics = [#tpu.dimension_semantics<parallel>], iteration_bounds = array<i64: 1>, scalar_prefetch = 0 : i64, scratch_operands = 0 : i64, tpu.core_type = #tpu.core_type<tc>, window_params = [{transform_indices = @transform_0, window_bounds = array<i64: 9, 128, 64>}, {transform_indices = @transform_1, window_bounds = array<i64: 128, 64>}]} {
    %c0 = arith.constant 0 : index
    %c0_0 = arith.constant 0 : index
    %c0_1 = arith.constant 0 : index
    %0 = vector.load %arg1[%c0, %c0_0, %c0_1] : memref<9x128x64xbf16, #tpu.memory_space<vmem>>, vector<9x128x64xbf16>
    %cst = arith.constant dense<0xFF80> : vector<128x64xbf16>
    %1 = vector.multi_reduction <maximumf>, %0, %cst [0] : vector<9x128x64xbf16> to vector<128x64xbf16>
    %c0_2 = arith.constant 0 : index
    %c0_3 = arith.constant 0 : index
    %2 = vector.load %arg2[%c0_2, %c0_3] : memref<128x64xbf16, #tpu.memory_space<vmem>>, vector<128x64xbf16>
    tpu.vector_store %arg2[%c0_2, %c0_3], %1 {strides = array<i32>} : memref<128x64xbf16, #tpu.memory_space<vmem>>, vector<128x64xbf16>,
    return
  }
  func.func @transform_0(%arg0: i32) -> (i32, i32, i32) {
    %c0_i32 = arith.constant 0 : i32
    %c0_i32_0 = arith.constant 0 : i32
    %c0_i32_1 = arith.constant 0 : i32
    return %c0_i32, %arg0, %c0_i32_0 : i32, i32, i32
  }
  func.func @transform_1(%arg0: i32) -> (i32, i32) {
    %c0_i32 = arith.constant 0 : i32
    %c0_i32_0 = arith.constant 0 : i32
    return %arg0, %c0_i32 : i32, i32
  }
}

module attributes {stable_mosaic.version = 11 : i64} {
  func.func @_matmul_affine_kernel(%arg0: i32, %arg1: i32, %arg2: i32, %arg3: memref<128x576xbf16, #tpu.memory_space<vmem>>, %arg4: memref<576x64xbf16, #tpu.memory_space<vmem>>, %arg5: memref<1x64xf32, #tpu.memory_space<vmem>>, %arg6: memref<1x64xf32, #tpu.memory_space<vmem>>, %arg7: memref<128x64xbf16, #tpu.memory_space<vmem>>, %arg8: memref<128x64xf32, #tpu.memory_space<vmem>>) attributes {dimension_semantics = [#tpu.dimension_semantics<parallel>, #tpu.dimension_semantics<parallel>, #tpu.dimension_semantics<arbitrary>], iteration_bounds = array<i64: 1, 1, 1>, scalar_prefetch = 0 : i64, scratch_operands = 1 : i64, tpu.core_type = #tpu.core_type<tc>, window_params = [{transform_indices = @transform_0, window_bounds = array<i64: 128, 576>}, {transform_indices = @transform_1, window_bounds = array<i64: 576, 64>}, {transform_indices = @transform_2, window_bounds = array<i64: 1, 64>}, {transform_indices = @transform_3, window_bounds = array<i64: 1, 64>}, {transform_indices = @transform_4, window_bounds = array<i64: 128, 64>}]} {
    %c0_i32 = arith.constant 0 : i32
    %0 = arith.cmpi eq, %arg2, %c0_i32 : i32
    %1 = arith.extui %0 : i1 to i32
    %c0_i32_0 = arith.constant 0 : i32
    %2 = arith.cmpi ne, %1, %c0_i32_0 : i32
    scf.if %2 {
      %cst_10 = arith.constant 0.000000e+00 : f32
      %12 = vector.broadcast %cst_10 : f32 to vector<128x64xf32>
      %c0_11 = arith.constant 0 : index
      %c0_12 = arith.constant 0 : index
      %13 = vector.load %arg8[%c0_11, %c0_12] : memref<128x64xf32, #tpu.memory_space<vmem>>, vector<128x64xf32>
      tpu.vector_store %arg8[%c0_11, %c0_12], %12 {strides = array<i32>} : memref<128x64xf32, #tpu.memory_space<vmem>>, vector<128x64xf32>,
    } else {
    }
    %c0 = arith.constant 0 : index
    %c0_1 = arith.constant 0 : index
    %3 = vector.load %arg8[%c0, %c0_1] : memref<128x64xf32, #tpu.memory_space<vmem>>, vector<128x64xf32>
    %c0_2 = arith.constant 0 : index
    %c0_3 = arith.constant 0 : index
    %4 = vector.load %arg3[%c0_2, %c0_3] : memref<128x576xbf16, #tpu.memory_space<vmem>>, vector<128x576xbf16>
    %c0_4 = arith.constant 0 : index
    %c0_5 = arith.constant 0 : index
    %5 = vector.load %arg4[%c0_4, %c0_5] : memref<576x64xbf16, #tpu.memory_space<vmem>>, vector<576x64xbf16>
    %cst = arith.constant dense<0.000000e+00> : vector<128x64xf32>
    %6 = tpu.matmul %4, %5, %cst {dimension_numbers = #tpu.dot_dimension_numbers<[1], [0], [0], [1], [0, 0, 1, 1], [], []>} : vector<128x576xbf16>, vector<576x64xbf16>, vector<128x64xf32> -> vector<128x64xf32>
    %7 = arith.addf %3, %6 : vector<128x64xf32>
    %c0_6 = arith.constant 0 : index
    %c0_7 = arith.constant 0 : index
    %8 = vector.load %arg8[%c0_6, %c0_7] : memref<128x64xf32, #tpu.memory_space<vmem>>, vector<128x64xf32>
    tpu.vector_store %arg8[%c0_6, %c0_7], %7 {strides = array<i32>} : memref<128x64xf32, #tpu.memory_space<vmem>>, vector<128x64xf32>,
    %c0_i32_8 = arith.constant 0 : i32
    %9 = arith.cmpi eq, %arg2, %c0_i32_8 : i32
    %10 = arith.extui %9 : i1 to i32
    %c0_i32_9 = arith.constant 0 : i32
    %11 = arith.cmpi ne, %10, %c0_i32_9 : i32
    scf.if %11 {
      %c0_10 = arith.constant 0 : index
      %c0_11 = arith.constant 0 : index
      %12 = vector.load %arg8[%c0_10, %c0_11] : memref<128x64xf32, #tpu.memory_space<vmem>>, vector<128x64xf32>
      %c0_12 = arith.constant 0 : index
      %c0_13 = arith.constant 0 : index
      %13 = vector.load %arg5[%c0_12, %c0_13] : memref<1x64xf32, #tpu.memory_space<vmem>>, vector<1x64xf32>
      %14 = vector.broadcast %13 : vector<1x64xf32> to vector<128x64xf32>
      %15 = arith.mulf %12, %14 : vector<128x64xf32>
      %c0_14 = arith.constant 0 : index
      %c0_15 = arith.constant 0 : index
      %16 = vector.load %arg6[%c0_14, %c0_15] : memref<1x64xf32, #tpu.memory_space<vmem>>, vector<1x64xf32>
      %17 = vector.broadcast %16 : vector<1x64xf32> to vector<128x64xf32>
      %18 = arith.addf %15, %17 : vector<128x64xf32>
      %cst_16 = arith.constant 0.000000e+00 : f32
      %19 = vector.broadcast %cst_16 : f32 to vector<128x64xf32>
      %20 = arith.maximumf %18, %19 : vector<128x64xf32>
      %21 = arith.truncf %20 : vector<128x64xf32> to vector<128x64xbf16>
      %c0_17 = arith.constant 0 : index
      %c0_18 = arith.constant 0 : index
      %22 = vector.load %arg7[%c0_17, %c0_18] : memref<128x64xbf16, #tpu.memory_space<vmem>>, vector<128x64xbf16>
      tpu.vector_store %arg7[%c0_17, %c0_18], %21 {strides = array<i32>} : memref<128x64xbf16, #tpu.memory_space<vmem>>, vector<128x64xbf16>,
    } else {
    }
    return
  }
  func.func @transform_0(%arg0: i32, %arg1: i32, %arg2: i32) -> (i32, i32) {
    %c0_i32 = arith.constant 0 : i32
    return %arg0, %arg2 : i32, i32
  }
  func.func @transform_1(%arg0: i32, %arg1: i32, %arg2: i32) -> (i32, i32) {
    %c0_i32 = arith.constant 0 : i32
    return %arg2, %arg1 : i32, i32
  }
  func.func @transform_2(%arg0: i32, %arg1: i32, %arg2: i32) -> (i32, i32) {
    %c0_i32 = arith.constant 0 : i32
    %c0_i32_0 = arith.constant 0 : i32
    return %c0_i32, %arg1 : i32, i32
  }
  func.func @transform_3(%arg0: i32, %arg1: i32, %arg2: i32) -> (i32, i32) {
    %c0_i32 = arith.constant 0 : i32
    %c0_i32_0 = arith.constant 0 : i32
    return %c0_i32, %arg1 : i32, i32
  }
  func.func @transform_4(%arg0: i32, %arg1: i32, %arg2: i32) -> (i32, i32) {
    %c0_i32 = arith.constant 0 : i32
    return %arg0, %arg1 : i32, i32
  }
}

module attributes {stable_mosaic.version = 11 : i64} {
  func.func @_matmul_affine_kernel(%arg0: i32, %arg1: i32, %arg2: i32, %arg3: memref<128x576xbf16, #tpu.memory_space<vmem>>, %arg4: memref<576x64xbf16, #tpu.memory_space<vmem>>, %arg5: memref<1x64xf32, #tpu.memory_space<vmem>>, %arg6: memref<1x64xf32, #tpu.memory_space<vmem>>, %arg7: memref<128x64xbf16, #tpu.memory_space<vmem>>, %arg8: memref<128x64xbf16, #tpu.memory_space<vmem>>, %arg9: memref<128x64xf32, #tpu.memory_space<vmem>>) attributes {dimension_semantics = [#tpu.dimension_semantics<parallel>, #tpu.dimension_semantics<parallel>, #tpu.dimension_semantics<arbitrary>], iteration_bounds = array<i64: 1, 1, 1>, scalar_prefetch = 0 : i64, scratch_operands = 1 : i64, tpu.core_type = #tpu.core_type<tc>, window_params = [{transform_indices = @transform_0, window_bounds = array<i64: 128, 576>}, {transform_indices = @transform_1, window_bounds = array<i64: 576, 64>}, {transform_indices = @transform_2, window_bounds = array<i64: 1, 64>}, {transform_indices = @transform_3, window_bounds = array<i64: 1, 64>}, {transform_indices = @transform_4, window_bounds = array<i64: 128, 64>}, {transform_indices = @transform_5, window_bounds = array<i64: 128, 64>}]} {
    %c0_i32 = arith.constant 0 : i32
    %0 = arith.cmpi eq, %arg2, %c0_i32 : i32
    %1 = arith.extui %0 : i1 to i32
    %c0_i32_0 = arith.constant 0 : i32
    %2 = arith.cmpi ne, %1, %c0_i32_0 : i32
    scf.if %2 {
      %cst_10 = arith.constant 0.000000e+00 : f32
      %12 = vector.broadcast %cst_10 : f32 to vector<128x64xf32>
      %c0_11 = arith.constant 0 : index
      %c0_12 = arith.constant 0 : index
      %13 = vector.load %arg9[%c0_11, %c0_12] : memref<128x64xf32, #tpu.memory_space<vmem>>, vector<128x64xf32>
      tpu.vector_store %arg9[%c0_11, %c0_12], %12 {strides = array<i32>} : memref<128x64xf32, #tpu.memory_space<vmem>>, vector<128x64xf32>,
    } else {
    }
    %c0 = arith.constant 0 : index
    %c0_1 = arith.constant 0 : index
    %3 = vector.load %arg9[%c0, %c0_1] : memref<128x64xf32, #tpu.memory_space<vmem>>, vector<128x64xf32>
    %c0_2 = arith.constant 0 : index
    %c0_3 = arith.constant 0 : index
    %4 = vector.load %arg3[%c0_2, %c0_3] : memref<128x576xbf16, #tpu.memory_space<vmem>>, vector<128x576xbf16>
    %c0_4 = arith.constant 0 : index
    %c0_5 = arith.constant 0 : index
    %5 = vector.load %arg4[%c0_4, %c0_5] : memref<576x64xbf16, #tpu.memory_space<vmem>>, vector<576x64xbf16>
    %cst = arith.constant dense<0.000000e+00> : vector<128x64xf32>
    %6 = tpu.matmul %4, %5, %cst {dimension_numbers = #tpu.dot_dimension_numbers<[1], [0], [0], [1], [0, 0, 1, 1], [], []>} : vector<128x576xbf16>, vector<576x64xbf16>, vector<128x64xf32> -> vector<128x64xf32>
    %7 = arith.addf %3, %6 : vector<128x64xf32>
    %c0_6 = arith.constant 0 : index
    %c0_7 = arith.constant 0 : index
    %8 = vector.load %arg9[%c0_6, %c0_7] : memref<128x64xf32, #tpu.memory_space<vmem>>, vector<128x64xf32>
    tpu.vector_store %arg9[%c0_6, %c0_7], %7 {strides = array<i32>} : memref<128x64xf32, #tpu.memory_space<vmem>>, vector<128x64xf32>,
    %c0_i32_8 = arith.constant 0 : i32
    %9 = arith.cmpi eq, %arg2, %c0_i32_8 : i32
    %10 = arith.extui %9 : i1 to i32
    %c0_i32_9 = arith.constant 0 : i32
    %11 = arith.cmpi ne, %10, %c0_i32_9 : i32
    scf.if %11 {
      %c0_10 = arith.constant 0 : index
      %c0_11 = arith.constant 0 : index
      %12 = vector.load %arg9[%c0_10, %c0_11] : memref<128x64xf32, #tpu.memory_space<vmem>>, vector<128x64xf32>
      %c0_12 = arith.constant 0 : index
      %c0_13 = arith.constant 0 : index
      %13 = vector.load %arg5[%c0_12, %c0_13] : memref<1x64xf32, #tpu.memory_space<vmem>>, vector<1x64xf32>
      %14 = vector.broadcast %13 : vector<1x64xf32> to vector<128x64xf32>
      %15 = arith.mulf %12, %14 : vector<128x64xf32>
      %c0_14 = arith.constant 0 : index
      %c0_15 = arith.constant 0 : index
      %16 = vector.load %arg6[%c0_14, %c0_15] : memref<1x64xf32, #tpu.memory_space<vmem>>, vector<1x64xf32>
      %17 = vector.broadcast %16 : vector<1x64xf32> to vector<128x64xf32>
      %18 = arith.addf %15, %17 : vector<128x64xf32>
      %c0_16 = arith.constant 0 : index
      %c0_17 = arith.constant 0 : index
      %19 = vector.load %arg7[%c0_16, %c0_17] : memref<128x64xbf16, #tpu.memory_space<vmem>>, vector<128x64xbf16>
      %20 = arith.extf %19 : vector<128x64xbf16> to vector<128x64xf32>
      %21 = arith.addf %18, %20 : vector<128x64xf32>
      %cst_18 = arith.constant 0.000000e+00 : f32
      %22 = vector.broadcast %cst_18 : f32 to vector<128x64xf32>
      %23 = arith.maximumf %21, %22 : vector<128x64xf32>
      %24 = arith.truncf %23 : vector<128x64xf32> to vector<128x64xbf16>
      %c0_19 = arith.constant 0 : index
      %c0_20 = arith.constant 0 : index
      %25 = vector.load %arg8[%c0_19, %c0_20] : memref<128x64xbf16, #tpu.memory_space<vmem>>, vector<128x64xbf16>
      tpu.vector_store %arg8[%c0_19, %c0_20], %24 {strides = array<i32>} : memref<128x64xbf16, #tpu.memory_space<vmem>>, vector<128x64xbf16>,
    } else {
    }
    return
  }
  func.func @transform_0(%arg0: i32, %arg1: i32, %arg2: i32) -> (i32, i32) {
    %c0_i32 = arith.constant 0 : i32
    return %arg0, %arg2 : i32, i32
  }
  func.func @transform_1(%arg0: i32, %arg1: i32, %arg2: i32) -> (i32, i32) {
    %c0_i32 = arith.constant 0 : i32
    return %arg2, %arg1 : i32, i32
  }
  func.func @transform_2(%arg0: i32, %arg1: i32, %arg2: i32) -> (i32, i32) {
    %c0_i32 = arith.constant 0 : i32
    %c0_i32_0 = arith.constant 0 : i32
    return %c0_i32, %arg1 : i32, i32
  }
  func.func @transform_3(%arg0: i32, %arg1: i32, %arg2: i32) -> (i32, i32) {
    %c0_i32 = arith.constant 0 : i32
    %c0_i32_0 = arith.constant 0 : i32
    return %c0_i32, %arg1 : i32, i32
  }
  func.func @transform_4(%arg0: i32, %arg1: i32, %arg2: i32) -> (i32, i32) {
    %c0_i32 = arith.constant 0 : i32
    return %arg0, %arg1 : i32, i32
  }
  func.func @transform_5(%arg0: i32, %arg1: i32, %arg2: i32) -> (i32, i32) {
    %c0_i32 = arith.constant 0 : i32
    return %arg0, %arg1 : i32, i32
  }
}

module attributes {stable_mosaic.version = 11 : i64} {
  func.func @_matmul_affine_kernel(%arg0: i32, %arg1: i32, %arg2: i32, %arg3: memref<32x576xbf16, #tpu.memory_space<vmem>>, %arg4: memref<576x128xbf16, #tpu.memory_space<vmem>>, %arg5: memref<1x128xf32, #tpu.memory_space<vmem>>, %arg6: memref<1x128xf32, #tpu.memory_space<vmem>>, %arg7: memref<32x128xbf16, #tpu.memory_space<vmem>>, %arg8: memref<32x128xf32, #tpu.memory_space<vmem>>) attributes {dimension_semantics = [#tpu.dimension_semantics<parallel>, #tpu.dimension_semantics<parallel>, #tpu.dimension_semantics<arbitrary>], iteration_bounds = array<i64: 1, 1, 1>, scalar_prefetch = 0 : i64, scratch_operands = 1 : i64, tpu.core_type = #tpu.core_type<tc>, window_params = [{transform_indices = @transform_0, window_bounds = array<i64: 32, 576>}, {transform_indices = @transform_1, window_bounds = array<i64: 576, 128>}, {transform_indices = @transform_2, window_bounds = array<i64: 1, 128>}, {transform_indices = @transform_3, window_bounds = array<i64: 1, 128>}, {transform_indices = @transform_4, window_bounds = array<i64: 32, 128>}]} {
    %c0_i32 = arith.constant 0 : i32
    %0 = arith.cmpi eq, %arg2, %c0_i32 : i32
    %1 = arith.extui %0 : i1 to i32
    %c0_i32_0 = arith.constant 0 : i32
    %2 = arith.cmpi ne, %1, %c0_i32_0 : i32
    scf.if %2 {
      %cst_10 = arith.constant 0.000000e+00 : f32
      %12 = vector.broadcast %cst_10 : f32 to vector<32x128xf32>
      %c0_11 = arith.constant 0 : index
      %c0_12 = arith.constant 0 : index
      %13 = vector.load %arg8[%c0_11, %c0_12] : memref<32x128xf32, #tpu.memory_space<vmem>>, vector<32x128xf32>
      tpu.vector_store %arg8[%c0_11, %c0_12], %12 {strides = array<i32>} : memref<32x128xf32, #tpu.memory_space<vmem>>, vector<32x128xf32>,
    } else {
    }
    %c0 = arith.constant 0 : index
    %c0_1 = arith.constant 0 : index
    %3 = vector.load %arg8[%c0, %c0_1] : memref<32x128xf32, #tpu.memory_space<vmem>>, vector<32x128xf32>
    %c0_2 = arith.constant 0 : index
    %c0_3 = arith.constant 0 : index
    %4 = vector.load %arg3[%c0_2, %c0_3] : memref<32x576xbf16, #tpu.memory_space<vmem>>, vector<32x576xbf16>
    %c0_4 = arith.constant 0 : index
    %c0_5 = arith.constant 0 : index
    %5 = vector.load %arg4[%c0_4, %c0_5] : memref<576x128xbf16, #tpu.memory_space<vmem>>, vector<576x128xbf16>
    %cst = arith.constant dense<0.000000e+00> : vector<32x128xf32>
    %6 = tpu.matmul %4, %5, %cst {dimension_numbers = #tpu.dot_dimension_numbers<[1], [0], [0], [1], [0, 0, 1, 1], [], []>} : vector<32x576xbf16>, vector<576x128xbf16>, vector<32x128xf32> -> vector<32x128xf32>
    %7 = arith.addf %3, %6 : vector<32x128xf32>
    %c0_6 = arith.constant 0 : index
    %c0_7 = arith.constant 0 : index
    %8 = vector.load %arg8[%c0_6, %c0_7] : memref<32x128xf32, #tpu.memory_space<vmem>>, vector<32x128xf32>
    tpu.vector_store %arg8[%c0_6, %c0_7], %7 {strides = array<i32>} : memref<32x128xf32, #tpu.memory_space<vmem>>, vector<32x128xf32>,
    %c0_i32_8 = arith.constant 0 : i32
    %9 = arith.cmpi eq, %arg2, %c0_i32_8 : i32
    %10 = arith.extui %9 : i1 to i32
    %c0_i32_9 = arith.constant 0 : i32
    %11 = arith.cmpi ne, %10, %c0_i32_9 : i32
    scf.if %11 {
      %c0_10 = arith.constant 0 : index
      %c0_11 = arith.constant 0 : index
      %12 = vector.load %arg8[%c0_10, %c0_11] : memref<32x128xf32, #tpu.memory_space<vmem>>, vector<32x128xf32>
      %c0_12 = arith.constant 0 : index
      %c0_13 = arith.constant 0 : index
      %13 = vector.load %arg5[%c0_12, %c0_13] : memref<1x128xf32, #tpu.memory_space<vmem>>, vector<1x128xf32>
      %14 = vector.broadcast %13 : vector<1x128xf32> to vector<32x128xf32>
      %15 = arith.mulf %12, %14 : vector<32x128xf32>
      %c0_14 = arith.constant 0 : index
      %c0_15 = arith.constant 0 : index
      %16 = vector.load %arg6[%c0_14, %c0_15] : memref<1x128xf32, #tpu.memory_space<vmem>>, vector<1x128xf32>
      %17 = vector.broadcast %16 : vector<1x128xf32> to vector<32x128xf32>
      %18 = arith.addf %15, %17 : vector<32x128xf32>
      %cst_16 = arith.constant 0.000000e+00 : f32
      %19 = vector.broadcast %cst_16 : f32 to vector<32x128xf32>
      %20 = arith.maximumf %18, %19 : vector<32x128xf32>
      %21 = arith.truncf %20 : vector<32x128xf32> to vector<32x128xbf16>
      %c0_17 = arith.constant 0 : index
      %c0_18 = arith.constant 0 : index
      %22 = vector.load %arg7[%c0_17, %c0_18] : memref<32x128xbf16, #tpu.memory_space<vmem>>, vector<32x128xbf16>
      tpu.vector_store %arg7[%c0_17, %c0_18], %21 {strides = array<i32>} : memref<32x128xbf16, #tpu.memory_space<vmem>>, vector<32x128xbf16>,
    } else {
    }
    return
  }
  func.func @transform_0(%arg0: i32, %arg1: i32, %arg2: i32) -> (i32, i32) {
    %c0_i32 = arith.constant 0 : i32
    return %arg0, %arg2 : i32, i32
  }
  func.func @transform_1(%arg0: i32, %arg1: i32, %arg2: i32) -> (i32, i32) {
    %c0_i32 = arith.constant 0 : i32
    return %arg2, %arg1 : i32, i32
  }
  func.func @transform_2(%arg0: i32, %arg1: i32, %arg2: i32) -> (i32, i32) {
    %c0_i32 = arith.constant 0 : i32
    %c0_i32_0 = arith.constant 0 : i32
    return %c0_i32, %arg1 : i32, i32
  }
  func.func @transform_3(%arg0: i32, %arg1: i32, %arg2: i32) -> (i32, i32) {
    %c0_i32 = arith.constant 0 : i32
    %c0_i32_0 = arith.constant 0 : i32
    return %c0_i32, %arg1 : i32, i32
  }
  func.func @transform_4(%arg0: i32, %arg1: i32, %arg2: i32) -> (i32, i32) {
    %c0_i32 = arith.constant 0 : i32
    return %arg0, %arg1 : i32, i32
  }
}

module attributes {stable_mosaic.version = 11 : i64} {
  func.func @_matmul_affine_kernel(%arg0: i32, %arg1: i32, %arg2: i32, %arg3: memref<32x64xbf16, #tpu.memory_space<vmem>>, %arg4: memref<64x128xbf16, #tpu.memory_space<vmem>>, %arg5: memref<1x128xf32, #tpu.memory_space<vmem>>, %arg6: memref<1x128xf32, #tpu.memory_space<vmem>>, %arg7: memref<32x128xbf16, #tpu.memory_space<vmem>>, %arg8: memref<32x128xf32, #tpu.memory_space<vmem>>) attributes {dimension_semantics = [#tpu.dimension_semantics<parallel>, #tpu.dimension_semantics<parallel>, #tpu.dimension_semantics<arbitrary>], iteration_bounds = array<i64: 1, 1, 1>, scalar_prefetch = 0 : i64, scratch_operands = 1 : i64, tpu.core_type = #tpu.core_type<tc>, window_params = [{transform_indices = @transform_0, window_bounds = array<i64: 32, 64>}, {transform_indices = @transform_1, window_bounds = array<i64: 64, 128>}, {transform_indices = @transform_2, window_bounds = array<i64: 1, 128>}, {transform_indices = @transform_3, window_bounds = array<i64: 1, 128>}, {transform_indices = @transform_4, window_bounds = array<i64: 32, 128>}]} {
    %c0_i32 = arith.constant 0 : i32
    %0 = arith.cmpi eq, %arg2, %c0_i32 : i32
    %1 = arith.extui %0 : i1 to i32
    %c0_i32_0 = arith.constant 0 : i32
    %2 = arith.cmpi ne, %1, %c0_i32_0 : i32
    scf.if %2 {
      %cst_10 = arith.constant 0.000000e+00 : f32
      %12 = vector.broadcast %cst_10 : f32 to vector<32x128xf32>
      %c0_11 = arith.constant 0 : index
      %c0_12 = arith.constant 0 : index
      %13 = vector.load %arg8[%c0_11, %c0_12] : memref<32x128xf32, #tpu.memory_space<vmem>>, vector<32x128xf32>
      tpu.vector_store %arg8[%c0_11, %c0_12], %12 {strides = array<i32>} : memref<32x128xf32, #tpu.memory_space<vmem>>, vector<32x128xf32>,
    } else {
    }
    %c0 = arith.constant 0 : index
    %c0_1 = arith.constant 0 : index
    %3 = vector.load %arg8[%c0, %c0_1] : memref<32x128xf32, #tpu.memory_space<vmem>>, vector<32x128xf32>
    %c0_2 = arith.constant 0 : index
    %c0_3 = arith.constant 0 : index
    %4 = vector.load %arg3[%c0_2, %c0_3] : memref<32x64xbf16, #tpu.memory_space<vmem>>, vector<32x64xbf16>
    %c0_4 = arith.constant 0 : index
    %c0_5 = arith.constant 0 : index
    %5 = vector.load %arg4[%c0_4, %c0_5] : memref<64x128xbf16, #tpu.memory_space<vmem>>, vector<64x128xbf16>
    %cst = arith.constant dense<0.000000e+00> : vector<32x128xf32>
    %6 = tpu.matmul %4, %5, %cst {dimension_numbers = #tpu.dot_dimension_numbers<[1], [0], [0], [1], [0, 0, 1, 1], [], []>} : vector<32x64xbf16>, vector<64x128xbf16>, vector<32x128xf32> -> vector<32x128xf32>
    %7 = arith.addf %3, %6 : vector<32x128xf32>
    %c0_6 = arith.constant 0 : index
    %c0_7 = arith.constant 0 : index
    %8 = vector.load %arg8[%c0_6, %c0_7] : memref<32x128xf32, #tpu.memory_space<vmem>>, vector<32x128xf32>
    tpu.vector_store %arg8[%c0_6, %c0_7], %7 {strides = array<i32>} : memref<32x128xf32, #tpu.memory_space<vmem>>, vector<32x128xf32>,
    %c0_i32_8 = arith.constant 0 : i32
    %9 = arith.cmpi eq, %arg2, %c0_i32_8 : i32
    %10 = arith.extui %9 : i1 to i32
    %c0_i32_9 = arith.constant 0 : i32
    %11 = arith.cmpi ne, %10, %c0_i32_9 : i32
    scf.if %11 {
      %c0_10 = arith.constant 0 : index
      %c0_11 = arith.constant 0 : index
      %12 = vector.load %arg8[%c0_10, %c0_11] : memref<32x128xf32, #tpu.memory_space<vmem>>, vector<32x128xf32>
      %c0_12 = arith.constant 0 : index
      %c0_13 = arith.constant 0 : index
      %13 = vector.load %arg5[%c0_12, %c0_13] : memref<1x128xf32, #tpu.memory_space<vmem>>, vector<1x128xf32>
      %14 = vector.broadcast %13 : vector<1x128xf32> to vector<32x128xf32>
      %15 = arith.mulf %12, %14 : vector<32x128xf32>
      %c0_14 = arith.constant 0 : index
      %c0_15 = arith.constant 0 : index
      %16 = vector.load %arg6[%c0_14, %c0_15] : memref<1x128xf32, #tpu.memory_space<vmem>>, vector<1x128xf32>
      %17 = vector.broadcast %16 : vector<1x128xf32> to vector<32x128xf32>
      %18 = arith.addf %15, %17 : vector<32x128xf32>
      %19 = arith.truncf %18 : vector<32x128xf32> to vector<32x128xbf16>
      %c0_16 = arith.constant 0 : index
      %c0_17 = arith.constant 0 : index
      %20 = vector.load %arg7[%c0_16, %c0_17] : memref<32x128xbf16, #tpu.memory_space<vmem>>, vector<32x128xbf16>
      tpu.vector_store %arg7[%c0_16, %c0_17], %19 {strides = array<i32>} : memref<32x128xbf16, #tpu.memory_space<vmem>>, vector<32x128xbf16>,
    } else {
    }
    return
  }
  func.func @transform_0(%arg0: i32, %arg1: i32, %arg2: i32) -> (i32, i32) {
    %c0_i32 = arith.constant 0 : i32
    return %arg0, %arg2 : i32, i32
  }
  func.func @transform_1(%arg0: i32, %arg1: i32, %arg2: i32) -> (i32, i32) {
    %c0_i32 = arith.constant 0 : i32
    return %arg2, %arg1 : i32, i32
  }
  func.func @transform_2(%arg0: i32, %arg1: i32, %arg2: i32) -> (i32, i32) {
    %c0_i32 = arith.constant 0 : i32
    %c0_i32_0 = arith.constant 0 : i32
    return %c0_i32, %arg1 : i32, i32
  }
  func.func @transform_3(%arg0: i32, %arg1: i32, %arg2: i32) -> (i32, i32) {
    %c0_i32 = arith.constant 0 : i32
    %c0_i32_0 = arith.constant 0 : i32
    return %c0_i32, %arg1 : i32, i32
  }
  func.func @transform_4(%arg0: i32, %arg1: i32, %arg2: i32) -> (i32, i32) {
    %c0_i32 = arith.constant 0 : i32
    return %arg0, %arg1 : i32, i32
  }
}

module attributes {stable_mosaic.version = 11 : i64} {
  func.func @_matmul_affine_kernel(%arg0: i32, %arg1: i32, %arg2: i32, %arg3: memref<32x384xbf16, #tpu.memory_space<vmem>>, %arg4: memref<384x128xbf16, #tpu.memory_space<vmem>>, %arg5: memref<1x128xf32, #tpu.memory_space<vmem>>, %arg6: memref<1x128xf32, #tpu.memory_space<vmem>>, %arg7: memref<32x128xbf16, #tpu.memory_space<vmem>>, %arg8: memref<32x128xbf16, #tpu.memory_space<vmem>>, %arg9: memref<32x128xf32, #tpu.memory_space<vmem>>) attributes {dimension_semantics = [#tpu.dimension_semantics<parallel>, #tpu.dimension_semantics<parallel>, #tpu.dimension_semantics<arbitrary>], iteration_bounds = array<i64: 1, 1, 3>, scalar_prefetch = 0 : i64, scratch_operands = 1 : i64, tpu.core_type = #tpu.core_type<tc>, window_params = [{transform_indices = @transform_0, window_bounds = array<i64: 32, 384>}, {transform_indices = @transform_1, window_bounds = array<i64: 384, 128>}, {transform_indices = @transform_2, window_bounds = array<i64: 1, 128>}, {transform_indices = @transform_3, window_bounds = array<i64: 1, 128>}, {transform_indices = @transform_4, window_bounds = array<i64: 32, 128>}, {transform_indices = @transform_5, window_bounds = array<i64: 32, 128>}]} {
    %c0_i32 = arith.constant 0 : i32
    %0 = arith.cmpi eq, %arg2, %c0_i32 : i32
    %1 = arith.extui %0 : i1 to i32
    %c0_i32_0 = arith.constant 0 : i32
    %2 = arith.cmpi ne, %1, %c0_i32_0 : i32
    scf.if %2 {
      %cst_9 = arith.constant 0.000000e+00 : f32
      %12 = vector.broadcast %cst_9 : f32 to vector<32x128xf32>
      %c0_10 = arith.constant 0 : index
      %c0_11 = arith.constant 0 : index
      %13 = vector.load %arg9[%c0_10, %c0_11] : memref<32x128xf32, #tpu.memory_space<vmem>>, vector<32x128xf32>
      tpu.vector_store %arg9[%c0_10, %c0_11], %12 {strides = array<i32>} : memref<32x128xf32, #tpu.memory_space<vmem>>, vector<32x128xf32>,
    } else {
    }
    %c0 = arith.constant 0 : index
    %c0_1 = arith.constant 0 : index
    %3 = vector.load %arg9[%c0, %c0_1] : memref<32x128xf32, #tpu.memory_space<vmem>>, vector<32x128xf32>
    %c0_2 = arith.constant 0 : index
    %c0_3 = arith.constant 0 : index
    %4 = vector.load %arg3[%c0_2, %c0_3] : memref<32x384xbf16, #tpu.memory_space<vmem>>, vector<32x384xbf16>
    %c0_4 = arith.constant 0 : index
    %c0_5 = arith.constant 0 : index
    %5 = vector.load %arg4[%c0_4, %c0_5] : memref<384x128xbf16, #tpu.memory_space<vmem>>, vector<384x128xbf16>
    %cst = arith.constant dense<0.000000e+00> : vector<32x128xf32>
    %6 = tpu.matmul %4, %5, %cst {dimension_numbers = #tpu.dot_dimension_numbers<[1], [0], [0], [1], [0, 0, 1, 1], [], []>} : vector<32x384xbf16>, vector<384x128xbf16>, vector<32x128xf32> -> vector<32x128xf32>
    %7 = arith.addf %3, %6 : vector<32x128xf32>
    %c0_6 = arith.constant 0 : index
    %c0_7 = arith.constant 0 : index
    %8 = vector.load %arg9[%c0_6, %c0_7] : memref<32x128xf32, #tpu.memory_space<vmem>>, vector<32x128xf32>
    tpu.vector_store %arg9[%c0_6, %c0_7], %7 {strides = array<i32>} : memref<32x128xf32, #tpu.memory_space<vmem>>, vector<32x128xf32>,
    %c2_i32 = arith.constant 2 : i32
    %9 = arith.cmpi eq, %arg2, %c2_i32 : i32
    %10 = arith.extui %9 : i1 to i32
    %c0_i32_8 = arith.constant 0 : i32
    %11 = arith.cmpi ne, %10, %c0_i32_8 : i32
    scf.if %11 {
      %c0_9 = arith.constant 0 : index
      %c0_10 = arith.constant 0 : index
      %12 = vector.load %arg9[%c0_9, %c0_10] : memref<32x128xf32, #tpu.memory_space<vmem>>, vector<32x128xf32>
      %c0_11 = arith.constant 0 : index
      %c0_12 = arith.constant 0 : index
      %13 = vector.load %arg5[%c0_11, %c0_12] : memref<1x128xf32, #tpu.memory_space<vmem>>, vector<1x128xf32>
      %14 = vector.broadcast %13 : vector<1x128xf32> to vector<32x128xf32>
      %15 = arith.mulf %12, %14 : vector<32x128xf32>
      %c0_13 = arith.constant 0 : index
      %c0_14 = arith.constant 0 : index
      %16 = vector.load %arg6[%c0_13, %c0_14] : memref<1x128xf32, #tpu.memory_space<vmem>>, vector<1x128xf32>
      %17 = vector.broadcast %16 : vector<1x128xf32> to vector<32x128xf32>
      %18 = arith.addf %15, %17 : vector<32x128xf32>
      %c0_15 = arith.constant 0 : index
      %c0_16 = arith.constant 0 : index
      %19 = vector.load %arg7[%c0_15, %c0_16] : memref<32x128xbf16, #tpu.memory_space<vmem>>, vector<32x128xbf16>
      %20 = arith.extf %19 : vector<32x128xbf16> to vector<32x128xf32>
      %21 = arith.addf %18, %20 : vector<32x128xf32>
      %cst_17 = arith.constant 0.000000e+00 : f32
      %22 = vector.broadcast %cst_17 : f32 to vector<32x128xf32>
      %23 = arith.maximumf %21, %22 : vector<32x128xf32>
      %24 = arith.truncf %23 : vector<32x128xf32> to vector<32x128xbf16>
      %c0_18 = arith.constant 0 : index
      %c0_19 = arith.constant 0 : index
      %25 = vector.load %arg8[%c0_18, %c0_19] : memref<32x128xbf16, #tpu.memory_space<vmem>>, vector<32x128xbf16>
      tpu.vector_store %arg8[%c0_18, %c0_19], %24 {strides = array<i32>} : memref<32x128xbf16, #tpu.memory_space<vmem>>, vector<32x128xbf16>,
    } else {
    }
    return
  }
  func.func @transform_0(%arg0: i32, %arg1: i32, %arg2: i32) -> (i32, i32) {
    %c0_i32 = arith.constant 0 : i32
    return %arg0, %arg2 : i32, i32
  }
  func.func @transform_1(%arg0: i32, %arg1: i32, %arg2: i32) -> (i32, i32) {
    %c0_i32 = arith.constant 0 : i32
    return %arg2, %arg1 : i32, i32
  }
  func.func @transform_2(%arg0: i32, %arg1: i32, %arg2: i32) -> (i32, i32) {
    %c0_i32 = arith.constant 0 : i32
    %c0_i32_0 = arith.constant 0 : i32
    return %c0_i32, %arg1 : i32, i32
  }
  func.func @transform_3(%arg0: i32, %arg1: i32, %arg2: i32) -> (i32, i32) {
    %c0_i32 = arith.constant 0 : i32
    %c0_i32_0 = arith.constant 0 : i32
    return %c0_i32, %arg1 : i32, i32
  }
  func.func @transform_4(%arg0: i32, %arg1: i32, %arg2: i32) -> (i32, i32) {
    %c0_i32 = arith.constant 0 : i32
    return %arg0, %arg1 : i32, i32
  }
  func.func @transform_5(%arg0: i32, %arg1: i32, %arg2: i32) -> (i32, i32) {
    %c0_i32 = arith.constant 0 : i32
    return %arg0, %arg1 : i32, i32
  }
}

module attributes {stable_mosaic.version = 11 : i64} {
  func.func @_matmul_affine_kernel(%arg0: i32, %arg1: i32, %arg2: i32, %arg3: memref<32x384xbf16, #tpu.memory_space<vmem>>, %arg4: memref<384x128xbf16, #tpu.memory_space<vmem>>, %arg5: memref<1x128xf32, #tpu.memory_space<vmem>>, %arg6: memref<1x128xf32, #tpu.memory_space<vmem>>, %arg7: memref<32x128xbf16, #tpu.memory_space<vmem>>, %arg8: memref<32x128xf32, #tpu.memory_space<vmem>>) attributes {dimension_semantics = [#tpu.dimension_semantics<parallel>, #tpu.dimension_semantics<parallel>, #tpu.dimension_semantics<arbitrary>], iteration_bounds = array<i64: 1, 1, 3>, scalar_prefetch = 0 : i64, scratch_operands = 1 : i64, tpu.core_type = #tpu.core_type<tc>, window_params = [{transform_indices = @transform_0, window_bounds = array<i64: 32, 384>}, {transform_indices = @transform_1, window_bounds = array<i64: 384, 128>}, {transform_indices = @transform_2, window_bounds = array<i64: 1, 128>}, {transform_indices = @transform_3, window_bounds = array<i64: 1, 128>}, {transform_indices = @transform_4, window_bounds = array<i64: 32, 128>}]} {
    %c0_i32 = arith.constant 0 : i32
    %0 = arith.cmpi eq, %arg2, %c0_i32 : i32
    %1 = arith.extui %0 : i1 to i32
    %c0_i32_0 = arith.constant 0 : i32
    %2 = arith.cmpi ne, %1, %c0_i32_0 : i32
    scf.if %2 {
      %cst_9 = arith.constant 0.000000e+00 : f32
      %12 = vector.broadcast %cst_9 : f32 to vector<32x128xf32>
      %c0_10 = arith.constant 0 : index
      %c0_11 = arith.constant 0 : index
      %13 = vector.load %arg8[%c0_10, %c0_11] : memref<32x128xf32, #tpu.memory_space<vmem>>, vector<32x128xf32>
      tpu.vector_store %arg8[%c0_10, %c0_11], %12 {strides = array<i32>} : memref<32x128xf32, #tpu.memory_space<vmem>>, vector<32x128xf32>,
    } else {
    }
    %c0 = arith.constant 0 : index
    %c0_1 = arith.constant 0 : index
    %3 = vector.load %arg8[%c0, %c0_1] : memref<32x128xf32, #tpu.memory_space<vmem>>, vector<32x128xf32>
    %c0_2 = arith.constant 0 : index
    %c0_3 = arith.constant 0 : index
    %4 = vector.load %arg3[%c0_2, %c0_3] : memref<32x384xbf16, #tpu.memory_space<vmem>>, vector<32x384xbf16>
    %c0_4 = arith.constant 0 : index
    %c0_5 = arith.constant 0 : index
    %5 = vector.load %arg4[%c0_4, %c0_5] : memref<384x128xbf16, #tpu.memory_space<vmem>>, vector<384x128xbf16>
    %cst = arith.constant dense<0.000000e+00> : vector<32x128xf32>
    %6 = tpu.matmul %4, %5, %cst {dimension_numbers = #tpu.dot_dimension_numbers<[1], [0], [0], [1], [0, 0, 1, 1], [], []>} : vector<32x384xbf16>, vector<384x128xbf16>, vector<32x128xf32> -> vector<32x128xf32>
    %7 = arith.addf %3, %6 : vector<32x128xf32>
    %c0_6 = arith.constant 0 : index
    %c0_7 = arith.constant 0 : index
    %8 = vector.load %arg8[%c0_6, %c0_7] : memref<32x128xf32, #tpu.memory_space<vmem>>, vector<32x128xf32>
    tpu.vector_store %arg8[%c0_6, %c0_7], %7 {strides = array<i32>} : memref<32x128xf32, #tpu.memory_space<vmem>>, vector<32x128xf32>,
    %c2_i32 = arith.constant 2 : i32
    %9 = arith.cmpi eq, %arg2, %c2_i32 : i32
    %10 = arith.extui %9 : i1 to i32
    %c0_i32_8 = arith.constant 0 : i32
    %11 = arith.cmpi ne, %10, %c0_i32_8 : i32
    scf.if %11 {
      %c0_9 = arith.constant 0 : index
      %c0_10 = arith.constant 0 : index
      %12 = vector.load %arg8[%c0_9, %c0_10] : memref<32x128xf32, #tpu.memory_space<vmem>>, vector<32x128xf32>
      %c0_11 = arith.constant 0 : index
      %c0_12 = arith.constant 0 : index
      %13 = vector.load %arg5[%c0_11, %c0_12] : memref<1x128xf32, #tpu.memory_space<vmem>>, vector<1x128xf32>
      %14 = vector.broadcast %13 : vector<1x128xf32> to vector<32x128xf32>
      %15 = arith.mulf %12, %14 : vector<32x128xf32>
      %c0_13 = arith.constant 0 : index
      %c0_14 = arith.constant 0 : index
      %16 = vector.load %arg6[%c0_13, %c0_14] : memref<1x128xf32, #tpu.memory_space<vmem>>, vector<1x128xf32>
      %17 = vector.broadcast %16 : vector<1x128xf32> to vector<32x128xf32>
      %18 = arith.addf %15, %17 : vector<32x128xf32>
      %cst_15 = arith.constant 0.000000e+00 : f32
      %19 = vector.broadcast %cst_15 : f32 to vector<32x128xf32>
      %20 = arith.maximumf %18, %19 : vector<32x128xf32>
      %21 = arith.truncf %20 : vector<32x128xf32> to vector<32x128xbf16>
      %c0_16 = arith.constant 0 : index
      %c0_17 = arith.constant 0 : index
      %22 = vector.load %arg7[%c0_16, %c0_17] : memref<32x128xbf16, #tpu.memory_space<vmem>>, vector<32x128xbf16>
      tpu.vector_store %arg7[%c0_16, %c0_17], %21 {strides = array<i32>} : memref<32x128xbf16, #tpu.memory_space<vmem>>, vector<32x128xbf16>,
    } else {
    }
    return
  }
  func.func @transform_0(%arg0: i32, %arg1: i32, %arg2: i32) -> (i32, i32) {
    %c0_i32 = arith.constant 0 : i32
    return %arg0, %arg2 : i32, i32
  }
  func.func @transform_1(%arg0: i32, %arg1: i32, %arg2: i32) -> (i32, i32) {
    %c0_i32 = arith.constant 0 : i32
    return %arg2, %arg1 : i32, i32
  }
  func.func @transform_2(%arg0: i32, %arg1: i32, %arg2: i32) -> (i32, i32) {
    %c0_i32 = arith.constant 0 : i32
    %c0_i32_0 = arith.constant 0 : i32
    return %c0_i32, %arg1 : i32, i32
  }
  func.func @transform_3(%arg0: i32, %arg1: i32, %arg2: i32) -> (i32, i32) {
    %c0_i32 = arith.constant 0 : i32
    %c0_i32_0 = arith.constant 0 : i32
    return %c0_i32, %arg1 : i32, i32
  }
  func.func @transform_4(%arg0: i32, %arg1: i32, %arg2: i32) -> (i32, i32) {
    %c0_i32 = arith.constant 0 : i32
    return %arg0, %arg1 : i32, i32
  }
}

module attributes {stable_mosaic.version = 11 : i64} {
  func.func @_matmul_affine_kernel(%arg0: i32, %arg1: i32, %arg2: i32, %arg3: memref<8x384xbf16, #tpu.memory_space<vmem>>, %arg4: memref<384x256xbf16, #tpu.memory_space<vmem>>, %arg5: memref<1x256xf32, #tpu.memory_space<vmem>>, %arg6: memref<1x256xf32, #tpu.memory_space<vmem>>, %arg7: memref<8x256xbf16, #tpu.memory_space<vmem>>, %arg8: memref<8x256xf32, #tpu.memory_space<vmem>>) attributes {dimension_semantics = [#tpu.dimension_semantics<parallel>, #tpu.dimension_semantics<parallel>, #tpu.dimension_semantics<arbitrary>], iteration_bounds = array<i64: 1, 1, 3>, scalar_prefetch = 0 : i64, scratch_operands = 1 : i64, tpu.core_type = #tpu.core_type<tc>, window_params = [{transform_indices = @transform_0, window_bounds = array<i64: 8, 384>}, {transform_indices = @transform_1, window_bounds = array<i64: 384, 256>}, {transform_indices = @transform_2, window_bounds = array<i64: 1, 256>}, {transform_indices = @transform_3, window_bounds = array<i64: 1, 256>}, {transform_indices = @transform_4, window_bounds = array<i64: 8, 256>}]} {
    %c0_i32 = arith.constant 0 : i32
    %0 = arith.cmpi eq, %arg2, %c0_i32 : i32
    %1 = arith.extui %0 : i1 to i32
    %c0_i32_0 = arith.constant 0 : i32
    %2 = arith.cmpi ne, %1, %c0_i32_0 : i32
    scf.if %2 {
      %cst_9 = arith.constant 0.000000e+00 : f32
      %12 = vector.broadcast %cst_9 : f32 to vector<8x256xf32>
      %c0_10 = arith.constant 0 : index
      %c0_11 = arith.constant 0 : index
      %13 = vector.load %arg8[%c0_10, %c0_11] : memref<8x256xf32, #tpu.memory_space<vmem>>, vector<8x256xf32>
      tpu.vector_store %arg8[%c0_10, %c0_11], %12 {strides = array<i32>} : memref<8x256xf32, #tpu.memory_space<vmem>>, vector<8x256xf32>,
    } else {
    }
    %c0 = arith.constant 0 : index
    %c0_1 = arith.constant 0 : index
    %3 = vector.load %arg8[%c0, %c0_1] : memref<8x256xf32, #tpu.memory_space<vmem>>, vector<8x256xf32>
    %c0_2 = arith.constant 0 : index
    %c0_3 = arith.constant 0 : index
    %4 = vector.load %arg3[%c0_2, %c0_3] : memref<8x384xbf16, #tpu.memory_space<vmem>>, vector<8x384xbf16>
    %c0_4 = arith.constant 0 : index
    %c0_5 = arith.constant 0 : index
    %5 = vector.load %arg4[%c0_4, %c0_5] : memref<384x256xbf16, #tpu.memory_space<vmem>>, vector<384x256xbf16>
    %cst = arith.constant dense<0.000000e+00> : vector<8x256xf32>
    %6 = tpu.matmul %4, %5, %cst {dimension_numbers = #tpu.dot_dimension_numbers<[1], [0], [0], [1], [0, 0, 1, 1], [], []>} : vector<8x384xbf16>, vector<384x256xbf16>, vector<8x256xf32> -> vector<8x256xf32>
    %7 = arith.addf %3, %6 : vector<8x256xf32>
    %c0_6 = arith.constant 0 : index
    %c0_7 = arith.constant 0 : index
    %8 = vector.load %arg8[%c0_6, %c0_7] : memref<8x256xf32, #tpu.memory_space<vmem>>, vector<8x256xf32>
    tpu.vector_store %arg8[%c0_6, %c0_7], %7 {strides = array<i32>} : memref<8x256xf32, #tpu.memory_space<vmem>>, vector<8x256xf32>,
    %c2_i32 = arith.constant 2 : i32
    %9 = arith.cmpi eq, %arg2, %c2_i32 : i32
    %10 = arith.extui %9 : i1 to i32
    %c0_i32_8 = arith.constant 0 : i32
    %11 = arith.cmpi ne, %10, %c0_i32_8 : i32
    scf.if %11 {
      %c0_9 = arith.constant 0 : index
      %c0_10 = arith.constant 0 : index
      %12 = vector.load %arg8[%c0_9, %c0_10] : memref<8x256xf32, #tpu.memory_space<vmem>>, vector<8x256xf32>
      %c0_11 = arith.constant 0 : index
      %c0_12 = arith.constant 0 : index
      %13 = vector.load %arg5[%c0_11, %c0_12] : memref<1x256xf32, #tpu.memory_space<vmem>>, vector<1x256xf32>
      %14 = vector.broadcast %13 : vector<1x256xf32> to vector<8x256xf32>
      %15 = arith.mulf %12, %14 : vector<8x256xf32>
      %c0_13 = arith.constant 0 : index
      %c0_14 = arith.constant 0 : index
      %16 = vector.load %arg6[%c0_13, %c0_14] : memref<1x256xf32, #tpu.memory_space<vmem>>, vector<1x256xf32>
      %17 = vector.broadcast %16 : vector<1x256xf32> to vector<8x256xf32>
      %18 = arith.addf %15, %17 : vector<8x256xf32>
      %cst_15 = arith.constant 0.000000e+00 : f32
      %19 = vector.broadcast %cst_15 : f32 to vector<8x256xf32>
      %20 = arith.maximumf %18, %19 : vector<8x256xf32>
      %21 = arith.truncf %20 : vector<8x256xf32> to vector<8x256xbf16>
      %c0_16 = arith.constant 0 : index
      %c0_17 = arith.constant 0 : index
      %22 = vector.load %arg7[%c0_16, %c0_17] : memref<8x256xbf16, #tpu.memory_space<vmem>>, vector<8x256xbf16>
      tpu.vector_store %arg7[%c0_16, %c0_17], %21 {strides = array<i32>} : memref<8x256xbf16, #tpu.memory_space<vmem>>, vector<8x256xbf16>,
    } else {
    }
    return
  }
  func.func @transform_0(%arg0: i32, %arg1: i32, %arg2: i32) -> (i32, i32) {
    %c0_i32 = arith.constant 0 : i32
    return %arg0, %arg2 : i32, i32
  }
  func.func @transform_1(%arg0: i32, %arg1: i32, %arg2: i32) -> (i32, i32) {
    %c0_i32 = arith.constant 0 : i32
    return %arg2, %arg1 : i32, i32
  }
  func.func @transform_2(%arg0: i32, %arg1: i32, %arg2: i32) -> (i32, i32) {
    %c0_i32 = arith.constant 0 : i32
    %c0_i32_0 = arith.constant 0 : i32
    return %c0_i32, %arg1 : i32, i32
  }
  func.func @transform_3(%arg0: i32, %arg1: i32, %arg2: i32) -> (i32, i32) {
    %c0_i32 = arith.constant 0 : i32
    %c0_i32_0 = arith.constant 0 : i32
    return %c0_i32, %arg1 : i32, i32
  }
  func.func @transform_4(%arg0: i32, %arg1: i32, %arg2: i32) -> (i32, i32) {
    %c0_i32 = arith.constant 0 : i32
    return %arg0, %arg1 : i32, i32
  }
}

module attributes {stable_mosaic.version = 11 : i64} {
  func.func @_matmul_affine_kernel(%arg0: i32, %arg1: i32, %arg2: i32, %arg3: memref<8x384xbf16, #tpu.memory_space<vmem>>, %arg4: memref<384x256xbf16, #tpu.memory_space<vmem>>, %arg5: memref<1x256xf32, #tpu.memory_space<vmem>>, %arg6: memref<1x256xf32, #tpu.memory_space<vmem>>, %arg7: memref<8x256xbf16, #tpu.memory_space<vmem>>, %arg8: memref<8x256xf32, #tpu.memory_space<vmem>>) attributes {dimension_semantics = [#tpu.dimension_semantics<parallel>, #tpu.dimension_semantics<parallel>, #tpu.dimension_semantics<arbitrary>], iteration_bounds = array<i64: 1, 1, 6>, scalar_prefetch = 0 : i64, scratch_operands = 1 : i64, tpu.core_type = #tpu.core_type<tc>, window_params = [{transform_indices = @transform_0, window_bounds = array<i64: 8, 384>}, {transform_indices = @transform_1, window_bounds = array<i64: 384, 256>}, {transform_indices = @transform_2, window_bounds = array<i64: 1, 256>}, {transform_indices = @transform_3, window_bounds = array<i64: 1, 256>}, {transform_indices = @transform_4, window_bounds = array<i64: 8, 256>}]} {
    %c0_i32 = arith.constant 0 : i32
    %0 = arith.cmpi eq, %arg2, %c0_i32 : i32
    %1 = arith.extui %0 : i1 to i32
    %c0_i32_0 = arith.constant 0 : i32
    %2 = arith.cmpi ne, %1, %c0_i32_0 : i32
    scf.if %2 {
      %cst_9 = arith.constant 0.000000e+00 : f32
      %12 = vector.broadcast %cst_9 : f32 to vector<8x256xf32>
      %c0_10 = arith.constant 0 : index
      %c0_11 = arith.constant 0 : index
      %13 = vector.load %arg8[%c0_10, %c0_11] : memref<8x256xf32, #tpu.memory_space<vmem>>, vector<8x256xf32>
      tpu.vector_store %arg8[%c0_10, %c0_11], %12 {strides = array<i32>} : memref<8x256xf32, #tpu.memory_space<vmem>>, vector<8x256xf32>,
    } else {
    }
    %c0 = arith.constant 0 : index
    %c0_1 = arith.constant 0 : index
    %3 = vector.load %arg8[%c0, %c0_1] : memref<8x256xf32, #tpu.memory_space<vmem>>, vector<8x256xf32>
    %c0_2 = arith.constant 0 : index
    %c0_3 = arith.constant 0 : index
    %4 = vector.load %arg3[%c0_2, %c0_3] : memref<8x384xbf16, #tpu.memory_space<vmem>>, vector<8x384xbf16>
    %c0_4 = arith.constant 0 : index
    %c0_5 = arith.constant 0 : index
    %5 = vector.load %arg4[%c0_4, %c0_5] : memref<384x256xbf16, #tpu.memory_space<vmem>>, vector<384x256xbf16>
    %cst = arith.constant dense<0.000000e+00> : vector<8x256xf32>
    %6 = tpu.matmul %4, %5, %cst {dimension_numbers = #tpu.dot_dimension_numbers<[1], [0], [0], [1], [0, 0, 1, 1], [], []>} : vector<8x384xbf16>, vector<384x256xbf16>, vector<8x256xf32> -> vector<8x256xf32>
    %7 = arith.addf %3, %6 : vector<8x256xf32>
    %c0_6 = arith.constant 0 : index
    %c0_7 = arith.constant 0 : index
    %8 = vector.load %arg8[%c0_6, %c0_7] : memref<8x256xf32, #tpu.memory_space<vmem>>, vector<8x256xf32>
    tpu.vector_store %arg8[%c0_6, %c0_7], %7 {strides = array<i32>} : memref<8x256xf32, #tpu.memory_space<vmem>>, vector<8x256xf32>,
    %c5_i32 = arith.constant 5 : i32
    %9 = arith.cmpi eq, %arg2, %c5_i32 : i32
    %10 = arith.extui %9 : i1 to i32
    %c0_i32_8 = arith.constant 0 : i32
    %11 = arith.cmpi ne, %10, %c0_i32_8 : i32
    scf.if %11 {
      %c0_9 = arith.constant 0 : index
      %c0_10 = arith.constant 0 : index
      %12 = vector.load %arg8[%c0_9, %c0_10] : memref<8x256xf32, #tpu.memory_space<vmem>>, vector<8x256xf32>
      %c0_11 = arith.constant 0 : index
      %c0_12 = arith.constant 0 : index
      %13 = vector.load %arg5[%c0_11, %c0_12] : memref<1x256xf32, #tpu.memory_space<vmem>>, vector<1x256xf32>
      %14 = vector.broadcast %13 : vector<1x256xf32> to vector<8x256xf32>
      %15 = arith.mulf %12, %14 : vector<8x256xf32>
      %c0_13 = arith.constant 0 : index
      %c0_14 = arith.constant 0 : index
      %16 = vector.load %arg6[%c0_13, %c0_14] : memref<1x256xf32, #tpu.memory_space<vmem>>, vector<1x256xf32>
      %17 = vector.broadcast %16 : vector<1x256xf32> to vector<8x256xf32>
      %18 = arith.addf %15, %17 : vector<8x256xf32>
      %cst_15 = arith.constant 0.000000e+00 : f32
      %19 = vector.broadcast %cst_15 : f32 to vector<8x256xf32>
      %20 = arith.maximumf %18, %19 : vector<8x256xf32>
      %21 = arith.truncf %20 : vector<8x256xf32> to vector<8x256xbf16>
      %c0_16 = arith.constant 0 : index
      %c0_17 = arith.constant 0 : index
      %22 = vector.load %arg7[%c0_16, %c0_17] : memref<8x256xbf16, #tpu.memory_space<vmem>>, vector<8x256xbf16>
      tpu.vector_store %arg7[%c0_16, %c0_17], %21 {strides = array<i32>} : memref<8x256xbf16, #tpu.memory_space<vmem>>, vector<8x256xbf16>,
    } else {
    }
    return
  }
  func.func @transform_0(%arg0: i32, %arg1: i32, %arg2: i32) -> (i32, i32) {
    %c0_i32 = arith.constant 0 : i32
    return %arg0, %arg2 : i32, i32
  }
  func.func @transform_1(%arg0: i32, %arg1: i32, %arg2: i32) -> (i32, i32) {
    %c0_i32 = arith.constant 0 : i32
    return %arg2, %arg1 : i32, i32
  }
  func.func @transform_2(%arg0: i32, %arg1: i32, %arg2: i32) -> (i32, i32) {
    %c0_i32 = arith.constant 0 : i32
    %c0_i32_0 = arith.constant 0 : i32
    return %c0_i32, %arg1 : i32, i32
  }
  func.func @transform_3(%arg0: i32, %arg1: i32, %arg2: i32) -> (i32, i32) {
    %c0_i32 = arith.constant 0 : i32
    %c0_i32_0 = arith.constant 0 : i32
    return %c0_i32, %arg1 : i32, i32
  }
  func.func @transform_4(%arg0: i32, %arg1: i32, %arg2: i32) -> (i32, i32) {
    %c0_i32 = arith.constant 0 : i32
    return %arg0, %arg1 : i32, i32
  }
}

module attributes {stable_mosaic.version = 11 : i64} {
  func.func @_matmul_affine_kernel(%arg0: i32, %arg1: i32, %arg2: i32, %arg3: memref<8x128xbf16, #tpu.memory_space<vmem>>, %arg4: memref<128x256xbf16, #tpu.memory_space<vmem>>, %arg5: memref<1x256xf32, #tpu.memory_space<vmem>>, %arg6: memref<1x256xf32, #tpu.memory_space<vmem>>, %arg7: memref<8x256xbf16, #tpu.memory_space<vmem>>, %arg8: memref<8x256xf32, #tpu.memory_space<vmem>>) attributes {dimension_semantics = [#tpu.dimension_semantics<parallel>, #tpu.dimension_semantics<parallel>, #tpu.dimension_semantics<arbitrary>], iteration_bounds = array<i64: 1, 1, 1>, scalar_prefetch = 0 : i64, scratch_operands = 1 : i64, tpu.core_type = #tpu.core_type<tc>, window_params = [{transform_indices = @transform_0, window_bounds = array<i64: 8, 128>}, {transform_indices = @transform_1, window_bounds = array<i64: 128, 256>}, {transform_indices = @transform_2, window_bounds = array<i64: 1, 256>}, {transform_indices = @transform_3, window_bounds = array<i64: 1, 256>}, {transform_indices = @transform_4, window_bounds = array<i64: 8, 256>}]} {
    %c0_i32 = arith.constant 0 : i32
    %0 = arith.cmpi eq, %arg2, %c0_i32 : i32
    %1 = arith.extui %0 : i1 to i32
    %c0_i32_0 = arith.constant 0 : i32
    %2 = arith.cmpi ne, %1, %c0_i32_0 : i32
    scf.if %2 {
      %cst_10 = arith.constant 0.000000e+00 : f32
      %12 = vector.broadcast %cst_10 : f32 to vector<8x256xf32>
      %c0_11 = arith.constant 0 : index
      %c0_12 = arith.constant 0 : index
      %13 = vector.load %arg8[%c0_11, %c0_12] : memref<8x256xf32, #tpu.memory_space<vmem>>, vector<8x256xf32>
      tpu.vector_store %arg8[%c0_11, %c0_12], %12 {strides = array<i32>} : memref<8x256xf32, #tpu.memory_space<vmem>>, vector<8x256xf32>,
    } else {
    }
    %c0 = arith.constant 0 : index
    %c0_1 = arith.constant 0 : index
    %3 = vector.load %arg8[%c0, %c0_1] : memref<8x256xf32, #tpu.memory_space<vmem>>, vector<8x256xf32>
    %c0_2 = arith.constant 0 : index
    %c0_3 = arith.constant 0 : index
    %4 = vector.load %arg3[%c0_2, %c0_3] : memref<8x128xbf16, #tpu.memory_space<vmem>>, vector<8x128xbf16>
    %c0_4 = arith.constant 0 : index
    %c0_5 = arith.constant 0 : index
    %5 = vector.load %arg4[%c0_4, %c0_5] : memref<128x256xbf16, #tpu.memory_space<vmem>>, vector<128x256xbf16>
    %cst = arith.constant dense<0.000000e+00> : vector<8x256xf32>
    %6 = tpu.matmul %4, %5, %cst {dimension_numbers = #tpu.dot_dimension_numbers<[1], [0], [0], [1], [0, 0, 1, 1], [], []>} : vector<8x128xbf16>, vector<128x256xbf16>, vector<8x256xf32> -> vector<8x256xf32>
    %7 = arith.addf %3, %6 : vector<8x256xf32>
    %c0_6 = arith.constant 0 : index
    %c0_7 = arith.constant 0 : index
    %8 = vector.load %arg8[%c0_6, %c0_7] : memref<8x256xf32, #tpu.memory_space<vmem>>, vector<8x256xf32>
    tpu.vector_store %arg8[%c0_6, %c0_7], %7 {strides = array<i32>} : memref<8x256xf32, #tpu.memory_space<vmem>>, vector<8x256xf32>,
    %c0_i32_8 = arith.constant 0 : i32
    %9 = arith.cmpi eq, %arg2, %c0_i32_8 : i32
    %10 = arith.extui %9 : i1 to i32
    %c0_i32_9 = arith.constant 0 : i32
    %11 = arith.cmpi ne, %10, %c0_i32_9 : i32
    scf.if %11 {
      %c0_10 = arith.constant 0 : index
      %c0_11 = arith.constant 0 : index
      %12 = vector.load %arg8[%c0_10, %c0_11] : memref<8x256xf32, #tpu.memory_space<vmem>>, vector<8x256xf32>
      %c0_12 = arith.constant 0 : index
      %c0_13 = arith.constant 0 : index
      %13 = vector.load %arg5[%c0_12, %c0_13] : memref<1x256xf32, #tpu.memory_space<vmem>>, vector<1x256xf32>
      %14 = vector.broadcast %13 : vector<1x256xf32> to vector<8x256xf32>
      %15 = arith.mulf %12, %14 : vector<8x256xf32>
      %c0_14 = arith.constant 0 : index
      %c0_15 = arith.constant 0 : index
      %16 = vector.load %arg6[%c0_14, %c0_15] : memref<1x256xf32, #tpu.memory_space<vmem>>, vector<1x256xf32>
      %17 = vector.broadcast %16 : vector<1x256xf32> to vector<8x256xf32>
      %18 = arith.addf %15, %17 : vector<8x256xf32>
      %19 = arith.truncf %18 : vector<8x256xf32> to vector<8x256xbf16>
      %c0_16 = arith.constant 0 : index
      %c0_17 = arith.constant 0 : index
      %20 = vector.load %arg7[%c0_16, %c0_17] : memref<8x256xbf16, #tpu.memory_space<vmem>>, vector<8x256xbf16>
      tpu.vector_store %arg7[%c0_16, %c0_17], %19 {strides = array<i32>} : memref<8x256xbf16, #tpu.memory_space<vmem>>, vector<8x256xbf16>,
    } else {
    }
    return
  }
  func.func @transform_0(%arg0: i32, %arg1: i32, %arg2: i32) -> (i32, i32) {
    %c0_i32 = arith.constant 0 : i32
    return %arg0, %arg2 : i32, i32
  }
  func.func @transform_1(%arg0: i32, %arg1: i32, %arg2: i32) -> (i32, i32) {
    %c0_i32 = arith.constant 0 : i32
    return %arg2, %arg1 : i32, i32
  }
  func.func @transform_2(%arg0: i32, %arg1: i32, %arg2: i32) -> (i32, i32) {
    %c0_i32 = arith.constant 0 : i32
    %c0_i32_0 = arith.constant 0 : i32
    return %c0_i32, %arg1 : i32, i32
  }
  func.func @transform_3(%arg0: i32, %arg1: i32, %arg2: i32) -> (i32, i32) {
    %c0_i32 = arith.constant 0 : i32
    %c0_i32_0 = arith.constant 0 : i32
    return %c0_i32, %arg1 : i32, i32
  }
  func.func @transform_4(%arg0: i32, %arg1: i32, %arg2: i32) -> (i32, i32) {
    %c0_i32 = arith.constant 0 : i32
    return %arg0, %arg1 : i32, i32
  }
}

module attributes {stable_mosaic.version = 11 : i64} {
  func.func @_matmul_affine_kernel(%arg0: i32, %arg1: i32, %arg2: i32, %arg3: memref<8x384xbf16, #tpu.memory_space<vmem>>, %arg4: memref<384x256xbf16, #tpu.memory_space<vmem>>, %arg5: memref<1x256xf32, #tpu.memory_space<vmem>>, %arg6: memref<1x256xf32, #tpu.memory_space<vmem>>, %arg7: memref<8x256xbf16, #tpu.memory_space<vmem>>, %arg8: memref<8x256xbf16, #tpu.memory_space<vmem>>, %arg9: memref<8x256xf32, #tpu.memory_space<vmem>>) attributes {dimension_semantics = [#tpu.dimension_semantics<parallel>, #tpu.dimension_semantics<parallel>, #tpu.dimension_semantics<arbitrary>], iteration_bounds = array<i64: 1, 1, 6>, scalar_prefetch = 0 : i64, scratch_operands = 1 : i64, tpu.core_type = #tpu.core_type<tc>, window_params = [{transform_indices = @transform_0, window_bounds = array<i64: 8, 384>}, {transform_indices = @transform_1, window_bounds = array<i64: 384, 256>}, {transform_indices = @transform_2, window_bounds = array<i64: 1, 256>}, {transform_indices = @transform_3, window_bounds = array<i64: 1, 256>}, {transform_indices = @transform_4, window_bounds = array<i64: 8, 256>}, {transform_indices = @transform_5, window_bounds = array<i64: 8, 256>}]} {
    %c0_i32 = arith.constant 0 : i32
    %0 = arith.cmpi eq, %arg2, %c0_i32 : i32
    %1 = arith.extui %0 : i1 to i32
    %c0_i32_0 = arith.constant 0 : i32
    %2 = arith.cmpi ne, %1, %c0_i32_0 : i32
    scf.if %2 {
      %cst_9 = arith.constant 0.000000e+00 : f32
      %12 = vector.broadcast %cst_9 : f32 to vector<8x256xf32>
      %c0_10 = arith.constant 0 : index
      %c0_11 = arith.constant 0 : index
      %13 = vector.load %arg9[%c0_10, %c0_11] : memref<8x256xf32, #tpu.memory_space<vmem>>, vector<8x256xf32>
      tpu.vector_store %arg9[%c0_10, %c0_11], %12 {strides = array<i32>} : memref<8x256xf32, #tpu.memory_space<vmem>>, vector<8x256xf32>,
    } else {
    }
    %c0 = arith.constant 0 : index
    %c0_1 = arith.constant 0 : index
    %3 = vector.load %arg9[%c0, %c0_1] : memref<8x256xf32, #tpu.memory_space<vmem>>, vector<8x256xf32>
    %c0_2 = arith.constant 0 : index
    %c0_3 = arith.constant 0 : index
    %4 = vector.load %arg3[%c0_2, %c0_3] : memref<8x384xbf16, #tpu.memory_space<vmem>>, vector<8x384xbf16>
    %c0_4 = arith.constant 0 : index
    %c0_5 = arith.constant 0 : index
    %5 = vector.load %arg4[%c0_4, %c0_5] : memref<384x256xbf16, #tpu.memory_space<vmem>>, vector<384x256xbf16>
    %cst = arith.constant dense<0.000000e+00> : vector<8x256xf32>
    %6 = tpu.matmul %4, %5, %cst {dimension_numbers = #tpu.dot_dimension_numbers<[1], [0], [0], [1], [0, 0, 1, 1], [], []>} : vector<8x384xbf16>, vector<384x256xbf16>, vector<8x256xf32> -> vector<8x256xf32>
    %7 = arith.addf %3, %6 : vector<8x256xf32>
    %c0_6 = arith.constant 0 : index
    %c0_7 = arith.constant 0 : index
    %8 = vector.load %arg9[%c0_6, %c0_7] : memref<8x256xf32, #tpu.memory_space<vmem>>, vector<8x256xf32>
    tpu.vector_store %arg9[%c0_6, %c0_7], %7 {strides = array<i32>} : memref<8x256xf32, #tpu.memory_space<vmem>>, vector<8x256xf32>,
    %c5_i32 = arith.constant 5 : i32
    %9 = arith.cmpi eq, %arg2, %c5_i32 : i32
    %10 = arith.extui %9 : i1 to i32
    %c0_i32_8 = arith.constant 0 : i32
    %11 = arith.cmpi ne, %10, %c0_i32_8 : i32
    scf.if %11 {
      %c0_9 = arith.constant 0 : index
      %c0_10 = arith.constant 0 : index
      %12 = vector.load %arg9[%c0_9, %c0_10] : memref<8x256xf32, #tpu.memory_space<vmem>>, vector<8x256xf32>
      %c0_11 = arith.constant 0 : index
      %c0_12 = arith.constant 0 : index
      %13 = vector.load %arg5[%c0_11, %c0_12] : memref<1x256xf32, #tpu.memory_space<vmem>>, vector<1x256xf32>
      %14 = vector.broadcast %13 : vector<1x256xf32> to vector<8x256xf32>
      %15 = arith.mulf %12, %14 : vector<8x256xf32>
      %c0_13 = arith.constant 0 : index
      %c0_14 = arith.constant 0 : index
      %16 = vector.load %arg6[%c0_13, %c0_14] : memref<1x256xf32, #tpu.memory_space<vmem>>, vector<1x256xf32>
      %17 = vector.broadcast %16 : vector<1x256xf32> to vector<8x256xf32>
      %18 = arith.addf %15, %17 : vector<8x256xf32>
      %c0_15 = arith.constant 0 : index
      %c0_16 = arith.constant 0 : index
      %19 = vector.load %arg7[%c0_15, %c0_16] : memref<8x256xbf16, #tpu.memory_space<vmem>>, vector<8x256xbf16>
      %20 = arith.extf %19 : vector<8x256xbf16> to vector<8x256xf32>
      %21 = arith.addf %18, %20 : vector<8x256xf32>
      %cst_17 = arith.constant 0.000000e+00 : f32
      %22 = vector.broadcast %cst_17 : f32 to vector<8x256xf32>
      %23 = arith.maximumf %21, %22 : vector<8x256xf32>
      %24 = arith.truncf %23 : vector<8x256xf32> to vector<8x256xbf16>
      %c0_18 = arith.constant 0 : index
      %c0_19 = arith.constant 0 : index
      %25 = vector.load %arg8[%c0_18, %c0_19] : memref<8x256xbf16, #tpu.memory_space<vmem>>, vector<8x256xbf16>
      tpu.vector_store %arg8[%c0_18, %c0_19], %24 {strides = array<i32>} : memref<8x256xbf16, #tpu.memory_space<vmem>>, vector<8x256xbf16>,
    } else {
    }
    return
  }
  func.func @transform_0(%arg0: i32, %arg1: i32, %arg2: i32) -> (i32, i32) {
    %c0_i32 = arith.constant 0 : i32
    return %arg0, %arg2 : i32, i32
  }
  func.func @transform_1(%arg0: i32, %arg1: i32, %arg2: i32) -> (i32, i32) {
    %c0_i32 = arith.constant 0 : i32
    return %arg2, %arg1 : i32, i32
  }
  func.func @transform_2(%arg0: i32, %arg1: i32, %arg2: i32) -> (i32, i32) {
    %c0_i32 = arith.constant 0 : i32
    %c0_i32_0 = arith.constant 0 : i32
    return %c0_i32, %arg1 : i32, i32
  }
  func.func @transform_3(%arg0: i32, %arg1: i32, %arg2: i32) -> (i32, i32) {
    %c0_i32 = arith.constant 0 : i32
    %c0_i32_0 = arith.constant 0 : i32
    return %c0_i32, %arg1 : i32, i32
  }
  func.func @transform_4(%arg0: i32, %arg1: i32, %arg2: i32) -> (i32, i32) {
    %c0_i32 = arith.constant 0 : i32
    return %arg0, %arg1 : i32, i32
  }
  func.func @transform_5(%arg0: i32, %arg1: i32, %arg2: i32) -> (i32, i32) {
    %c0_i32 = arith.constant 0 : i32
    return %arg0, %arg1 : i32, i32
  }
}

module attributes {stable_mosaic.version = 11 : i64} {
  func.func @_matmul_affine_kernel(%arg0: i32, %arg1: i32, %arg2: i32, %arg3: memref<8x384xbf16, #tpu.memory_space<vmem>>, %arg4: memref<384x256xbf16, #tpu.memory_space<vmem>>, %arg5: memref<1x256xf32, #tpu.memory_space<vmem>>, %arg6: memref<1x256xf32, #tpu.memory_space<vmem>>, %arg7: memref<8x256xbf16, #tpu.memory_space<vmem>>, %arg8: memref<8x256xf32, #tpu.memory_space<vmem>>) attributes {dimension_semantics = [#tpu.dimension_semantics<parallel>, #tpu.dimension_semantics<parallel>, #tpu.dimension_semantics<arbitrary>], iteration_bounds = array<i64: 1, 2, 6>, scalar_prefetch = 0 : i64, scratch_operands = 1 : i64, tpu.core_type = #tpu.core_type<tc>, window_params = [{transform_indices = @transform_0, window_bounds = array<i64: 8, 384>}, {transform_indices = @transform_1, window_bounds = array<i64: 384, 256>}, {transform_indices = @transform_2, window_bounds = array<i64: 1, 256>}, {transform_indices = @transform_3, window_bounds = array<i64: 1, 256>}, {transform_indices = @transform_4, window_bounds = array<i64: 8, 256>}]} {
    %c0_i32 = arith.constant 0 : i32
    %0 = arith.cmpi eq, %arg2, %c0_i32 : i32
    %1 = arith.extui %0 : i1 to i32
    %c0_i32_0 = arith.constant 0 : i32
    %2 = arith.cmpi ne, %1, %c0_i32_0 : i32
    scf.if %2 {
      %cst_9 = arith.constant 0.000000e+00 : f32
      %12 = vector.broadcast %cst_9 : f32 to vector<8x256xf32>
      %c0_10 = arith.constant 0 : index
      %c0_11 = arith.constant 0 : index
      %13 = vector.load %arg8[%c0_10, %c0_11] : memref<8x256xf32, #tpu.memory_space<vmem>>, vector<8x256xf32>
      tpu.vector_store %arg8[%c0_10, %c0_11], %12 {strides = array<i32>} : memref<8x256xf32, #tpu.memory_space<vmem>>, vector<8x256xf32>,
    } else {
    }
    %c0 = arith.constant 0 : index
    %c0_1 = arith.constant 0 : index
    %3 = vector.load %arg8[%c0, %c0_1] : memref<8x256xf32, #tpu.memory_space<vmem>>, vector<8x256xf32>
    %c0_2 = arith.constant 0 : index
    %c0_3 = arith.constant 0 : index
    %4 = vector.load %arg3[%c0_2, %c0_3] : memref<8x384xbf16, #tpu.memory_space<vmem>>, vector<8x384xbf16>
    %c0_4 = arith.constant 0 : index
    %c0_5 = arith.constant 0 : index
    %5 = vector.load %arg4[%c0_4, %c0_5] : memref<384x256xbf16, #tpu.memory_space<vmem>>, vector<384x256xbf16>
    %cst = arith.constant dense<0.000000e+00> : vector<8x256xf32>
    %6 = tpu.matmul %4, %5, %cst {dimension_numbers = #tpu.dot_dimension_numbers<[1], [0], [0], [1], [0, 0, 1, 1], [], []>} : vector<8x384xbf16>, vector<384x256xbf16>, vector<8x256xf32> -> vector<8x256xf32>
    %7 = arith.addf %3, %6 : vector<8x256xf32>
    %c0_6 = arith.constant 0 : index
    %c0_7 = arith.constant 0 : index
    %8 = vector.load %arg8[%c0_6, %c0_7] : memref<8x256xf32, #tpu.memory_space<vmem>>, vector<8x256xf32>
    tpu.vector_store %arg8[%c0_6, %c0_7], %7 {strides = array<i32>} : memref<8x256xf32, #tpu.memory_space<vmem>>, vector<8x256xf32>,
    %c5_i32 = arith.constant 5 : i32
    %9 = arith.cmpi eq, %arg2, %c5_i32 : i32
    %10 = arith.extui %9 : i1 to i32
    %c0_i32_8 = arith.constant 0 : i32
    %11 = arith.cmpi ne, %10, %c0_i32_8 : i32
    scf.if %11 {
      %c0_9 = arith.constant 0 : index
      %c0_10 = arith.constant 0 : index
      %12 = vector.load %arg8[%c0_9, %c0_10] : memref<8x256xf32, #tpu.memory_space<vmem>>, vector<8x256xf32>
      %c0_11 = arith.constant 0 : index
      %c0_12 = arith.constant 0 : index
      %13 = vector.load %arg5[%c0_11, %c0_12] : memref<1x256xf32, #tpu.memory_space<vmem>>, vector<1x256xf32>
      %14 = vector.broadcast %13 : vector<1x256xf32> to vector<8x256xf32>
      %15 = arith.mulf %12, %14 : vector<8x256xf32>
      %c0_13 = arith.constant 0 : index
      %c0_14 = arith.constant 0 : index
      %16 = vector.load %arg6[%c0_13, %c0_14] : memref<1x256xf32, #tpu.memory_space<vmem>>, vector<1x256xf32>
      %17 = vector.broadcast %16 : vector<1x256xf32> to vector<8x256xf32>
      %18 = arith.addf %15, %17 : vector<8x256xf32>
      %cst_15 = arith.constant 0.000000e+00 : f32
      %19 = vector.broadcast %cst_15 : f32 to vector<8x256xf32>
      %20 = arith.maximumf %18, %19 : vector<8x256xf32>
      %21 = arith.truncf %20 : vector<8x256xf32> to vector<8x256xbf16>
      %c0_16 = arith.constant 0 : index
      %c0_17 = arith.constant 0 : index
      %22 = vector.load %arg7[%c0_16, %c0_17] : memref<8x256xbf16, #tpu.memory_space<vmem>>, vector<8x256xbf16>
      tpu.vector_store %arg7[%c0_16, %c0_17], %21 {strides = array<i32>} : memref<8x256xbf16, #tpu.memory_space<vmem>>, vector<8x256xbf16>,
    } else {
    }
    return
  }
  func.func @transform_0(%arg0: i32, %arg1: i32, %arg2: i32) -> (i32, i32) {
    %c0_i32 = arith.constant 0 : i32
    return %arg0, %arg2 : i32, i32
  }
  func.func @transform_1(%arg0: i32, %arg1: i32, %arg2: i32) -> (i32, i32) {
    %c0_i32 = arith.constant 0 : i32
    return %arg2, %arg1 : i32, i32
  }
  func.func @transform_2(%arg0: i32, %arg1: i32, %arg2: i32) -> (i32, i32) {
    %c0_i32 = arith.constant 0 : i32
    %c0_i32_0 = arith.constant 0 : i32
    return %c0_i32, %arg1 : i32, i32
  }
  func.func @transform_3(%arg0: i32, %arg1: i32, %arg2: i32) -> (i32, i32) {
    %c0_i32 = arith.constant 0 : i32
    %c0_i32_0 = arith.constant 0 : i32
    return %c0_i32, %arg1 : i32, i32
  }
  func.func @transform_4(%arg0: i32, %arg1: i32, %arg2: i32) -> (i32, i32) {
    %c0_i32 = arith.constant 0 : i32
    return %arg0, %arg1 : i32, i32
  }
}

module attributes {stable_mosaic.version = 11 : i64} {
  func.func @_matmul_affine_kernel(%arg0: i32, %arg1: i32, %arg2: i32, %arg3: memref<8x256xbf16, #tpu.memory_space<vmem>>, %arg4: memref<256x256xbf16, #tpu.memory_space<vmem>>, %arg5: memref<1x256xf32, #tpu.memory_space<vmem>>, %arg6: memref<1x256xf32, #tpu.memory_space<vmem>>, %arg7: memref<8x256xbf16, #tpu.memory_space<vmem>>, %arg8: memref<8x256xf32, #tpu.memory_space<vmem>>) attributes {dimension_semantics = [#tpu.dimension_semantics<parallel>, #tpu.dimension_semantics<parallel>, #tpu.dimension_semantics<arbitrary>], iteration_bounds = array<i64: 1, 2, 1>, scalar_prefetch = 0 : i64, scratch_operands = 1 : i64, tpu.core_type = #tpu.core_type<tc>, window_params = [{transform_indices = @transform_0, window_bounds = array<i64: 8, 256>}, {transform_indices = @transform_1, window_bounds = array<i64: 256, 256>}, {transform_indices = @transform_2, window_bounds = array<i64: 1, 256>}, {transform_indices = @transform_3, window_bounds = array<i64: 1, 256>}, {transform_indices = @transform_4, window_bounds = array<i64: 8, 256>}]} {
    %c0_i32 = arith.constant 0 : i32
    %0 = arith.cmpi eq, %arg2, %c0_i32 : i32
    %1 = arith.extui %0 : i1 to i32
    %c0_i32_0 = arith.constant 0 : i32
    %2 = arith.cmpi ne, %1, %c0_i32_0 : i32
    scf.if %2 {
      %cst_10 = arith.constant 0.000000e+00 : f32
      %12 = vector.broadcast %cst_10 : f32 to vector<8x256xf32>
      %c0_11 = arith.constant 0 : index
      %c0_12 = arith.constant 0 : index
      %13 = vector.load %arg8[%c0_11, %c0_12] : memref<8x256xf32, #tpu.memory_space<vmem>>, vector<8x256xf32>
      tpu.vector_store %arg8[%c0_11, %c0_12], %12 {strides = array<i32>} : memref<8x256xf32, #tpu.memory_space<vmem>>, vector<8x256xf32>,
    } else {
    }
    %c0 = arith.constant 0 : index
    %c0_1 = arith.constant 0 : index
    %3 = vector.load %arg8[%c0, %c0_1] : memref<8x256xf32, #tpu.memory_space<vmem>>, vector<8x256xf32>
    %c0_2 = arith.constant 0 : index
    %c0_3 = arith.constant 0 : index
    %4 = vector.load %arg3[%c0_2, %c0_3] : memref<8x256xbf16, #tpu.memory_space<vmem>>, vector<8x256xbf16>
    %c0_4 = arith.constant 0 : index
    %c0_5 = arith.constant 0 : index
    %5 = vector.load %arg4[%c0_4, %c0_5] : memref<256x256xbf16, #tpu.memory_space<vmem>>, vector<256x256xbf16>
    %cst = arith.constant dense<0.000000e+00> : vector<8x256xf32>
    %6 = tpu.matmul %4, %5, %cst {dimension_numbers = #tpu.dot_dimension_numbers<[1], [0], [0], [1], [0, 0, 1, 1], [], []>} : vector<8x256xbf16>, vector<256x256xbf16>, vector<8x256xf32> -> vector<8x256xf32>
    %7 = arith.addf %3, %6 : vector<8x256xf32>
    %c0_6 = arith.constant 0 : index
    %c0_7 = arith.constant 0 : index
    %8 = vector.load %arg8[%c0_6, %c0_7] : memref<8x256xf32, #tpu.memory_space<vmem>>, vector<8x256xf32>
    tpu.vector_store %arg8[%c0_6, %c0_7], %7 {strides = array<i32>} : memref<8x256xf32, #tpu.memory_space<vmem>>, vector<8x256xf32>,
    %c0_i32_8 = arith.constant 0 : i32
    %9 = arith.cmpi eq, %arg2, %c0_i32_8 : i32
    %10 = arith.extui %9 : i1 to i32
    %c0_i32_9 = arith.constant 0 : i32
    %11 = arith.cmpi ne, %10, %c0_i32_9 : i32
    scf.if %11 {
      %c0_10 = arith.constant 0 : index
      %c0_11 = arith.constant 0 : index
      %12 = vector.load %arg8[%c0_10, %c0_11] : memref<8x256xf32, #tpu.memory_space<vmem>>, vector<8x256xf32>
      %c0_12 = arith.constant 0 : index
      %c0_13 = arith.constant 0 : index
      %13 = vector.load %arg5[%c0_12, %c0_13] : memref<1x256xf32, #tpu.memory_space<vmem>>, vector<1x256xf32>
      %14 = vector.broadcast %13 : vector<1x256xf32> to vector<8x256xf32>
      %15 = arith.mulf %12, %14 : vector<8x256xf32>
      %c0_14 = arith.constant 0 : index
      %c0_15 = arith.constant 0 : index
      %16 = vector.load %arg6[%c0_14, %c0_15] : memref<1x256xf32, #tpu.memory_space<vmem>>, vector<1x256xf32>
      %17 = vector.broadcast %16 : vector<1x256xf32> to vector<8x256xf32>
      %18 = arith.addf %15, %17 : vector<8x256xf32>
      %19 = arith.truncf %18 : vector<8x256xf32> to vector<8x256xbf16>
      %c0_16 = arith.constant 0 : index
      %c0_17 = arith.constant 0 : index
      %20 = vector.load %arg7[%c0_16, %c0_17] : memref<8x256xbf16, #tpu.memory_space<vmem>>, vector<8x256xbf16>
      tpu.vector_store %arg7[%c0_16, %c0_17], %19 {strides = array<i32>} : memref<8x256xbf16, #tpu.memory_space<vmem>>, vector<8x256xbf16>,
    } else {
    }
    return
  }
  func.func @transform_0(%arg0: i32, %arg1: i32, %arg2: i32) -> (i32, i32) {
    %c0_i32 = arith.constant 0 : i32
    return %arg0, %arg2 : i32, i32
  }
  func.func @transform_1(%arg0: i32, %arg1: i32, %arg2: i32) -> (i32, i32) {
    %c0_i32 = arith.constant 0 : i32
    return %arg2, %arg1 : i32, i32
  }
  func.func @transform_2(%arg0: i32, %arg1: i32, %arg2: i32) -> (i32, i32) {
    %c0_i32 = arith.constant 0 : i32
    %c0_i32_0 = arith.constant 0 : i32
    return %c0_i32, %arg1 : i32, i32
  }
  func.func @transform_3(%arg0: i32, %arg1: i32, %arg2: i32) -> (i32, i32) {
    %c0_i32 = arith.constant 0 : i32
    %c0_i32_0 = arith.constant 0 : i32
    return %c0_i32, %arg1 : i32, i32
  }
  func.func @transform_4(%arg0: i32, %arg1: i32, %arg2: i32) -> (i32, i32) {
    %c0_i32 = arith.constant 0 : i32
    return %arg0, %arg1 : i32, i32
  }
}

module attributes {stable_mosaic.version = 11 : i64} {
  func.func @_matmul_affine_kernel(%arg0: i32, %arg1: i32, %arg2: i32, %arg3: memref<8x512xbf16, #tpu.memory_space<vmem>>, %arg4: memref<512x256xbf16, #tpu.memory_space<vmem>>, %arg5: memref<1x256xf32, #tpu.memory_space<vmem>>, %arg6: memref<1x256xf32, #tpu.memory_space<vmem>>, %arg7: memref<8x256xbf16, #tpu.memory_space<vmem>>, %arg8: memref<8x256xbf16, #tpu.memory_space<vmem>>, %arg9: memref<8x256xf32, #tpu.memory_space<vmem>>) attributes {dimension_semantics = [#tpu.dimension_semantics<parallel>, #tpu.dimension_semantics<parallel>, #tpu.dimension_semantics<arbitrary>], iteration_bounds = array<i64: 1, 2, 9>, scalar_prefetch = 0 : i64, scratch_operands = 1 : i64, tpu.core_type = #tpu.core_type<tc>, window_params = [{transform_indices = @transform_0, window_bounds = array<i64: 8, 512>}, {transform_indices = @transform_1, window_bounds = array<i64: 512, 256>}, {transform_indices = @transform_2, window_bounds = array<i64: 1, 256>}, {transform_indices = @transform_3, window_bounds = array<i64: 1, 256>}, {transform_indices = @transform_4, window_bounds = array<i64: 8, 256>}, {transform_indices = @transform_5, window_bounds = array<i64: 8, 256>}]} {
    %c0_i32 = arith.constant 0 : i32
    %0 = arith.cmpi eq, %arg2, %c0_i32 : i32
    %1 = arith.extui %0 : i1 to i32
    %c0_i32_0 = arith.constant 0 : i32
    %2 = arith.cmpi ne, %1, %c0_i32_0 : i32
    scf.if %2 {
      %cst_9 = arith.constant 0.000000e+00 : f32
      %12 = vector.broadcast %cst_9 : f32 to vector<8x256xf32>
      %c0_10 = arith.constant 0 : index
      %c0_11 = arith.constant 0 : index
      %13 = vector.load %arg9[%c0_10, %c0_11] : memref<8x256xf32, #tpu.memory_space<vmem>>, vector<8x256xf32>
      tpu.vector_store %arg9[%c0_10, %c0_11], %12 {strides = array<i32>} : memref<8x256xf32, #tpu.memory_space<vmem>>, vector<8x256xf32>,
    } else {
    }
    %c0 = arith.constant 0 : index
    %c0_1 = arith.constant 0 : index
    %3 = vector.load %arg9[%c0, %c0_1] : memref<8x256xf32, #tpu.memory_space<vmem>>, vector<8x256xf32>
    %c0_2 = arith.constant 0 : index
    %c0_3 = arith.constant 0 : index
    %4 = vector.load %arg3[%c0_2, %c0_3] : memref<8x512xbf16, #tpu.memory_space<vmem>>, vector<8x512xbf16>
    %c0_4 = arith.constant 0 : index
    %c0_5 = arith.constant 0 : index
    %5 = vector.load %arg4[%c0_4, %c0_5] : memref<512x256xbf16, #tpu.memory_space<vmem>>, vector<512x256xbf16>
    %cst = arith.constant dense<0.000000e+00> : vector<8x256xf32>
    %6 = tpu.matmul %4, %5, %cst {dimension_numbers = #tpu.dot_dimension_numbers<[1], [0], [0], [1], [0, 0, 1, 1], [], []>} : vector<8x512xbf16>, vector<512x256xbf16>, vector<8x256xf32> -> vector<8x256xf32>
    %7 = arith.addf %3, %6 : vector<8x256xf32>
    %c0_6 = arith.constant 0 : index
    %c0_7 = arith.constant 0 : index
    %8 = vector.load %arg9[%c0_6, %c0_7] : memref<8x256xf32, #tpu.memory_space<vmem>>, vector<8x256xf32>
    tpu.vector_store %arg9[%c0_6, %c0_7], %7 {strides = array<i32>} : memref<8x256xf32, #tpu.memory_space<vmem>>, vector<8x256xf32>,
    %c8_i32 = arith.constant 8 : i32
    %9 = arith.cmpi eq, %arg2, %c8_i32 : i32
    %10 = arith.extui %9 : i1 to i32
    %c0_i32_8 = arith.constant 0 : i32
    %11 = arith.cmpi ne, %10, %c0_i32_8 : i32
    scf.if %11 {
      %c0_9 = arith.constant 0 : index
      %c0_10 = arith.constant 0 : index
      %12 = vector.load %arg9[%c0_9, %c0_10] : memref<8x256xf32, #tpu.memory_space<vmem>>, vector<8x256xf32>
      %c0_11 = arith.constant 0 : index
      %c0_12 = arith.constant 0 : index
      %13 = vector.load %arg5[%c0_11, %c0_12] : memref<1x256xf32, #tpu.memory_space<vmem>>, vector<1x256xf32>
      %14 = vector.broadcast %13 : vector<1x256xf32> to vector<8x256xf32>
      %15 = arith.mulf %12, %14 : vector<8x256xf32>
      %c0_13 = arith.constant 0 : index
      %c0_14 = arith.constant 0 : index
      %16 = vector.load %arg6[%c0_13, %c0_14] : memref<1x256xf32, #tpu.memory_space<vmem>>, vector<1x256xf32>
      %17 = vector.broadcast %16 : vector<1x256xf32> to vector<8x256xf32>
      %18 = arith.addf %15, %17 : vector<8x256xf32>
      %c0_15 = arith.constant 0 : index
      %c0_16 = arith.constant 0 : index
      %19 = vector.load %arg7[%c0_15, %c0_16] : memref<8x256xbf16, #tpu.memory_space<vmem>>, vector<8x256xbf16>
      %20 = arith.extf %19 : vector<8x256xbf16> to vector<8x256xf32>
      %21 = arith.addf %18, %20 : vector<8x256xf32>
      %cst_17 = arith.constant 0.000000e+00 : f32
      %22 = vector.broadcast %cst_17 : f32 to vector<8x256xf32>
      %23 = arith.maximumf %21, %22 : vector<8x256xf32>
      %24 = arith.truncf %23 : vector<8x256xf32> to vector<8x256xbf16>
      %c0_18 = arith.constant 0 : index
      %c0_19 = arith.constant 0 : index
      %25 = vector.load %arg8[%c0_18, %c0_19] : memref<8x256xbf16, #tpu.memory_space<vmem>>, vector<8x256xbf16>
      tpu.vector_store %arg8[%c0_18, %c0_19], %24 {strides = array<i32>} : memref<8x256xbf16, #tpu.memory_space<vmem>>, vector<8x256xbf16>,
    } else {
    }
    return
  }
  func.func @transform_0(%arg0: i32, %arg1: i32, %arg2: i32) -> (i32, i32) {
    %c0_i32 = arith.constant 0 : i32
    return %arg0, %arg2 : i32, i32
  }
  func.func @transform_1(%arg0: i32, %arg1: i32, %arg2: i32) -> (i32, i32) {
    %c0_i32 = arith.constant 0 : i32
    return %arg2, %arg1 : i32, i32
  }
  func.func @transform_2(%arg0: i32, %arg1: i32, %arg2: i32) -> (i32, i32) {
    %c0_i32 = arith.constant 0 : i32
    %c0_i32_0 = arith.constant 0 : i32
    return %c0_i32, %arg1 : i32, i32
  }
  func.func @transform_3(%arg0: i32, %arg1: i32, %arg2: i32) -> (i32, i32) {
    %c0_i32 = arith.constant 0 : i32
    %c0_i32_0 = arith.constant 0 : i32
    return %c0_i32, %arg1 : i32, i32
  }
  func.func @transform_4(%arg0: i32, %arg1: i32, %arg2: i32) -> (i32, i32) {
    %c0_i32 = arith.constant 0 : i32
    return %arg0, %arg1 : i32, i32
  }
  func.func @transform_5(%arg0: i32, %arg1: i32, %arg2: i32) -> (i32, i32) {
    %c0_i32 = arith.constant 0 : i32
    return %arg0, %arg1 : i32, i32
  }
}

module attributes {stable_mosaic.version = 11 : i64} {
  func.func @_matmul_affine_kernel(%arg0: i32, %arg1: i32, %arg2: i32, %arg3: memref<8x512xbf16, #tpu.memory_space<vmem>>, %arg4: memref<512x256xbf16, #tpu.memory_space<vmem>>, %arg5: memref<1x256xf32, #tpu.memory_space<vmem>>, %arg6: memref<1x256xf32, #tpu.memory_space<vmem>>, %arg7: memref<8x256xbf16, #tpu.memory_space<vmem>>, %arg8: memref<8x256xf32, #tpu.memory_space<vmem>>) attributes {dimension_semantics = [#tpu.dimension_semantics<parallel>, #tpu.dimension_semantics<parallel>, #tpu.dimension_semantics<arbitrary>], iteration_bounds = array<i64: 1, 2, 9>, scalar_prefetch = 0 : i64, scratch_operands = 1 : i64, tpu.core_type = #tpu.core_type<tc>, window_params = [{transform_indices = @transform_0, window_bounds = array<i64: 8, 512>}, {transform_indices = @transform_1, window_bounds = array<i64: 512, 256>}, {transform_indices = @transform_2, window_bounds = array<i64: 1, 256>}, {transform_indices = @transform_3, window_bounds = array<i64: 1, 256>}, {transform_indices = @transform_4, window_bounds = array<i64: 8, 256>}]} {
    %c0_i32 = arith.constant 0 : i32
    %0 = arith.cmpi eq, %arg2, %c0_i32 : i32
    %1 = arith.extui %0 : i1 to i32
    %c0_i32_0 = arith.constant 0 : i32
    %2 = arith.cmpi ne, %1, %c0_i32_0 : i32
    scf.if %2 {
      %cst_9 = arith.constant 0.000000e+00 : f32
      %12 = vector.broadcast %cst_9 : f32 to vector<8x256xf32>
      %c0_10 = arith.constant 0 : index
      %c0_11 = arith.constant 0 : index
      %13 = vector.load %arg8[%c0_10, %c0_11] : memref<8x256xf32, #tpu.memory_space<vmem>>, vector<8x256xf32>
      tpu.vector_store %arg8[%c0_10, %c0_11], %12 {strides = array<i32>} : memref<8x256xf32, #tpu.memory_space<vmem>>, vector<8x256xf32>,
    } else {
    }
    %c0 = arith.constant 0 : index
    %c0_1 = arith.constant 0 : index
    %3 = vector.load %arg8[%c0, %c0_1] : memref<8x256xf32, #tpu.memory_space<vmem>>, vector<8x256xf32>
    %c0_2 = arith.constant 0 : index
    %c0_3 = arith.constant 0 : index
    %4 = vector.load %arg3[%c0_2, %c0_3] : memref<8x512xbf16, #tpu.memory_space<vmem>>, vector<8x512xbf16>
    %c0_4 = arith.constant 0 : index
    %c0_5 = arith.constant 0 : index
    %5 = vector.load %arg4[%c0_4, %c0_5] : memref<512x256xbf16, #tpu.memory_space<vmem>>, vector<512x256xbf16>
    %cst = arith.constant dense<0.000000e+00> : vector<8x256xf32>
    %6 = tpu.matmul %4, %5, %cst {dimension_numbers = #tpu.dot_dimension_numbers<[1], [0], [0], [1], [0, 0, 1, 1], [], []>} : vector<8x512xbf16>, vector<512x256xbf16>, vector<8x256xf32> -> vector<8x256xf32>
    %7 = arith.addf %3, %6 : vector<8x256xf32>
    %c0_6 = arith.constant 0 : index
    %c0_7 = arith.constant 0 : index
    %8 = vector.load %arg8[%c0_6, %c0_7] : memref<8x256xf32, #tpu.memory_space<vmem>>, vector<8x256xf32>
    tpu.vector_store %arg8[%c0_6, %c0_7], %7 {strides = array<i32>} : memref<8x256xf32, #tpu.memory_space<vmem>>, vector<8x256xf32>,
    %c8_i32 = arith.constant 8 : i32
    %9 = arith.cmpi eq, %arg2, %c8_i32 : i32
    %10 = arith.extui %9 : i1 to i32
    %c0_i32_8 = arith.constant 0 : i32
    %11 = arith.cmpi ne, %10, %c0_i32_8 : i32
    scf.if %11 {
      %c0_9 = arith.constant 0 : index
      %c0_10 = arith.constant 0 : index
      %12 = vector.load %arg8[%c0_9, %c0_10] : memref<8x256xf32, #tpu.memory_space<vmem>>, vector<8x256xf32>
      %c0_11 = arith.constant 0 : index
      %c0_12 = arith.constant 0 : index
      %13 = vector.load %arg5[%c0_11, %c0_12] : memref<1x256xf32, #tpu.memory_space<vmem>>, vector<1x256xf32>
      %14 = vector.broadcast %13 : vector<1x256xf32> to vector<8x256xf32>
      %15 = arith.mulf %12, %14 : vector<8x256xf32>
      %c0_13 = arith.constant 0 : index
      %c0_14 = arith.constant 0 : index
      %16 = vector.load %arg6[%c0_13, %c0_14] : memref<1x256xf32, #tpu.memory_space<vmem>>, vector<1x256xf32>
      %17 = vector.broadcast %16 : vector<1x256xf32> to vector<8x256xf32>
      %18 = arith.addf %15, %17 : vector<8x256xf32>
      %cst_15 = arith.constant 0.000000e+00 : f32
      %19 = vector.broadcast %cst_15 : f32 to vector<8x256xf32>
      %20 = arith.maximumf %18, %19 : vector<8x256xf32>
      %21 = arith.truncf %20 : vector<8x256xf32> to vector<8x256xbf16>
      %c0_16 = arith.constant 0 : index
      %c0_17 = arith.constant 0 : index
      %22 = vector.load %arg7[%c0_16, %c0_17] : memref<8x256xbf16, #tpu.memory_space<vmem>>, vector<8x256xbf16>
      tpu.vector_store %arg7[%c0_16, %c0_17], %21 {strides = array<i32>} : memref<8x256xbf16, #tpu.memory_space<vmem>>, vector<8x256xbf16>,
    } else {
    }
    return
  }
  func.func @transform_0(%arg0: i32, %arg1: i32, %arg2: i32) -> (i32, i32) {
    %c0_i32 = arith.constant 0 : i32
    return %arg0, %arg2 : i32, i32
  }
  func.func @transform_1(%arg0: i32, %arg1: i32, %arg2: i32) -> (i32, i32) {
    %c0_i32 = arith.constant 0 : i32
    return %arg2, %arg1 : i32, i32
  }
  func.func @transform_2(%arg0: i32, %arg1: i32, %arg2: i32) -> (i32, i32) {
    %c0_i32 = arith.constant 0 : i32
    %c0_i32_0 = arith.constant 0 : i32
    return %c0_i32, %arg1 : i32, i32
  }
  func.func @transform_3(%arg0: i32, %arg1: i32, %arg2: i32) -> (i32, i32) {
    %c0_i32 = arith.constant 0 : i32
    %c0_i32_0 = arith.constant 0 : i32
    return %c0_i32, %arg1 : i32, i32
  }
  func.func @transform_4(%arg0: i32, %arg1: i32, %arg2: i32) -> (i32, i32) {
    %c0_i32 = arith.constant 0 : i32
    return %arg0, %arg1 : i32, i32
  }
}

module attributes {stable_mosaic.version = 11 : i64} {
  func.func @_matmul_affine_kernel(%arg0: i32, %arg1: i32, %arg2: i32, %arg3: memref<8x512xbf16, #tpu.memory_space<vmem>>, %arg4: memref<512x256xbf16, #tpu.memory_space<vmem>>, %arg5: memref<1x256xf32, #tpu.memory_space<vmem>>, %arg6: memref<1x256xf32, #tpu.memory_space<vmem>>, %arg7: memref<8x256xbf16, #tpu.memory_space<vmem>>, %arg8: memref<8x256xf32, #tpu.memory_space<vmem>>) attributes {dimension_semantics = [#tpu.dimension_semantics<parallel>, #tpu.dimension_semantics<parallel>, #tpu.dimension_semantics<arbitrary>], iteration_bounds = array<i64: 1, 4, 1>, scalar_prefetch = 0 : i64, scratch_operands = 1 : i64, tpu.core_type = #tpu.core_type<tc>, window_params = [{transform_indices = @transform_0, window_bounds = array<i64: 8, 512>}, {transform_indices = @transform_1, window_bounds = array<i64: 512, 256>}, {transform_indices = @transform_2, window_bounds = array<i64: 1, 256>}, {transform_indices = @transform_3, window_bounds = array<i64: 1, 256>}, {transform_indices = @transform_4, window_bounds = array<i64: 8, 256>}]} {
    %c0_i32 = arith.constant 0 : i32
    %0 = arith.cmpi eq, %arg2, %c0_i32 : i32
    %1 = arith.extui %0 : i1 to i32
    %c0_i32_0 = arith.constant 0 : i32
    %2 = arith.cmpi ne, %1, %c0_i32_0 : i32
    scf.if %2 {
      %cst_10 = arith.constant 0.000000e+00 : f32
      %12 = vector.broadcast %cst_10 : f32 to vector<8x256xf32>
      %c0_11 = arith.constant 0 : index
      %c0_12 = arith.constant 0 : index
      %13 = vector.load %arg8[%c0_11, %c0_12] : memref<8x256xf32, #tpu.memory_space<vmem>>, vector<8x256xf32>
      tpu.vector_store %arg8[%c0_11, %c0_12], %12 {strides = array<i32>} : memref<8x256xf32, #tpu.memory_space<vmem>>, vector<8x256xf32>,
    } else {
    }
    %c0 = arith.constant 0 : index
    %c0_1 = arith.constant 0 : index
    %3 = vector.load %arg8[%c0, %c0_1] : memref<8x256xf32, #tpu.memory_space<vmem>>, vector<8x256xf32>
    %c0_2 = arith.constant 0 : index
    %c0_3 = arith.constant 0 : index
    %4 = vector.load %arg3[%c0_2, %c0_3] : memref<8x512xbf16, #tpu.memory_space<vmem>>, vector<8x512xbf16>
    %c0_4 = arith.constant 0 : index
    %c0_5 = arith.constant 0 : index
    %5 = vector.load %arg4[%c0_4, %c0_5] : memref<512x256xbf16, #tpu.memory_space<vmem>>, vector<512x256xbf16>
    %cst = arith.constant dense<0.000000e+00> : vector<8x256xf32>
    %6 = tpu.matmul %4, %5, %cst {dimension_numbers = #tpu.dot_dimension_numbers<[1], [0], [0], [1], [0, 0, 1, 1], [], []>} : vector<8x512xbf16>, vector<512x256xbf16>, vector<8x256xf32> -> vector<8x256xf32>
    %7 = arith.addf %3, %6 : vector<8x256xf32>
    %c0_6 = arith.constant 0 : index
    %c0_7 = arith.constant 0 : index
    %8 = vector.load %arg8[%c0_6, %c0_7] : memref<8x256xf32, #tpu.memory_space<vmem>>, vector<8x256xf32>
    tpu.vector_store %arg8[%c0_6, %c0_7], %7 {strides = array<i32>} : memref<8x256xf32, #tpu.memory_space<vmem>>, vector<8x256xf32>,
    %c0_i32_8 = arith.constant 0 : i32
    %9 = arith.cmpi eq, %arg2, %c0_i32_8 : i32
    %10 = arith.extui %9 : i1 to i32
    %c0_i32_9 = arith.constant 0 : i32
    %11 = arith.cmpi ne, %10, %c0_i32_9 : i32
    scf.if %11 {
      %c0_10 = arith.constant 0 : index
      %c0_11 = arith.constant 0 : index
      %12 = vector.load %arg8[%c0_10, %c0_11] : memref<8x256xf32, #tpu.memory_space<vmem>>, vector<8x256xf32>
      %c0_12 = arith.constant 0 : index
      %c0_13 = arith.constant 0 : index
      %13 = vector.load %arg5[%c0_12, %c0_13] : memref<1x256xf32, #tpu.memory_space<vmem>>, vector<1x256xf32>
      %14 = vector.broadcast %13 : vector<1x256xf32> to vector<8x256xf32>
      %15 = arith.mulf %12, %14 : vector<8x256xf32>
      %c0_14 = arith.constant 0 : index
      %c0_15 = arith.constant 0 : index
      %16 = vector.load %arg6[%c0_14, %c0_15] : memref<1x256xf32, #tpu.memory_space<vmem>>, vector<1x256xf32>
      %17 = vector.broadcast %16 : vector<1x256xf32> to vector<8x256xf32>
      %18 = arith.addf %15, %17 : vector<8x256xf32>
      %19 = arith.truncf %18 : vector<8x256xf32> to vector<8x256xbf16>
      %c0_16 = arith.constant 0 : index
      %c0_17 = arith.constant 0 : index
      %20 = vector.load %arg7[%c0_16, %c0_17] : memref<8x256xbf16, #tpu.memory_space<vmem>>, vector<8x256xbf16>
      tpu.vector_store %arg7[%c0_16, %c0_17], %19 {strides = array<i32>} : memref<8x256xbf16, #tpu.memory_space<vmem>>, vector<8x256xbf16>,
    } else {
    }
    return
  }
  func.func @transform_0(%arg0: i32, %arg1: i32, %arg2: i32) -> (i32, i32) {
    %c0_i32 = arith.constant 0 : i32
    return %arg0, %arg2 : i32, i32
  }
  func.func @transform_1(%arg0: i32, %arg1: i32, %arg2: i32) -> (i32, i32) {
    %c0_i32 = arith.constant 0 : i32
    return %arg2, %arg1 : i32, i32
  }
  func.func @transform_2(%arg0: i32, %arg1: i32, %arg2: i32) -> (i32, i32) {
    %c0_i32 = arith.constant 0 : i32
    %c0_i32_0 = arith.constant 0 : i32
    return %c0_i32, %arg1 : i32, i32
  }
  func.func @transform_3(%arg0: i32, %arg1: i32, %arg2: i32) -> (i32, i32) {
    %c0_i32 = arith.constant 0 : i32
    %c0_i32_0 = arith.constant 0 : i32
    return %c0_i32, %arg1 : i32, i32
  }
  func.func @transform_4(%arg0: i32, %arg1: i32, %arg2: i32) -> (i32, i32) {
    %c0_i32 = arith.constant 0 : i32
    return %arg0, %arg1 : i32, i32
  }
}

module attributes {stable_mosaic.version = 11 : i64} {
  func.func @_matmul_affine_kernel(%arg0: i32, %arg1: i32, %arg2: i32, %arg3: memref<8x512xbf16, #tpu.memory_space<vmem>>, %arg4: memref<512x128xbf16, #tpu.memory_space<vmem>>, %arg5: memref<1x128xf32, #tpu.memory_space<vmem>>, %arg6: memref<1x128xf32, #tpu.memory_space<vmem>>, %arg7: memref<8x128xf32, #tpu.memory_space<vmem>>, %arg8: memref<8x128xf32, #tpu.memory_space<vmem>>) attributes {dimension_semantics = [#tpu.dimension_semantics<parallel>, #tpu.dimension_semantics<parallel>, #tpu.dimension_semantics<arbitrary>], iteration_bounds = array<i64: 1, 1, 2>, scalar_prefetch = 0 : i64, scratch_operands = 1 : i64, tpu.core_type = #tpu.core_type<tc>, window_params = [{transform_indices = @transform_0, window_bounds = array<i64: 8, 512>}, {transform_indices = @transform_1, window_bounds = array<i64: 512, 128>}, {transform_indices = @transform_2, window_bounds = array<i64: 1, 128>}, {transform_indices = @transform_3, window_bounds = array<i64: 1, 128>}, {transform_indices = @transform_4, window_bounds = array<i64: 8, 128>}]} {
    %c0_i32 = arith.constant 0 : i32
    %0 = arith.cmpi eq, %arg2, %c0_i32 : i32
    %1 = arith.extui %0 : i1 to i32
    %c0_i32_0 = arith.constant 0 : i32
    %2 = arith.cmpi ne, %1, %c0_i32_0 : i32
    scf.if %2 {
      %cst_9 = arith.constant 0.000000e+00 : f32
      %12 = vector.broadcast %cst_9 : f32 to vector<8x128xf32>
      %c0_10 = arith.constant 0 : index
      %c0_11 = arith.constant 0 : index
      %13 = vector.load %arg8[%c0_10, %c0_11] : memref<8x128xf32, #tpu.memory_space<vmem>>, vector<8x128xf32>
      tpu.vector_store %arg8[%c0_10, %c0_11], %12 {strides = array<i32>} : memref<8x128xf32, #tpu.memory_space<vmem>>, vector<8x128xf32>,
    } else {
    }
    %c0 = arith.constant 0 : index
    %c0_1 = arith.constant 0 : index
    %3 = vector.load %arg8[%c0, %c0_1] : memref<8x128xf32, #tpu.memory_space<vmem>>, vector<8x128xf32>
    %c0_2 = arith.constant 0 : index
    %c0_3 = arith.constant 0 : index
    %4 = vector.load %arg3[%c0_2, %c0_3] : memref<8x512xbf16, #tpu.memory_space<vmem>>, vector<8x512xbf16>
    %c0_4 = arith.constant 0 : index
    %c0_5 = arith.constant 0 : index
    %5 = vector.load %arg4[%c0_4, %c0_5] : memref<512x128xbf16, #tpu.memory_space<vmem>>, vector<512x128xbf16>
    %cst = arith.constant dense<0.000000e+00> : vector<8x128xf32>
    %6 = tpu.matmul %4, %5, %cst {dimension_numbers = #tpu.dot_dimension_numbers<[1], [0], [0], [1], [0, 0, 1, 1], [], []>} : vector<8x512xbf16>, vector<512x128xbf16>, vector<8x128xf32> -> vector<8x128xf32>
    %7 = arith.addf %3, %6 : vector<8x128xf32>
    %c0_6 = arith.constant 0 : index
    %c0_7 = arith.constant 0 : index
    %8 = vector.load %arg8[%c0_6, %c0_7] : memref<8x128xf32, #tpu.memory_space<vmem>>, vector<8x128xf32>
    tpu.vector_store %arg8[%c0_6, %c0_7], %7 {strides = array<i32>} : memref<8x128xf32, #tpu.memory_space<vmem>>, vector<8x128xf32>,
    %c1_i32 = arith.constant 1 : i32
    %9 = arith.cmpi eq, %arg2, %c1_i32 : i32
    %10 = arith.extui %9 : i1 to i32
    %c0_i32_8 = arith.constant 0 : i32
    %11 = arith.cmpi ne, %10, %c0_i32_8 : i32
    scf.if %11 {
      %c0_9 = arith.constant 0 : index
      %c0_10 = arith.constant 0 : index
      %12 = vector.load %arg8[%c0_9, %c0_10] : memref<8x128xf32, #tpu.memory_space<vmem>>, vector<8x128xf32>
      %c0_11 = arith.constant 0 : index
      %c0_12 = arith.constant 0 : index
      %13 = vector.load %arg5[%c0_11, %c0_12] : memref<1x128xf32, #tpu.memory_space<vmem>>, vector<1x128xf32>
      %14 = vector.broadcast %13 : vector<1x128xf32> to vector<8x128xf32>
      %15 = arith.mulf %12, %14 : vector<8x128xf32>
      %c0_13 = arith.constant 0 : index
      %c0_14 = arith.constant 0 : index
      %16 = vector.load %arg6[%c0_13, %c0_14] : memref<1x128xf32, #tpu.memory_space<vmem>>, vector<1x128xf32>
      %17 = vector.broadcast %16 : vector<1x128xf32> to vector<8x128xf32>
      %18 = arith.addf %15, %17 : vector<8x128xf32>
      %c0_15 = arith.constant 0 : index
      %c0_16 = arith.constant 0 : index
      %19 = vector.load %arg7[%c0_15, %c0_16] : memref<8x128xf32, #tpu.memory_space<vmem>>, vector<8x128xf32>
      tpu.vector_store %arg7[%c0_15, %c0_16], %18 {strides = array<i32>} : memref<8x128xf32, #tpu.memory_space<vmem>>, vector<8x128xf32>,
    } else {
    }
    return
  }
  func.func @transform_0(%arg0: i32, %arg1: i32, %arg2: i32) -> (i32, i32) {
    %c0_i32 = arith.constant 0 : i32
    return %arg0, %arg2 : i32, i32
  }
  func.func @transform_1(%arg0: i32, %arg1: i32, %arg2: i32) -> (i32, i32) {
    %c0_i32 = arith.constant 0 : i32
    return %arg2, %arg1 : i32, i32
  }
  func.func @transform_2(%arg0: i32, %arg1: i32, %arg2: i32) -> (i32, i32) {
    %c0_i32 = arith.constant 0 : i32
    %c0_i32_0 = arith.constant 0 : i32
    return %c0_i32, %arg1 : i32, i32
  }
  func.func @transform_3(%arg0: i32, %arg1: i32, %arg2: i32) -> (i32, i32) {
    %c0_i32 = arith.constant 0 : i32
    %c0_i32_0 = arith.constant 0 : i32
    return %c0_i32, %arg1 : i32, i32
  }
  func.func @transform_4(%arg0: i32, %arg1: i32, %arg2: i32) -> (i32, i32) {
    %c0_i32 = arith.constant 0 : i32
    return %arg0, %arg1 : i32, i32
  }
}

</mosaic_0001>

<bundles_post_ra>
// kernel: resnet18_forward.24
= control target key start
LH: loop header
LB: loop body
LE: loop exit
PB: predicated region body
PF: predicated region fallthrough
CT: control target
= control target key end

     0   :  { %vm153_vm0 = vcmask 519168   ;;  %s1385_s0 = inlined_call_operand.vmem [shape: bf16[9,128,64], index: 0, kind: input, shape index: {}]   ;;  %s1386_s1 = inlined_call_operand.vmem [shape: bf16[128,64], index: 1, kind: output, shape index: {}]  }
   0x1   :  { %v9_v0 = vld [vmem:[%s1385_s0] sm:$0xf]  ;;  %v10_v12 = vld [vmem:[%s1385_s0 + $0x4] sm:$0xf]  ;;  %v11_v33 = vld [vmem:[%s1385_s0 + $0x8] sm:$0xf] }
   0x2   :  { %v25_v1 = vld [vmem:[%s1385_s0 + $0x40] sm:$0xf]  ;;  %v156_v4 = vsel %vm153_vm0, %v9_v0, 4286644096  ;;  %v26_v13 = vld [vmem:[%s1385_s0 + $0x44] sm:$0xf] }
   0x3   :  { %v41_v2 = vld [vmem:[%s1385_s0 + $0x80] sm:$0xf]  ;;  %v159_v5 = vsel %vm153_vm0, %v25_v1, 4286644096  ;;  %v42_v14 = vld [vmem:[%s1385_s0 + $0x84] sm:$0xf] }
   0x4   :  { %v57_v3 = vld [vmem:[%s1385_s0 + $0xc0] sm:$0xf]  ;;  %v163_v6 = vsel %vm153_vm0, %v41_v2, 4286644096  ;;  %v161_v8 = vmax.bf16 %v159_v5, %v156_v4  ;;  %v58_v19 = vld [vmem:[%s1385_s0 + $0xc4] sm:$0xf] }
   0x5   :  { %v73_v7 = vld [vmem:[%s1385_s0 + $0x100] sm:$0xf]  ;;  %v167_v10 = vsel %vm153_vm0, %v57_v3, 4286644096  ;;  %v191_v20 = vsel %vm153_vm0, %v10_v12, 4286644096 }
   0x6   :  { %v89_v9 = vld [vmem:[%s1385_s0 + $0x140] sm:$0xf]  ;;  %v165_v11 = vmax.bf16 %v163_v6, %v161_v8  ;;  %v171_v15 = vsel %vm153_vm0, %v73_v7, 4286644096  ;;  %v194_v21 = vsel %vm153_vm0, %v26_v13, 4286644096 }
   0x7   :  { %v105_v16 = vld [vmem:[%s1385_s0 + $0x180] sm:$0xf]  ;;  %v175_v18 = vsel %vm153_vm0, %v89_v9, 4286644096  ;;  %v198_v22 = vsel %vm153_vm0, %v42_v14, 4286644096  ;;  %v196_v27 = vmax.bf16 %v194_v21, %v191_v20 }
   0x8   :  { %v169_v17 = vmax.bf16 %v167_v10, %v165_v11  ;;  %v121_v23 = vld [vmem:[%s1385_s0 + $0x1c0] sm:$0xf]  ;;  %v74_v26 = vld [vmem:[%s1385_s0 + $0x104] sm:$0xf]  ;;  %v179_v28 = vsel %vm153_vm0, %v105_v16, 4286644096 }
   0x9   :  { %v137_v24 = vld [vmem:[%s1385_s0 + $0x200] sm:$0xf]  ;;  %v90_v29 = vld [vmem:[%s1385_s0 + $0x144] sm:$0xf]  ;;  %v202_v30 = vsel %vm153_vm0, %v58_v19, 4286644096  ;;  %v200_v32 = vmax.bf16 %v198_v22, %v196_v27 }
   0xa   :  { %v173_v25 = vmax.bf16 %v171_v15, %v169_v17  ;;  %v27_v34 = vld [vmem:[%s1385_s0 + $0x48] sm:$0xf]  ;;  %v183_v36 = vsel %vm153_vm0, %v121_v23, 4286644096  ;;  %v187_v37 = vsel %vm153_vm0, %v137_v24, 4286644096 }
   0xb   :  { %v43_v35 = vld [vmem:[%s1385_s0 + $0x88] sm:$0xf]  ;;  %v206_v38 = vsel %vm153_vm0, %v74_v26, 4286644096  ;;  %v106_v40 = vld [vmem:[%s1385_s0 + $0x184] sm:$0xf]  ;;  %v204_v41 = vmax.bf16 %v202_v30, %v200_v32 }
   0xc   :  { %v177_v31 = vmax.bf16 %v175_v18, %v173_v25  ;;  %v210_v42 = vsel %vm153_vm0, %v90_v29, 4286644096  ;;  %v59_v43 = vld [vmem:[%s1385_s0 + $0xc8] sm:$0xf]  ;;  %v226_v44 = vsel %vm153_vm0, %v11_v33, 4286644096 }
   0xd   :  { %v229_v45 = vsel %vm153_vm0, %v27_v34, 4286644096  ;;  %v233_v46 = vsel %vm153_vm0, %v43_v35, 4286644096  ;;  %v122_v48 = vld [vmem:[%s1385_s0 + $0x1c4] sm:$0xf]  ;;  %v208_v50 = vmax.bf16 %v206_v38, %v204_v41 }
   0xe   :  { %v181_v39 = vmax.bf16 %v179_v28, %v177_v31  ;;  %v138_v49 = vld [vmem:[%s1385_s0 + $0x204] sm:$0xf]  ;;  %v75_v51 = vld [vmem:[%s1385_s0 + $0x108] sm:$0xf]  ;;  %v231_v52 = vmax.bf16 %v229_v45, %v226_v44  ;;  %v214_v53 = vsel %vm153_vm0, %v106_v40, 4286644096 }
   0xf   :  { %v91_v54 = vld [vmem:[%s1385_s0 + $0x148] sm:$0xf]  ;;  %v237_v55 = vsel %vm153_vm0, %v59_v43, 4286644096  ;;  %v212_v57 = vmax.bf16 %v210_v42, %v208_v50  ;;  %v12_v59 = vld [vmem:[%s1385_s0 + $0xc] sm:$0xf] }
  0x10   :  { %v185_v47 = vmax.bf16 %v183_v36, %v181_v39  ;;  %v235_v58 = vmax.bf16 %v233_v46, %v231_v52  ;;  %v28_v60 = vld [vmem:[%s1385_s0 + $0x4c] sm:$0xf]  ;;  %v218_v62 = vsel %vm153_vm0, %v122_v48, 4286644096  ;;  %v222_v63 = vsel %vm153_vm0, %v138_v49, 4286644096 }
  0x11   :  { %v44_v61 = vld [vmem:[%s1385_s0 + $0x8c] sm:$0xf]  ;;  %v241_v0 = vsel %vm153_vm0, %v75_v51, 4286644096  ;;  %v216_v1 = vmax.bf16 %v214_v53, %v212_v57  ;;  %v107_v2 = vld [vmem:[%s1385_s0 + $0x188] sm:$0xf] }
  0x12   :  { %v189_v56 = vmax.bf16 %v187_v37, %v185_v47  ;;  %v239_v3 = vmax.bf16 %v237_v55, %v235_v58  ;;  %v245_v4 = vsel %vm153_vm0, %v91_v54, 4286644096  ;;  %v60_v5 = vld [vmem:[%s1385_s0 + $0xcc] sm:$0xf]  ;;  %v261_v6 = vsel %vm153_vm0, %v12_v59, 4286644096 }
  0x13   :  { %v264_v7 = vsel %vm153_vm0, %v28_v60, 4286644096  ;;  %v268_v8 = vsel %vm153_vm0, %v44_v61, 4286644096  ;;  %v220_v9 = vmax.bf16 %v218_v62, %v216_v1  ;;  %v123_v10 = vld [vmem:[%s1385_s0 + $0x1c8] sm:$0xf] }
  0x14   :  { %715 = vst.msk [vmem:[%s1386_s1] sm:$0xf] %vm153_vm0, %v189_v56  ;;  %v139_v11 = vld [vmem:[%s1385_s0 + $0x208] sm:$0xf]  ;;  %v243_v12 = vmax.bf16 %v241_v0, %v239_v3  ;;  %v76_v13 = vld [vmem:[%s1385_s0 + $0x10c] sm:$0xf]  ;;  %v266_v14 = vmax.bf16 %v264_v7, %v261_v6 }
  0x15   :  { %v249_v15 = vsel %vm153_vm0, %v107_v2, 4286644096  ;;  %v92_v16 = vld [vmem:[%s1385_s0 + $0x14c] sm:$0xf]  ;;  %v272_v17 = vsel %vm153_vm0, %v60_v5, 4286644096  ;;  %v224_v18 = vmax.bf16 %v222_v63, %v220_v9 }
  0x16   :  { %v247_v19 = vmax.bf16 %v245_v4, %v243_v12  ;;  %v270_v20 = vmax.bf16 %v268_v8, %v266_v14  ;;  %v13_v21 = vld [vmem:[%s1385_s0 + $0x10] sm:$0xf]  ;;  %v253_v24 = vsel %vm153_vm0, %v123_v10, 4286644096  ;;  %v257_v25 = vsel %vm153_vm0, %v139_v11, 4286644096 }
  0x17   :  { %v29_v22 = vld [vmem:[%s1385_s0 + $0x50] sm:$0xf]  ;;  %v276_v26 = vsel %vm153_vm0, %v76_v13, 4286644096  ;;  %716 = vst.msk [vmem:[%s1386_s1 + $0x4] sm:$0xf] %vm153_vm0, %v224_v18 }
  0x18   :  { %v45_v23 = vld [vmem:[%s1385_s0 + $0x90] sm:$0xf]  ;;  %v251_v27 = vmax.bf16 %v249_v15, %v247_v19  ;;  %v108_v28 = vld [vmem:[%s1385_s0 + $0x18c] sm:$0xf]  ;;  %v274_v29 = vmax.bf16 %v272_v17, %v270_v20  ;;  %v280_v30 = vsel %vm153_vm0, %v92_v16, 4286644096 }
  0x19   :  { %v61_v31 = vld [vmem:[%s1385_s0 + $0xd0] sm:$0xf]  ;;  %v296_v32 = vsel %vm153_vm0, %v13_v21, 4286644096  ;;  %v299_v33 = vsel %vm153_vm0, %v29_v22, 4286644096 }
  0x1a   :  { %v303_v34 = vsel %vm153_vm0, %v45_v23, 4286644096  ;;  %v255_v35 = vmax.bf16 %v253_v24, %v251_v27  ;;  %v124_v36 = vld [vmem:[%s1385_s0 + $0x1cc] sm:$0xf]  ;;  %v278_v38 = vmax.bf16 %v276_v26, %v274_v29  ;;  %v77_v39 = vld [vmem:[%s1385_s0 + $0x110] sm:$0xf]  ;;  %v301_v40 = vmax.bf16 %v299_v33, %v296_v32 }
  0x1b   :  { %v140_v37 = vld [vmem:[%s1385_s0 + $0x20c] sm:$0xf]  ;;  %v284_v41 = vsel %vm153_vm0, %v108_v28, 4286644096  ;;  %v93_v42 = vld [vmem:[%s1385_s0 + $0x150] sm:$0xf] }
  0x1c   :  { %v307_v43 = vsel %vm153_vm0, %v61_v31, 4286644096  ;;  %v259_v44 = vmax.bf16 %v257_v25, %v255_v35  ;;  %v282_v45 = vmax.bf16 %v280_v30, %v278_v38  ;;  %v305_v46 = vmax.bf16 %v303_v34, %v301_v40  ;;  %v14_v47 = vld [vmem:[%s1385_s0 + $0x14] sm:$0xf]  ;;  %v109_v54 = vld [vmem:[%s1385_s0 + $0x190] sm:$0xf] }
  0x1d   :  { %v30_v48 = vld [vmem:[%s1385_s0 + $0x54] sm:$0xf]  ;;  %v288_v50 = vsel %vm153_vm0, %v124_v36, 4286644096  ;;  %v292_v51 = vsel %vm153_vm0, %v140_v37, 4286644096 }
  0x1e   :  { %v46_v49 = vld [vmem:[%s1385_s0 + $0x94] sm:$0xf]  ;;  %v311_v52 = vsel %vm153_vm0, %v77_v39, 4286644096  ;;  %717 = vst.msk [vmem:[%s1386_s1 + $0x8] sm:$0xf] %vm153_vm0, %v259_v44  ;;  %v286_v53 = vmax.bf16 %v284_v41, %v282_v45  ;;  %v309_v55 = vmax.bf16 %v307_v43, %v305_v46 }
  0x1f   :  { %v315_v56 = vsel %vm153_vm0, %v93_v42, 4286644096  ;;  %v62_v57 = vld [vmem:[%s1385_s0 + $0xd4] sm:$0xf]  ;;  %v331_v58 = vsel %vm153_vm0, %v14_v47, 4286644096 }
  0x20   :  { %v334_v59 = vsel %vm153_vm0, %v30_v48, 4286644096  ;;  %v338_v60 = vsel %vm153_vm0, %v46_v49, 4286644096  ;;  %v290_v61 = vmax.bf16 %v288_v50, %v286_v53  ;;  %v125_v62 = vld [vmem:[%s1385_s0 + $0x1d0] sm:$0xf]  ;;  %v313_v0 = vmax.bf16 %v311_v52, %v309_v55 }
  0x21   :  { %v141_v63 = vld [vmem:[%s1385_s0 + $0x210] sm:$0xf]  ;;  %v78_v1 = vld [vmem:[%s1385_s0 + $0x114] sm:$0xf]  ;;  %v336_v2 = vmax.bf16 %v334_v59, %v331_v58  ;;  %v319_v3 = vsel %vm153_vm0, %v109_v54, 4286644096 }
  0x22   :  { %v94_v4 = vld [vmem:[%s1385_s0 + $0x154] sm:$0xf]  ;;  %v342_v5 = vsel %vm153_vm0, %v62_v57, 4286644096  ;;  %v294_v6 = vmax.bf16 %v292_v51, %v290_v61  ;;  %v317_v7 = vmax.bf16 %v315_v56, %v313_v0  ;;  %v15_v9 = vld [vmem:[%s1385_s0 + $0x18] sm:$0xf] }
  0x23   :  { %v340_v8 = vmax.bf16 %v338_v60, %v336_v2  ;;  %v31_v10 = vld [vmem:[%s1385_s0 + $0x58] sm:$0xf]  ;;  %v323_v12 = vsel %vm153_vm0, %v125_v62, 4286644096  ;;  %v327_v13 = vsel %vm153_vm0, %v141_v63, 4286644096 }
  0x24   :  { %v47_v11 = vld [vmem:[%s1385_s0 + $0x98] sm:$0xf]  ;;  %v346_v14 = vsel %vm153_vm0, %v78_v1, 4286644096  ;;  %718 = vst.msk [vmem:[%s1386_s1 + $0xc] sm:$0xf] %vm153_vm0, %v294_v6  ;;  %v321_v15 = vmax.bf16 %v319_v3, %v317_v7 }
  0x25   :  { %v110_v16 = vld [vmem:[%s1385_s0 + $0x194] sm:$0xf]  ;;  %v344_v17 = vmax.bf16 %v342_v5, %v340_v8  ;;  %v350_v18 = vsel %vm153_vm0, %v94_v4, 4286644096  ;;  %v63_v19 = vld [vmem:[%s1385_s0 + $0xd8] sm:$0xf] }
  0x26   :  { %v366_v20 = vsel %vm153_vm0, %v15_v9, 4286644096  ;;  %v369_v21 = vsel %vm153_vm0, %v31_v10, 4286644096  ;;  %v373_v22 = vsel %vm153_vm0, %v47_v11, 4286644096  ;;  %v325_v23 = vmax.bf16 %v323_v12, %v321_v15 }
  0x27   :  { %v126_v24 = vld [vmem:[%s1385_s0 + $0x1d4] sm:$0xf]  ;;  %v348_v26 = vmax.bf16 %v346_v14, %v344_v17  ;;  %v79_v27 = vld [vmem:[%s1385_s0 + $0x118] sm:$0xf]  ;;  %v371_v28 = vmax.bf16 %v369_v21, %v366_v20  ;;  %v354_v29 = vsel %vm153_vm0, %v110_v16, 4286644096 }
  0x28   :  { %v142_v25 = vld [vmem:[%s1385_s0 + $0x214] sm:$0xf]  ;;  %v95_v30 = vld [vmem:[%s1385_s0 + $0x158] sm:$0xf]  ;;  %v377_v31 = vsel %vm153_vm0, %v63_v19, 4286644096  ;;  %v329_v32 = vmax.bf16 %v327_v13, %v325_v23 }
  0x29   :  { %v352_v33 = vmax.bf16 %v350_v18, %v348_v26  ;;  %v375_v34 = vmax.bf16 %v373_v22, %v371_v28  ;;  %v16_v35 = vld [vmem:[%s1385_s0 + $0x1c] sm:$0xf]  ;;  %v358_v38 = vsel %vm153_vm0, %v126_v24, 4286644096  ;;  %v362_v39 = vsel %vm153_vm0, %v142_v25, 4286644096 }
  0x2a   :  { %v32_v36 = vld [vmem:[%s1385_s0 + $0x5c] sm:$0xf]  ;;  %v381_v40 = vsel %vm153_vm0, %v79_v27, 4286644096  ;;  %719 = vst.msk [vmem:[%s1386_s1 + $0x10] sm:$0xf] %vm153_vm0, %v329_v32 }
  0x2b   :  { %v48_v37 = vld [vmem:[%s1385_s0 + $0x9c] sm:$0xf]  ;;  %v356_v41 = vmax.bf16 %v354_v29, %v352_v33  ;;  %v111_v42 = vld [vmem:[%s1385_s0 + $0x198] sm:$0xf]  ;;  %v379_v43 = vmax.bf16 %v377_v31, %v375_v34  ;;  %v385_v44 = vsel %vm153_vm0, %v95_v30, 4286644096 }
  0x2c   :  { %v64_v45 = vld [vmem:[%s1385_s0 + $0xdc] sm:$0xf]  ;;  %v401_v46 = vsel %vm153_vm0, %v16_v35, 4286644096  ;;  %v404_v47 = vsel %vm153_vm0, %v32_v36, 4286644096 }
  0x2d   :  { %v408_v48 = vsel %vm153_vm0, %v48_v37, 4286644096  ;;  %v360_v49 = vmax.bf16 %v358_v38, %v356_v41  ;;  %v127_v50 = vld [vmem:[%s1385_s0 + $0x1d8] sm:$0xf]  ;;  %v383_v52 = vmax.bf16 %v381_v40, %v379_v43  ;;  %v80_v53 = vld [vmem:[%s1385_s0 + $0x11c] sm:$0xf]  ;;  %v406_v54 = vmax.bf16 %v404_v47, %v401_v46 }
  0x2e   :  { %v143_v51 = vld [vmem:[%s1385_s0 + $0x218] sm:$0xf]  ;;  %v389_v55 = vsel %vm153_vm0, %v111_v42, 4286644096  ;;  %v96_v56 = vld [vmem:[%s1385_s0 + $0x15c] sm:$0xf] }
  0x2f   :  { %v412_v57 = vsel %vm153_vm0, %v64_v45, 4286644096  ;;  %v364_v58 = vmax.bf16 %v362_v39, %v360_v49  ;;  %v387_v59 = vmax.bf16 %v385_v44, %v383_v52  ;;  %v410_v60 = vmax.bf16 %v408_v48, %v406_v54  ;;  %v17_v61 = vld [vmem:[%s1385_s0 + $0x20] sm:$0xf]  ;;  %v112_v4 = vld [vmem:[%s1385_s0 + $0x19c] sm:$0xf] }
  0x30   :  { %v33_v62 = vld [vmem:[%s1385_s0 + $0x60] sm:$0xf]  ;;  %v393_v0 = vsel %vm153_vm0, %v127_v50, 4286644096  ;;  %v397_v1 = vsel %vm153_vm0, %v143_v51, 4286644096 }
  0x31   :  { %v49_v63 = vld [vmem:[%s1385_s0 + $0xa0] sm:$0xf]  ;;  %v416_v2 = vsel %vm153_vm0, %v80_v53, 4286644096  ;;  %720 = vst.msk [vmem:[%s1386_s1 + $0x14] sm:$0xf] %vm153_vm0, %v364_v58  ;;  %v391_v3 = vmax.bf16 %v389_v55, %v387_v59  ;;  %v414_v5 = vmax.bf16 %v412_v57, %v410_v60 }
  0x32   :  { %v420_v6 = vsel %vm153_vm0, %v96_v56, 4286644096  ;;  %v65_v7 = vld [vmem:[%s1385_s0 + $0xe0] sm:$0xf]  ;;  %v436_v8 = vsel %vm153_vm0, %v17_v61, 4286644096 }
  0x33   :  { %v439_v9 = vsel %vm153_vm0, %v33_v62, 4286644096  ;;  %v443_v10 = vsel %vm153_vm0, %v49_v63, 4286644096  ;;  %v395_v11 = vmax.bf16 %v393_v0, %v391_v3  ;;  %v128_v12 = vld [vmem:[%s1385_s0 + $0x1dc] sm:$0xf]  ;;  %v418_v14 = vmax.bf16 %v416_v2, %v414_v5 }
  0x34   :  { %v144_v13 = vld [vmem:[%s1385_s0 + $0x21c] sm:$0xf]  ;;  %v81_v15 = vld [vmem:[%s1385_s0 + $0x120] sm:$0xf]  ;;  %v441_v16 = vmax.bf16 %v439_v9, %v436_v8  ;;  %v424_v17 = vsel %vm153_vm0, %v112_v4, 4286644096 }
  0x35   :  { %v97_v18 = vld [vmem:[%s1385_s0 + $0x160] sm:$0xf]  ;;  %v447_v19 = vsel %vm153_vm0, %v65_v7, 4286644096  ;;  %v399_v20 = vmax.bf16 %v397_v1, %v395_v11  ;;  %v422_v21 = vmax.bf16 %v420_v6, %v418_v14  ;;  %v18_v23 = vld [vmem:[%s1385_s0 + $0x24] sm:$0xf] }
  0x36   :  { %v445_v22 = vmax.bf16 %v443_v10, %v441_v16  ;;  %v34_v24 = vld [vmem:[%s1385_s0 + $0x64] sm:$0xf]  ;;  %v428_v26 = vsel %vm153_vm0, %v128_v12, 4286644096  ;;  %v432_v27 = vsel %vm153_vm0, %v144_v13, 4286644096 }
  0x37   :  { %v50_v25 = vld [vmem:[%s1385_s0 + $0xa4] sm:$0xf]  ;;  %v451_v28 = vsel %vm153_vm0, %v81_v15, 4286644096  ;;  %721 = vst.msk [vmem:[%s1386_s1 + $0x18] sm:$0xf] %vm153_vm0, %v399_v20  ;;  %v426_v29 = vmax.bf16 %v424_v17, %v422_v21 }
  0x38   :  { %v113_v30 = vld [vmem:[%s1385_s0 + $0x1a0] sm:$0xf]  ;;  %v449_v31 = vmax.bf16 %v447_v19, %v445_v22  ;;  %v455_v32 = vsel %vm153_vm0, %v97_v18, 4286644096  ;;  %v66_v33 = vld [vmem:[%s1385_s0 + $0xe4] sm:$0xf] }
  0x39   :  { %v471_v34 = vsel %vm153_vm0, %v18_v23, 4286644096  ;;  %v474_v35 = vsel %vm153_vm0, %v34_v24, 4286644096  ;;  %v478_v36 = vsel %vm153_vm0, %v50_v25, 4286644096  ;;  %v430_v37 = vmax.bf16 %v428_v26, %v426_v29 }
  0x3a   :  { %v129_v38 = vld [vmem:[%s1385_s0 + $0x1e0] sm:$0xf]  ;;  %v453_v40 = vmax.bf16 %v451_v28, %v449_v31  ;;  %v82_v41 = vld [vmem:[%s1385_s0 + $0x124] sm:$0xf]  ;;  %v476_v42 = vmax.bf16 %v474_v35, %v471_v34  ;;  %v459_v43 = vsel %vm153_vm0, %v113_v30, 4286644096 }
  0x3b   :  { %v145_v39 = vld [vmem:[%s1385_s0 + $0x220] sm:$0xf]  ;;  %v98_v44 = vld [vmem:[%s1385_s0 + $0x164] sm:$0xf]  ;;  %v482_v45 = vsel %vm153_vm0, %v66_v33, 4286644096  ;;  %v434_v46 = vmax.bf16 %v432_v27, %v430_v37 }
  0x3c   :  { %v457_v47 = vmax.bf16 %v455_v32, %v453_v40  ;;  %v480_v48 = vmax.bf16 %v478_v36, %v476_v42  ;;  %v19_v49 = vld [vmem:[%s1385_s0 + $0x28] sm:$0xf]  ;;  %v463_v52 = vsel %vm153_vm0, %v129_v38, 4286644096  ;;  %v467_v53 = vsel %vm153_vm0, %v145_v39, 4286644096 }
  0x3d   :  { %v35_v50 = vld [vmem:[%s1385_s0 + $0x68] sm:$0xf]  ;;  %v486_v54 = vsel %vm153_vm0, %v82_v41, 4286644096  ;;  %722 = vst.msk [vmem:[%s1386_s1 + $0x1c] sm:$0xf] %vm153_vm0, %v434_v46 }
  0x3e   :  { %v51_v51 = vld [vmem:[%s1385_s0 + $0xa8] sm:$0xf]  ;;  %v461_v55 = vmax.bf16 %v459_v43, %v457_v47  ;;  %v114_v56 = vld [vmem:[%s1385_s0 + $0x1a4] sm:$0xf]  ;;  %v484_v57 = vmax.bf16 %v482_v45, %v480_v48  ;;  %v490_v58 = vsel %vm153_vm0, %v98_v44, 4286644096 }
  0x3f   :  { %v67_v59 = vld [vmem:[%s1385_s0 + $0xe8] sm:$0xf]  ;;  %v506_v60 = vsel %vm153_vm0, %v19_v49, 4286644096  ;;  %v509_v61 = vsel %vm153_vm0, %v35_v50, 4286644096 }
  0x40   :  { %v513_v62 = vsel %vm153_vm0, %v51_v51, 4286644096  ;;  %v465_v63 = vmax.bf16 %v463_v52, %v461_v55  ;;  %v130_v0 = vld [vmem:[%s1385_s0 + $0x1e4] sm:$0xf]  ;;  %v488_v2 = vmax.bf16 %v486_v54, %v484_v57  ;;  %v83_v3 = vld [vmem:[%s1385_s0 + $0x128] sm:$0xf]  ;;  %v511_v4 = vmax.bf16 %v509_v61, %v506_v60 }
  0x41   :  { %v146_v1 = vld [vmem:[%s1385_s0 + $0x224] sm:$0xf]  ;;  %v494_v5 = vsel %vm153_vm0, %v114_v56, 4286644096  ;;  %v99_v6 = vld [vmem:[%s1385_s0 + $0x168] sm:$0xf] }
  0x42   :  { %v517_v7 = vsel %vm153_vm0, %v67_v59, 4286644096  ;;  %v469_v8 = vmax.bf16 %v467_v53, %v465_v63  ;;  %v492_v9 = vmax.bf16 %v490_v58, %v488_v2  ;;  %v515_v10 = vmax.bf16 %v513_v62, %v511_v4  ;;  %v20_v11 = vld [vmem:[%s1385_s0 + $0x2c] sm:$0xf]  ;;  %v115_v18 = vld [vmem:[%s1385_s0 + $0x1a8] sm:$0xf] }
  0x43   :  { %v36_v12 = vld [vmem:[%s1385_s0 + $0x6c] sm:$0xf]  ;;  %v498_v14 = vsel %vm153_vm0, %v130_v0, 4286644096  ;;  %v502_v15 = vsel %vm153_vm0, %v146_v1, 4286644096 }
  0x44   :  { %v52_v13 = vld [vmem:[%s1385_s0 + $0xac] sm:$0xf]  ;;  %v521_v16 = vsel %vm153_vm0, %v83_v3, 4286644096  ;;  %723 = vst.msk [vmem:[%s1386_s1 + $0x20] sm:$0xf] %vm153_vm0, %v469_v8  ;;  %v496_v17 = vmax.bf16 %v494_v5, %v492_v9  ;;  %v519_v19 = vmax.bf16 %v517_v7, %v515_v10 }
  0x45   :  { %v525_v20 = vsel %vm153_vm0, %v99_v6, 4286644096  ;;  %v68_v21 = vld [vmem:[%s1385_s0 + $0xec] sm:$0xf]  ;;  %v541_v22 = vsel %vm153_vm0, %v20_v11, 4286644096 }
  0x46   :  { %v544_v23 = vsel %vm153_vm0, %v36_v12, 4286644096  ;;  %v548_v24 = vsel %vm153_vm0, %v52_v13, 4286644096  ;;  %v500_v25 = vmax.bf16 %v498_v14, %v496_v17  ;;  %v131_v26 = vld [vmem:[%s1385_s0 + $0x1e8] sm:$0xf]  ;;  %v523_v28 = vmax.bf16 %v521_v16, %v519_v19 }
  0x47   :  { %v147_v27 = vld [vmem:[%s1385_s0 + $0x228] sm:$0xf]  ;;  %v84_v29 = vld [vmem:[%s1385_s0 + $0x12c] sm:$0xf]  ;;  %v546_v30 = vmax.bf16 %v544_v23, %v541_v22  ;;  %v529_v31 = vsel %vm153_vm0, %v115_v18, 4286644096 }
  0x48   :  { %v100_v32 = vld [vmem:[%s1385_s0 + $0x16c] sm:$0xf]  ;;  %v552_v33 = vsel %vm153_vm0, %v68_v21, 4286644096  ;;  %v504_v34 = vmax.bf16 %v502_v15, %v500_v25  ;;  %v527_v35 = vmax.bf16 %v525_v20, %v523_v28  ;;  %v21_v37 = vld [vmem:[%s1385_s0 + $0x30] sm:$0xf] }
  0x49   :  { %v550_v36 = vmax.bf16 %v548_v24, %v546_v30  ;;  %v37_v38 = vld [vmem:[%s1385_s0 + $0x70] sm:$0xf]  ;;  %v533_v40 = vsel %vm153_vm0, %v131_v26, 4286644096  ;;  %v537_v41 = vsel %vm153_vm0, %v147_v27, 4286644096 }
  0x4a   :  { %v53_v39 = vld [vmem:[%s1385_s0 + $0xb0] sm:$0xf]  ;;  %v556_v42 = vsel %vm153_vm0, %v84_v29, 4286644096  ;;  %724 = vst.msk [vmem:[%s1386_s1 + $0x24] sm:$0xf] %vm153_vm0, %v504_v34  ;;  %v531_v43 = vmax.bf16 %v529_v31, %v527_v35 }
  0x4b   :  { %v116_v44 = vld [vmem:[%s1385_s0 + $0x1ac] sm:$0xf]  ;;  %v554_v45 = vmax.bf16 %v552_v33, %v550_v36  ;;  %v560_v46 = vsel %vm153_vm0, %v100_v32, 4286644096  ;;  %v69_v47 = vld [vmem:[%s1385_s0 + $0xf0] sm:$0xf] }
  0x4c   :  { %v576_v48 = vsel %vm153_vm0, %v21_v37, 4286644096  ;;  %v579_v49 = vsel %vm153_vm0, %v37_v38, 4286644096  ;;  %v583_v50 = vsel %vm153_vm0, %v53_v39, 4286644096  ;;  %v535_v51 = vmax.bf16 %v533_v40, %v531_v43 }
  0x4d   :  { %v132_v52 = vld [vmem:[%s1385_s0 + $0x1ec] sm:$0xf]  ;;  %v558_v54 = vmax.bf16 %v556_v42, %v554_v45  ;;  %v85_v55 = vld [vmem:[%s1385_s0 + $0x130] sm:$0xf]  ;;  %v581_v56 = vmax.bf16 %v579_v49, %v576_v48  ;;  %v564_v57 = vsel %vm153_vm0, %v116_v44, 4286644096 }
  0x4e   :  { %v148_v53 = vld [vmem:[%s1385_s0 + $0x22c] sm:$0xf]  ;;  %v101_v58 = vld [vmem:[%s1385_s0 + $0x170] sm:$0xf]  ;;  %v587_v59 = vsel %vm153_vm0, %v69_v47, 4286644096  ;;  %v539_v60 = vmax.bf16 %v537_v41, %v535_v51 }
  0x4f   :  { %v562_v61 = vmax.bf16 %v560_v46, %v558_v54  ;;  %v585_v62 = vmax.bf16 %v583_v50, %v581_v56  ;;  %v22_v63 = vld [vmem:[%s1385_s0 + $0x34] sm:$0xf]  ;;  %v568_v2 = vsel %vm153_vm0, %v132_v52, 4286644096  ;;  %v572_v3 = vsel %vm153_vm0, %v148_v53, 4286644096 }
  0x50   :  { %v38_v0 = vld [vmem:[%s1385_s0 + $0x74] sm:$0xf]  ;;  %v591_v4 = vsel %vm153_vm0, %v85_v55, 4286644096  ;;  %725 = vst.msk [vmem:[%s1386_s1 + $0x28] sm:$0xf] %vm153_vm0, %v539_v60 }
  0x51   :  { %v54_v1 = vld [vmem:[%s1385_s0 + $0xb4] sm:$0xf]  ;;  %v566_v5 = vmax.bf16 %v564_v57, %v562_v61  ;;  %v117_v6 = vld [vmem:[%s1385_s0 + $0x1b0] sm:$0xf]  ;;  %v589_v7 = vmax.bf16 %v587_v59, %v585_v62  ;;  %v595_v8 = vsel %vm153_vm0, %v101_v58, 4286644096 }
  0x52   :  { %v70_v9 = vld [vmem:[%s1385_s0 + $0xf4] sm:$0xf]  ;;  %v611_v10 = vsel %vm153_vm0, %v22_v63, 4286644096  ;;  %v614_v11 = vsel %vm153_vm0, %v38_v0, 4286644096 }
  0x53   :  { %v618_v12 = vsel %vm153_vm0, %v54_v1, 4286644096  ;;  %v570_v13 = vmax.bf16 %v568_v2, %v566_v5  ;;  %v133_v14 = vld [vmem:[%s1385_s0 + $0x1f0] sm:$0xf]  ;;  %v593_v16 = vmax.bf16 %v591_v4, %v589_v7  ;;  %v86_v17 = vld [vmem:[%s1385_s0 + $0x134] sm:$0xf]  ;;  %v616_v18 = vmax.bf16 %v614_v11, %v611_v10 }
  0x54   :  { %v149_v15 = vld [vmem:[%s1385_s0 + $0x230] sm:$0xf]  ;;  %v599_v19 = vsel %vm153_vm0, %v117_v6, 4286644096  ;;  %v102_v20 = vld [vmem:[%s1385_s0 + $0x174] sm:$0xf] }
  0x55   :  { %v622_v21 = vsel %vm153_vm0, %v70_v9, 4286644096  ;;  %v574_v22 = vmax.bf16 %v572_v3, %v570_v13  ;;  %v597_v23 = vmax.bf16 %v595_v8, %v593_v16  ;;  %v620_v24 = vmax.bf16 %v618_v12, %v616_v18  ;;  %v23_v25 = vld [vmem:[%s1385_s0 + $0x38] sm:$0xf]  ;;  %v118_v32 = vld [vmem:[%s1385_s0 + $0x1b4] sm:$0xf] }
  0x56   :  { %v39_v26 = vld [vmem:[%s1385_s0 + $0x78] sm:$0xf]  ;;  %v603_v28 = vsel %vm153_vm0, %v133_v14, 4286644096  ;;  %v607_v29 = vsel %vm153_vm0, %v149_v15, 4286644096 }
  0x57   :  { %v55_v27 = vld [vmem:[%s1385_s0 + $0xb8] sm:$0xf]  ;;  %v626_v30 = vsel %vm153_vm0, %v86_v17, 4286644096  ;;  %726 = vst.msk [vmem:[%s1386_s1 + $0x2c] sm:$0xf] %vm153_vm0, %v574_v22  ;;  %v601_v31 = vmax.bf16 %v599_v19, %v597_v23  ;;  %v624_v33 = vmax.bf16 %v622_v21, %v620_v24 }
  0x58   :  { %v630_v34 = vsel %vm153_vm0, %v102_v20, 4286644096  ;;  %v71_v35 = vld [vmem:[%s1385_s0 + $0xf8] sm:$0xf]  ;;  %v646_v36 = vsel %vm153_vm0, %v23_v25, 4286644096 }
  0x59   :  { %v649_v37 = vsel %vm153_vm0, %v39_v26, 4286644096  ;;  %v653_v38 = vsel %vm153_vm0, %v55_v27, 4286644096  ;;  %v605_v39 = vmax.bf16 %v603_v28, %v601_v31  ;;  %v134_v40 = vld [vmem:[%s1385_s0 + $0x1f4] sm:$0xf]  ;;  %v628_v42 = vmax.bf16 %v626_v30, %v624_v33 }
  0x5a   :  { %v150_v41 = vld [vmem:[%s1385_s0 + $0x234] sm:$0xf]  ;;  %v87_v43 = vld [vmem:[%s1385_s0 + $0x138] sm:$0xf]  ;;  %v651_v44 = vmax.bf16 %v649_v37, %v646_v36  ;;  %v634_v45 = vsel %vm153_vm0, %v118_v32, 4286644096 }
  0x5b   :  { %v103_v46 = vld [vmem:[%s1385_s0 + $0x178] sm:$0xf]  ;;  %v657_v47 = vsel %vm153_vm0, %v71_v35, 4286644096  ;;  %v609_v48 = vmax.bf16 %v607_v29, %v605_v39  ;;  %v632_v49 = vmax.bf16 %v630_v34, %v628_v42  ;;  %v24_v51 = vld [vmem:[%s1385_s0 + $0x3c] sm:$0xf] }
  0x5c   :  { %v655_v50 = vmax.bf16 %v653_v38, %v651_v44  ;;  %v40_v52 = vld [vmem:[%s1385_s0 + $0x7c] sm:$0xf]  ;;  %v638_v54 = vsel %vm153_vm0, %v134_v40, 4286644096  ;;  %v642_v55 = vsel %vm153_vm0, %v150_v41, 4286644096 }
  0x5d   :  { %v56_v53 = vld [vmem:[%s1385_s0 + $0xbc] sm:$0xf]  ;;  %v661_v56 = vsel %vm153_vm0, %v87_v43, 4286644096  ;;  %727 = vst.msk [vmem:[%s1386_s1 + $0x30] sm:$0xf] %vm153_vm0, %v609_v48  ;;  %v636_v57 = vmax.bf16 %v634_v45, %v632_v49 }
  0x5e   :  { %v119_v58 = vld [vmem:[%s1385_s0 + $0x1b8] sm:$0xf]  ;;  %v659_v59 = vmax.bf16 %v657_v47, %v655_v50  ;;  %v665_v60 = vsel %vm153_vm0, %v103_v46, 4286644096  ;;  %v72_v61 = vld [vmem:[%s1385_s0 + $0xfc] sm:$0xf] }
  0x5f   :  { %v681_v62 = vsel %vm153_vm0, %v24_v51, 4286644096  ;;  %v684_v63 = vsel %vm153_vm0, %v40_v52, 4286644096  ;;  %v688_v0 = vsel %vm153_vm0, %v56_v53, 4286644096  ;;  %v640_v1 = vmax.bf16 %v638_v54, %v636_v57 }
  0x60   :  { %v135_v2 = vld [vmem:[%s1385_s0 + $0x1f8] sm:$0xf]  ;;  %v663_v3 = vmax.bf16 %v661_v56, %v659_v59  ;;  %v88_v4 = vld [vmem:[%s1385_s0 + $0x13c] sm:$0xf]  ;;  %v686_v5 = vmax.bf16 %v684_v63, %v681_v62  ;;  %v669_v6 = vsel %vm153_vm0, %v119_v58, 4286644096 }
  0x61   :  { %v692_v7 = vsel %vm153_vm0, %v72_v61, 4286644096  ;;  %v644_v8 = vmax.bf16 %v642_v55, %v640_v1  ;;  %v151_v9 = vld [vmem:[%s1385_s0 + $0x238] sm:$0xf]  ;;  %v104_v11 = vld [vmem:[%s1385_s0 + $0x17c] sm:$0xf] }
  0x62   :  { %v667_v10 = vmax.bf16 %v665_v60, %v663_v3  ;;  %v690_v12 = vmax.bf16 %v688_v0, %v686_v5  ;;  %v673_v13 = vsel %vm153_vm0, %v135_v2, 4286644096  ;;  %v696_v14 = vsel %vm153_vm0, %v88_v4, 4286644096  ;;  %v120_v16 = vld [vmem:[%s1385_s0 + $0x1bc] sm:$0xf] }
  0x63   :  { %728 = vst.msk [vmem:[%s1386_s1 + $0x34] sm:$0xf] %vm153_vm0, %v644_v8  ;;  %v677_v18 = vsel %vm153_vm0, %v151_v9, 4286644096  ;;  %v700_v19 = vsel %vm153_vm0, %v104_v11, 4286644096 }
  0x64   :  { %v671_v15 = vmax.bf16 %v669_v6, %v667_v10  ;;  %v694_v17 = vmax.bf16 %v692_v7, %v690_v12  ;;  %v136_v21 = vld [vmem:[%s1385_s0 + $0x1fc] sm:$0xf]  ;;  %v704_v23 = vsel %vm153_vm0, %v120_v16, 4286644096 }
  0x65   :  { %v152_v25 = vld [vmem:[%s1385_s0 + $0x23c] sm:$0xf]  ;;  %v708_v27 = vsel %vm153_vm0, %v136_v21, 4286644096 }
  0x66   :  { %v675_v20 = vmax.bf16 %v673_v13, %v671_v15  ;;  %v698_v22 = vmax.bf16 %v696_v14, %v694_v17  ;;  %v712_v29 = vsel %vm153_vm0, %v152_v25, 4286644096 }
  0x68   :  { %v679_v24 = vmax.bf16 %v677_v18, %v675_v20  ;;  %v702_v26 = vmax.bf16 %v700_v19, %v698_v22 }
  0x6a   :  { %729 = vst.msk [vmem:[%s1386_s1 + $0x38] sm:$0xf] %vm153_vm0, %v679_v24  ;;  %v706_v28 = vmax.bf16 %v704_v23, %v702_v26 }
  0x6c   :  { %v710_v30 = vmax.bf16 %v708_v27, %v706_v28 }
  0x6e   :  { %v714_v31 = vmax.bf16 %v712_v29, %v710_v30 }
  0x70   :  { %730 = vst.msk [vmem:[%s1386_s1 + $0x3c] sm:$0xf] %vm153_vm0, %v714_v31 }

// kernel: resnet18_forward.23
= control target key start
LH: loop header
LB: loop body
LE: loop exit
PB: predicated region body
PF: predicated region fallthrough
CT: control target
= control target key end

     0   :  { %s1641_s15 = smov 0   ;;  %s1643_s16 = smov 0   ;;  %s1984_s0 = inlined_call_operand.vmem [shape: bf16[512,147], index: 0, kind: input, shape index: {}]   ;;  %s1985_s1 = inlined_call_operand.vmem [shape: bf16[147,64], index: 1, kind: input, shape index: {}]   ;;  %s1986_s2 = inlined_call_operand.vmem [shape: f32[1,64], index: 2, kind: input, shape index: {}]   ;;  %s1987_s3 = inlined_call_operand.vmem [shape: f32[1,64], index: 3, kind: input, shape index: {}]   ;;  %s1988_s4 = inlined_call_operand.vmem [shape: bf16[512,64], index: 4, kind: output, shape index: {}]  }
   0x1   :  { %s1645_s17 = smov 0  }
   0x2 LB: > { %s33_s18 = sadd.s32 1, %s1607_s16  ;;  %p1351_p0 = scmp.ge.s32.totalorder %s1611_s17, 1  ;;  %s1611_s17 = sphi %s1645_s17, %s14_s17   ;;  %s1607_s16 = sphi %s1643_s16, %s1990_s16   ;;  %s1603_s15 = sphi %s1641_s15, %s1989_s15  }
   0x3   : > { %p35_p1 = scmp.ge.s32.totalorder %s33_s18, 2  ;;  %p224_p2 = scmp.lt.s32.totalorder %s1611_s17, 3 }
   0x5   : > { %s1992_s18 = smov (%p35_p1, %s33_s18), 0  ;;  %p225_p3 = pnand %p1351_p0, %p224_p2 }
   0x6   : > { %v1531_v0 = vld [vmem:[%s1985_s1] sm:$0xff] (!%p225_p3)   ;;  %v1613_v1 = vmov (!%p225_p3), 0   ;;  %v1532_v2 = vld [vmem:[%s1985_s1 + $0x8] sm:$0xff] (!%p225_p3)   ;;  %v1533_v3 = vld [vmem:[%s1985_s1 + $0x10] sm:$0xff] (!%p225_p3)   ;;  %s1352_s25 = sshll.u32 (!%p225_p3), %s1603_s15, 5  ;;  %vm313_vm0 = vcmask (!%p225_p3), 523264  }
   0x7   : > { %228 = sbr.rel (%p225_p3) target bundleno = 338 (0x152), region = 36  ;;  %686 = vmatprep.subr.bf16.mxu0 (!%p225_p3), %v1613_v1  ;;  %1484 = vmatprep.subr.bf16.mxu1 (!%p225_p3), %v1613_v1  ;;  %p274_p4 = scmp.lt.s32.totalorder (!%p225_p3), %s1352_s25, 63  ;;  %v1534_v4 = vld [vmem:[%s1985_s1 + $0x18] sm:$0xff] (!%p225_p3)   ;;  %v1614_v5 = vmov (!%p225_p3), 0.0   ;;  %v1535_v6 = vld [vmem:[%s1985_s1 + $0x20] sm:$0xff] (!%p225_p3)   ;;  %vm630_vm1 = vcmask (!%p225_p3), 154624  }
   0x8   : > { %687 = vmatpush1.bf16.msra.mxu0 (!%p225_p3), %v1531_v0  ;;  %1494 = vmatpush1.bf16.msra.mxu1 (!%p225_p3), %v1531_v0  ;;  %314 = vst.msk [vmem:[#allocation2] sm:$0xff] (!%p225_p3), %vm313_vm0, %v1614_v5  ;;  %315 = vst.msk [vmem:[#allocation2 + $0x8] sm:$0xff] (!%p225_p3), %vm313_vm0, %v1614_v5  ;;  %v1536_v9 = vld [vmem:[%s1985_s1 + $0x28] sm:$0xff] (!%p225_p3)   ;;  %v1537_v10 = vld [vmem:[%s1985_s1 + $0x30] sm:$0xff] (!%p225_p3)   ;;  %vm679_vm2 = vcmask (!%p225_p3), 1040384   ;;  %vm680_vm3 = vcmask (!%p225_p3), 1041408  }
   0x9   : > { %688 = vmatprep.subr.bf16.mxu0 (!%p225_p3), %v1613_v1  ;;  %1485 = vmatprep.subr.bf16.mxu1 (!%p225_p3), %v1613_v1  ;;  %316 = vst.msk [vmem:[#allocation2 + $0x10] sm:$0xff] (!%p225_p3), %vm313_vm0, %v1614_v5  ;;  %317 = vst.msk [vmem:[#allocation2 + $0x18] sm:$0xff] (!%p225_p3), %vm313_vm0, %v1614_v5  ;;  %v1538_v11 = vld [vmem:[%s1985_s1 + $0x38] sm:$0xff] (!%p225_p3)   ;;  %v1615_v12 = vmov (!%p225_p3), 65535   ;;  %v1539_v14 = vld [vmem:[%s1985_s1 + $0x40] sm:$0xff] (!%p225_p3)   ;;  %vm1185_vm4 = vcmask (!%p225_p3), 519168  }
   0xa   : > { %318 = vst.msk [vmem:[#allocation2 + $0x20] sm:$0xff] (!%p225_p3), %vm313_vm0, %v1614_v5  ;;  %319 = vst.msk [vmem:[#allocation2 + $0x28] sm:$0xff] (!%p225_p3), %vm313_vm0, %v1614_v5  ;;  %v681_v13 = vsel (!%p225_p3), %vm679_vm2, 4294967295, %v1615_v12  ;;  %v1540_v15 = vld [vmem:[%s1985_s1 + $0x48] ss:$0 sps:$4 sm:$0x33] (!%p225_p3)  }
   0xb   : > { %320 = vst.msk [vmem:[#allocation2 + $0x30] sm:$0xff] (!%p225_p3), %vm313_vm0, %v1614_v5  ;;  %321 = vst.msk [vmem:[#allocation2 + $0x38] sm:$0xff] (!%p225_p3), %vm313_vm0, %v1614_v5  ;;  %v682_v16 = vsel (!%p225_p3), %vm680_vm3, %v681_v13, 0  ;;  %v1811_v12 = vld [vmem:[%s1987_s3] ss:$0 sm:$0xff] (!%p225_p3) }
   0xc   : > { %689 = vmatpush1.bf16.msra.mxu0 (!%p225_p3), %v1532_v2  ;;  %1495 = vmatpush1.bf16.msra.mxu1 (!%p225_p3), %v1532_v2  ;;  %322 = vst.msk [vmem:[#allocation2 + $0x40] sm:$0xff] (!%p225_p3), %vm313_vm0, %v1614_v5  ;;  %323 = vst.msk [vmem:[#allocation2 + $0x48] sm:$0xff] (!%p225_p3), %vm313_vm0, %v1614_v5  ;;  %v684_v17 = vand.u32 (!%p225_p3), %v1540_v15, %v682_v16  ;;  %v1806_v2 = vld [vmem:[%s1986_s2] ss:$0 sm:$0xff] (!%p225_p3) }
   0xd   : > { %690 = vmatprep.subr.bf16.mxu0 (!%p225_p3), %v1613_v1  ;;  %1486 = vmatprep.subr.bf16.mxu1 (!%p225_p3), %v1613_v1  ;;  %324 = vst.msk [vmem:[#allocation2 + $0x50] sm:$0xff] (!%p225_p3), %vm313_vm0, %v1614_v5  ;;  %325 = vst.msk [vmem:[#allocation2 + $0x58] sm:$0xff] (!%p225_p3), %vm313_vm0, %v1614_v5 }
   0xe   : > { %s1994_s25 = smov (!%p274_p4, %s1352_s25), 63  ;;  %326 = vst.msk [vmem:[#allocation2 + $0x60] sm:$0xff] %vm313_vm0, %v1614_v5  ;;  %327 = vst.msk [vmem:[#allocation2 + $0x68] sm:$0xff] %vm313_vm0, %v1614_v5 }
   0xf   : > { %s1451_s28 = sshll.u32 %s1994_s25, 3  ;;  %328 = vst.msk [vmem:[#allocation2 + $0x70] sm:$0xff] %vm313_vm0, %v1614_v5  ;;  %329 = vst.msk [vmem:[#allocation2 + $0x78] sm:$0xff] %vm313_vm0, %v1614_v5  ;;  %v346_v48 = vld [vmem:[#allocation2] sm:$0xff]  ;;  %v347_v52 = vld [vmem:[#allocation2 + $0x8] sm:$0xff]  ;;  %s1356_s26 = sshll.u32 %s1994_s25, 2 }
  0x10   : > { %691 = vmatpush1.bf16.msra.mxu0 %v1533_v3  ;;  %1496 = vmatpush1.bf16.msra.mxu1 %v1533_v3  ;;  %330 = vst.msk [vmem:[#allocation2 + $0x80] sm:$0xff] %vm313_vm0, %v1614_v5  ;;  %331 = vst.msk [vmem:[#allocation2 + $0x88] sm:$0xff] %vm313_vm0, %v1614_v5  ;;  %s1719_s5 = scalar_lea.vmem %s1984_s0, %s1451_s28  ;;  %v348_v0 = vld [vmem:[#allocation2 + $0x10] sm:$0xff]  ;;  %s1829_s28 = scalar_lea.vmem %s1988_s4, %s1356_s26 }
  0x11   : > { %692 = vmatprep.subr.bf16.mxu0 %v1613_v1  ;;  %1487 = vmatprep.subr.bf16.mxu1 %v1613_v1  ;;  %332 = vst.msk [vmem:[#allocation2 + $0x90] sm:$0xff] %vm313_vm0, %v1614_v5  ;;  %333 = vst.msk [vmem:[#allocation2 + $0x98] sm:$0xff] %vm313_vm0, %v1614_v5  ;;  %v1543_v7 = vld [vmem:[%s1719_s5 + $0x4] ss:$8 sps:$4 sm:$0xff]   ;;  %v1541_v18 = vld [vmem:[%s1719_s5] ss:$8 sps:$4 sm:$0xff]  }
  0x12   : > { %334 = vst.msk [vmem:[#allocation2 + $0xa0] sm:$0xff] %vm313_vm0, %v1614_v5  ;;  %335 = vst.msk [vmem:[#allocation2 + $0xa8] sm:$0xff] %vm313_vm0, %v1614_v5  ;;  %v1546_v8 = vld [vmem:[%s1719_s5 + $0x84] ss:$8 sps:$4 sm:$0xff]   ;;  %1399 = vmatprep.mubr.msk.bf16.mxu0 %vm630_vm1, %v1543_v7  ;;  %v1544_v19 = vld [vmem:[%s1719_s5 + $0x80] ss:$8 sps:$4 sm:$0xff]  }
  0x13   : > { %336 = vst.msk [vmem:[#allocation2 + $0xb0] sm:$0xff] %vm313_vm0, %v1614_v5  ;;  %337 = vst.msk [vmem:[#allocation2 + $0xb8] sm:$0xff] %vm313_vm0, %v1614_v5  ;;  %1407 = vmatprep.mubr.msk.bf16.mxu1 %vm630_vm1, %v1546_v8  ;;  %v1547_v20 = vld [vmem:[%s1719_s5 + $0x14] ss:$8 sps:$4 sm:$0xff]   ;;  %v1551_v22 = vld [vmem:[%s1719_s5 + $0x10] ss:$8 sps:$4 sm:$0xff]  }
  0x14   : > { %338 = vst.msk [vmem:[#allocation2 + $0xc0] sm:$0xff] %vm313_vm0, %v1614_v5  ;;  %339 = vst.msk [vmem:[#allocation2 + $0xc8] sm:$0xff] %vm313_vm0, %v1614_v5  ;;  %693 = vmatpush1.bf16.msra.mxu0 %v1534_v4  ;;  %1497 = vmatpush1.bf16.msra.mxu1 %v1534_v4  ;;  %v1549_v21 = vld [vmem:[%s1719_s5 + $0x94] ss:$8 sps:$4 sm:$0xff]   ;;  %v1552_v23 = vld [vmem:[%s1719_s5 + $0x90] ss:$8 sps:$4 sm:$0xff]  }
  0x15   : > { %340 = vst.msk [vmem:[#allocation2 + $0xd0] sm:$0xff] %vm313_vm0, %v1614_v5  ;;  %341 = vst.msk [vmem:[#allocation2 + $0xd8] sm:$0xff] %vm313_vm0, %v1614_v5  ;;  %694 = vmatprep.subr.bf16.mxu0 %v1613_v1  ;;  %1488 = vmatprep.subr.bf16.mxu1 %v1613_v1  ;;  %v1553_v24 = vld [vmem:[%s1719_s5 + $0x24] ss:$8 sps:$4 sm:$0xff]   ;;  %v1557_v26 = vld [vmem:[%s1719_s5 + $0x20] ss:$8 sps:$4 sm:$0xff]  }
  0x16   : > { %342 = vst.msk [vmem:[#allocation2 + $0xe0] sm:$0xff] %vm313_vm0, %v1614_v5  ;;  %343 = vst.msk [vmem:[#allocation2 + $0xe8] sm:$0xff] %vm313_vm0, %v1614_v5  ;;  %v1555_v25 = vld [vmem:[%s1719_s5 + $0xa4] ss:$8 sps:$4 sm:$0xff]   ;;  %v1558_v27 = vld [vmem:[%s1719_s5 + $0xa0] ss:$8 sps:$4 sm:$0xff]  }
  0x17   : > { %344 = vst.msk [vmem:[#allocation2 + $0xf0] sm:$0xff] %vm313_vm0, %v1614_v5  ;;  %345 = vst.msk [vmem:[#allocation2 + $0xf8] sm:$0xff] %vm313_vm0, %v1614_v5  ;;  %v1559_v28 = vld [vmem:[%s1719_s5 + $0x34] ss:$8 sps:$4 sm:$0xff]   ;;  %v1563_v30 = vld [vmem:[%s1719_s5 + $0x30] ss:$8 sps:$4 sm:$0xff]  }
  0x18   : > { %695 = vmatpush1.bf16.msra.mxu0 %v1535_v6  ;;  %1498 = vmatpush1.bf16.msra.mxu1 %v1535_v6  ;;  %v1561_v29 = vld [vmem:[%s1719_s5 + $0xb4] ss:$8 sps:$4 sm:$0xff]   ;;  %v1564_v31 = vld [vmem:[%s1719_s5 + $0xb0] ss:$8 sps:$4 sm:$0xff]   ;;  %v1565_v32 = vld [vmem:[%s1719_s5 + $0x44] ss:$8 sps:$4 sm:$0xff]  }
  0x19   : > { %696 = vmatprep.subr.bf16.mxu0 %v1613_v1  ;;  %1489 = vmatprep.subr.bf16.mxu1 %v1613_v1  ;;  %v1567_v33 = vld [vmem:[%s1719_s5 + $0xc4] ss:$8 sps:$4 sm:$0xff]   ;;  %v1569_v34 = vld [vmem:[%s1719_s5 + $0x40] ss:$8 sps:$4 sm:$0xff]   ;;  %v1571_v36 = vld [vmem:[%s1719_s5 + $0x54] ss:$8 sps:$4 sm:$0xff]  }
  0x1a   : > { %v1570_v35 = vld [vmem:[%s1719_s5 + $0xc0] ss:$8 sps:$4 sm:$0xff]   ;;  %v1573_v37 = vld [vmem:[%s1719_s5 + $0xd4] ss:$8 sps:$4 sm:$0xff]   ;;  %v1575_v38 = vld [vmem:[%s1719_s5 + $0x50] ss:$8 sps:$4 sm:$0xff]  }
  0x1b   : > { %v1576_v39 = vld [vmem:[%s1719_s5 + $0xd0] ss:$8 sps:$4 sm:$0xff]   ;;  %v1577_v40 = vld [vmem:[%s1719_s5 + $0x64] ss:$8 sps:$4 sm:$0xff]   ;;  %v1581_v42 = vld [vmem:[%s1719_s5 + $0x60] ss:$8 sps:$4 sm:$0xff]  }
  0x1c   : > { %697 = vmatpush1.bf16.msra.mxu0 %v1536_v9  ;;  %1499 = vmatpush1.bf16.msra.mxu1 %v1536_v9  ;;  %v1579_v41 = vld [vmem:[%s1719_s5 + $0xe4] ss:$8 sps:$4 sm:$0xff]   ;;  %v1582_v43 = vld [vmem:[%s1719_s5 + $0xe0] ss:$8 sps:$4 sm:$0xff]   ;;  %v1583_v44 = vld [vmem:[%s1719_s5 + $0x74] ss:$8 sps:$4 sm:$0xff]  }
  0x1d   : > { %698 = vmatprep.subr.bf16.mxu0 %v1613_v1  ;;  %1490 = vmatprep.subr.bf16.mxu1 %v1613_v1  ;;  %v1585_v45 = vld [vmem:[%s1719_s5 + $0xf4] ss:$8 sps:$4 sm:$0xff]   ;;  %v1587_v46 = vld [vmem:[%s1719_s5 + $0x70] ss:$8 sps:$4 sm:$0xff]   ;;  %v362_v49 = vld [vmem:[#allocation2 + $0x80] sm:$0xff] }
  0x1e   : > { %v1588_v47 = vld [vmem:[%s1719_s5 + $0xf0] ss:$8 sps:$4 sm:$0xff]   ;;  %v363_v53 = vld [vmem:[#allocation2 + $0x88] sm:$0xff] }
  0x1f   : > { %v349_v5 = vld [vmem:[#allocation2 + $0x18] sm:$0xff] }
  0x20   : > { %699 = vmatpush1.bf16.msra.mxu0 %v1537_v10  ;;  %1500 = vmatpush1.bf16.msra.mxu1 %v1537_v10  ;;  %v365_v6 = vld [vmem:[#allocation2 + $0x98] sm:$0xff] }
  0x21   : > { %700 = vmatprep.subr.bf16.mxu0 %v1613_v1  ;;  %1491 = vmatprep.subr.bf16.mxu1 %v1613_v1 }
  0x24   : > { %701 = vmatpush1.bf16.msra.mxu0 %v1538_v11  ;;  %1501 = vmatpush1.bf16.msra.mxu1 %v1538_v11 }
  0x25   : > { %702 = vmatprep.subr.bf16.mxu0 %v1613_v1  ;;  %1492 = vmatprep.subr.bf16.mxu1 %v1613_v1 }
  0x28   : > { %703 = vmatpush1.bf16.msra.mxu0 %v1539_v14  ;;  %1502 = vmatpush1.bf16.msra.mxu1 %v1539_v14 }
  0x29   : > { %704 = vmatprep.subr.bf16.mxu0 %v1613_v1  ;;  %1493 = vmatprep.subr.bf16.mxu1 %v1613_v1  ;;  %v364_v1 = vld [vmem:[#allocation2 + $0x90] sm:$0xff] }
  0x2c   : > { %705 = vmatpush1.bf16.msra.mxu0 %v684_v17  ;;  %1503 = vmatpush1.bf16.msra.mxu1 %v684_v17 }
  0x2f   : > { %719 = vmatmul.mubr.bf16.vlgmr.msra.gmra.mrb[0].mxu0 %v1541_v18  ;;  %783 = vmatmul.mubr.bf16.vlgmr.msra.gmra.mrb[0].mxu1 %v1544_v19 }
  0x30   : > { %1400 = vmatprep.mubr.msk.bf16.mxu0 %vm630_vm1, %v1547_v20  ;;  %1408 = vmatprep.mubr.msk.bf16.mxu1 %vm630_vm1, %v1549_v21 }
  0x37   : > { %727 = vmatmul.mubr.bf16.gmra.mrb[4].mxu0 %v1551_v22  ;;  %791 = vmatmul.mubr.bf16.gmra.mrb[4].mxu1 %v1552_v23 }
  0x38   : > { %1401 = vmatprep.mubr.msk.bf16.mxu0 %vm630_vm1, %v1553_v24  ;;  %1409 = vmatprep.mubr.msk.bf16.mxu1 %vm630_vm1, %v1555_v25 }
  0x3f   : > { %735 = vmatmul.mubr.bf16.gmra.mrb[8].mxu0 %v1557_v26  ;;  %799 = vmatmul.mubr.bf16.gmra.mrb[8].mxu1 %v1558_v27 }
  0x40   : > { %1402 = vmatprep.mubr.msk.bf16.mxu0 %vm630_vm1, %v1559_v28  ;;  %1410 = vmatprep.mubr.msk.bf16.mxu1 %vm630_vm1, %v1561_v29 }
  0x47   : > { %743 = vmatmul.mubr.bf16.gmra.mrb[12].mxu0 %v1563_v30  ;;  %807 = vmatmul.mubr.bf16.gmra.mrb[12].mxu1 %v1564_v31 }
  0x48   : > { %1403 = vmatprep.mubr.msk.bf16.mxu0 %vm630_vm1, %v1565_v32  ;;  %1411 = vmatprep.mubr.msk.bf16.mxu1 %vm630_vm1, %v1567_v33  ;;  %v350_v32 = vld [vmem:[#allocation2 + $0x20] sm:$0xff] }
  0x49   : > { %v366_v33 = vld [vmem:[#allocation2 + $0xa0] sm:$0xff] }
  0x4f   : > { %751 = vmatmul.mubr.bf16.gmra.mrb[16].mxu0 %v1569_v34  ;;  %815 = vmatmul.mubr.bf16.gmra.mrb[16].mxu1 %v1570_v35 }
  0x50   : > { %1404 = vmatprep.mubr.msk.bf16.mxu0 %vm630_vm1, %v1571_v36  ;;  %1412 = vmatprep.mubr.msk.bf16.mxu1 %vm630_vm1, %v1573_v37 }
  0x57   : > { %759 = vmatmul.mubr.bf16.gmra.mrb[20].mxu0 %v1575_v38  ;;  %823 = vmatmul.mubr.bf16.gmra.mrb[20].mxu1 %v1576_v39 }
  0x58   : > { %1405 = vmatprep.mubr.msk.bf16.mxu0 %vm630_vm1, %v1577_v40  ;;  %1413 = vmatprep.mubr.msk.bf16.mxu1 %vm630_vm1, %v1579_v41 }
  0x5f   : > { %767 = vmatmul.mubr.bf16.gmra.mrb[24].mxu0 %v1581_v42  ;;  %831 = vmatmul.mubr.bf16.gmra.mrb[24].mxu1 %v1582_v43  ;;  %v351_v42 = vld [vmem:[#allocation2 + $0x28] sm:$0xff] }
  0x60   : > { %1406 = vmatprep.mubr.msk.bf16.mxu0 %vm630_vm1, %v1583_v44  ;;  %1414 = vmatprep.mubr.msk.bf16.mxu1 %vm630_vm1, %v1585_v45  ;;  %v367_v43 = vld [vmem:[#allocation2 + $0xa8] sm:$0xff] }
  0x67   : > { %775 = vmatmul.mubr.bf16.gmra.mrb[28].mxu0 %v1587_v46  ;;  %839 = vmatmul.mubr.bf16.gmra.mrb[28].mxu1 %v1588_v47 }
 0x102   : > { %v720_v50 = vpop.f32.mrb[0].mxu0  ;;  %v784_v51 = vpop.f32.mrb[0].mxu1 }
 0x103   : > { %v847_v54 = vadd.f32 %v720_v50, %v346_v48  ;;  %v863_v55 = vadd.f32 %v784_v51, %v362_v49  ;;  %v722_v56 = vpop.f32.mrb[1].mxu0  ;;  %v786_v57 = vpop.f32.mrb[1].mxu1 }
 0x104   : > { %v723_v58 = vpop.f32.mrb[2].mxu0  ;;  %v787_v59 = vpop.f32.mrb[2].mxu1 }
 0x105   : > { %880 = vst.msk [vmem:[#allocation2] sm:$0xff] %vm313_vm0, %v847_v54  ;;  %896 = vst.msk [vmem:[#allocation2 + $0x80] sm:$0xff] %vm313_vm0, %v863_v55  ;;  %v848_v60 = vadd.f32 %v723_v58, %v347_v52  ;;  %v864_v61 = vadd.f32 %v787_v59, %v363_v53  ;;  %v725_v62 = vpop.f32.mrb[3].mxu0  ;;  %v789_v63 = vpop.f32.mrb[3].mxu1 }
 0x107   : > { %881 = vst.msk [vmem:[#allocation2 + $0x8] sm:$0xff] %vm313_vm0, %v848_v60  ;;  %897 = vst.msk [vmem:[#allocation2 + $0x88] sm:$0xff] %vm313_vm0, %v864_v61 }
 0x10a   : > { %v728_v3 = vpop.f32.mrb[4].mxu0  ;;  %v792_v4 = vpop.f32.mrb[4].mxu1 }
 0x10b   : > { %v849_v7 = vadd.f32 %v728_v3, %v348_v0  ;;  %v865_v8 = vadd.f32 %v792_v4, %v364_v1  ;;  %v730_v9 = vpop.f32.mrb[5].mxu0  ;;  %v794_v10 = vpop.f32.mrb[5].mxu1 }
 0x10c   : > { %v915_v11 = vld [vmem:[#allocation2] sm:$0xff]  ;;  %v731_v14 = vpop.f32.mrb[6].mxu0  ;;  %v795_v15 = vpop.f32.mrb[6].mxu1  ;;  %v353_v9 = vld [vmem:[#allocation2 + $0x38] sm:$0xff] }
 0x10d   : > { %v931_v13 = vld [vmem:[#allocation2 + $0x80] sm:$0xff]  ;;  %v954_v16 = vmul.f32 %v1806_v2, %v915_v11  ;;  %882 = vst.msk [vmem:[#allocation2 + $0x10] sm:$0xff] %vm313_vm0, %v849_v7  ;;  %898 = vst.msk [vmem:[#allocation2 + $0x90] sm:$0xff] %vm313_vm0, %v865_v8  ;;  %v850_v18 = vadd.f32 %v731_v14, %v349_v5  ;;  %v866_v19 = vadd.f32 %v795_v15, %v365_v6  ;;  %v733_v20 = vpop.f32.mrb[7].mxu0  ;;  %v797_v21 = vpop.f32.mrb[7].mxu1  ;;  %v352_v5 = vld [vmem:[#allocation2 + $0x30] sm:$0xff] }
 0x10e   : > { %v970_v17 = vmul.f32 %v1806_v2, %v931_v13  ;;  %v916_v22 = vld [vmem:[#allocation2 + $0x8] sm:$0xff]  ;;  %v368_v6 = vld [vmem:[#allocation2 + $0xb0] sm:$0xff]  ;;  %v369_v10 = vld [vmem:[#allocation2 + $0xb8] sm:$0xff] }
 0x10f   : > { %v932_v23 = vld [vmem:[#allocation2 + $0x88] sm:$0xff]  ;;  %v993_v24 = vadd.f32 %v1811_v12, %v954_v16  ;;  %v955_v26 = vmul.f32 %v1806_v2, %v916_v22  ;;  %883 = vst.msk [vmem:[#allocation2 + $0x18] sm:$0xff] %vm313_vm0, %v850_v18  ;;  %899 = vst.msk [vmem:[#allocation2 + $0x98] sm:$0xff] %vm313_vm0, %v866_v19 }
 0x110   : > { %v1009_v25 = vadd.f32 %v1811_v12, %v970_v17  ;;  %v971_v27 = vmul.f32 %v1806_v2, %v932_v23 }
 0x111   : > { %v1025_v28 = vmax.f32 %v993_v24, 0.0  ;;  %v994_v30 = vadd.f32 %v1811_v12, %v955_v26 }
 0x112   : > { %v1041_v29 = vmax.f32 %v1009_v25, 0.0  ;;  %v1010_v31 = vadd.f32 %v1811_v12, %v971_v27  ;;  %v736_v34 = vpop.f32.mrb[8].mxu0  ;;  %v800_v35 = vpop.f32.mrb[8].mxu1 }
 0x113   : > { %v1452_v36 = vpack.c.bf16 %v1025_v28, %v1025_v28  ;;  %v1026_v38 = vmax.f32 %v994_v30, 0.0  ;;  %v738_v40 = vpop.f32.mrb[9].mxu0  ;;  %v802_v41 = vpop.f32.mrb[9].mxu1  ;;  %v851_v46 = vadd.f32 %v736_v34, %v350_v32  ;;  %v867_v47 = vadd.f32 %v800_v35, %v366_v33 }
 0x114   : > { %v1468_v37 = vpack.c.bf16 %v1041_v29, %v1041_v29  ;;  %v1042_v39 = vmax.f32 %v1010_v31, 0.0  ;;  %v917_v44 = vld [vmem:[#allocation2 + $0x10] sm:$0xff]  ;;  %v739_v48 = vpop.f32.mrb[10].mxu0  ;;  %v803_v49 = vpop.f32.mrb[10].mxu1 }
 0x115   : > { %v933_v45 = vld [vmem:[#allocation2 + $0x90] sm:$0xff]  ;;  %1186 = vst.msk [vmem:[%s1829_s28] sm:$0xf] %vm1185_vm4, %v1452_v36  ;;  %v1453_v50 = vpack.c.bf16 %v1026_v38, %v1026_v38  ;;  %v956_v52 = vmul.f32 %v1806_v2, %v917_v44  ;;  %v741_v54 = vpop.f32.mrb[11].mxu0  ;;  %v805_v55 = vpop.f32.mrb[11].mxu1  ;;  %v852_v58 = vadd.f32 %v739_v48, %v351_v42  ;;  %v868_v59 = vadd.f32 %v803_v49, %v367_v43  ;;  %v354_v38 = vld [vmem:[#allocation2 + $0x40] sm:$0xff] }
 0x116   : > { %1202 = vst.msk [vmem:[%s1829_s28 + $0x40] sm:$0xf] %vm1185_vm4, %v1468_v37  ;;  %v1469_v51 = vpack.c.bf16 %v1042_v39, %v1042_v39  ;;  %v972_v53 = vmul.f32 %v1806_v2, %v933_v45  ;;  %v918_v56 = vld [vmem:[#allocation2 + $0x18] sm:$0xff]  ;;  %v370_v39 = vld [vmem:[#allocation2 + $0xc0] sm:$0xff] }
 0x117   : > { %v934_v57 = vld [vmem:[#allocation2 + $0x98] sm:$0xff]  ;;  %884 = vst.msk [vmem:[#allocation2 + $0x20] sm:$0xff] %vm313_vm0, %v851_v46  ;;  %900 = vst.msk [vmem:[#allocation2 + $0xa0] sm:$0xff] %vm313_vm0, %v867_v47  ;;  %v995_v60 = vadd.f32 %v1811_v12, %v956_v52  ;;  %v957_v62 = vmul.f32 %v1806_v2, %v918_v56  ;;  %v355_v46 = vld [vmem:[#allocation2 + $0x48] sm:$0xff] }
 0x118   : > { %1187 = vst.msk [vmem:[%s1829_s28 + $0x4] sm:$0xf] %vm1185_vm4, %v1453_v50  ;;  %1203 = vst.msk [vmem:[%s1829_s28 + $0x44] sm:$0xf] %vm1185_vm4, %v1469_v51  ;;  %v1011_v61 = vadd.f32 %v1811_v12, %v972_v53  ;;  %v973_v63 = vmul.f32 %v1806_v2, %v934_v57  ;;  %v371_v47 = vld [vmem:[#allocation2 + $0xc8] sm:$0xff] }
 0x119   : > { %885 = vst.msk [vmem:[#allocation2 + $0x28] sm:$0xff] %vm313_vm0, %v852_v58  ;;  %901 = vst.msk [vmem:[#allocation2 + $0xa8] sm:$0xff] %vm313_vm0, %v868_v59  ;;  %v1027_v0 = vmax.f32 %v995_v60, 0.0  ;;  %v996_v3 = vadd.f32 %v1811_v12, %v957_v62 }
 0x11a   : > { %v1043_v1 = vmax.f32 %v1011_v61, 0.0  ;;  %v1012_v4 = vadd.f32 %v1811_v12, %v973_v63  ;;  %v744_v7 = vpop.f32.mrb[12].mxu0  ;;  %v808_v8 = vpop.f32.mrb[12].mxu1 }
 0x11b   : > { %v1454_v11 = vpack.c.bf16 %v1027_v0, %v1027_v0  ;;  %v1028_v14 = vmax.f32 %v996_v3, 0.0  ;;  %v746_v16 = vpop.f32.mrb[13].mxu0  ;;  %v810_v17 = vpop.f32.mrb[13].mxu1  ;;  %v853_v18 = vadd.f32 %v744_v7, %v352_v5  ;;  %v869_v19 = vadd.f32 %v808_v8, %v368_v6 }
 0x11c   : > { %v1470_v13 = vpack.c.bf16 %v1043_v1, %v1043_v1  ;;  %v1044_v15 = vmax.f32 %v1012_v4, 0.0  ;;  %v747_v20 = vpop.f32.mrb[14].mxu0  ;;  %v811_v21 = vpop.f32.mrb[14].mxu1 }
 0x11d   : > { %1188 = vst.msk [vmem:[%s1829_s28 + $0x8] sm:$0xf] %vm1185_vm4, %v1454_v11  ;;  %v1455_v22 = vpack.c.bf16 %v1028_v14, %v1028_v14  ;;  %v854_v26 = vadd.f32 %v747_v20, %v353_v9  ;;  %v870_v27 = vadd.f32 %v811_v21, %v369_v10  ;;  %v749_v28 = vpop.f32.mrb[15].mxu0  ;;  %v813_v29 = vpop.f32.mrb[15].mxu1  ;;  %v356_v11 = vld [vmem:[#allocation2 + $0x50] sm:$0xff] }
 0x11e   : > { %1204 = vst.msk [vmem:[%s1829_s28 + $0x48] sm:$0xf] %vm1185_vm4, %v1470_v13  ;;  %v1471_v23 = vpack.c.bf16 %v1044_v15, %v1044_v15  ;;  %v919_v24 = vld [vmem:[#allocation2 + $0x20] sm:$0xff]  ;;  %v372_v13 = vld [vmem:[#allocation2 + $0xd0] sm:$0xff] }
 0x11f   : > { %v935_v25 = vld [vmem:[#allocation2 + $0xa0] sm:$0xff]  ;;  %v958_v30 = vmul.f32 %v1806_v2, %v919_v24  ;;  %886 = vst.msk [vmem:[#allocation2 + $0x30] sm:$0xff] %vm313_vm0, %v853_v18  ;;  %902 = vst.msk [vmem:[#allocation2 + $0xb0] sm:$0xff] %vm313_vm0, %v869_v19 }
 0x120   : > { %v974_v31 = vmul.f32 %v1806_v2, %v935_v25  ;;  %1189 = vst.msk [vmem:[%s1829_s28 + $0xc] sm:$0xf] %vm1185_vm4, %v1455_v22  ;;  %1205 = vst.msk [vmem:[%s1829_s28 + $0x4c] sm:$0xf] %vm1185_vm4, %v1471_v23  ;;  %v920_v32 = vld [vmem:[#allocation2 + $0x28] sm:$0xff] }
 0x121   : > { %v936_v33 = vld [vmem:[#allocation2 + $0xa8] sm:$0xff]  ;;  %887 = vst.msk [vmem:[#allocation2 + $0x38] sm:$0xff] %vm313_vm0, %v854_v26  ;;  %903 = vst.msk [vmem:[#allocation2 + $0xb8] sm:$0xff] %vm313_vm0, %v870_v27  ;;  %v997_v34 = vadd.f32 %v1811_v12, %v958_v30  ;;  %v959_v36 = vmul.f32 %v1806_v2, %v920_v32  ;;  %v357_v26 = vld [vmem:[#allocation2 + $0x58] sm:$0xff] }
 0x122   : > { %v1013_v35 = vadd.f32 %v1811_v12, %v974_v31  ;;  %v975_v37 = vmul.f32 %v1806_v2, %v936_v33  ;;  %v752_v44 = vpop.f32.mrb[16].mxu0  ;;  %v816_v45 = vpop.f32.mrb[16].mxu1  ;;  %v373_v27 = vld [vmem:[#allocation2 + $0xd8] sm:$0xff] }
 0x123   : > { %v1029_v40 = vmax.f32 %v997_v34, 0.0  ;;  %v998_v42 = vadd.f32 %v1811_v12, %v959_v36  ;;  %v855_v48 = vadd.f32 %v752_v44, %v354_v38  ;;  %v871_v49 = vadd.f32 %v816_v45, %v370_v39  ;;  %v754_v50 = vpop.f32.mrb[17].mxu0  ;;  %v818_v51 = vpop.f32.mrb[17].mxu1 }
 0x124   : > { %v1045_v41 = vmax.f32 %v1013_v35, 0.0  ;;  %v1014_v43 = vadd.f32 %v1811_v12, %v975_v37  ;;  %v755_v56 = vpop.f32.mrb[18].mxu0  ;;  %v819_v57 = vpop.f32.mrb[18].mxu1 }
 0x125   : > { %v1456_v52 = vpack.c.bf16 %v1029_v40, %v1029_v40  ;;  %v1030_v54 = vmax.f32 %v998_v42, 0.0  ;;  %888 = vst.msk [vmem:[#allocation2 + $0x40] sm:$0xff] %vm313_vm0, %v855_v48  ;;  %904 = vst.msk [vmem:[#allocation2 + $0xc0] sm:$0xff] %vm313_vm0, %v871_v49  ;;  %v856_v60 = vadd.f32 %v755_v56, %v355_v46  ;;  %v872_v61 = vadd.f32 %v819_v57, %v371_v47  ;;  %v757_v62 = vpop.f32.mrb[19].mxu0  ;;  %v821_v63 = vpop.f32.mrb[19].mxu1 }
 0x126   : > { %v1472_v53 = vpack.c.bf16 %v1045_v41, %v1045_v41  ;;  %v1046_v55 = vmax.f32 %v1014_v43, 0.0  ;;  %v921_v58 = vld [vmem:[#allocation2 + $0x30] sm:$0xff]  ;;  %v359_v62 = vld [vmem:[#allocation2 + $0x68] sm:$0xff] }
 0x127   : > { %v937_v59 = vld [vmem:[#allocation2 + $0xb0] sm:$0xff]  ;;  %1190 = vst.msk [vmem:[%s1829_s28 + $0x10] sm:$0xf] %vm1185_vm4, %v1456_v52  ;;  %v1457_v0 = vpack.c.bf16 %v1030_v54, %v1030_v54  ;;  %v960_v3 = vmul.f32 %v1806_v2, %v921_v58  ;;  %v358_v52 = vld [vmem:[#allocation2 + $0x60] sm:$0xff]  ;;  %v375_v63 = vld [vmem:[#allocation2 + $0xe8] sm:$0xff] }
 0x128   : > { %1206 = vst.msk [vmem:[%s1829_s28 + $0x50] sm:$0xf] %vm1185_vm4, %v1472_v53  ;;  %v1473_v1 = vpack.c.bf16 %v1046_v55, %v1046_v55  ;;  %v976_v4 = vmul.f32 %v1806_v2, %v937_v59  ;;  %v922_v5 = vld [vmem:[#allocation2 + $0x38] sm:$0xff]  ;;  %v374_v53 = vld [vmem:[#allocation2 + $0xe0] sm:$0xff] }
 0x129   : > { %v938_v6 = vld [vmem:[#allocation2 + $0xb8] sm:$0xff]  ;;  %v961_v7 = vmul.f32 %v1806_v2, %v922_v5  ;;  %889 = vst.msk [vmem:[#allocation2 + $0x48] sm:$0xff] %vm313_vm0, %v856_v60  ;;  %905 = vst.msk [vmem:[#allocation2 + $0xc8] sm:$0xff] %vm313_vm0, %v872_v61  ;;  %v999_v9 = vadd.f32 %v1811_v12, %v960_v3 }
 0x12a   : > { %v977_v8 = vmul.f32 %v1806_v2, %v938_v6  ;;  %1191 = vst.msk [vmem:[%s1829_s28 + $0x14] sm:$0xf] %vm1185_vm4, %v1457_v0  ;;  %1207 = vst.msk [vmem:[%s1829_s28 + $0x54] sm:$0xf] %vm1185_vm4, %v1473_v1  ;;  %v1015_v10 = vadd.f32 %v1811_v12, %v976_v4  ;;  %v760_v18 = vpop.f32.mrb[20].mxu0  ;;  %v824_v19 = vpop.f32.mrb[20].mxu1 }
 0x12b   : > { %v1000_v14 = vadd.f32 %v1811_v12, %v961_v7  ;;  %v1031_v16 = vmax.f32 %v999_v9, 0.0  ;;  %v857_v22 = vadd.f32 %v760_v18, %v356_v11  ;;  %v873_v23 = vadd.f32 %v824_v19, %v372_v13  ;;  %v762_v24 = vpop.f32.mrb[21].mxu0  ;;  %v826_v25 = vpop.f32.mrb[21].mxu1 }
 0x12c   : > { %v1016_v15 = vadd.f32 %v1811_v12, %v977_v8  ;;  %v1047_v17 = vmax.f32 %v1015_v10, 0.0  ;;  %v923_v30 = vld [vmem:[#allocation2 + $0x40] sm:$0xff]  ;;  %v763_v32 = vpop.f32.mrb[22].mxu0  ;;  %v827_v33 = vpop.f32.mrb[22].mxu1 }
 0x12d   : > { %v1032_v20 = vmax.f32 %v1000_v14, 0.0  ;;  %v1458_v28 = vpack.c.bf16 %v1031_v16, %v1031_v16  ;;  %v939_v31 = vld [vmem:[#allocation2 + $0xc0] sm:$0xff]  ;;  %v962_v36 = vmul.f32 %v1806_v2, %v923_v30  ;;  %890 = vst.msk [vmem:[#allocation2 + $0x50] sm:$0xff] %vm313_vm0, %v857_v22  ;;  %906 = vst.msk [vmem:[#allocation2 + $0xd0] sm:$0xff] %vm313_vm0, %v873_v23  ;;  %v765_v38 = vpop.f32.mrb[23].mxu0  ;;  %v829_v39 = vpop.f32.mrb[23].mxu1  ;;  %v858_v42 = vadd.f32 %v763_v32, %v357_v26 }
 0x12e   : > { %v1048_v21 = vmax.f32 %v1016_v15, 0.0  ;;  %v1474_v29 = vpack.c.bf16 %v1047_v17, %v1047_v17  ;;  %v978_v37 = vmul.f32 %v1806_v2, %v939_v31  ;;  %v874_v43 = vadd.f32 %v827_v33, %v373_v27  ;;  %v360_v22 = vld [vmem:[#allocation2 + $0x70] sm:$0xff]  ;;  %v361_v30 = vld [vmem:[#allocation2 + $0x78] sm:$0xff] }
 0x12f   : > { %v1459_v34 = vpack.c.bf16 %v1032_v20, %v1032_v20  ;;  %1192 = vst.msk [vmem:[%s1829_s28 + $0x18] sm:$0xf] %vm1185_vm4, %v1458_v28  ;;  %v1001_v44 = vadd.f32 %v1811_v12, %v962_v36  ;;  %v376_v23 = vld [vmem:[#allocation2 + $0xf0] sm:$0xff]  ;;  %v377_v31 = vld [vmem:[#allocation2 + $0xf8] sm:$0xff] }
 0x130   : > { %v1475_v35 = vpack.c.bf16 %v1048_v21, %v1048_v21  ;;  %1208 = vst.msk [vmem:[%s1829_s28 + $0x58] sm:$0xf] %vm1185_vm4, %v1474_v29  ;;  %v924_v40 = vld [vmem:[#allocation2 + $0x48] sm:$0xff]  ;;  %v1017_v45 = vadd.f32 %v1811_v12, %v978_v37 }
 0x131   : > { %v940_v41 = vld [vmem:[#allocation2 + $0xc8] sm:$0xff]  ;;  %1193 = vst.msk [vmem:[%s1829_s28 + $0x1c] sm:$0xf] %vm1185_vm4, %v1459_v34  ;;  %v963_v46 = vmul.f32 %v1806_v2, %v924_v40  ;;  %v1033_v48 = vmax.f32 %v1001_v44, 0.0 }
 0x132   : > { %1209 = vst.msk [vmem:[%s1829_s28 + $0x5c] sm:$0xf] %vm1185_vm4, %v1475_v35  ;;  %v979_v47 = vmul.f32 %v1806_v2, %v940_v41  ;;  %v1049_v49 = vmax.f32 %v1017_v45, 0.0  ;;  %v768_v54 = vpop.f32.mrb[24].mxu0  ;;  %v832_v55 = vpop.f32.mrb[24].mxu1 }
 0x133   : > { %891 = vst.msk [vmem:[#allocation2 + $0x58] sm:$0xff] %vm313_vm0, %v858_v42  ;;  %907 = vst.msk [vmem:[#allocation2 + $0xd8] sm:$0xff] %vm313_vm0, %v874_v43  ;;  %v1002_v50 = vadd.f32 %v1811_v12, %v963_v46  ;;  %v1460_v56 = vpack.c.bf16 %v1033_v48, %v1033_v48  ;;  %v770_v60 = vpop.f32.mrb[25].mxu0  ;;  %v834_v61 = vpop.f32.mrb[25].mxu1  ;;  %v859_v3 = vadd.f32 %v768_v54, %v358_v52 }
 0x134   : > { %v1018_v51 = vadd.f32 %v1811_v12, %v979_v47  ;;  %v1476_v57 = vpack.c.bf16 %v1049_v49, %v1049_v49  ;;  %v925_v0 = vld [vmem:[#allocation2 + $0x50] sm:$0xff]  ;;  %v875_v4 = vadd.f32 %v832_v55, %v374_v53  ;;  %v771_v5 = vpop.f32.mrb[26].mxu0  ;;  %v835_v6 = vpop.f32.mrb[26].mxu1 }
 0x135   : > { %v1034_v58 = vmax.f32 %v1002_v50, 0.0  ;;  %v941_v1 = vld [vmem:[#allocation2 + $0xd0] sm:$0xff]  ;;  %1194 = vst.msk [vmem:[%s1829_s28 + $0x20] sm:$0xf] %vm1185_vm4, %v1460_v56  ;;  %v964_v9 = vmul.f32 %v1806_v2, %v925_v0  ;;  %v773_v11 = vpop.f32.mrb[27].mxu0  ;;  %v837_v13 = vpop.f32.mrb[27].mxu1  ;;  %v860_v14 = vadd.f32 %v771_v5, %v359_v62  ;;  %v876_v15 = vadd.f32 %v835_v6, %v375_v63 }
 0x136   : > { %v1050_v59 = vmax.f32 %v1018_v51, 0.0  ;;  %1210 = vst.msk [vmem:[%s1829_s28 + $0x60] sm:$0xf] %vm1185_vm4, %v1476_v57  ;;  %v980_v10 = vmul.f32 %v1806_v2, %v941_v1 }
 0x137   : > { %v1461_v7 = vpack.c.bf16 %v1034_v58, %v1034_v58  ;;  %892 = vst.msk [vmem:[#allocation2 + $0x60] sm:$0xff] %vm313_vm0, %v859_v3  ;;  %908 = vst.msk [vmem:[#allocation2 + $0xe0] sm:$0xff] %vm313_vm0, %v875_v4  ;;  %v1003_v16 = vadd.f32 %v1811_v12, %v964_v9 }
 0x138   : > { %v1477_v8 = vpack.c.bf16 %v1050_v59, %v1050_v59  ;;  %v1019_v17 = vadd.f32 %v1811_v12, %v980_v10  ;;  %893 = vst.msk [vmem:[#allocation2 + $0x68] sm:$0xff] %vm313_vm0, %v860_v14  ;;  %909 = vst.msk [vmem:[#allocation2 + $0xe8] sm:$0xff] %vm313_vm0, %v876_v15 }
 0x139   : > { %1195 = vst.msk [vmem:[%s1829_s28 + $0x24] sm:$0xf] %vm1185_vm4, %v1461_v7  ;;  %v1035_v24 = vmax.f32 %v1003_v16, 0.0 }
 0x13a   : > { %1211 = vst.msk [vmem:[%s1829_s28 + $0x64] sm:$0xf] %vm1185_vm4, %v1477_v8  ;;  %v926_v18 = vld [vmem:[#allocation2 + $0x58] sm:$0xff]  ;;  %v1051_v25 = vmax.f32 %v1019_v17, 0.0  ;;  %v776_v28 = vpop.f32.mrb[28].mxu0  ;;  %v840_v29 = vpop.f32.mrb[28].mxu1 }
 0x13b   : > { %v942_v19 = vld [vmem:[#allocation2 + $0xd8] sm:$0xff]  ;;  %v965_v20 = vmul.f32 %v1806_v2, %v926_v18  ;;  %v1462_v32 = vpack.c.bf16 %v1035_v24, %v1035_v24  ;;  %v861_v34 = vadd.f32 %v776_v28, %v360_v22  ;;  %v877_v35 = vadd.f32 %v840_v29, %v376_v23  ;;  %v778_v36 = vpop.f32.mrb[29].mxu0  ;;  %v842_v37 = vpop.f32.mrb[29].mxu1 }
 0x13c   : > { %v981_v21 = vmul.f32 %v1806_v2, %v942_v19  ;;  %v1478_v33 = vpack.c.bf16 %v1051_v25, %v1051_v25  ;;  %v779_v40 = vpop.f32.mrb[30].mxu0  ;;  %v843_v41 = vpop.f32.mrb[30].mxu1 }
 0x13d   : > { %v1004_v26 = vadd.f32 %v1811_v12, %v965_v20  ;;  %1196 = vst.msk [vmem:[%s1829_s28 + $0x28] sm:$0xf] %vm1185_vm4, %v1462_v32  ;;  %v862_v44 = vadd.f32 %v779_v40, %v361_v30  ;;  %v878_v45 = vadd.f32 %v843_v41, %v377_v31  ;;  %v781_v46 = vpop.f32.mrb[31].mxu0  ;;  %v845_v47 = vpop.f32.mrb[31].mxu1 }
 0x13e   : > { %v1020_v27 = vadd.f32 %v1811_v12, %v981_v21  ;;  %1212 = vst.msk [vmem:[%s1829_s28 + $0x68] sm:$0xf] %vm1185_vm4, %v1478_v33  ;;  %v927_v42 = vld [vmem:[#allocation2 + $0x60] sm:$0xff] }
 0x13f   : > { %v1036_v38 = vmax.f32 %v1004_v26, 0.0  ;;  %v943_v43 = vld [vmem:[#allocation2 + $0xe0] sm:$0xff]  ;;  %894 = vst.msk [vmem:[#allocation2 + $0x70] sm:$0xff] %vm313_vm0, %v861_v34  ;;  %910 = vst.msk [vmem:[#allocation2 + $0xf0] sm:$0xff] %vm313_vm0, %v877_v35  ;;  %v966_v50 = vmul.f32 %v1806_v2, %v927_v42  ;;  %v928_v52 = vld [vmem:[#allocation2 + $0x68] sm:$0xff] }
 0x140   : > { %v1052_v39 = vmax.f32 %v1020_v27, 0.0  ;;  %v982_v51 = vmul.f32 %v1806_v2, %v943_v43  ;;  %v944_v53 = vld [vmem:[#allocation2 + $0xe8] sm:$0xff]  ;;  %895 = vst.msk [vmem:[#allocation2 + $0x78] sm:$0xff] %vm313_vm0, %v862_v44  ;;  %911 = vst.msk [vmem:[#allocation2 + $0xf8] sm:$0xff] %vm313_vm0, %v878_v45  ;;  %v967_v56 = vmul.f32 %v1806_v2, %v928_v52 }
 0x141   : > { %v1463_v48 = vpack.c.bf16 %v1036_v38, %v1036_v38  ;;  %v1005_v54 = vadd.f32 %v1811_v12, %v966_v50  ;;  %v983_v57 = vmul.f32 %v1806_v2, %v944_v53 }
 0x142   : > { %v1479_v49 = vpack.c.bf16 %v1052_v39, %v1052_v39  ;;  %v1021_v55 = vadd.f32 %v1811_v12, %v982_v51  ;;  %v1006_v60 = vadd.f32 %v1811_v12, %v967_v56 }
 0x143   : > { %1197 = vst.msk [vmem:[%s1829_s28 + $0x2c] sm:$0xf] %vm1185_vm4, %v1463_v48  ;;  %v1037_v58 = vmax.f32 %v1005_v54, 0.0  ;;  %v1022_v61 = vadd.f32 %v1811_v12, %v983_v57 }
 0x144   : > { %1213 = vst.msk [vmem:[%s1829_s28 + $0x6c] sm:$0xf] %vm1185_vm4, %v1479_v49  ;;  %v1053_v59 = vmax.f32 %v1021_v55, 0.0  ;;  %v1038_v0 = vmax.f32 %v1006_v60, 0.0 }
 0x145   : > { %v1464_v62 = vpack.c.bf16 %v1037_v58, %v1037_v58  ;;  %v1054_v1 = vmax.f32 %v1022_v61, 0.0 }
 0x146   : > { %v1480_v63 = vpack.c.bf16 %v1053_v59, %v1053_v59  ;;  %v929_v3 = vld [vmem:[#allocation2 + $0x70] sm:$0xff]  ;;  %v1465_v7 = vpack.c.bf16 %v1038_v0, %v1038_v0 }
 0x147   : > { %v945_v4 = vld [vmem:[#allocation2 + $0xf0] sm:$0xff]  ;;  %v968_v5 = vmul.f32 %v1806_v2, %v929_v3  ;;  %1198 = vst.msk [vmem:[%s1829_s28 + $0x30] sm:$0xf] %vm1185_vm4, %v1464_v62  ;;  %v1481_v8 = vpack.c.bf16 %v1054_v1, %v1054_v1  ;;  %v930_v9 = vld [vmem:[#allocation2 + $0x78] sm:$0xff] }
 0x148   : > { %v984_v6 = vmul.f32 %v1806_v2, %v945_v4  ;;  %1214 = vst.msk [vmem:[%s1829_s28 + $0x70] sm:$0xf] %vm1185_vm4, %v1480_v63  ;;  %v946_v10 = vld [vmem:[#allocation2 + $0xf8] sm:$0xff]  ;;  %v969_v14 = vmul.f32 %v1806_v2, %v930_v9  ;;  %1199 = vst.msk [vmem:[%s1829_s28 + $0x34] sm:$0xf] %vm1185_vm4, %v1465_v7 }
 0x149   : > { %v1007_v11 = vadd.f32 %v1811_v12, %v968_v5  ;;  %v985_v15 = vmul.f32 %v1806_v2, %v946_v10  ;;  %1215 = vst.msk [vmem:[%s1829_s28 + $0x74] sm:$0xf] %vm1185_vm4, %v1481_v8 }
 0x14a   : > { %v1023_v13 = vadd.f32 %v1811_v12, %v984_v6  ;;  %v1008_v18 = vadd.f32 %v1811_v12, %v969_v14 }
 0x14b   : > { %v1039_v16 = vmax.f32 %v1007_v11, 0.0  ;;  %v1024_v19 = vadd.f32 %v1811_v12, %v985_v15 }
 0x14c   : > { %v1055_v17 = vmax.f32 %v1023_v13, 0.0  ;;  %v1040_v22 = vmax.f32 %v1008_v18, 0.0 }
 0x14d   : > { %v1466_v20 = vpack.c.bf16 %v1039_v16, %v1039_v16  ;;  %v1056_v23 = vmax.f32 %v1024_v19, 0.0 }
 0x14e   : > { %v1482_v21 = vpack.c.bf16 %v1055_v17, %v1055_v17  ;;  %v1467_v2 = vpack.c.bf16 %v1040_v22, %v1040_v22 }
 0x14f   : > { %1200 = vst.msk [vmem:[%s1829_s28 + $0x38] sm:$0xf] %vm1185_vm4, %v1466_v20  ;;  %v1483_v24 = vpack.c.bf16 %v1056_v23, %v1056_v23 }
 0x150   : > { %1216 = vst.msk [vmem:[%s1829_s28 + $0x78] sm:$0xf] %vm1185_vm4, %v1482_v21  ;;  %1201 = vst.msk [vmem:[%s1829_s28 + $0x3c] sm:$0xf] %vm1185_vm4, %v1467_v2 }
 0x151   : > { %1217 = vst.msk [vmem:[%s1829_s28 + $0x7c] sm:$0xf] %vm1185_vm4, %v1483_v24 }
 0x152 PF: > { %s14_s17 = sadd.s32 1, %s1611_s17   ;;  %s1989_s15 = smov %s1607_s16 }
 0x153   : > { %p11_p5 = scmp.ge.s32.totalorder %s14_s17, 4   ;;  %s1990_s16 = smov %s1992_s18 }
 0x155   :  { %13 = sbr.rel (!%p11_p5) target bundleno = 2 (0x2), region = 83 }

// kernel: resnet18_forward.25
= control target key start
LH: loop header
LB: loop body
LE: loop exit
PB: predicated region body
PF: predicated region fallthrough
CT: control target
= control target key end

     0   :  { %vm22_vm0 = vcmask 523264   ;;  %vm1084_vm1 = vcmask 519168   ;;  %s1924_s1 = inlined_call_operand.vmem [shape: bf16[576,64], index: 1, kind: input, shape index: {}]   ;;  %s1925_s0 = inlined_call_operand.vmem [shape: bf16[128,576], index: 0, kind: input, shape index: {}]   ;;  %s1926_s2 = inlined_call_operand.vmem [shape: f32[1,64], index: 2, kind: input, shape index: {}]   ;;  %s1927_s3 = inlined_call_operand.vmem [shape: f32[1,64], index: 3, kind: input, shape index: {}]   ;;  %s1928_s4 = inlined_call_operand.vmem [shape: bf16[128,64], index: 4, kind: output, shape index: {}]  }
   0x1   :  { %v1396_v0 = vld [vmem:[%s1924_s1 + $0x40] sm:$0xff]   ;;  %v1400_v4 = vld [vmem:[%s1924_s1 + $0x48] sm:$0xff]   ;;  %v1404_v8 = vld [vmem:[%s1924_s1 + $0x50] sm:$0xff]  }
   0x2   :  { %v1397_v1 = vld [vmem:[%s1924_s1 + $0xc0] sm:$0xff]   ;;  %1223 = vmatprep.subr.bf16.mxu0 %v1396_v0  ;;  %v1401_v5 = vld [vmem:[%s1924_s1 + $0xc8] sm:$0xff]   ;;  %v1405_v9 = vld [vmem:[%s1924_s1 + $0xd0] sm:$0xff]  }
   0x3   :  { %v1398_v2 = vld [vmem:[%s1924_s1] sm:$0xff]   ;;  %1287 = vmatprep.subr.bf16.mxu1 %v1397_v1  ;;  %v1402_v6 = vld [vmem:[%s1924_s1 + $0x8] sm:$0xff]   ;;  %v1406_v10 = vld [vmem:[%s1924_s1 + $0x10] sm:$0xff]  }
   0x4   :  { %v1399_v3 = vld [vmem:[%s1924_s1 + $0x80] sm:$0xff]   ;;  %1224 = vmatpush3.bf16.msra.mxu0 %v1398_v2  ;;  %v1403_v7 = vld [vmem:[%s1924_s1 + $0x88] sm:$0xff]   ;;  %v1407_v11 = vld [vmem:[%s1924_s1 + $0x90] sm:$0xff]  }
   0x5   :  { %1288 = vmatpush3.bf16.msra.mxu1 %v1399_v3  ;;  %1225 = vmatprep.subr.bf16.mxu0 %v1400_v4  ;;  %v1408_v12 = vld [vmem:[%s1924_s1 + $0x58] sm:$0xff]   ;;  %v1412_v16 = vld [vmem:[%s1924_s1 + $0x60] sm:$0xff]   ;;  %v1416_v20 = vld [vmem:[%s1924_s1 + $0x68] sm:$0xff]  }
   0x6   :  { %1289 = vmatprep.subr.bf16.mxu1 %v1401_v5  ;;  %v1409_v13 = vld [vmem:[%s1924_s1 + $0xd8] sm:$0xff]   ;;  %v1413_v17 = vld [vmem:[%s1924_s1 + $0xe0] sm:$0xff]   ;;  %v1417_v21 = vld [vmem:[%s1924_s1 + $0xe8] sm:$0xff]  }
   0x7   :  { %v1410_v14 = vld [vmem:[%s1924_s1 + $0x18] sm:$0xff]   ;;  %v1414_v18 = vld [vmem:[%s1924_s1 + $0x20] sm:$0xff]   ;;  %v1418_v22 = vld [vmem:[%s1924_s1 + $0x28] sm:$0xff]  }
   0x8   :  { %1226 = vmatpush3.bf16.msra.mxu0 %v1402_v6  ;;  %v1411_v15 = vld [vmem:[%s1924_s1 + $0x98] sm:$0xff]   ;;  %v1415_v19 = vld [vmem:[%s1924_s1 + $0xa0] sm:$0xff]   ;;  %v1419_v23 = vld [vmem:[%s1924_s1 + $0xa8] sm:$0xff]  }
   0x9   :  { %1290 = vmatpush3.bf16.msra.mxu1 %v1403_v7  ;;  %1227 = vmatprep.subr.bf16.mxu0 %v1404_v8  ;;  %v1420_v24 = vld [vmem:[%s1924_s1 + $0x70] sm:$0xff]   ;;  %v1424_v28 = vld [vmem:[%s1924_s1 + $0x78] sm:$0xff]   ;;  %v1433_v35 = vld [vmem:[%s1925_s0 + $0xc] ss:$20 sps:$4 sm:$0xff]  }
   0xa   :  { %1291 = vmatprep.subr.bf16.mxu1 %v1405_v9  ;;  %v1421_v25 = vld [vmem:[%s1924_s1 + $0xf0] sm:$0xff]   ;;  %v1425_v29 = vld [vmem:[%s1924_s1 + $0xf8] sm:$0xff]   ;;  %v1434_v36 = vld [vmem:[%s1924_s1 + $0x100] sm:$0xff]   ;;  %745 = vmatprep.mubr.bf16.mxu1 %v1433_v35 }
   0xb   :  { %v1422_v26 = vld [vmem:[%s1924_s1 + $0x30] sm:$0xff]   ;;  %v1426_v30 = vld [vmem:[%s1924_s1 + $0x38] sm:$0xff]   ;;  %v1435_v37 = vld [vmem:[%s1925_s0 + $0x2c] ss:$20 sps:$4 sm:$0xff]  }
   0xc   :  { %1228 = vmatpush3.bf16.msra.mxu0 %v1406_v10  ;;  %v1423_v27 = vld [vmem:[%s1924_s1 + $0xb0] sm:$0xff]   ;;  %v1427_v31 = vld [vmem:[%s1924_s1 + $0xb8] sm:$0xff]   ;;  %v1447_v42 = vld [vmem:[%s1924_s1 + $0x108] sm:$0xff]  }
   0xd   :  { %1292 = vmatpush3.bf16.msra.mxu1 %v1407_v11  ;;  %1229 = vmatprep.subr.bf16.mxu0 %v1408_v12  ;;  %v1428_v32 = vld [vmem:[%s1925_s0] ss:$20 sps:$4 sm:$0xff]   ;;  %v1430_v33 = vld [vmem:[%s1925_s0 + $0x4] ss:$20 sps:$4 sm:$0xff]   ;;  %v1431_v34 = vld [vmem:[%s1925_s0 + $0x8] ss:$20 sps:$4 sm:$0xff]  }
   0xe   :  { %1293 = vmatprep.subr.bf16.mxu1 %v1409_v13  ;;  %648 = vmatprep.mubr.bf16.mxu0 %v1430_v33  ;;  %v1437_v38 = vld [vmem:[%s1925_s0 + $0x34] ss:$20 sps:$4 sm:$0xff]   ;;  %v1440_v40 = vld [vmem:[%s1925_s0 + $0x30] ss:$20 sps:$4 sm:$0xff]   ;;  %v1446_v45 = vld [vmem:[%s1925_s0 + $0x58] ss:$20 sps:$4 sm:$0xff]  }
   0xf   :  { %v1439_v39 = vld [vmem:[%s1925_s0 + $0x28] ss:$20 sps:$4 sm:$0xff]   ;;  %v1445_v44 = vld [vmem:[%s1925_s0 + $0x50] ss:$20 sps:$4 sm:$0xff]   ;;  %v1452_v50 = vld [vmem:[%s1925_s0 + $0x78] ss:$20 sps:$4 sm:$0xff]  }
  0x10   :  { %1230 = vmatpush3.bf16.msra.mxu0 %v1410_v14  ;;  %v1441_v41 = vld [vmem:[%s1925_s0 + $0x54] ss:$20 sps:$4 sm:$0xff]   ;;  %v1443_v43 = vld [vmem:[%s1925_s0 + $0x5c] ss:$20 sps:$4 sm:$0xff]   ;;  %v1450_v48 = vld [vmem:[%s1925_s0 + $0x84] ss:$20 sps:$4 sm:$0xff]  }
  0x11   :  { %1294 = vmatpush3.bf16.msra.mxu1 %v1411_v15  ;;  %1231 = vmatprep.subr.bf16.mxu0 %v1412_v16  ;;  %v1460_v46 = vld [vmem:[%s1924_s1 + $0x110] sm:$0xff]   ;;  %v1473_v49 = vld [vmem:[%s1924_s1 + $0x118] sm:$0xff]   ;;  %v1456_v53 = vld [vmem:[%s1925_s0 + $0xac] ss:$20 sps:$4 sm:$0xff]   ;;  %v1488_v12 = vmov 0.0  }
  0x12   :  { %1295 = vmatprep.subr.bf16.mxu1 %v1413_v17  ;;  %v1448_v47 = vld [vmem:[%s1925_s0 + $0x7c] ss:$20 sps:$4 sm:$0xff]   ;;  %v1453_v51 = vld [vmem:[%s1925_s0 + $0x80] ss:$20 sps:$4 sm:$0xff]   ;;  %v1454_v52 = vld [vmem:[%s1925_s0 + $0xa4] ss:$20 sps:$4 sm:$0xff]  }
  0x13   :  { %v1458_v54 = vld [vmem:[%s1925_s0 + $0xa0] ss:$20 sps:$4 sm:$0xff]   ;;  %v1459_v55 = vld [vmem:[%s1925_s0 + $0xa8] ss:$20 sps:$4 sm:$0xff]   ;;  %v1466_v59 = vld [vmem:[%s1925_s0 + $0xd0] ss:$20 sps:$4 sm:$0xff]  }
  0x14   :  { %1232 = vmatpush3.bf16.msra.mxu0 %v1414_v18  ;;  %v1461_v56 = vld [vmem:[%s1925_s0 + $0xcc] ss:$20 sps:$4 sm:$0xff]   ;;  %v1463_v57 = vld [vmem:[%s1925_s0 + $0xd4] ss:$20 sps:$4 sm:$0xff]   ;;  %v1469_v61 = vld [vmem:[%s1925_s0 + $0xfc] ss:$20 sps:$4 sm:$0xff]  }
  0x15   :  { %1296 = vmatpush3.bf16.msra.mxu1 %v1415_v19  ;;  %1233 = vmatprep.subr.bf16.mxu0 %v1416_v20  ;;  %v1465_v58 = vld [vmem:[%s1925_s0 + $0xc8] ss:$20 sps:$4 sm:$0xff]   ;;  %v1471_v62 = vld [vmem:[%s1925_s0 + $0xf0] ss:$20 sps:$4 sm:$0xff]   ;;  %v1472_v63 = vld [vmem:[%s1925_s0 + $0xf8] ss:$20 sps:$4 sm:$0xff]  }
  0x16   :  { %1297 = vmatprep.subr.bf16.mxu1 %v1417_v21  ;;  %v1467_v60 = vld [vmem:[%s1925_s0 + $0xf4] ss:$20 sps:$4 sm:$0xff]   ;;  %v1474_v0 = vld [vmem:[%s1925_s0 + $0x11c] ss:$20 sps:$4 sm:$0xff]   ;;  %v1476_v1 = vld [vmem:[%s1925_s0 + $0x124] ss:$20 sps:$4 sm:$0xff]  }
  0x17   :  { %v1478_v2 = vld [vmem:[%s1925_s0 + $0x118] ss:$20 sps:$4 sm:$0xff]   ;;  %v1479_v3 = vld [vmem:[%s1925_s0 + $0x120] ss:$20 sps:$4 sm:$0xff]   ;;  %v1480_v4 = vld [vmem:[%s1925_s0 + $0x10] ss:$20 sps:$4 sm:$0xff]  }
  0x18   :  { %1234 = vmatpush3.bf16.msra.mxu0 %v1418_v22  ;;  %v1481_v5 = vld [vmem:[%s1925_s0 + $0xb0] ss:$20 sps:$4 sm:$0xff]   ;;  %v1482_v6 = vld [vmem:[%s1925_s0 + $0x38] ss:$20 sps:$4 sm:$0xff]   ;;  %v1484_v8 = vld [vmem:[%s1925_s0 + $0x60] ss:$20 sps:$4 sm:$0xff]  }
  0x19   :  { %1298 = vmatpush3.bf16.msra.mxu1 %v1419_v23  ;;  %1235 = vmatprep.subr.bf16.mxu0 %v1420_v24  ;;  %v1483_v7 = vld [vmem:[%s1925_s0 + $0xd8] ss:$20 sps:$4 sm:$0xff]   ;;  %v1485_v9 = vld [vmem:[%s1925_s0 + $0x100] ss:$20 sps:$4 sm:$0xff]   ;;  %v1486_v10 = vld [vmem:[%s1925_s0 + $0x88] ss:$20 sps:$4 sm:$0xff]  }
  0x1a   :  { %1299 = vmatprep.subr.bf16.mxu1 %v1421_v25  ;;  %v1487_v11 = vld [vmem:[%s1925_s0 + $0x128] ss:$20 sps:$4 sm:$0xff]   ;;  %25 = vst.msk [vmem:[#allocation2 + $0x10] sm:$0xff] %vm22_vm0, %v1488_v12  ;;  %23 = vst.msk [vmem:[#allocation2] sm:$0xff] %vm22_vm0, %v1488_v12 }
  0x1b   :  { %24 = vst.msk [vmem:[#allocation2 + $0x8] sm:$0xff] %vm22_vm0, %v1488_v12  ;;  %26 = vst.msk [vmem:[#allocation2 + $0x18] sm:$0xff] %vm22_vm0, %v1488_v12 }
  0x1c   :  { %1236 = vmatpush3.bf16.msra.mxu0 %v1422_v26  ;;  %27 = vst.msk [vmem:[#allocation2 + $0x20] sm:$0xff] %vm22_vm0, %v1488_v12  ;;  %28 = vst.msk [vmem:[#allocation2 + $0x28] sm:$0xff] %vm22_vm0, %v1488_v12 }
  0x1d   :  { %1300 = vmatpush3.bf16.msra.mxu1 %v1423_v27  ;;  %1237 = vmatprep.subr.bf16.mxu0 %v1424_v28  ;;  %29 = vst.msk [vmem:[#allocation2 + $0x30] sm:$0xff] %vm22_vm0, %v1488_v12  ;;  %30 = vst.msk [vmem:[#allocation2 + $0x38] sm:$0xff] %vm22_vm0, %v1488_v12 }
  0x1e   :  { %1301 = vmatprep.subr.bf16.mxu1 %v1425_v29  ;;  %31 = vst.msk [vmem:[#allocation2 + $0x40] sm:$0xff] %vm22_vm0, %v1488_v12  ;;  %32 = vst.msk [vmem:[#allocation2 + $0x48] sm:$0xff] %vm22_vm0, %v1488_v12 }
  0x1f   :  { %33 = vst.msk [vmem:[#allocation2 + $0x50] sm:$0xff] %vm22_vm0, %v1488_v12  ;;  %34 = vst.msk [vmem:[#allocation2 + $0x58] sm:$0xff] %vm22_vm0, %v1488_v12 }
  0x20   :  { %1238 = vmatpush3.bf16.msra.mxu0 %v1426_v30  ;;  %35 = vst.msk [vmem:[#allocation2 + $0x60] sm:$0xff] %vm22_vm0, %v1488_v12  ;;  %36 = vst.msk [vmem:[#allocation2 + $0x68] sm:$0xff] %vm22_vm0, %v1488_v12 }
  0x21   :  { %1302 = vmatpush3.bf16.msra.mxu1 %v1427_v31  ;;  %1363 = vmatprep.subr.bf16.mxu0 %v1434_v36  ;;  %37 = vst.msk [vmem:[#allocation2 + $0x70] sm:$0xff] %vm22_vm0, %v1488_v12  ;;  %38 = vst.msk [vmem:[#allocation2 + $0x78] sm:$0xff] %vm22_vm0, %v1488_v12 }
  0x22   :  { %1387 = vmatprep.subr.bf16.mxu1 %v1434_v36 }
  0x23   :  { %649 = vmatmul.mubr.bf16.vlgmr.msra.gmra.mrb[0].mxu0 %v1428_v32 }
  0x24   :  { %746 = vmatmul.mubr.bf16.vlgmr.msra.gmra.mrb[0].mxu1 %v1431_v34  ;;  %1364 = vmatpush3.bf16.msra.mxu0 %v1434_v36 }
  0x25   :  { %1391 = vmatpush3.bf16.msra.mxu1 %v1434_v36  ;;  %656 = vmatprep.mubr.bf16.mxu0 %v1435_v37 }
  0x26   :  { %753 = vmatprep.mubr.bf16.mxu1 %v1437_v38  ;;  %1365 = vmatprep.subr.bf16.mxu0 %v1447_v42 }
  0x27   :  { %1388 = vmatprep.subr.bf16.mxu1 %v1447_v42 }
  0x28   :  { %1366 = vmatpush3.bf16.msra.mxu0 %v1447_v42 }
  0x29   :  { %1392 = vmatpush3.bf16.msra.mxu1 %v1447_v42  ;;  %1367 = vmatprep.subr.bf16.mxu0 %v1460_v46 }
  0x2a   :  { %1389 = vmatprep.subr.bf16.mxu1 %v1460_v46 }
  0x2b   :  { %657 = vmatmul.mubr.bf16.gmra.mrb[4].mxu0 %v1439_v39 }
  0x2c   :  { %754 = vmatmul.mubr.bf16.gmra.mrb[4].mxu1 %v1440_v40  ;;  %664 = vmatprep.mubr.bf16.mxu0 %v1441_v41 }
  0x2d   :  { %761 = vmatprep.mubr.bf16.mxu1 %v1443_v43  ;;  %1368 = vmatpush3.bf16.msra.mxu0 %v1460_v46 }
  0x2e   :  { %1393 = vmatpush3.bf16.msra.mxu1 %v1460_v46  ;;  %1369 = vmatprep.subr.bf16.mxu0 %v1473_v49 }
  0x2f   :  { %1390 = vmatprep.subr.bf16.mxu1 %v1473_v49 }
  0x31   :  { %1370 = vmatpush3.bf16.msra.mxu0 %v1473_v49 }
  0x32   :  { %1394 = vmatpush3.bf16.msra.mxu1 %v1473_v49 }
  0x33   :  { %665 = vmatmul.mubr.bf16.gmra.mrb[8].mxu0 %v1445_v44 }
  0x34   :  { %762 = vmatmul.mubr.bf16.gmra.mrb[8].mxu1 %v1446_v45  ;;  %672 = vmatprep.mubr.bf16.mxu0 %v1448_v47 }
  0x35   :  { %769 = vmatprep.mubr.bf16.mxu1 %v1450_v48 }
  0x3b   :  { %673 = vmatmul.mubr.bf16.gmra.mrb[12].mxu0 %v1452_v50 }
  0x3c   :  { %770 = vmatmul.mubr.bf16.gmra.mrb[12].mxu1 %v1453_v51  ;;  %680 = vmatprep.mubr.bf16.mxu0 %v1454_v52 }
  0x3d   :  { %777 = vmatprep.mubr.bf16.mxu1 %v1456_v53 }
  0x43   :  { %681 = vmatmul.mubr.bf16.gmra.mrb[16].mxu0 %v1458_v54 }
  0x44   :  { %778 = vmatmul.mubr.bf16.gmra.mrb[16].mxu1 %v1459_v55  ;;  %688 = vmatprep.mubr.bf16.mxu0 %v1461_v56 }
  0x45   :  { %785 = vmatprep.mubr.bf16.mxu1 %v1463_v57 }
  0x4b   :  { %689 = vmatmul.mubr.bf16.gmra.mrb[20].mxu0 %v1465_v58 }
  0x4c   :  { %786 = vmatmul.mubr.bf16.gmra.mrb[20].mxu1 %v1466_v59  ;;  %696 = vmatprep.mubr.bf16.mxu0 %v1467_v60 }
  0x4d   :  { %793 = vmatprep.mubr.bf16.mxu1 %v1469_v61 }
  0x53   :  { %697 = vmatmul.mubr.bf16.gmra.mrb[24].mxu0 %v1471_v62 }
  0x54   :  { %794 = vmatmul.mubr.bf16.gmra.mrb[24].mxu1 %v1472_v63  ;;  %704 = vmatprep.mubr.bf16.mxu0 %v1474_v0 }
  0x55   :  { %801 = vmatprep.mubr.bf16.mxu1 %v1476_v1 }
  0x5b   :  { %705 = vmatmul.mubr.bf16.gmra.mrb[28].mxu0 %v1478_v2 }
  0x5c   :  { %802 = vmatmul.mubr.bf16.gmra.mrb[28].mxu1 %v1479_v3  ;;  %1371 = vmatprep.mubr.msk.bf16.mxu0 %vm22_vm0, %v1480_v4 }
  0x5d   :  { %1379 = vmatprep.mubr.msk.bf16.mxu1 %vm22_vm0, %v1481_v5 }
  0x63   :  { %1372 = vmatmul.mubr.msk.bf16.vlgmr.msra.gmra.mrb[32].mxu0 %vm22_vm0, %v1482_v6 }
  0x64   :  { %1380 = vmatmul.mubr.msk.bf16.vlgmr.msra.gmra.mrb[32].mxu1 %vm22_vm0, %v1483_v7  ;;  %1375 = vmatprep.mubr.msk.bf16.mxu0 %vm22_vm0, %v1484_v8 }
  0x65   :  { %1383 = vmatprep.mubr.msk.bf16.mxu1 %vm22_vm0, %v1485_v9 }
  0x6b   :  { %1376 = vmatmul.mubr.msk.bf16.gmra.mrb[36].mxu0 %vm22_vm0, %v1486_v10 }
  0x6c   :  { %1384 = vmatmul.mubr.msk.bf16.gmra.mrb[36].mxu1 %vm22_vm0, %v1487_v11 }
  0xf6   :  { %v1239_v13 = vpop.f32.mrb[0].mxu0 }
  0xf7   :  { %v1303_v14 = vpop.f32.mrb[0].mxu1  ;;  %v1240_v15 = vpop.f32.mrb[1].mxu0 }
  0xf8   :  { %v1241_v16 = vadd.f32 %v1240_v15, %v1239_v13  ;;  %v1304_v17 = vpop.f32.mrb[1].mxu1  ;;  %v1242_v18 = vpop.f32.mrb[2].mxu0 }
  0xf9   :  { %v1305_v19 = vadd.f32 %v1304_v17, %v1303_v14  ;;  %v1306_v20 = vpop.f32.mrb[2].mxu1  ;;  %v1243_v21 = vpop.f32.mrb[3].mxu0 }
  0xfa   :  { %v1244_v22 = vadd.f32 %v1243_v21, %v1242_v18  ;;  %v1307_v23 = vpop.f32.mrb[3].mxu1 }
  0xfb   :  { %v1308_v24 = vadd.f32 %v1307_v23, %v1306_v20  ;;  %v1766_v25 = vadd.f32 %v1305_v19, %v1241_v16 }
  0xfd   :  { %v1768_v26 = vadd.f32 %v1308_v24, %v1244_v22 }
  0xfe   :  { %v1245_v27 = vpop.f32.mrb[4].mxu0 }
  0xff   :  { %v1309_v28 = vpop.f32.mrb[4].mxu1  ;;  %v1246_v29 = vpop.f32.mrb[5].mxu0 }
 0x100   :  { %v1247_v30 = vadd.f32 %v1246_v29, %v1245_v27  ;;  %v1310_v31 = vpop.f32.mrb[5].mxu1  ;;  %v1248_v32 = vpop.f32.mrb[6].mxu0 }
 0x101   :  { %v1311_v33 = vadd.f32 %v1310_v31, %v1309_v28  ;;  %v1312_v34 = vpop.f32.mrb[6].mxu1  ;;  %v1249_v35 = vpop.f32.mrb[7].mxu0 }
 0x102   :  { %v1250_v36 = vadd.f32 %v1249_v35, %v1248_v32  ;;  %v1313_v37 = vpop.f32.mrb[7].mxu1 }
 0x103   :  { %v1314_v38 = vadd.f32 %v1313_v37, %v1312_v34  ;;  %v1770_v39 = vadd.f32 %v1311_v33, %v1247_v30 }
 0x105   :  { %v1772_v40 = vadd.f32 %v1314_v38, %v1250_v36 }
 0x106   :  { %v1251_v41 = vpop.f32.mrb[8].mxu0 }
 0x107   :  { %v1315_v42 = vpop.f32.mrb[8].mxu1  ;;  %v1252_v43 = vpop.f32.mrb[9].mxu0 }
 0x108   :  { %v1253_v44 = vadd.f32 %v1252_v43, %v1251_v41  ;;  %v1316_v45 = vpop.f32.mrb[9].mxu1  ;;  %v1254_v46 = vpop.f32.mrb[10].mxu0 }
 0x109   :  { %v1317_v47 = vadd.f32 %v1316_v45, %v1315_v42  ;;  %v1318_v48 = vpop.f32.mrb[10].mxu1  ;;  %v1255_v49 = vpop.f32.mrb[11].mxu0 }
 0x10a   :  { %v1256_v50 = vadd.f32 %v1255_v49, %v1254_v46  ;;  %v1319_v51 = vpop.f32.mrb[11].mxu1 }
 0x10b   :  { %v1320_v52 = vadd.f32 %v1319_v51, %v1318_v48  ;;  %v1774_v53 = vadd.f32 %v1317_v47, %v1253_v44 }
 0x10d   :  { %v1776_v54 = vadd.f32 %v1320_v52, %v1256_v50 }
 0x10e   :  { %v1257_v55 = vpop.f32.mrb[12].mxu0 }
 0x10f   :  { %v1321_v56 = vpop.f32.mrb[12].mxu1  ;;  %v1258_v57 = vpop.f32.mrb[13].mxu0 }
 0x110   :  { %v1259_v58 = vadd.f32 %v1258_v57, %v1257_v55  ;;  %v1322_v59 = vpop.f32.mrb[13].mxu1  ;;  %v1260_v60 = vpop.f32.mrb[14].mxu0 }
 0x111   :  { %v1323_v61 = vadd.f32 %v1322_v59, %v1321_v56  ;;  %v1324_v62 = vpop.f32.mrb[14].mxu1  ;;  %v1261_v63 = vpop.f32.mrb[15].mxu0 }
 0x112   :  { %v1262_v0 = vadd.f32 %v1261_v63, %v1260_v60  ;;  %v1325_v1 = vpop.f32.mrb[15].mxu1 }
 0x113   :  { %v1326_v2 = vadd.f32 %v1325_v1, %v1324_v62  ;;  %v1778_v3 = vadd.f32 %v1323_v61, %v1259_v58 }
 0x115   :  { %v1780_v4 = vadd.f32 %v1326_v2, %v1262_v0 }
 0x116   :  { %v1263_v5 = vpop.f32.mrb[16].mxu0 }
 0x117   :  { %v1327_v6 = vpop.f32.mrb[16].mxu1  ;;  %v1264_v7 = vpop.f32.mrb[17].mxu0 }
 0x118   :  { %v1265_v8 = vadd.f32 %v1264_v7, %v1263_v5  ;;  %v1328_v9 = vpop.f32.mrb[17].mxu1  ;;  %v1266_v10 = vpop.f32.mrb[18].mxu0  ;;  %v41_v5 = vld [vmem:[#allocation2 + $0x10] sm:$0xff] }
 0x119   :  { %v1329_v11 = vadd.f32 %v1328_v9, %v1327_v6  ;;  %v1330_v12 = vpop.f32.mrb[18].mxu1  ;;  %v1267_v13 = vpop.f32.mrb[19].mxu0 }
 0x11a   :  { %v1268_v14 = vadd.f32 %v1267_v13, %v1266_v10  ;;  %v1331_v15 = vpop.f32.mrb[19].mxu1  ;;  %v39_v10 = vld [vmem:[#allocation2] sm:$0xff] }
 0x11b   :  { %v1332_v16 = vadd.f32 %v1331_v15, %v1330_v12  ;;  %v780_v17 = vadd.f32 %v1329_v11, %v1265_v8  ;;  %v49_v8 = vld [vmem:[#allocation2 + $0x50] sm:$0xff] }
 0x11d   :  { %v1782_v18 = vadd.f32 %v1332_v16, %v1268_v14  ;;  %v47_v14 = vld [vmem:[#allocation2 + $0x40] sm:$0xff]  ;;  %v42_v16 = vld [vmem:[#allocation2 + $0x18] sm:$0xff] }
 0x11e   :  { %v1269_v19 = vpop.f32.mrb[20].mxu0 }
 0x11f   :  { %v1333_v20 = vpop.f32.mrb[20].mxu1  ;;  %v1270_v21 = vpop.f32.mrb[21].mxu0 }
 0x120   :  { %v1271_v22 = vadd.f32 %v1270_v21, %v1269_v19  ;;  %v1334_v23 = vpop.f32.mrb[21].mxu1  ;;  %v1272_v24 = vpop.f32.mrb[22].mxu0 }
 0x121   :  { %v1335_v27 = vadd.f32 %v1334_v23, %v1333_v20  ;;  %v1336_v28 = vpop.f32.mrb[22].mxu1  ;;  %v1273_v29 = vpop.f32.mrb[23].mxu0  ;;  %v50_v23 = vld [vmem:[#allocation2 + $0x58] sm:$0xff] }
 0x122   :  { %v1274_v30 = vadd.f32 %v1273_v29, %v1272_v24  ;;  %v1337_v31 = vpop.f32.mrb[23].mxu1 }
 0x123   :  { %v1338_v32 = vadd.f32 %v1337_v31, %v1336_v28  ;;  %v788_v33 = vadd.f32 %v1335_v27, %v1271_v22  ;;  %v40_v27 = vld [vmem:[#allocation2 + $0x8] sm:$0xff] }
 0x125   :  { %v791_v34 = vadd.f32 %v1338_v32, %v1274_v30  ;;  %v48_v32 = vld [vmem:[#allocation2 + $0x48] sm:$0xff] }
 0x126   :  { %v1275_v35 = vpop.f32.mrb[24].mxu0 }
 0x127   :  { %v1339_v36 = vpop.f32.mrb[24].mxu1  ;;  %v1276_v37 = vpop.f32.mrb[25].mxu0 }
 0x128   :  { %v1277_v38 = vadd.f32 %v1276_v37, %v1275_v35  ;;  %v1340_v41 = vpop.f32.mrb[25].mxu1  ;;  %v1278_v42 = vpop.f32.mrb[26].mxu0 }
 0x129   :  { %v1341_v43 = vadd.f32 %v1340_v41, %v1339_v36  ;;  %v1342_v44 = vpop.f32.mrb[26].mxu1  ;;  %v1279_v45 = vpop.f32.mrb[27].mxu0 }
 0x12a   :  { %v1280_v46 = vadd.f32 %v1279_v45, %v1278_v42  ;;  %v1343_v47 = vpop.f32.mrb[27].mxu1  ;;  %v43_v42 = vld [vmem:[#allocation2 + $0x20] sm:$0xff] }
 0x12b   :  { %v1344_v48 = vadd.f32 %v1343_v47, %v1342_v44  ;;  %v1784_v49 = vadd.f32 %v1341_v43, %v1277_v38  ;;  %v53_v38 = vld [vmem:[#allocation2 + $0x70] sm:$0xff]  ;;  %v1807_v44 = vld [vmem:[%s1926_s2] ss:$0 sm:$0xff] }
 0x12c   :  { %v51_v47 = vld [vmem:[#allocation2 + $0x60] sm:$0xff] }
 0x12d   :  { %v1786_v50 = vadd.f32 %v1344_v48, %v1280_v46 }
 0x12e   :  { %v1281_v51 = vpop.f32.mrb[28].mxu0 }
 0x12f   :  { %v1345_v52 = vpop.f32.mrb[28].mxu1  ;;  %v1282_v55 = vpop.f32.mrb[29].mxu0 }
 0x130   :  { %v1283_v56 = vadd.f32 %v1282_v55, %v1281_v51  ;;  %v1346_v57 = vpop.f32.mrb[29].mxu1  ;;  %v1284_v58 = vpop.f32.mrb[30].mxu0  ;;  %v46_v51 = vld [vmem:[#allocation2 + $0x38] sm:$0xff] }
 0x131   :  { %v1347_v59 = vadd.f32 %v1346_v57, %v1345_v52  ;;  %v1348_v60 = vpop.f32.mrb[30].mxu1  ;;  %v1285_v61 = vpop.f32.mrb[31].mxu0  ;;  %v54_v57 = vld [vmem:[#allocation2 + $0x78] sm:$0xff] }
 0x132   :  { %v1286_v62 = vadd.f32 %v1285_v61, %v1284_v58  ;;  %v1349_v63 = vpop.f32.mrb[31].mxu1 }
 0x133   :  { %v1350_v0 = vadd.f32 %v1349_v63, %v1348_v60  ;;  %v804_v1 = vadd.f32 %v1347_v59, %v1283_v56  ;;  %v44_v59 = vld [vmem:[#allocation2 + $0x28] sm:$0xff] }
 0x135   :  { %v1788_v2 = vadd.f32 %v1350_v0, %v1286_v62  ;;  %v1815_v62 = vld [vmem:[%s1927_s3] ss:$0 sm:$0xff] }
 0x136   :  { %v1373_v6 = vpop.f32.mrb[32].mxu0 }
 0x137   :  { %v853_v7 = vadd.f32 %v1373_v6, %v1770_v39  ;;  %v1381_v9 = vpop.f32.mrb[32].mxu1  ;;  %v844_v11 = vpop.f32.mrb[33].mxu0 }
 0x138   :  { %v885_v12 = vadd.f32 %v1381_v9, %v788_v33  ;;  %v845_v13 = vadd.f32 %v844_v11, %v1766_v25  ;;  %v876_v15 = vpop.f32.mrb[33].mxu1  ;;  %v1374_v19 = vpop.f32.mrb[34].mxu0 }
 0x139   :  { %v909_v20 = vadd.f32 %v853_v7, %v41_v5  ;;  %v877_v21 = vadd.f32 %v876_v15, %v780_v17  ;;  %v856_v22 = vadd.f32 %v1374_v19, %v1772_v40  ;;  %v1382_v24 = vpop.f32.mrb[34].mxu1  ;;  %v847_v28 = vpop.f32.mrb[35].mxu0  ;;  %v52_v5 = vld [vmem:[#allocation2 + $0x68] sm:$0xff] }
 0x13a   :  { %v917_v39 = vadd.f32 %v885_v12, %v49_v8  ;;  %v907_v29 = vadd.f32 %v845_v13, %v39_v10  ;;  %v888_v30 = vadd.f32 %v1382_v24, %v791_v34  ;;  %v848_v31 = vadd.f32 %v847_v28, %v1768_v26  ;;  %v879_v33 = vpop.f32.mrb[35].mxu1  ;;  %v45_v26 = vld [vmem:[#allocation2 + $0x30] sm:$0xff] }
 0x13b   :  { %925 = vst.msk [vmem:[#allocation2 + $0x10] sm:$0xff] %vm22_vm0, %v909_v20  ;;  %v915_v25 = vadd.f32 %v877_v21, %v47_v14  ;;  %v910_v35 = vadd.f32 %v856_v22, %v42_v16  ;;  %v880_v36 = vadd.f32 %v879_v33, %v1782_v18 }
 0x13c   :  { %933 = vst.msk [vmem:[#allocation2 + $0x50] sm:$0xff] %vm22_vm0, %v917_v39  ;;  %923 = vst.msk [vmem:[#allocation2] sm:$0xff] %vm22_vm0, %v907_v29  ;;  %v918_v40 = vadd.f32 %v888_v30, %v50_v23  ;;  %v908_v17 = vadd.f32 %v848_v31, %v40_v27 }
 0x13d   :  { %931 = vst.msk [vmem:[#allocation2 + $0x40] sm:$0xff] %vm22_vm0, %v915_v25  ;;  %926 = vst.msk [vmem:[#allocation2 + $0x18] sm:$0xff] %vm22_vm0, %v910_v35  ;;  %v916_v34 = vadd.f32 %v880_v36, %v48_v32 }
 0x13e   :  { %934 = vst.msk [vmem:[#allocation2 + $0x58] sm:$0xff] %vm22_vm0, %v918_v40  ;;  %924 = vst.msk [vmem:[#allocation2 + $0x8] sm:$0xff] %vm22_vm0, %v908_v17  ;;  %v1377_v37 = vpop.f32.mrb[36].mxu0 }
 0x13f   :  { %932 = vst.msk [vmem:[#allocation2 + $0x48] sm:$0xff] %vm22_vm0, %v916_v34  ;;  %v869_v18 = vadd.f32 %v1377_v37, %v1778_v3  ;;  %v1385_v41 = vpop.f32.mrb[36].mxu1  ;;  %v860_v43 = vpop.f32.mrb[37].mxu0 }
 0x140   :  { %v901_v45 = vadd.f32 %v1385_v41, %v804_v1  ;;  %v861_v46 = vadd.f32 %v860_v43, %v1774_v53  ;;  %v892_v48 = vpop.f32.mrb[37].mxu1  ;;  %v1378_v52 = vpop.f32.mrb[38].mxu0 }
 0x141   :  { %v913_v55 = vadd.f32 %v869_v18, %v45_v26  ;;  %v893_v3 = vadd.f32 %v892_v48, %v1784_v49  ;;  %v872_v56 = vadd.f32 %v1378_v52, %v1780_v4  ;;  %v1386_v58 = vpop.f32.mrb[38].mxu1  ;;  %v863_v60 = vpop.f32.mrb[39].mxu0 }
 0x142   :  { %v944_v61 = vld [vmem:[#allocation2 + $0x10] sm:$0xff]  ;;  %v921_v53 = vadd.f32 %v901_v45, %v53_v38  ;;  %v911_v63 = vadd.f32 %v861_v46, %v43_v42  ;;  %v904_v0 = vadd.f32 %v1386_v58, %v1788_v2  ;;  %v864_v1 = vadd.f32 %v863_v60, %v1776_v54  ;;  %v895_v49 = vpop.f32.mrb[39].mxu1 }
 0x143   :  { %v967_v4 = vmul.f32 %v1807_v44, %v944_v61  ;;  %v952_v6 = vld [vmem:[#allocation2 + $0x50] sm:$0xff]  ;;  %v942_v7 = vld [vmem:[#allocation2] sm:$0xff]  ;;  %929 = vst.msk [vmem:[#allocation2 + $0x30] sm:$0xff] %vm22_vm0, %v913_v55  ;;  %v919_v8 = vadd.f32 %v893_v3, %v51_v47  ;;  %v914_v9 = vadd.f32 %v872_v56, %v46_v51  ;;  %v896_v10 = vadd.f32 %v895_v49, %v1786_v50 }
 0x144   :  { %v975_v11 = vmul.f32 %v1807_v44, %v952_v6  ;;  %v965_v12 = vmul.f32 %v1807_v44, %v942_v7  ;;  %v950_v13 = vld [vmem:[#allocation2 + $0x40] sm:$0xff]  ;;  %v945_v2 = vld [vmem:[#allocation2 + $0x18] sm:$0xff]  ;;  %937 = vst.msk [vmem:[#allocation2 + $0x70] sm:$0xff] %vm22_vm0, %v921_v53  ;;  %927 = vst.msk [vmem:[#allocation2 + $0x20] sm:$0xff] %vm22_vm0, %v911_v63  ;;  %v922_v54 = vadd.f32 %v904_v0, %v54_v57 }
 0x145   :  { %v912_v14 = vadd.f32 %v864_v1, %v44_v59  ;;  %v990_v15 = vadd.f32 %v1815_v62, %v967_v4  ;;  %v973_v16 = vmul.f32 %v1807_v44, %v950_v13  ;;  %v968_v19 = vmul.f32 %v1807_v44, %v945_v2  ;;  %v953_v20 = vld [vmem:[#allocation2 + $0x58] sm:$0xff]  ;;  %v943_v50 = vld [vmem:[#allocation2 + $0x8] sm:$0xff]  ;;  %935 = vst.msk [vmem:[#allocation2 + $0x60] sm:$0xff] %vm22_vm0, %v919_v8 }
 0x146   :  { %930 = vst.msk [vmem:[#allocation2 + $0x38] sm:$0xff] %vm22_vm0, %v914_v9  ;;  %v920_v21 = vadd.f32 %v896_v10, %v52_v5  ;;  %v998_v22 = vadd.f32 %v1815_v62, %v975_v11  ;;  %v988_v23 = vadd.f32 %v1815_v62, %v965_v12  ;;  %v976_v24 = vmul.f32 %v1807_v44, %v953_v20  ;;  %v951_v28 = vld [vmem:[#allocation2 + $0x48] sm:$0xff] }
 0x147   :  { %v966_v27 = vmul.f32 %v1807_v44, %v943_v50  ;;  %938 = vst.msk [vmem:[#allocation2 + $0x78] sm:$0xff] %vm22_vm0, %v922_v54  ;;  %928 = vst.msk [vmem:[#allocation2 + $0x28] sm:$0xff] %vm22_vm0, %v912_v14  ;;  %v1006_v39 = vmax.f32 %v990_v15, 0.0  ;;  %v996_v29 = vadd.f32 %v1815_v62, %v973_v16  ;;  %v991_v30 = vadd.f32 %v1815_v62, %v968_v19 }
 0x148   :  { %v974_v31 = vmul.f32 %v1807_v44, %v951_v28  ;;  %936 = vst.msk [vmem:[#allocation2 + $0x68] sm:$0xff] %vm22_vm0, %v920_v21  ;;  %v1014_v32 = vmax.f32 %v998_v22, 0.0  ;;  %v1004_v33 = vmax.f32 %v988_v23, 0.0  ;;  %v999_v25 = vadd.f32 %v1815_v62, %v976_v24 }
 0x149   :  { %v989_v35 = vadd.f32 %v1815_v62, %v966_v27  ;;  %v1209_v36 = vpack.c.bf16 %v1006_v39, %v1006_v39  ;;  %v1012_v40 = vmax.f32 %v996_v29, 0.0  ;;  %v1007_v17 = vmax.f32 %v991_v30, 0.0 }
 0x14a   :  { %v997_v34 = vadd.f32 %v1815_v62, %v974_v31  ;;  %v1217_v26 = vpack.c.bf16 %v1014_v32, %v1014_v32  ;;  %v1207_v37 = vpack.c.bf16 %v1004_v33, %v1004_v33  ;;  %v1015_v18 = vmax.f32 %v999_v25, 0.0  ;;  %v948_v41 = vld [vmem:[#allocation2 + $0x30] sm:$0xff] }
 0x14b   :  { %v1005_v38 = vmax.f32 %v989_v35, 0.0  ;;  %1087 = vst.msk [vmem:[%s1928_s4 + $0x8] sm:$0xf] %vm1084_vm1, %v1209_v36  ;;  %v1215_v42 = vpack.c.bf16 %v1012_v40, %v1012_v40  ;;  %v1210_v43 = vpack.c.bf16 %v1007_v17, %v1007_v17  ;;  %v971_v46 = vmul.f32 %v1807_v44, %v948_v41  ;;  %v956_v47 = vld [vmem:[#allocation2 + $0x70] sm:$0xff]  ;;  %v946_v48 = vld [vmem:[#allocation2 + $0x20] sm:$0xff] }
 0x14c   :  { %v1013_v45 = vmax.f32 %v997_v34, 0.0  ;;  %1095 = vst.msk [vmem:[%s1928_s4 + $0x28] sm:$0xf] %vm1084_vm1, %v1217_v26  ;;  %1085 = vst.msk [vmem:[%s1928_s4] sm:$0xf] %vm1084_vm1, %v1207_v37  ;;  %v1218_v51 = vpack.c.bf16 %v1015_v18, %v1015_v18  ;;  %v979_v55 = vmul.f32 %v1807_v44, %v956_v47  ;;  %v969_v3 = vmul.f32 %v1807_v44, %v946_v48  ;;  %v954_v56 = vld [vmem:[#allocation2 + $0x60] sm:$0xff] }
 0x14d   :  { %v1208_v52 = vpack.c.bf16 %v1005_v38, %v1005_v38  ;;  %v949_v57 = vld [vmem:[#allocation2 + $0x38] sm:$0xff]  ;;  %1093 = vst.msk [vmem:[%s1928_s4 + $0x20] sm:$0xf] %vm1084_vm1, %v1215_v42  ;;  %1088 = vst.msk [vmem:[%s1928_s4 + $0xc] sm:$0xf] %vm1084_vm1, %v1210_v43  ;;  %v994_v59 = vadd.f32 %v1815_v62, %v971_v46  ;;  %v977_v60 = vmul.f32 %v1807_v44, %v954_v56 }
 0x14e   :  { %v1216_v58 = vpack.c.bf16 %v1013_v45, %v1013_v45  ;;  %v972_v61 = vmul.f32 %v1807_v44, %v949_v57  ;;  %v957_v53 = vld [vmem:[#allocation2 + $0x78] sm:$0xff]  ;;  %v947_v63 = vld [vmem:[#allocation2 + $0x28] sm:$0xff]  ;;  %1096 = vst.msk [vmem:[%s1928_s4 + $0x2c] sm:$0xf] %vm1084_vm1, %v1218_v51  ;;  %v1002_v0 = vadd.f32 %v1815_v62, %v979_v55  ;;  %v992_v1 = vadd.f32 %v1815_v62, %v969_v3 }
 0x14f   :  { %1086 = vst.msk [vmem:[%s1928_s4 + $0x4] sm:$0xf] %vm1084_vm1, %v1208_v52  ;;  %v980_v5 = vmul.f32 %v1807_v44, %v957_v53  ;;  %v970_v49 = vmul.f32 %v1807_v44, %v947_v63  ;;  %v955_v4 = vld [vmem:[#allocation2 + $0x68] sm:$0xff]  ;;  %v1010_v6 = vmax.f32 %v994_v59, 0.0  ;;  %v1000_v7 = vadd.f32 %v1815_v62, %v977_v60 }
 0x150   :  { %1094 = vst.msk [vmem:[%s1928_s4 + $0x24] sm:$0xf] %vm1084_vm1, %v1216_v58  ;;  %v995_v8 = vadd.f32 %v1815_v62, %v972_v61  ;;  %v978_v9 = vmul.f32 %v1807_v44, %v955_v4  ;;  %v1018_v10 = vmax.f32 %v1002_v0, 0.0  ;;  %v1008_v11 = vmax.f32 %v992_v1, 0.0 }
 0x151   :  { %v1003_v12 = vadd.f32 %v1815_v62, %v980_v5  ;;  %v993_v13 = vadd.f32 %v1815_v62, %v970_v49  ;;  %v1213_v2 = vpack.c.bf16 %v1010_v6, %v1010_v6  ;;  %v1016_v54 = vmax.f32 %v1000_v7, 0.0 }
 0x152   :  { %v1011_v14 = vmax.f32 %v995_v8, 0.0  ;;  %v1001_v15 = vadd.f32 %v1815_v62, %v978_v9  ;;  %v1221_v16 = vpack.c.bf16 %v1018_v10, %v1018_v10  ;;  %v1211_v19 = vpack.c.bf16 %v1008_v11, %v1008_v11 }
 0x153   :  { %v1019_v20 = vmax.f32 %v1003_v12, 0.0  ;;  %v1009_v50 = vmax.f32 %v993_v13, 0.0  ;;  %1091 = vst.msk [vmem:[%s1928_s4 + $0x18] sm:$0xf] %vm1084_vm1, %v1213_v2  ;;  %v1219_v44 = vpack.c.bf16 %v1016_v54, %v1016_v54 }
 0x154   :  { %v1214_v21 = vpack.c.bf16 %v1011_v14, %v1011_v14  ;;  %v1017_v22 = vmax.f32 %v1001_v15, 0.0  ;;  %1099 = vst.msk [vmem:[%s1928_s4 + $0x38] sm:$0xf] %vm1084_vm1, %v1221_v16  ;;  %1089 = vst.msk [vmem:[%s1928_s4 + $0x10] sm:$0xf] %vm1084_vm1, %v1211_v19 }
 0x155   :  { %v1222_v62 = vpack.c.bf16 %v1019_v20, %v1019_v20  ;;  %v1212_v23 = vpack.c.bf16 %v1009_v50, %v1009_v50  ;;  %1097 = vst.msk [vmem:[%s1928_s4 + $0x30] sm:$0xf] %vm1084_vm1, %v1219_v44 }
 0x156   :  { %1092 = vst.msk [vmem:[%s1928_s4 + $0x1c] sm:$0xf] %vm1084_vm1, %v1214_v21  ;;  %v1220_v24 = vpack.c.bf16 %v1017_v22, %v1017_v22 }
 0x157   :  { %1100 = vst.msk [vmem:[%s1928_s4 + $0x3c] sm:$0xf] %vm1084_vm1, %v1222_v62  ;;  %1090 = vst.msk [vmem:[%s1928_s4 + $0x14] sm:$0xf] %vm1084_vm1, %v1212_v23 }
 0x158   :  { %1098 = vst.msk [vmem:[%s1928_s4 + $0x34] sm:$0xf] %vm1084_vm1, %v1220_v24 }

// kernel: resnet18_forward.26
= control target key start
LH: loop header
LB: loop body
LE: loop exit
PB: predicated region body
PF: predicated region fallthrough
CT: control target
= control target key end

     0   :  { %vm25_vm0 = vcmask 523264   ;;  %vm1135_vm1 = vcmask 519168   ;;  %s2113_s1 = inlined_call_operand.vmem [shape: bf16[576,64], index: 1, kind: input, shape index: {}]   ;;  %s2114_s0 = inlined_call_operand.vmem [shape: bf16[128,576], index: 0, kind: input, shape index: {}]   ;;  %s2115_s4 = inlined_call_operand.vmem [shape: bf16[128,64], index: 4, kind: input, shape index: {}]   ;;  %s2116_s2 = inlined_call_operand.vmem [shape: f32[1,64], index: 2, kind: input, shape index: {}]   ;;  %s2117_s3 = inlined_call_operand.vmem [shape: f32[1,64], index: 3, kind: input, shape index: {}]   ;;  %s2118_s5 = inlined_call_operand.vmem [shape: bf16[128,64], index: 5, kind: output, shape index: {}]  }
   0x1   :  { %v1486_v0 = vld [vmem:[%s2113_s1 + $0x40] sm:$0xff]   ;;  %v1490_v4 = vld [vmem:[%s2113_s1 + $0x48] sm:$0xff]   ;;  %v1494_v8 = vld [vmem:[%s2113_s1 + $0x50] sm:$0xff]  }
   0x2   :  { %v1487_v1 = vld [vmem:[%s2113_s1 + $0xc0] sm:$0xff]   ;;  %1313 = vmatprep.subr.bf16.mxu0 %v1486_v0  ;;  %v1491_v5 = vld [vmem:[%s2113_s1 + $0xc8] sm:$0xff]   ;;  %v1495_v9 = vld [vmem:[%s2113_s1 + $0xd0] sm:$0xff]  }
   0x3   :  { %v1488_v2 = vld [vmem:[%s2113_s1] sm:$0xff]   ;;  %1377 = vmatprep.subr.bf16.mxu1 %v1487_v1  ;;  %v1492_v6 = vld [vmem:[%s2113_s1 + $0x8] sm:$0xff]   ;;  %v1496_v10 = vld [vmem:[%s2113_s1 + $0x10] sm:$0xff]  }
   0x4   :  { %v1489_v3 = vld [vmem:[%s2113_s1 + $0x80] sm:$0xff]   ;;  %1314 = vmatpush3.bf16.msra.mxu0 %v1488_v2  ;;  %v1493_v7 = vld [vmem:[%s2113_s1 + $0x88] sm:$0xff]   ;;  %v1497_v11 = vld [vmem:[%s2113_s1 + $0x90] sm:$0xff]  }
   0x5   :  { %1378 = vmatpush3.bf16.msra.mxu1 %v1489_v3  ;;  %1315 = vmatprep.subr.bf16.mxu0 %v1490_v4  ;;  %v1498_v12 = vld [vmem:[%s2113_s1 + $0x58] sm:$0xff]   ;;  %v1502_v16 = vld [vmem:[%s2113_s1 + $0x60] sm:$0xff]   ;;  %v1506_v20 = vld [vmem:[%s2113_s1 + $0x68] sm:$0xff]  }
   0x6   :  { %1379 = vmatprep.subr.bf16.mxu1 %v1491_v5  ;;  %v1499_v13 = vld [vmem:[%s2113_s1 + $0xd8] sm:$0xff]   ;;  %v1503_v17 = vld [vmem:[%s2113_s1 + $0xe0] sm:$0xff]   ;;  %v1507_v21 = vld [vmem:[%s2113_s1 + $0xe8] sm:$0xff]  }
   0x7   :  { %v1500_v14 = vld [vmem:[%s2113_s1 + $0x18] sm:$0xff]   ;;  %v1504_v18 = vld [vmem:[%s2113_s1 + $0x20] sm:$0xff]   ;;  %v1508_v22 = vld [vmem:[%s2113_s1 + $0x28] sm:$0xff]  }
   0x8   :  { %1316 = vmatpush3.bf16.msra.mxu0 %v1492_v6  ;;  %v1501_v15 = vld [vmem:[%s2113_s1 + $0x98] sm:$0xff]   ;;  %v1505_v19 = vld [vmem:[%s2113_s1 + $0xa0] sm:$0xff]   ;;  %v1509_v23 = vld [vmem:[%s2113_s1 + $0xa8] sm:$0xff]  }
   0x9   :  { %1380 = vmatpush3.bf16.msra.mxu1 %v1493_v7  ;;  %1317 = vmatprep.subr.bf16.mxu0 %v1494_v8  ;;  %v1510_v24 = vld [vmem:[%s2113_s1 + $0x70] sm:$0xff]   ;;  %v1514_v28 = vld [vmem:[%s2113_s1 + $0x78] sm:$0xff]   ;;  %v1523_v35 = vld [vmem:[%s2114_s0 + $0xc] ss:$20 sps:$4 sm:$0xff]  }
   0xa   :  { %1381 = vmatprep.subr.bf16.mxu1 %v1495_v9  ;;  %v1511_v25 = vld [vmem:[%s2113_s1 + $0xf0] sm:$0xff]   ;;  %v1515_v29 = vld [vmem:[%s2113_s1 + $0xf8] sm:$0xff]   ;;  %v1524_v36 = vld [vmem:[%s2113_s1 + $0x100] sm:$0xff]   ;;  %748 = vmatprep.mubr.bf16.mxu1 %v1523_v35 }
   0xb   :  { %v1512_v26 = vld [vmem:[%s2113_s1 + $0x30] sm:$0xff]   ;;  %v1516_v30 = vld [vmem:[%s2113_s1 + $0x38] sm:$0xff]   ;;  %v1525_v37 = vld [vmem:[%s2114_s0 + $0x2c] ss:$20 sps:$4 sm:$0xff]  }
   0xc   :  { %1318 = vmatpush3.bf16.msra.mxu0 %v1496_v10  ;;  %v1513_v27 = vld [vmem:[%s2113_s1 + $0xb0] sm:$0xff]   ;;  %v1517_v31 = vld [vmem:[%s2113_s1 + $0xb8] sm:$0xff]   ;;  %v1537_v42 = vld [vmem:[%s2113_s1 + $0x108] sm:$0xff]  }
   0xd   :  { %1382 = vmatpush3.bf16.msra.mxu1 %v1497_v11  ;;  %1319 = vmatprep.subr.bf16.mxu0 %v1498_v12  ;;  %v1518_v32 = vld [vmem:[%s2114_s0] ss:$20 sps:$4 sm:$0xff]   ;;  %v1520_v33 = vld [vmem:[%s2114_s0 + $0x4] ss:$20 sps:$4 sm:$0xff]   ;;  %v1521_v34 = vld [vmem:[%s2114_s0 + $0x8] ss:$20 sps:$4 sm:$0xff]  }
   0xe   :  { %1383 = vmatprep.subr.bf16.mxu1 %v1499_v13  ;;  %651 = vmatprep.mubr.bf16.mxu0 %v1520_v33  ;;  %v1527_v38 = vld [vmem:[%s2114_s0 + $0x34] ss:$20 sps:$4 sm:$0xff]   ;;  %v1530_v40 = vld [vmem:[%s2114_s0 + $0x30] ss:$20 sps:$4 sm:$0xff]   ;;  %v1536_v45 = vld [vmem:[%s2114_s0 + $0x58] ss:$20 sps:$4 sm:$0xff]  }
   0xf   :  { %v1529_v39 = vld [vmem:[%s2114_s0 + $0x28] ss:$20 sps:$4 sm:$0xff]   ;;  %v1535_v44 = vld [vmem:[%s2114_s0 + $0x50] ss:$20 sps:$4 sm:$0xff]   ;;  %v1542_v50 = vld [vmem:[%s2114_s0 + $0x78] ss:$20 sps:$4 sm:$0xff]  }
  0x10   :  { %1320 = vmatpush3.bf16.msra.mxu0 %v1500_v14  ;;  %v1531_v41 = vld [vmem:[%s2114_s0 + $0x54] ss:$20 sps:$4 sm:$0xff]   ;;  %v1533_v43 = vld [vmem:[%s2114_s0 + $0x5c] ss:$20 sps:$4 sm:$0xff]   ;;  %v1540_v48 = vld [vmem:[%s2114_s0 + $0x84] ss:$20 sps:$4 sm:$0xff]  }
  0x11   :  { %1384 = vmatpush3.bf16.msra.mxu1 %v1501_v15  ;;  %1321 = vmatprep.subr.bf16.mxu0 %v1502_v16  ;;  %v1550_v46 = vld [vmem:[%s2113_s1 + $0x110] sm:$0xff]   ;;  %v1563_v49 = vld [vmem:[%s2113_s1 + $0x118] sm:$0xff]   ;;  %v1546_v53 = vld [vmem:[%s2114_s0 + $0xac] ss:$20 sps:$4 sm:$0xff]   ;;  %v1578_v12 = vmov 0.0  }
  0x12   :  { %1385 = vmatprep.subr.bf16.mxu1 %v1503_v17  ;;  %v1538_v47 = vld [vmem:[%s2114_s0 + $0x7c] ss:$20 sps:$4 sm:$0xff]   ;;  %v1543_v51 = vld [vmem:[%s2114_s0 + $0x80] ss:$20 sps:$4 sm:$0xff]   ;;  %v1544_v52 = vld [vmem:[%s2114_s0 + $0xa4] ss:$20 sps:$4 sm:$0xff]  }
  0x13   :  { %v1548_v54 = vld [vmem:[%s2114_s0 + $0xa0] ss:$20 sps:$4 sm:$0xff]   ;;  %v1549_v55 = vld [vmem:[%s2114_s0 + $0xa8] ss:$20 sps:$4 sm:$0xff]   ;;  %v1556_v59 = vld [vmem:[%s2114_s0 + $0xd0] ss:$20 sps:$4 sm:$0xff]  }
  0x14   :  { %1322 = vmatpush3.bf16.msra.mxu0 %v1504_v18  ;;  %v1551_v56 = vld [vmem:[%s2114_s0 + $0xcc] ss:$20 sps:$4 sm:$0xff]   ;;  %v1553_v57 = vld [vmem:[%s2114_s0 + $0xd4] ss:$20 sps:$4 sm:$0xff]   ;;  %v1559_v61 = vld [vmem:[%s2114_s0 + $0xfc] ss:$20 sps:$4 sm:$0xff]  }
  0x15   :  { %1386 = vmatpush3.bf16.msra.mxu1 %v1505_v19  ;;  %1323 = vmatprep.subr.bf16.mxu0 %v1506_v20  ;;  %v1555_v58 = vld [vmem:[%s2114_s0 + $0xc8] ss:$20 sps:$4 sm:$0xff]   ;;  %v1561_v62 = vld [vmem:[%s2114_s0 + $0xf0] ss:$20 sps:$4 sm:$0xff]   ;;  %v1562_v63 = vld [vmem:[%s2114_s0 + $0xf8] ss:$20 sps:$4 sm:$0xff]  }
  0x16   :  { %1387 = vmatprep.subr.bf16.mxu1 %v1507_v21  ;;  %v1557_v60 = vld [vmem:[%s2114_s0 + $0xf4] ss:$20 sps:$4 sm:$0xff]   ;;  %v1564_v0 = vld [vmem:[%s2114_s0 + $0x11c] ss:$20 sps:$4 sm:$0xff]   ;;  %v1566_v1 = vld [vmem:[%s2114_s0 + $0x124] ss:$20 sps:$4 sm:$0xff]  }
  0x17   :  { %v1568_v2 = vld [vmem:[%s2114_s0 + $0x118] ss:$20 sps:$4 sm:$0xff]   ;;  %v1569_v3 = vld [vmem:[%s2114_s0 + $0x120] ss:$20 sps:$4 sm:$0xff]   ;;  %v1570_v4 = vld [vmem:[%s2114_s0 + $0x10] ss:$20 sps:$4 sm:$0xff]  }
  0x18   :  { %1324 = vmatpush3.bf16.msra.mxu0 %v1508_v22  ;;  %v1571_v5 = vld [vmem:[%s2114_s0 + $0xb0] ss:$20 sps:$4 sm:$0xff]   ;;  %v1572_v6 = vld [vmem:[%s2114_s0 + $0x38] ss:$20 sps:$4 sm:$0xff]   ;;  %v1574_v8 = vld [vmem:[%s2114_s0 + $0x60] ss:$20 sps:$4 sm:$0xff]  }
  0x19   :  { %1388 = vmatpush3.bf16.msra.mxu1 %v1509_v23  ;;  %1325 = vmatprep.subr.bf16.mxu0 %v1510_v24  ;;  %v1573_v7 = vld [vmem:[%s2114_s0 + $0xd8] ss:$20 sps:$4 sm:$0xff]   ;;  %v1575_v9 = vld [vmem:[%s2114_s0 + $0x100] ss:$20 sps:$4 sm:$0xff]   ;;  %v1576_v10 = vld [vmem:[%s2114_s0 + $0x88] ss:$20 sps:$4 sm:$0xff]  }
  0x1a   :  { %1389 = vmatprep.subr.bf16.mxu1 %v1511_v25  ;;  %v1577_v11 = vld [vmem:[%s2114_s0 + $0x128] ss:$20 sps:$4 sm:$0xff]   ;;  %28 = vst.msk [vmem:[#allocation2 + $0x10] sm:$0xff] %vm25_vm0, %v1578_v12  ;;  %26 = vst.msk [vmem:[#allocation2] sm:$0xff] %vm25_vm0, %v1578_v12 }
  0x1b   :  { %27 = vst.msk [vmem:[#allocation2 + $0x8] sm:$0xff] %vm25_vm0, %v1578_v12  ;;  %29 = vst.msk [vmem:[#allocation2 + $0x18] sm:$0xff] %vm25_vm0, %v1578_v12 }
  0x1c   :  { %1326 = vmatpush3.bf16.msra.mxu0 %v1512_v26  ;;  %30 = vst.msk [vmem:[#allocation2 + $0x20] sm:$0xff] %vm25_vm0, %v1578_v12  ;;  %31 = vst.msk [vmem:[#allocation2 + $0x28] sm:$0xff] %vm25_vm0, %v1578_v12 }
  0x1d   :  { %1390 = vmatpush3.bf16.msra.mxu1 %v1513_v27  ;;  %1327 = vmatprep.subr.bf16.mxu0 %v1514_v28  ;;  %32 = vst.msk [vmem:[#allocation2 + $0x30] sm:$0xff] %vm25_vm0, %v1578_v12  ;;  %33 = vst.msk [vmem:[#allocation2 + $0x38] sm:$0xff] %vm25_vm0, %v1578_v12 }
  0x1e   :  { %1391 = vmatprep.subr.bf16.mxu1 %v1515_v29  ;;  %34 = vst.msk [vmem:[#allocation2 + $0x40] sm:$0xff] %vm25_vm0, %v1578_v12  ;;  %35 = vst.msk [vmem:[#allocation2 + $0x48] sm:$0xff] %vm25_vm0, %v1578_v12 }
  0x1f   :  { %36 = vst.msk [vmem:[#allocation2 + $0x50] sm:$0xff] %vm25_vm0, %v1578_v12  ;;  %37 = vst.msk [vmem:[#allocation2 + $0x58] sm:$0xff] %vm25_vm0, %v1578_v12 }
  0x20   :  { %1328 = vmatpush3.bf16.msra.mxu0 %v1516_v30  ;;  %38 = vst.msk [vmem:[#allocation2 + $0x60] sm:$0xff] %vm25_vm0, %v1578_v12  ;;  %39 = vst.msk [vmem:[#allocation2 + $0x68] sm:$0xff] %vm25_vm0, %v1578_v12 }
  0x21   :  { %1392 = vmatpush3.bf16.msra.mxu1 %v1517_v31  ;;  %1453 = vmatprep.subr.bf16.mxu0 %v1524_v36  ;;  %40 = vst.msk [vmem:[#allocation2 + $0x70] sm:$0xff] %vm25_vm0, %v1578_v12  ;;  %41 = vst.msk [vmem:[#allocation2 + $0x78] sm:$0xff] %vm25_vm0, %v1578_v12 }
  0x22   :  { %1477 = vmatprep.subr.bf16.mxu1 %v1524_v36 }
  0x23   :  { %652 = vmatmul.mubr.bf16.vlgmr.msra.gmra.mrb[0].mxu0 %v1518_v32 }
  0x24   :  { %749 = vmatmul.mubr.bf16.vlgmr.msra.gmra.mrb[0].mxu1 %v1521_v34  ;;  %1454 = vmatpush3.bf16.msra.mxu0 %v1524_v36 }
  0x25   :  { %1481 = vmatpush3.bf16.msra.mxu1 %v1524_v36  ;;  %659 = vmatprep.mubr.bf16.mxu0 %v1525_v37 }
  0x26   :  { %756 = vmatprep.mubr.bf16.mxu1 %v1527_v38  ;;  %1455 = vmatprep.subr.bf16.mxu0 %v1537_v42 }
  0x27   :  { %1478 = vmatprep.subr.bf16.mxu1 %v1537_v42 }
  0x28   :  { %1456 = vmatpush3.bf16.msra.mxu0 %v1537_v42 }
  0x29   :  { %1482 = vmatpush3.bf16.msra.mxu1 %v1537_v42  ;;  %1457 = vmatprep.subr.bf16.mxu0 %v1550_v46 }
  0x2a   :  { %1479 = vmatprep.subr.bf16.mxu1 %v1550_v46 }
  0x2b   :  { %660 = vmatmul.mubr.bf16.gmra.mrb[4].mxu0 %v1529_v39 }
  0x2c   :  { %757 = vmatmul.mubr.bf16.gmra.mrb[4].mxu1 %v1530_v40  ;;  %667 = vmatprep.mubr.bf16.mxu0 %v1531_v41 }
  0x2d   :  { %764 = vmatprep.mubr.bf16.mxu1 %v1533_v43  ;;  %1458 = vmatpush3.bf16.msra.mxu0 %v1550_v46 }
  0x2e   :  { %1483 = vmatpush3.bf16.msra.mxu1 %v1550_v46  ;;  %1459 = vmatprep.subr.bf16.mxu0 %v1563_v49 }
  0x2f   :  { %1480 = vmatprep.subr.bf16.mxu1 %v1563_v49 }
  0x31   :  { %1460 = vmatpush3.bf16.msra.mxu0 %v1563_v49 }
  0x32   :  { %1484 = vmatpush3.bf16.msra.mxu1 %v1563_v49 }
  0x33   :  { %668 = vmatmul.mubr.bf16.gmra.mrb[8].mxu0 %v1535_v44 }
  0x34   :  { %765 = vmatmul.mubr.bf16.gmra.mrb[8].mxu1 %v1536_v45  ;;  %675 = vmatprep.mubr.bf16.mxu0 %v1538_v47 }
  0x35   :  { %772 = vmatprep.mubr.bf16.mxu1 %v1540_v48 }
  0x3b   :  { %676 = vmatmul.mubr.bf16.gmra.mrb[12].mxu0 %v1542_v50 }
  0x3c   :  { %773 = vmatmul.mubr.bf16.gmra.mrb[12].mxu1 %v1543_v51  ;;  %683 = vmatprep.mubr.bf16.mxu0 %v1544_v52 }
  0x3d   :  { %780 = vmatprep.mubr.bf16.mxu1 %v1546_v53 }
  0x43   :  { %684 = vmatmul.mubr.bf16.gmra.mrb[16].mxu0 %v1548_v54 }
  0x44   :  { %781 = vmatmul.mubr.bf16.gmra.mrb[16].mxu1 %v1549_v55  ;;  %691 = vmatprep.mubr.bf16.mxu0 %v1551_v56 }
  0x45   :  { %788 = vmatprep.mubr.bf16.mxu1 %v1553_v57 }
  0x4b   :  { %692 = vmatmul.mubr.bf16.gmra.mrb[20].mxu0 %v1555_v58 }
  0x4c   :  { %789 = vmatmul.mubr.bf16.gmra.mrb[20].mxu1 %v1556_v59  ;;  %699 = vmatprep.mubr.bf16.mxu0 %v1557_v60 }
  0x4d   :  { %796 = vmatprep.mubr.bf16.mxu1 %v1559_v61 }
  0x53   :  { %700 = vmatmul.mubr.bf16.gmra.mrb[24].mxu0 %v1561_v62 }
  0x54   :  { %797 = vmatmul.mubr.bf16.gmra.mrb[24].mxu1 %v1562_v63  ;;  %707 = vmatprep.mubr.bf16.mxu0 %v1564_v0 }
  0x55   :  { %804 = vmatprep.mubr.bf16.mxu1 %v1566_v1 }
  0x5b   :  { %708 = vmatmul.mubr.bf16.gmra.mrb[28].mxu0 %v1568_v2 }
  0x5c   :  { %805 = vmatmul.mubr.bf16.gmra.mrb[28].mxu1 %v1569_v3  ;;  %1461 = vmatprep.mubr.msk.bf16.mxu0 %vm25_vm0, %v1570_v4 }
  0x5d   :  { %1469 = vmatprep.mubr.msk.bf16.mxu1 %vm25_vm0, %v1571_v5 }
  0x63   :  { %1462 = vmatmul.mubr.msk.bf16.vlgmr.msra.gmra.mrb[32].mxu0 %vm25_vm0, %v1572_v6 }
  0x64   :  { %1470 = vmatmul.mubr.msk.bf16.vlgmr.msra.gmra.mrb[32].mxu1 %vm25_vm0, %v1573_v7  ;;  %1465 = vmatprep.mubr.msk.bf16.mxu0 %vm25_vm0, %v1574_v8 }
  0x65   :  { %1473 = vmatprep.mubr.msk.bf16.mxu1 %vm25_vm0, %v1575_v9 }
  0x6b   :  { %1466 = vmatmul.mubr.msk.bf16.gmra.mrb[36].mxu0 %vm25_vm0, %v1576_v10 }
  0x6c   :  { %1474 = vmatmul.mubr.msk.bf16.gmra.mrb[36].mxu1 %vm25_vm0, %v1577_v11 }
  0xf6   :  { %v1329_v13 = vpop.f32.mrb[0].mxu0 }
  0xf7   :  { %v1393_v14 = vpop.f32.mrb[0].mxu1  ;;  %v1330_v15 = vpop.f32.mrb[1].mxu0 }
  0xf8   :  { %v1331_v16 = vadd.f32 %v1330_v15, %v1329_v13  ;;  %v1394_v17 = vpop.f32.mrb[1].mxu1  ;;  %v1332_v18 = vpop.f32.mrb[2].mxu0 }
  0xf9   :  { %v1395_v19 = vadd.f32 %v1394_v17, %v1393_v14  ;;  %v1396_v20 = vpop.f32.mrb[2].mxu1  ;;  %v1333_v21 = vpop.f32.mrb[3].mxu0 }
  0xfa   :  { %v1334_v22 = vadd.f32 %v1333_v21, %v1332_v18  ;;  %v1397_v23 = vpop.f32.mrb[3].mxu1 }
  0xfb   :  { %v1398_v24 = vadd.f32 %v1397_v23, %v1396_v20  ;;  %v1861_v25 = vadd.f32 %v1395_v19, %v1331_v16 }
  0xfd   :  { %v1863_v26 = vadd.f32 %v1398_v24, %v1334_v22 }
  0xfe   :  { %v1335_v27 = vpop.f32.mrb[4].mxu0 }
  0xff   :  { %v1399_v28 = vpop.f32.mrb[4].mxu1  ;;  %v1336_v29 = vpop.f32.mrb[5].mxu0 }
 0x100   :  { %v1337_v30 = vadd.f32 %v1336_v29, %v1335_v27  ;;  %v1400_v31 = vpop.f32.mrb[5].mxu1  ;;  %v1338_v32 = vpop.f32.mrb[6].mxu0 }
 0x101   :  { %v1401_v33 = vadd.f32 %v1400_v31, %v1399_v28  ;;  %v1402_v34 = vpop.f32.mrb[6].mxu1  ;;  %v1339_v35 = vpop.f32.mrb[7].mxu0 }
 0x102   :  { %v1340_v36 = vadd.f32 %v1339_v35, %v1338_v32  ;;  %v1403_v37 = vpop.f32.mrb[7].mxu1 }
 0x103   :  { %v1404_v38 = vadd.f32 %v1403_v37, %v1402_v34  ;;  %v1865_v39 = vadd.f32 %v1401_v33, %v1337_v30 }
 0x105   :  { %v1867_v40 = vadd.f32 %v1404_v38, %v1340_v36 }
 0x106   :  { %v1341_v41 = vpop.f32.mrb[8].mxu0 }
 0x107   :  { %v1405_v42 = vpop.f32.mrb[8].mxu1  ;;  %v1342_v43 = vpop.f32.mrb[9].mxu0 }
 0x108   :  { %v1343_v44 = vadd.f32 %v1342_v43, %v1341_v41  ;;  %v1406_v45 = vpop.f32.mrb[9].mxu1  ;;  %v1344_v46 = vpop.f32.mrb[10].mxu0 }
 0x109   :  { %v1407_v47 = vadd.f32 %v1406_v45, %v1405_v42  ;;  %v1408_v48 = vpop.f32.mrb[10].mxu1  ;;  %v1345_v49 = vpop.f32.mrb[11].mxu0 }
 0x10a   :  { %v1346_v50 = vadd.f32 %v1345_v49, %v1344_v46  ;;  %v1409_v51 = vpop.f32.mrb[11].mxu1 }
 0x10b   :  { %v1410_v52 = vadd.f32 %v1409_v51, %v1408_v48  ;;  %v1869_v53 = vadd.f32 %v1407_v47, %v1343_v44 }
 0x10d   :  { %v1871_v54 = vadd.f32 %v1410_v52, %v1346_v50 }
 0x10e   :  { %v1347_v55 = vpop.f32.mrb[12].mxu0 }
 0x10f   :  { %v1411_v56 = vpop.f32.mrb[12].mxu1  ;;  %v1348_v57 = vpop.f32.mrb[13].mxu0 }
 0x110   :  { %v1349_v58 = vadd.f32 %v1348_v57, %v1347_v55  ;;  %v1412_v59 = vpop.f32.mrb[13].mxu1  ;;  %v1350_v60 = vpop.f32.mrb[14].mxu0 }
 0x111   :  { %v1413_v61 = vadd.f32 %v1412_v59, %v1411_v56  ;;  %v1414_v62 = vpop.f32.mrb[14].mxu1  ;;  %v1351_v63 = vpop.f32.mrb[15].mxu0 }
 0x112   :  { %v1352_v0 = vadd.f32 %v1351_v63, %v1350_v60  ;;  %v1415_v1 = vpop.f32.mrb[15].mxu1 }
 0x113   :  { %v1416_v2 = vadd.f32 %v1415_v1, %v1414_v62  ;;  %v1873_v3 = vadd.f32 %v1413_v61, %v1349_v58 }
 0x115   :  { %v1875_v4 = vadd.f32 %v1416_v2, %v1352_v0 }
 0x116   :  { %v1353_v5 = vpop.f32.mrb[16].mxu0 }
 0x117   :  { %v1417_v6 = vpop.f32.mrb[16].mxu1  ;;  %v1354_v7 = vpop.f32.mrb[17].mxu0 }
 0x118   :  { %v1355_v8 = vadd.f32 %v1354_v7, %v1353_v5  ;;  %v1418_v9 = vpop.f32.mrb[17].mxu1  ;;  %v1356_v10 = vpop.f32.mrb[18].mxu0  ;;  %v44_v5 = vld [vmem:[#allocation2 + $0x10] sm:$0xff] }
 0x119   :  { %v1419_v11 = vadd.f32 %v1418_v9, %v1417_v6  ;;  %v1420_v12 = vpop.f32.mrb[18].mxu1  ;;  %v1357_v13 = vpop.f32.mrb[19].mxu0 }
 0x11a   :  { %v1358_v14 = vadd.f32 %v1357_v13, %v1356_v10  ;;  %v1421_v15 = vpop.f32.mrb[19].mxu1  ;;  %v42_v10 = vld [vmem:[#allocation2] sm:$0xff]  ;;  %v1893_v13 = vld [vmem:[%s2115_s4 + $0x8] sm:$0xff]  }
 0x11b   :  { %v1422_v16 = vadd.f32 %v1421_v15, %v1420_v12  ;;  %v1877_v17 = vadd.f32 %v1419_v11, %v1355_v8  ;;  %v52_v8 = vld [vmem:[#allocation2 + $0x50] sm:$0xff]  ;;  %v50_v12 = vld [vmem:[#allocation2 + $0x40] sm:$0xff] }
 0x11d   :  { %v1879_v18 = vadd.f32 %v1422_v16, %v1358_v14 }
 0x11e   :  { %v1359_v19 = vpop.f32.mrb[20].mxu0 }
 0x11f   :  { %v1423_v20 = vpop.f32.mrb[20].mxu1  ;;  %v1360_v21 = vpop.f32.mrb[21].mxu0 }
 0x120   :  { %v1361_v22 = vadd.f32 %v1360_v21, %v1359_v19  ;;  %v1424_v23 = vpop.f32.mrb[21].mxu1  ;;  %v1362_v24 = vpop.f32.mrb[22].mxu0  ;;  %v45_v19 = vld [vmem:[#allocation2 + $0x18] sm:$0xff] }
 0x121   :  { %v1425_v27 = vadd.f32 %v1424_v23, %v1423_v20  ;;  %v1426_v28 = vpop.f32.mrb[22].mxu1  ;;  %v1363_v29 = vpop.f32.mrb[23].mxu0  ;;  %v53_v21 = vld [vmem:[#allocation2 + $0x58] sm:$0xff]  ;;  %v1904_v23 = vld [vmem:[%s2115_s4] sm:$0xff]  }
 0x122   :  { %v1364_v30 = vadd.f32 %v1363_v29, %v1362_v24  ;;  %v1427_v31 = vpop.f32.mrb[23].mxu1 }
 0x123   :  { %v1428_v32 = vadd.f32 %v1427_v31, %v1426_v28  ;;  %v791_v33 = vadd.f32 %v1425_v27, %v1361_v22  ;;  %v43_v28 = vld [vmem:[#allocation2 + $0x8] sm:$0xff] }
 0x125   :  { %v794_v34 = vadd.f32 %v1428_v32, %v1364_v30  ;;  %v1911_v32 = vld [vmem:[%s2115_s4 + $0x20] sm:$0xff]  }
 0x126   :  { %v1365_v35 = vpop.f32.mrb[24].mxu0 }
 0x127   :  { %v1429_v36 = vpop.f32.mrb[24].mxu1  ;;  %v1366_v37 = vpop.f32.mrb[25].mxu0 }
 0x128   :  { %v1367_v38 = vadd.f32 %v1366_v37, %v1365_v35  ;;  %v1430_v41 = vpop.f32.mrb[25].mxu1  ;;  %v1368_v42 = vpop.f32.mrb[26].mxu0 }
 0x129   :  { %v1431_v43 = vadd.f32 %v1430_v41, %v1429_v36  ;;  %v1432_v44 = vpop.f32.mrb[26].mxu1  ;;  %v1369_v45 = vpop.f32.mrb[27].mxu0  ;;  %v51_v36 = vld [vmem:[#allocation2 + $0x48] sm:$0xff] }
 0x12a   :  { %v1370_v46 = vadd.f32 %v1369_v45, %v1368_v42  ;;  %v1433_v47 = vpop.f32.mrb[27].mxu1  ;;  %v1920_v42 = vld [vmem:[%s2115_s4 + $0x18] sm:$0xff]   ;;  %v1934_v45 = vld [vmem:[%s2115_s4 + $0x10] sm:$0xff]  }
 0x12b   :  { %v1434_v48 = vadd.f32 %v1433_v47, %v1432_v44  ;;  %v1881_v49 = vadd.f32 %v1431_v43, %v1367_v38  ;;  %v1276_v43 = vunpack.c.l.bf16 %v1904_v23  ;;  %v1292_v47 = vunpack.c.l.bf16 %v1911_v32 }
 0x12d   :  { %v1883_v50 = vadd.f32 %v1434_v48, %v1370_v46  ;;  %v1939_v46 = vld [vmem:[%s2115_s4 + $0x30] sm:$0xff]   ;;  %v1281_v48 = vunpack.c.h.bf16 %v1893_v13 }
 0x12e   :  { %v1371_v51 = vpop.f32.mrb[28].mxu0 }
 0x12f   :  { %v1435_v52 = vpop.f32.mrb[28].mxu1  ;;  %v1372_v55 = vpop.f32.mrb[29].mxu0 }
 0x130   :  { %v1373_v56 = vadd.f32 %v1372_v55, %v1371_v51  ;;  %v1436_v57 = vpop.f32.mrb[29].mxu1  ;;  %v1374_v58 = vpop.f32.mrb[30].mxu0  ;;  %v1277_v55 = vunpack.c.h.bf16 %v1904_v23 }
 0x131   :  { %v1437_v59 = vadd.f32 %v1436_v57, %v1435_v52  ;;  %v1438_v60 = vpop.f32.mrb[30].mxu1  ;;  %v1375_v61 = vpop.f32.mrb[31].mxu0  ;;  %v48_v57 = vld [vmem:[#allocation2 + $0x30] sm:$0xff] }
 0x132   :  { %v1376_v62 = vadd.f32 %v1375_v61, %v1374_v58  ;;  %v1439_v63 = vpop.f32.mrb[31].mxu1 }
 0x133   :  { %v1440_v0 = vadd.f32 %v1439_v63, %v1438_v60  ;;  %v1885_v1 = vadd.f32 %v1437_v59, %v1373_v56  ;;  %v1293_v56 = vunpack.c.h.bf16 %v1911_v32  ;;  %v1288_v59 = vunpack.c.l.bf16 %v1920_v42 }
 0x135   :  { %v1887_v2 = vadd.f32 %v1440_v0, %v1376_v62  ;;  %v56_v62 = vld [vmem:[#allocation2 + $0x70] sm:$0xff]  ;;  %v46_v0 = vld [vmem:[#allocation2 + $0x20] sm:$0xff] }
 0x136   :  { %v1463_v6 = vpop.f32.mrb[32].mxu0 }
 0x137   :  { %v856_v7 = vadd.f32 %v1463_v6, %v1865_v39  ;;  %v1471_v9 = vpop.f32.mrb[32].mxu1  ;;  %v847_v11 = vpop.f32.mrb[33].mxu0  ;;  %v1899_v39 = vld [vmem:[%s2115_s4 + $0x28] sm:$0xff]   ;;  %v1284_v6 = vunpack.c.l.bf16 %v1934_v45 }
 0x138   :  { %v888_v14 = vadd.f32 %v1471_v9, %v791_v33  ;;  %v848_v15 = vadd.f32 %v847_v11, %v1861_v25  ;;  %v879_v16 = vpop.f32.mrb[33].mxu1  ;;  %v1464_v20 = vpop.f32.mrb[34].mxu0  ;;  %v1297_v51 = vunpack.c.h.bf16 %v1899_v39  ;;  %v1960_v9 = vld [vmem:[%s2116_s2] ss:$0 sm:$0xff] }
 0x139   :  { %v912_v22 = vadd.f32 %v856_v7, %v44_v5  ;;  %v880_v24 = vadd.f32 %v879_v16, %v1877_v17  ;;  %v859_v27 = vadd.f32 %v1464_v20, %v1867_v40  ;;  %v1472_v25 = vpop.f32.mrb[34].mxu1  ;;  %v850_v29 = vpop.f32.mrb[35].mxu0  ;;  %v1280_v17 = vunpack.c.l.bf16 %v1893_v13 }
 0x13a   :  { %v920_v30 = vadd.f32 %v888_v14, %v52_v8  ;;  %v910_v31 = vadd.f32 %v848_v15, %v42_v10  ;;  %v891_v33 = vadd.f32 %v1472_v25, %v794_v34  ;;  %v851_v35 = vadd.f32 %v850_v29, %v1863_v26  ;;  %v882_v37 = vpop.f32.mrb[35].mxu1  ;;  %v1925_v34 = vld [vmem:[%s2115_s4 + $0x38] sm:$0xff]   ;;  %v47_v25 = vld [vmem:[#allocation2 + $0x28] sm:$0xff]  ;;  %v1972_v29 = vld [vmem:[%s2117_s3] ss:$0 sm:$0xff] }
 0x13b   :  { %928 = vst.msk [vmem:[#allocation2 + $0x10] sm:$0xff] %vm25_vm0, %v912_v22  ;;  %v918_v40 = vadd.f32 %v880_v24, %v50_v12  ;;  %v913_v38 = vadd.f32 %v859_v27, %v45_v19  ;;  %v883_v41 = vadd.f32 %v882_v37, %v1879_v18  ;;  %v1296_v26 = vunpack.c.l.bf16 %v1899_v39  ;;  %v49_v14 = vld [vmem:[#allocation2 + $0x38] sm:$0xff] }
 0x13c   :  { %936 = vst.msk [vmem:[#allocation2 + $0x50] sm:$0xff] %vm25_vm0, %v920_v30  ;;  %926 = vst.msk [vmem:[#allocation2] sm:$0xff] %vm25_vm0, %v910_v31  ;;  %v921_v44 = vadd.f32 %v891_v33, %v53_v21  ;;  %v911_v18 = vadd.f32 %v851_v35, %v43_v28  ;;  %v1304_v60 = vunpack.c.l.bf16 %v1925_v34  ;;  %v1300_v7 = vunpack.c.l.bf16 %v1939_v46  ;;  %v57_v24 = vld [vmem:[#allocation2 + $0x78] sm:$0xff] }
 0x13d   :  { %934 = vst.msk [vmem:[#allocation2 + $0x40] sm:$0xff] %vm25_vm0, %v918_v40  ;;  %929 = vst.msk [vmem:[#allocation2 + $0x18] sm:$0xff] %vm25_vm0, %v913_v38  ;;  %v919_v52 = vadd.f32 %v883_v41, %v51_v36  ;;  %v1289_v8 = vunpack.c.h.bf16 %v1920_v42  ;;  %v1305_v16 = vunpack.c.h.bf16 %v1925_v34  ;;  %v1285_v19 = vunpack.c.h.bf16 %v1934_v45 }
 0x13e   :  { %937 = vst.msk [vmem:[#allocation2 + $0x58] sm:$0xff] %vm25_vm0, %v921_v44  ;;  %927 = vst.msk [vmem:[#allocation2 + $0x8] sm:$0xff] %vm25_vm0, %v911_v18  ;;  %v1467_v58 = vpop.f32.mrb[36].mxu0 }
 0x13f   :  { %935 = vst.msk [vmem:[#allocation2 + $0x48] sm:$0xff] %vm25_vm0, %v919_v52  ;;  %v872_v61 = vadd.f32 %v1467_v58, %v1873_v3  ;;  %v1475_v63 = vpop.f32.mrb[36].mxu1  ;;  %v863_v5 = vpop.f32.mrb[37].mxu0  ;;  %v54_v3 = vld [vmem:[#allocation2 + $0x60] sm:$0xff] }
 0x140   :  { %v904_v10 = vadd.f32 %v1475_v63, %v1885_v1  ;;  %v864_v11 = vadd.f32 %v863_v5, %v1869_v53  ;;  %v895_v12 = vpop.f32.mrb[37].mxu1  ;;  %v1468_v15 = vpop.f32.mrb[38].mxu0  ;;  %v1301_v1 = vunpack.c.h.bf16 %v1939_v46 }
 0x141   :  { %v916_v20 = vadd.f32 %v872_v61, %v48_v57  ;;  %v896_v21 = vadd.f32 %v895_v12, %v1881_v49  ;;  %v875_v22 = vadd.f32 %v1468_v15, %v1875_v4  ;;  %v1476_v27 = vpop.f32.mrb[38].mxu1  ;;  %v866_v28 = vpop.f32.mrb[39].mxu0  ;;  %v55_v4 = vld [vmem:[#allocation2 + $0x68] sm:$0xff] }
 0x142   :  { %v947_v53 = vld [vmem:[#allocation2 + $0x10] sm:$0xff]  ;;  %v924_v30 = vadd.f32 %v904_v10, %v56_v62  ;;  %v914_v31 = vadd.f32 %v864_v11, %v46_v0  ;;  %v907_v33 = vadd.f32 %v1476_v27, %v1887_v2  ;;  %v867_v49 = vadd.f32 %v866_v28, %v1871_v54  ;;  %v898_v35 = vpop.f32.mrb[39].mxu1 }
 0x143   :  { %v970_v36 = vmul.f32 %v1960_v9, %v947_v53  ;;  %v955_v37 = vld [vmem:[#allocation2 + $0x50] sm:$0xff]  ;;  %v945_v40 = vld [vmem:[#allocation2] sm:$0xff]  ;;  %932 = vst.msk [vmem:[#allocation2 + $0x30] sm:$0xff] %vm25_vm0, %v916_v20  ;;  %v922_v38 = vadd.f32 %v896_v21, %v54_v3  ;;  %v917_v41 = vadd.f32 %v875_v22, %v49_v14  ;;  %v899_v44 = vadd.f32 %v898_v35, %v1883_v50 }
 0x144   :  { %v978_v18 = vmul.f32 %v1960_v9, %v955_v37  ;;  %v968_v52 = vmul.f32 %v1960_v9, %v945_v40  ;;  %v953_v57 = vld [vmem:[#allocation2 + $0x40] sm:$0xff]  ;;  %v948_v2 = vld [vmem:[#allocation2 + $0x18] sm:$0xff]  ;;  %940 = vst.msk [vmem:[#allocation2 + $0x70] sm:$0xff] %vm25_vm0, %v924_v30  ;;  %930 = vst.msk [vmem:[#allocation2 + $0x20] sm:$0xff] %vm25_vm0, %v914_v31  ;;  %v925_v54 = vadd.f32 %v907_v33, %v57_v24 }
 0x145   :  { %v915_v58 = vadd.f32 %v867_v49, %v47_v25  ;;  %v993_v61 = vadd.f32 %v1972_v29, %v970_v36  ;;  %v976_v62 = vmul.f32 %v1960_v9, %v953_v57  ;;  %v971_v63 = vmul.f32 %v1960_v9, %v948_v2  ;;  %v956_v0 = vld [vmem:[#allocation2 + $0x58] sm:$0xff]  ;;  %v946_v50 = vld [vmem:[#allocation2 + $0x8] sm:$0xff]  ;;  %938 = vst.msk [vmem:[#allocation2 + $0x60] sm:$0xff] %vm25_vm0, %v922_v38 }
 0x146   :  { %933 = vst.msk [vmem:[#allocation2 + $0x38] sm:$0xff] %vm25_vm0, %v917_v41  ;;  %v923_v5 = vadd.f32 %v899_v44, %v55_v4  ;;  %v1001_v10 = vadd.f32 %v1972_v29, %v978_v18  ;;  %v991_v11 = vadd.f32 %v1972_v29, %v968_v52  ;;  %v979_v3 = vmul.f32 %v1960_v9, %v956_v0  ;;  %v954_v14 = vld [vmem:[#allocation2 + $0x48] sm:$0xff] }
 0x147   :  { %v969_v12 = vmul.f32 %v1960_v9, %v946_v50  ;;  %941 = vst.msk [vmem:[#allocation2 + $0x78] sm:$0xff] %vm25_vm0, %v925_v54  ;;  %931 = vst.msk [vmem:[#allocation2 + $0x28] sm:$0xff] %vm25_vm0, %v915_v58  ;;  %v1041_v15 = vadd.f32 %v1280_v17, %v993_v61  ;;  %v999_v20 = vadd.f32 %v1972_v29, %v976_v62 }
 0x148   :  { %v994_v21 = vadd.f32 %v1972_v29, %v971_v63  ;;  %v977_v22 = vmul.f32 %v1960_v9, %v954_v14  ;;  %939 = vst.msk [vmem:[#allocation2 + $0x68] sm:$0xff] %vm25_vm0, %v923_v5  ;;  %v1049_v24 = vadd.f32 %v1296_v26, %v1001_v10  ;;  %v1039_v27 = vadd.f32 %v1276_v43, %v991_v11 }
 0x149   :  { %v1002_v25 = vadd.f32 %v1972_v29, %v979_v3  ;;  %v992_v28 = vadd.f32 %v1972_v29, %v969_v12  ;;  %v1057_v53 = vmax.f32 %v1041_v15, 0.0  ;;  %v1047_v17 = vadd.f32 %v1292_v47, %v999_v20 }
 0x14a   :  { %v1042_v30 = vadd.f32 %v1281_v48, %v994_v21  ;;  %v1000_v31 = vadd.f32 %v1972_v29, %v977_v22  ;;  %v1065_v33 = vmax.f32 %v1049_v24, 0.0  ;;  %v1055_v49 = vmax.f32 %v1039_v27, 0.0  ;;  %v951_v4 = vld [vmem:[#allocation2 + $0x30] sm:$0xff] }
 0x14b   :  { %v1050_v26 = vadd.f32 %v1297_v51, %v1002_v25  ;;  %v1040_v43 = vadd.f32 %v1277_v55, %v992_v28  ;;  %v1260_v35 = vpack.c.bf16 %v1057_v53, %v1057_v53  ;;  %v1063_v36 = vmax.f32 %v1047_v17, 0.0  ;;  %v959_v40 = vld [vmem:[#allocation2 + $0x70] sm:$0xff]  ;;  %v949_v13 = vld [vmem:[#allocation2 + $0x20] sm:$0xff] }
 0x14c   :  { %v1058_v37 = vmax.f32 %v1042_v30, 0.0  ;;  %v1048_v47 = vadd.f32 %v1293_v56, %v1000_v31  ;;  %v1268_v48 = vpack.c.bf16 %v1065_v33, %v1065_v33  ;;  %v1258_v38 = vpack.c.bf16 %v1055_v49, %v1055_v49  ;;  %v957_v18 = vld [vmem:[#allocation2 + $0x60] sm:$0xff] }
 0x14d   :  { %v1066_v41 = vmax.f32 %v1050_v26, 0.0  ;;  %v1056_v44 = vmax.f32 %v1040_v43, 0.0  ;;  %v952_v52 = vld [vmem:[#allocation2 + $0x38] sm:$0xff]  ;;  %1138 = vst.msk [vmem:[%s2118_s5 + $0x8] sm:$0xf] %vm1135_vm1, %v1260_v35  ;;  %v1266_v39 = vpack.c.bf16 %v1063_v36, %v1063_v36  ;;  %v974_v55 = vmul.f32 %v1960_v9, %v951_v4 }
 0x14e   :  { %v1261_v23 = vpack.c.bf16 %v1058_v37, %v1058_v37  ;;  %v1064_v51 = vmax.f32 %v1048_v47, 0.0  ;;  %v960_v32 = vld [vmem:[#allocation2 + $0x78] sm:$0xff]  ;;  %v950_v56 = vld [vmem:[#allocation2 + $0x28] sm:$0xff]  ;;  %1146 = vst.msk [vmem:[%s2118_s5 + $0x28] sm:$0xf] %vm1135_vm1, %v1268_v48  ;;  %v982_v54 = vmul.f32 %v1960_v9, %v959_v40  ;;  %v972_v58 = vmul.f32 %v1960_v9, %v949_v13 }
 0x14f   :  { %1136 = vst.msk [vmem:[%s2118_s5] sm:$0xf] %vm1135_vm1, %v1258_v38  ;;  %v1269_v57 = vpack.c.bf16 %v1066_v41, %v1066_v41  ;;  %v1259_v2 = vpack.c.bf16 %v1056_v44, %v1056_v44  ;;  %v958_v61 = vld [vmem:[#allocation2 + $0x68] sm:$0xff]  ;;  %1144 = vst.msk [vmem:[%s2118_s5 + $0x20] sm:$0xf] %vm1135_vm1, %v1266_v39  ;;  %v997_v63 = vadd.f32 %v1972_v29, %v974_v55 }
 0x150   :  { %1139 = vst.msk [vmem:[%s2118_s5 + $0xc] sm:$0xf] %vm1135_vm1, %v1261_v23  ;;  %v1267_v62 = vpack.c.bf16 %v1064_v51, %v1064_v51  ;;  %v980_v0 = vmul.f32 %v1960_v9, %v957_v18  ;;  %v975_v50 = vmul.f32 %v1960_v9, %v952_v52  ;;  %v1005_v5 = vadd.f32 %v1972_v29, %v982_v54 }
 0x151   :  { %1147 = vst.msk [vmem:[%s2118_s5 + $0x2c] sm:$0xf] %vm1135_vm1, %v1269_v57  ;;  %1137 = vst.msk [vmem:[%s2118_s5 + $0x4] sm:$0xf] %vm1135_vm1, %v1259_v2  ;;  %v995_v10 = vadd.f32 %v1972_v29, %v972_v58  ;;  %v983_v11 = vmul.f32 %v1960_v9, %v960_v32  ;;  %v973_v3 = vmul.f32 %v1960_v9, %v950_v56 }
 0x152   :  { %1145 = vst.msk [vmem:[%s2118_s5 + $0x24] sm:$0xf] %vm1135_vm1, %v1267_v62  ;;  %v1045_v12 = vadd.f32 %v1288_v59, %v997_v63  ;;  %v1003_v14 = vadd.f32 %v1972_v29, %v980_v0  ;;  %v998_v15 = vadd.f32 %v1972_v29, %v975_v50  ;;  %v981_v20 = vmul.f32 %v1960_v9, %v958_v61 }
 0x153   :  { %v1053_v21 = vadd.f32 %v1304_v60, %v1005_v5  ;;  %v1043_v22 = vadd.f32 %v1284_v6, %v995_v10  ;;  %v1006_v24 = vadd.f32 %v1972_v29, %v983_v11  ;;  %v996_v27 = vadd.f32 %v1972_v29, %v973_v3 }
 0x154   :  { %v1061_v25 = vmax.f32 %v1045_v12, 0.0  ;;  %v1051_v59 = vadd.f32 %v1300_v7, %v1003_v14  ;;  %v1046_v28 = vadd.f32 %v1289_v8, %v998_v15  ;;  %v1004_v53 = vadd.f32 %v1972_v29, %v981_v20 }
 0x155   :  { %v1069_v9 = vmax.f32 %v1053_v21, 0.0  ;;  %v1059_v17 = vmax.f32 %v1043_v22, 0.0  ;;  %v1054_v60 = vadd.f32 %v1305_v16, %v1006_v24  ;;  %v1044_v6 = vadd.f32 %v1285_v19, %v996_v27 }
 0x156   :  { %v1264_v30 = vpack.c.bf16 %v1061_v25, %v1061_v25  ;;  %v1067_v31 = vmax.f32 %v1051_v59, 0.0  ;;  %v1062_v33 = vmax.f32 %v1046_v28, 0.0  ;;  %v1052_v49 = vadd.f32 %v1301_v1, %v1004_v53 }
 0x157   :  { %v1272_v7 = vpack.c.bf16 %v1069_v9, %v1069_v9  ;;  %v1262_v26 = vpack.c.bf16 %v1059_v17, %v1059_v17  ;;  %v1070_v42 = vmax.f32 %v1054_v60, 0.0  ;;  %v1060_v8 = vmax.f32 %v1044_v6, 0.0 }
 0x158   :  { %1142 = vst.msk [vmem:[%s2118_s5 + $0x18] sm:$0xf] %vm1135_vm1, %v1264_v30  ;;  %v1270_v34 = vpack.c.bf16 %v1067_v31, %v1067_v31  ;;  %v1265_v16 = vpack.c.bf16 %v1062_v33, %v1062_v33  ;;  %v1068_v29 = vmax.f32 %v1052_v49, 0.0 }
 0x159   :  { %1150 = vst.msk [vmem:[%s2118_s5 + $0x38] sm:$0xf] %vm1135_vm1, %v1272_v7  ;;  %1140 = vst.msk [vmem:[%s2118_s5 + $0x10] sm:$0xf] %vm1135_vm1, %v1262_v26  ;;  %v1273_v45 = vpack.c.bf16 %v1070_v42, %v1070_v42  ;;  %v1263_v46 = vpack.c.bf16 %v1060_v8, %v1060_v8 }
 0x15a   :  { %1148 = vst.msk [vmem:[%s2118_s5 + $0x30] sm:$0xf] %vm1135_vm1, %v1270_v34  ;;  %1143 = vst.msk [vmem:[%s2118_s5 + $0x1c] sm:$0xf] %vm1135_vm1, %v1265_v16  ;;  %v1271_v19 = vpack.c.bf16 %v1068_v29, %v1068_v29 }
 0x15b   :  { %1151 = vst.msk [vmem:[%s2118_s5 + $0x3c] sm:$0xf] %vm1135_vm1, %v1273_v45  ;;  %1141 = vst.msk [vmem:[%s2118_s5 + $0x14] sm:$0xf] %vm1135_vm1, %v1263_v46 }
 0x15c   :  { %1149 = vst.msk [vmem:[%s2118_s5 + $0x34] sm:$0xf] %vm1135_vm1, %v1271_v19 }

// kernel: resnet18_forward.30
= control target key start
LH: loop header
LB: loop body
LE: loop exit
PB: predicated region body
PF: predicated region fallthrough
CT: control target
= control target key end

     0   :  { %vm76_vm0 = vcmask 523264   ;;  %s301_s1 = inlined_call_operand.vmem [shape: bf16[64,128], index: 1, kind: input, shape index: {}]   ;;  %s302_s0 = inlined_call_operand.vmem [shape: bf16[32,64], index: 0, kind: input, shape index: {}]   ;;  %s303_s2 = inlined_call_operand.vmem [shape: f32[1,128], index: 2, kind: input, shape index: {}]   ;;  %s304_s3 = inlined_call_operand.vmem [shape: f32[1,128], index: 3, kind: input, shape index: {}]   ;;  %s305_s4 = inlined_call_operand.vmem [shape: bf16[32,128], index: 4, kind: output, shape index: {}]  }
   0x1   :  { %v240_v0 = vld [vmem:[%s301_s1] sm:$0xff]   ;;  %v241_v1 = vld [vmem:[%s301_s1 + $0x8] sm:$0xff]   ;;  %v242_v2 = vld [vmem:[%s301_s1 + $0x10] sm:$0xff]  }
   0x2   :  { %228 = vmatprep.subr.bf16.mxu0 %v240_v0  ;;  %v244_v3 = vld [vmem:[%s302_s0] sm:$0xff]   ;;  %v243_v4 = vld [vmem:[%s301_s1 + $0x18] sm:$0xff]   ;;  %v245_v5 = vld [vmem:[%s302_s0 + $0x8] sm:$0xff]  }
   0x3   :  { %229 = vmatpush3.bf16.msra.mxu0 %v240_v0  ;;  %236 = vmatprep.mubr.msk.bf16.mxu0 %vm76_vm0, %v244_v3  ;;  %v201_v6 = vld [vmem:[%s303_s2] ss:$0 sm:$0xff] }
   0x4   :  { %230 = vmatprep.subr.bf16.mxu0 %v241_v1  ;;  %v202_v10 = vld [vmem:[%s304_s3] ss:$0 sm:$0xff] }
   0x7   :  { %231 = vmatpush3.bf16.msra.mxu0 %v241_v1 }
   0x8   :  { %232 = vmatprep.subr.bf16.mxu0 %v242_v2 }
   0xb   :  { %233 = vmatpush3.bf16.msra.mxu0 %v242_v2 }
   0xc   :  { %234 = vmatprep.subr.bf16.mxu0 %v243_v4 }
   0xf   :  { %235 = vmatpush3.bf16.msra.mxu0 %v243_v4 }
  0x12   :  { %237 = vmatmul.mubr.msk.bf16.vlgmr.msra.gmra.mrb[0].mxu0 %vm76_vm0, %v245_v5 }
  0xe5   :  { %v238_v7 = vpop.f32.mrb[0].mxu0 }
  0xe6   :  { %v156_v8 = vmul.f32 %v238_v7, %v201_v6  ;;  %v117_v9 = vpop.f32.mrb[1].mxu0 }
  0xe7   :  { %v154_v11 = vmul.f32 %v201_v6, %v117_v9  ;;  %v239_v12 = vpop.f32.mrb[2].mxu0 }
  0xe8   :  { %v157_v13 = vmul.f32 %v239_v12, %v201_v6  ;;  %v120_v14 = vpop.f32.mrb[3].mxu0  ;;  %v167_v16 = vadd.f32 %v202_v10, %v156_v8 }
  0xe9   :  { %v155_v15 = vmul.f32 %v201_v6, %v120_v14  ;;  %v165_v18 = vadd.f32 %v202_v10, %v154_v11 }
  0xea   :  { %v168_v17 = vadd.f32 %v202_v10, %v157_v13 }
  0xeb   :  { %v166_v19 = vadd.f32 %v202_v10, %v155_v15 }
  0xec   :  { %v219_v20 = vpack.c.bf16 %v168_v17, %v167_v16 }
  0xed   :  { %v214_v21 = vpack.c.bf16 %v166_v19, %v165_v18 }
  0xee   :  { %221 = vst [vmem:[%s305_s4 + $0x8] sm:$0xff] %v219_v20  }
  0xef   :  { %215 = vst [vmem:[%s305_s4] sm:$0xff] %v214_v21  }

// kernel: resnet18_forward.29
= control target key start
LH: loop header
LB: loop body
LE: loop exit
PB: predicated region body
PF: predicated region fallthrough
CT: control target
= control target key end

     0   :  { %vm380_vm0 = vcmask 523264   ;;  %s967_s1 = inlined_call_operand.vmem [shape: bf16[576,128], index: 1, kind: input, shape index: {}]   ;;  %s968_s0 = inlined_call_operand.vmem [shape: bf16[32,576], index: 0, kind: input, shape index: {}]   ;;  %s969_s2 = inlined_call_operand.vmem [shape: f32[1,128], index: 2, kind: input, shape index: {}]   ;;  %s970_s3 = inlined_call_operand.vmem [shape: f32[1,128], index: 3, kind: input, shape index: {}]   ;;  %s971_s4 = inlined_call_operand.vmem [shape: bf16[32,128], index: 4, kind: output, shape index: {}]  }
   0x1   :  { %v742_v0 = vld [vmem:[%s967_s1 + $0x40] sm:$0xff]   ;;  %v746_v4 = vld [vmem:[%s967_s1 + $0x48] sm:$0xff]   ;;  %v750_v8 = vld [vmem:[%s967_s1 + $0x50] sm:$0xff]  }
   0x2   :  { %v743_v1 = vld [vmem:[%s967_s1 + $0xc0] sm:$0xff]   ;;  %668 = vmatprep.subr.bf16.mxu0 %v742_v0  ;;  %v747_v5 = vld [vmem:[%s967_s1 + $0xc8] sm:$0xff]   ;;  %v751_v9 = vld [vmem:[%s967_s1 + $0xd0] sm:$0xff]  }
   0x3   :  { %v744_v2 = vld [vmem:[%s967_s1] sm:$0xff]   ;;  %696 = vmatprep.subr.bf16.mxu1 %v743_v1  ;;  %v748_v6 = vld [vmem:[%s967_s1 + $0x8] sm:$0xff]   ;;  %v752_v10 = vld [vmem:[%s967_s1 + $0x10] sm:$0xff]  }
   0x4   :  { %v745_v3 = vld [vmem:[%s967_s1 + $0x80] sm:$0xff]   ;;  %669 = vmatpush3.bf16.msra.mxu0 %v744_v2  ;;  %v749_v7 = vld [vmem:[%s967_s1 + $0x88] sm:$0xff]   ;;  %v753_v11 = vld [vmem:[%s967_s1 + $0x90] sm:$0xff]  }
   0x5   :  { %697 = vmatpush3.bf16.msra.mxu1 %v745_v3  ;;  %670 = vmatprep.subr.bf16.mxu0 %v746_v4  ;;  %v754_v12 = vld [vmem:[%s967_s1 + $0x58] sm:$0xff]   ;;  %v758_v16 = vld [vmem:[%s967_s1 + $0x60] sm:$0xff]   ;;  %v762_v20 = vld [vmem:[%s967_s1 + $0x68] sm:$0xff]  }
   0x6   :  { %698 = vmatprep.subr.bf16.mxu1 %v747_v5  ;;  %v755_v13 = vld [vmem:[%s967_s1 + $0xd8] sm:$0xff]   ;;  %v759_v17 = vld [vmem:[%s967_s1 + $0xe0] sm:$0xff]   ;;  %v763_v21 = vld [vmem:[%s967_s1 + $0xe8] sm:$0xff]  }
   0x7   :  { %v756_v14 = vld [vmem:[%s967_s1 + $0x18] sm:$0xff]   ;;  %v760_v18 = vld [vmem:[%s967_s1 + $0x20] sm:$0xff]   ;;  %v764_v22 = vld [vmem:[%s967_s1 + $0x28] sm:$0xff]  }
   0x8   :  { %671 = vmatpush3.bf16.msra.mxu0 %v748_v6  ;;  %v757_v15 = vld [vmem:[%s967_s1 + $0x98] sm:$0xff]   ;;  %v761_v19 = vld [vmem:[%s967_s1 + $0xa0] sm:$0xff]   ;;  %v765_v23 = vld [vmem:[%s967_s1 + $0xa8] sm:$0xff]  }
   0x9   :  { %699 = vmatpush3.bf16.msra.mxu1 %v749_v7  ;;  %672 = vmatprep.subr.bf16.mxu0 %v750_v8  ;;  %v766_v24 = vld [vmem:[%s967_s1 + $0x70] sm:$0xff]   ;;  %v770_v28 = vld [vmem:[%s967_s1 + $0x78] sm:$0xff]   ;;  %v779_v35 = vld [vmem:[%s968_s0 + $0xc] ss:$20 sps:$4 sm:$0xff]  }
   0xa   :  { %700 = vmatprep.subr.bf16.mxu1 %v751_v9  ;;  %v767_v25 = vld [vmem:[%s967_s1 + $0xf0] sm:$0xff]   ;;  %v771_v29 = vld [vmem:[%s967_s1 + $0xf8] sm:$0xff]   ;;  %v780_v36 = vld [vmem:[%s967_s1 + $0x100] sm:$0xff]   ;;  %468 = vmatprep.mubr.bf16.mxu1 %v779_v35 }
   0xb   :  { %v768_v26 = vld [vmem:[%s967_s1 + $0x30] sm:$0xff]   ;;  %v772_v30 = vld [vmem:[%s967_s1 + $0x38] sm:$0xff]   ;;  %v781_v37 = vld [vmem:[%s967_s1 + $0x108] sm:$0xff]  }
   0xc   :  { %673 = vmatpush3.bf16.msra.mxu0 %v752_v10  ;;  %v769_v27 = vld [vmem:[%s967_s1 + $0xb0] sm:$0xff]   ;;  %v773_v31 = vld [vmem:[%s967_s1 + $0xb8] sm:$0xff]   ;;  %v782_v38 = vld [vmem:[%s968_s0 + $0x2c] ss:$20 sps:$4 sm:$0xff]  }
   0xd   :  { %701 = vmatpush3.bf16.msra.mxu1 %v753_v11  ;;  %674 = vmatprep.subr.bf16.mxu0 %v754_v12  ;;  %v774_v32 = vld [vmem:[%s968_s0] ss:$20 sps:$4 sm:$0xff]   ;;  %v776_v33 = vld [vmem:[%s968_s0 + $0x4] ss:$20 sps:$4 sm:$0xff]   ;;  %v777_v34 = vld [vmem:[%s968_s0 + $0x8] ss:$20 sps:$4 sm:$0xff]  }
   0xe   :  { %702 = vmatprep.subr.bf16.mxu1 %v755_v13  ;;  %419 = vmatprep.mubr.bf16.mxu0 %v776_v33  ;;  %v784_v39 = vld [vmem:[%s968_s0 + $0x34] ss:$20 sps:$4 sm:$0xff]   ;;  %v787_v42 = vld [vmem:[%s968_s0 + $0x30] ss:$20 sps:$4 sm:$0xff]   ;;  %v789_v44 = vld [vmem:[%s967_s1 + $0x118] sm:$0xff]  }
   0xf   :  { %v786_v40 = vld [vmem:[%s968_s0 + $0x28] ss:$20 sps:$4 sm:$0xff]   ;;  %v788_v41 = vld [vmem:[%s967_s1 + $0x110] sm:$0xff]   ;;  %v791_v45 = vld [vmem:[%s968_s0 + $0x38] ss:$20 sps:$4 sm:$0xff]  }
  0x10   :  { %675 = vmatpush3.bf16.msra.mxu0 %v756_v14  ;;  %v790_v43 = vld [vmem:[%s968_s0 + $0x10] ss:$20 sps:$4 sm:$0xff]   ;;  %v647_v11 = vld [vmem:[%s969_s2] ss:$0 sm:$0xff] }
  0x11   :  { %703 = vmatpush3.bf16.msra.mxu1 %v757_v15  ;;  %676 = vmatprep.subr.bf16.mxu0 %v758_v16  ;;  %v648_v14 = vld [vmem:[%s970_s3] ss:$0 sm:$0xff] }
  0x12   :  { %704 = vmatprep.subr.bf16.mxu1 %v759_v17 }
  0x14   :  { %677 = vmatpush3.bf16.msra.mxu0 %v760_v18 }
  0x15   :  { %705 = vmatpush3.bf16.msra.mxu1 %v761_v19  ;;  %678 = vmatprep.subr.bf16.mxu0 %v762_v20 }
  0x16   :  { %706 = vmatprep.subr.bf16.mxu1 %v763_v21 }
  0x18   :  { %679 = vmatpush3.bf16.msra.mxu0 %v764_v22 }
  0x19   :  { %707 = vmatpush3.bf16.msra.mxu1 %v765_v23  ;;  %680 = vmatprep.subr.bf16.mxu0 %v766_v24 }
  0x1a   :  { %708 = vmatprep.subr.bf16.mxu1 %v767_v25 }
  0x1c   :  { %681 = vmatpush3.bf16.msra.mxu0 %v768_v26 }
  0x1d   :  { %709 = vmatpush3.bf16.msra.mxu1 %v769_v27  ;;  %682 = vmatprep.subr.bf16.mxu0 %v770_v28 }
  0x1e   :  { %710 = vmatprep.subr.bf16.mxu1 %v771_v29 }
  0x20   :  { %683 = vmatpush3.bf16.msra.mxu0 %v772_v30 }
  0x21   :  { %711 = vmatpush3.bf16.msra.mxu1 %v773_v31  ;;  %730 = vmatprep.subr.bf16.mxu0 %v780_v36 }
  0x23   :  { %420 = vmatmul.mubr.bf16.vlgmr.msra.gmra.mrb[0].mxu0 %v774_v32 }
  0x24   :  { %469 = vmatmul.mubr.bf16.vlgmr.msra.gmra.mrb[0].mxu1 %v777_v34  ;;  %731 = vmatpush3.bf16.msra.mxu0 %v780_v36 }
  0x25   :  { %732 = vmatprep.subr.bf16.mxu0 %v781_v37  ;;  %427 = vmatprep.mubr.bf16.mxu0 %v782_v38 }
  0x26   :  { %476 = vmatprep.mubr.bf16.mxu1 %v784_v39 }
  0x28   :  { %733 = vmatpush3.bf16.msra.mxu0 %v781_v37 }
  0x29   :  { %734 = vmatprep.subr.bf16.mxu0 %v788_v41 }
  0x2b   :  { %428 = vmatmul.mubr.bf16.gmra.mrb[4].mxu0 %v786_v40 }
  0x2c   :  { %477 = vmatmul.mubr.bf16.gmra.mrb[4].mxu1 %v787_v42  ;;  %738 = vmatprep.mubr.msk.bf16.mxu0 %vm380_vm0, %v790_v43 }
  0x2d   :  { %735 = vmatpush3.bf16.msra.mxu0 %v788_v41 }
  0x2e   :  { %736 = vmatprep.subr.bf16.mxu0 %v789_v44 }
  0x31   :  { %737 = vmatpush3.bf16.msra.mxu0 %v789_v44 }
  0x34   :  { %739 = vmatmul.mubr.msk.bf16.vlgmr.msra.gmra.mrb[8].mxu0 %vm380_vm0, %v791_v45 }
  0xf6   :  { %v684_v46 = vpop.f32.mrb[0].mxu0 }
  0xf7   :  { %v712_v47 = vpop.f32.mrb[0].mxu1  ;;  %v685_v48 = vpop.f32.mrb[1].mxu0 }
  0xf8   :  { %v686_v49 = vadd.f32 %v685_v48, %v684_v46  ;;  %v713_v50 = vpop.f32.mrb[1].mxu1  ;;  %v687_v51 = vpop.f32.mrb[2].mxu0 }
  0xf9   :  { %v714_v52 = vadd.f32 %v713_v50, %v712_v47  ;;  %v715_v53 = vpop.f32.mrb[2].mxu1  ;;  %v688_v54 = vpop.f32.mrb[3].mxu0 }
  0xfa   :  { %v689_v55 = vadd.f32 %v688_v54, %v687_v51  ;;  %v716_v56 = vpop.f32.mrb[3].mxu1 }
  0xfb   :  { %v717_v57 = vadd.f32 %v716_v56, %v715_v53  ;;  %v471_v58 = vadd.f32 %v714_v52, %v686_v49 }
  0xfd   :  { %v474_v59 = vadd.f32 %v717_v57, %v689_v55 }
  0xfe   :  { %v690_v60 = vpop.f32.mrb[4].mxu0 }
  0xff   :  { %v718_v61 = vpop.f32.mrb[4].mxu1  ;;  %v691_v62 = vpop.f32.mrb[5].mxu0 }
 0x100   :  { %v692_v63 = vadd.f32 %v691_v62, %v690_v60  ;;  %v719_v0 = vpop.f32.mrb[5].mxu1  ;;  %v693_v1 = vpop.f32.mrb[6].mxu0 }
 0x101   :  { %v720_v2 = vadd.f32 %v719_v0, %v718_v61  ;;  %v721_v3 = vpop.f32.mrb[6].mxu1  ;;  %v694_v4 = vpop.f32.mrb[7].mxu0 }
 0x102   :  { %v695_v5 = vadd.f32 %v694_v4, %v693_v1  ;;  %v722_v6 = vpop.f32.mrb[7].mxu1 }
 0x103   :  { %v723_v7 = vadd.f32 %v722_v6, %v721_v3  ;;  %v479_v8 = vadd.f32 %v720_v2, %v692_v63 }
 0x105   :  { %v482_v9 = vadd.f32 %v723_v7, %v695_v5 }
 0x107   :  { %v740_v10 = vpop.f32.mrb[8].mxu0 }
 0x108   :  { %v528_v12 = vadd.f32 %v740_v10, %v479_v8  ;;  %v519_v13 = vpop.f32.mrb[9].mxu0 }
 0x109   :  { %v520_v15 = vadd.f32 %v519_v13, %v471_v58  ;;  %v741_v16 = vpop.f32.mrb[10].mxu0 }
 0x10a   :  { %v558_v17 = vmul.f32 %v647_v11, %v528_v12  ;;  %v531_v18 = vadd.f32 %v741_v16, %v482_v9  ;;  %v522_v19 = vpop.f32.mrb[11].mxu0 }
 0x10b   :  { %v556_v20 = vmul.f32 %v647_v11, %v520_v15  ;;  %v523_v21 = vadd.f32 %v522_v19, %v474_v59 }
 0x10c   :  { %v569_v22 = vadd.f32 %v648_v14, %v558_v17  ;;  %v559_v23 = vmul.f32 %v647_v11, %v531_v18 }
 0x10d   :  { %v567_v24 = vadd.f32 %v648_v14, %v556_v20  ;;  %v557_v25 = vmul.f32 %v647_v11, %v523_v21 }
 0x10e   :  { %v570_v26 = vadd.f32 %v648_v14, %v559_v23  ;;  %v573_v28 = vmax.f32 %v569_v22, 0.0 }
 0x10f   :  { %v568_v27 = vadd.f32 %v648_v14, %v557_v25  ;;  %v571_v30 = vmax.f32 %v567_v24, 0.0 }
 0x110   :  { %v574_v29 = vmax.f32 %v570_v26, 0.0 }
 0x111   :  { %v572_v31 = vmax.f32 %v568_v27, 0.0 }
 0x112   :  { %v665_v32 = vpack.c.bf16 %v574_v29, %v573_v28 }
 0x113   :  { %v660_v33 = vpack.c.bf16 %v572_v31, %v571_v30 }
 0x114   :  { %667 = vst [vmem:[%s971_s4 + $0x8] sm:$0xff] %v665_v32  }
 0x115   :  { %661 = vst [vmem:[%s971_s4] sm:$0xff] %v660_v33  }

// kernel: resnet18_forward.32
= control target key start
LH: loop header
LB: loop body
LE: loop exit
PB: predicated region body
PF: predicated region fallthrough
CT: control target
= control target key end

     0   :  { %s1142_s15 = smov 0   ;;  %s1144_s16 = smov 0   ;;  %s1255_s0 = inlined_call_operand.vmem [shape: bf16[32,1152], index: 0, kind: input, shape index: {}]   ;;  %s1256_s1 = inlined_call_operand.vmem [shape: bf16[1152,128], index: 1, kind: input, shape index: {}]   ;;  %s1257_s2 = inlined_call_operand.vmem [shape: f32[1,128], index: 2, kind: input, shape index: {}]   ;;  %s1258_s3 = inlined_call_operand.vmem [shape: f32[1,128], index: 3, kind: input, shape index: {}]   ;;  %s1259_s4 = inlined_call_operand.vmem [shape: bf16[32,128], index: 4, kind: output, shape index: {}]  }
   0x1   :  { %s1146_s17 = smov 0   ;;  %s1148_s18 = smov 0  }
   0x2   :  { %s1150_s19 = smov 0  }
   0x3 LB: > { %s26_s20 = sadd.s32 1, %s1110_s18  ;;  %p49_p1 = scmp.ne.s32.totalorder %s1102_s16, %s1098_s15  ;;  %s1114_s19 = sphi %s1150_s19, %s14_s19   ;;  %s1110_s18 = sphi %s1148_s18, %s1263_s18   ;;  %s1106_s17 = sphi %s1146_s17, %s1262_s17   ;;  %s1102_s16 = sphi %s1144_s16, %s1261_s16   ;;  %s1098_s15 = sphi %s1142_s15, %s1260_s15  }
   0x4   : > { %p27_p0 = scmp.ge.s32.totalorder %s26_s20, 3  ;;  %p50_p2 = scmp.eq.s32.totalorder %s1114_s19, 0 }
   0x5   : > { %s42_s22 = sadd.s32 1, %s1102_s16  ;;  %p873_p5 = scmp.ge.s32.totalorder %s1114_s19, 3 }
   0x6   : > { %s1265_s20 = smov (%p27_p0, %s26_s20), 0  ;;  %p51_p3 = por %p50_p2, %p49_p1 }
   0x7   : > { %s38_s21 = ssub.s32 %s1110_s18, %s1265_s20  ;;  %195 = sbr.rel (%p873_p5) target bundleno = 23 (0x17), region = 24 }
   0x8   : > { %p40_p4 = scmp.eq.s32.totalorder %s38_s21, 0 }
   0xa   : > { %s1177_s23 = scalar_select %p40_p4, %s1102_s16, %s42_s22  }
   0xe   : > { %198 = sbr.rel (!%p51_p3) target bundleno = 23 (0x17), region = 28  ;;  %s200_s24 = sand.u32 (%p51_p3), 1, %s1102_s16  }
   0xf   : > { %s927_s25 = smul.u32 (%p51_p3), 12, %s1110_s18 }
  0x10   : > { %s1001_s26 = smul.u32 (%p51_p3), 48, %s200_s24 }
  0x11   : > { %s208_s29 = scalar_lea.vmem (%p51_p3), %s1255_s0, %s927_s25 }
  0x12   : > { %v223_v0 = vld [vmem:[%s208_s29] sm:$0xff] (%p51_p3)  ;;  %v227_v2 = vld [vmem:[%s208_s29 + $0x48] sm:$0xff] (%p51_p3)  ;;  %s202_s30 = scalar_lea.vmem (%p51_p3), [#allocation3], %s1001_s26  ;;  %v879_v6 = vld [vmem:[%s208_s29 + $0x50] sm:$0xf] (%p51_p3) }
  0x13   : > { %v225_v1 = vld [vmem:[%s208_s29 + $0x24] sm:$0xff] (%p51_p3)  ;;  %224 = vst [vmem:[%s202_s30] sm:$0xff] (%p51_p3), %v223_v0  ;;  %228 = vst [vmem:[%s202_s30 + $0x18] sm:$0xff] (%p51_p3), %v227_v2  ;;  %v229_v3 = vld [vmem:[%s208_s29 + $0x6c] sm:$0xff] (%p51_p3) }
  0x14   : > { %226 = vst [vmem:[%s202_s30 + $0xc] sm:$0xff] (%p51_p3), %v225_v1  ;;  %v875_v4 = vld [vmem:[%s208_s29 + $0x8] sm:$0xf] (%p51_p3)  ;;  %v877_v5 = vld [vmem:[%s208_s29 + $0x2c] sm:$0xf] (%p51_p3)  ;;  %230 = vst [vmem:[%s202_s30 + $0x24] sm:$0xff] (%p51_p3), %v229_v3 }
  0x15   : > { %876 = vst [vmem:[%s202_s30 + $0x8] sm:$0xf] %v875_v4  ;;  %878 = vst [vmem:[%s202_s30 + $0x14] sm:$0xf] %v877_v5  ;;  %v881_v7 = vld [vmem:[%s208_s29 + $0x74] sm:$0xf] }
  0x16   : > { %880 = vst [vmem:[%s202_s30 + $0x20] sm:$0xf] %v879_v6  ;;  %882 = vst [vmem:[%s202_s30 + $0x2c] sm:$0xf] %v881_v7 }
  0x17 PF: > { %p883_p6 = scmp.ge.s32.totalorder %s1114_s19, 1  ;;  %p262_p7 = scmp.lt.s32.totalorder %s1114_s19, 4 }
  0x19   : > { %p263_p8 = pnand %p883_p6, %p262_p7 }
  0x1a   : > { %s269_s5 = sand.u32 (!%p263_p8), 1, %s1098_s15   ;;  %s313_s6 = smul.u32 (!%p263_p8), 48, %s1106_s17 }
  0x1b   : > { %266 = sbr.rel (%p263_p8) target bundleno = 320 (0x140), region = 58  ;;  %p885_p10 = scmp.ne.s32.totalorder (!%p263_p8), %s1106_s17, 0 }
  0x1c   : > { %s1002_s7 = smul.u32 (!%p263_p8), 48, %s269_s5  ;;  %p314_p9 = scmp.lt.s32.totalorder (!%p263_p8), %s313_s6, 143 }
  0x1e   : > { %s1194_s12 = scalar_lea.vmem (!%p263_p8), [#allocation3], %s1002_s7 }
  0x22   : > { %s1267_s6 = smov (!%p314_p9, %s313_s6), 143  ;;  %341 = sbr.rel (%p885_p10) target bundleno = 41 (0x29), region = 66 }
  0x23   : > { %s884_s8 = sshll.u32 %s1267_s6, 2  ;;  %v1116_v8 = vmov (!%p885_p10), 0.0  }
  0x24   : > { %s1192_s11 = scalar_lea.vmem %s1256_s1, %s884_s8  ;;  %342 = vst [vmem:[#allocation2] sm:$0xff] (!%p885_p10), %v1116_v8  ;;  %343 = vst [vmem:[#allocation2 + $0x8] sm:$0xff] (!%p885_p10), %v1116_v8 }
  0x25   : > { %344 = vst [vmem:[#allocation2 + $0x10] sm:$0xff] (!%p885_p10), %v1116_v8  ;;  %345 = vst [vmem:[#allocation2 + $0x18] sm:$0xff] (!%p885_p10), %v1116_v8 }
  0x29 PF: > { %v1044_v9 = vld [vmem:[%s1192_s11 + $0x40] sm:$0xff]   ;;  %v1047_v12 = vld [vmem:[%s1192_s11 + $0x48] sm:$0xff]   ;;  %v1050_v15 = vld [vmem:[%s1192_s11 + $0x50] sm:$0xff]   ;;  %p916_p11 = scmp.ne.s32.totalorder %s1106_s17, 2 }
  0x2a   : > { %v1045_v10 = vld [vmem:[%s1192_s11] sm:$0xff]   ;;  %943 = vmatprep.subr.bf16.mxu0 %v1044_v9  ;;  %v1048_v13 = vld [vmem:[%s1192_s11 + $0x8] sm:$0xff]   ;;  %v1051_v16 = vld [vmem:[%s1192_s11 + $0x10] sm:$0xff]  }
  0x2b   : > { %v1046_v11 = vld [vmem:[%s1192_s11 + $0x80] sm:$0xff]   ;;  %944 = vmatpush3.bf16.msra.mxu0 %v1045_v10  ;;  %v1049_v14 = vld [vmem:[%s1192_s11 + $0x88] sm:$0xff]   ;;  %v1052_v17 = vld [vmem:[%s1192_s11 + $0x90] sm:$0xff]  }
  0x2c   : > { %981 = vmatprep.subr.bf16.mxu1 %v1046_v11  ;;  %945 = vmatprep.subr.bf16.mxu0 %v1047_v12  ;;  %v1053_v18 = vld [vmem:[%s1192_s11 + $0x58] sm:$0xff]   ;;  %v1056_v21 = vld [vmem:[%s1192_s11 + $0x60] sm:$0xff]   ;;  %v1059_v24 = vld [vmem:[%s1192_s11 + $0x68] sm:$0xff]  }
  0x2d   : > { %982 = vmatpush3.bf16.msra.mxu1 %v1046_v11  ;;  %v1054_v19 = vld [vmem:[%s1192_s11 + $0x18] sm:$0xff]   ;;  %v1058_v22 = vld [vmem:[%s1192_s11 + $0xa0] sm:$0xff]   ;;  %v1061_v25 = vld [vmem:[%s1192_s11 + $0xa8] sm:$0xff]  }
  0x2e   : > { %983 = vmatprep.subr.bf16.mxu1 %v1049_v14  ;;  %v1055_v20 = vld [vmem:[%s1192_s11 + $0x98] sm:$0xff]   ;;  %v1057_v23 = vld [vmem:[%s1192_s11 + $0x20] sm:$0xff]   ;;  %v1060_v26 = vld [vmem:[%s1192_s11 + $0x28] sm:$0xff]  }
  0x2f   : > { %946 = vmatpush3.bf16.msra.mxu0 %v1048_v13  ;;  %v1062_v27 = vld [vmem:[%s1192_s11 + $0x70] sm:$0xff]   ;;  %v1065_v30 = vld [vmem:[%s1192_s11 + $0x78] sm:$0xff]   ;;  %v346_v45 = vld [vmem:[#allocation2] sm:$0xff] }
  0x30   : > { %947 = vmatprep.subr.bf16.mxu0 %v1050_v15  ;;  %v1063_v28 = vld [vmem:[%s1192_s11 + $0x30] sm:$0xff]   ;;  %v1067_v31 = vld [vmem:[%s1192_s11 + $0xb8] sm:$0xff]   ;;  %v347_v50 = vld [vmem:[#allocation2 + $0x8] sm:$0xff] }
  0x31   : > { %984 = vmatpush3.bf16.msra.mxu1 %v1049_v14  ;;  %v1064_v29 = vld [vmem:[%s1192_s11 + $0xb0] sm:$0xff]   ;;  %v1066_v34 = vld [vmem:[%s1192_s11 + $0x38] sm:$0xff]   ;;  %v917_v5 = vld [vmem:[%s1257_s2] ss:$0 sm:$0xff] (!%p916_p11) }
  0x32   : > { %985 = vmatprep.subr.bf16.mxu1 %v1052_v17  ;;  %v1070_v32 = vld [vmem:[%s1194_s12 + $0x4] ss:$12 sps:$4 sm:$0xff]   ;;  %v1071_v33 = vld [vmem:[%s1194_s12 + $0x8] ss:$12 sps:$4 sm:$0xff]   ;;  %v1068_v35 = vld [vmem:[%s1194_s12] ss:$12 sps:$4 sm:$0xff]  }
  0x33   : > { %948 = vmatpush3.bf16.msra.mxu0 %v1051_v16  ;;  %614 = vmatprep.mubr.bf16.mxu0 %v1070_v32  ;;  %v1073_v36 = vld [vmem:[%s1194_s12 + $0x1c] ss:$12 sps:$4 sm:$0xff]   ;;  %v1072_v37 = vld [vmem:[%s1194_s12 + $0x20] ss:$12 sps:$4 sm:$0xff]   ;;  %v1075_v38 = vld [vmem:[%s1194_s12 + $0x18] ss:$12 sps:$4 sm:$0xff]  }
  0x34   : > { %949 = vmatprep.subr.bf16.mxu0 %v1053_v18  ;;  %997 = vmatprep.mubr.bf16.mxu1 %v1071_v33  ;;  %v348_v59 = vld [vmem:[#allocation2 + $0x10] sm:$0xff]  ;;  %v349_v63 = vld [vmem:[#allocation2 + $0x18] sm:$0xff]  ;;  %v918_v8 = vld [vmem:[%s1258_s3] ss:$0 sm:$0xff] (!%p916_p11) }
  0x35   : > { %986 = vmatpush3.bf16.msra.mxu1 %v1052_v17 }
  0x36   : > { %987 = vmatprep.subr.bf16.mxu1 %v1055_v20 }
  0x37   : > { %950 = vmatpush3.bf16.msra.mxu0 %v1054_v19 }
  0x38   : > { %951 = vmatprep.subr.bf16.mxu0 %v1056_v21 }
  0x39   : > { %988 = vmatpush3.bf16.msra.mxu1 %v1055_v20 }
  0x3a   : > { %989 = vmatprep.subr.bf16.mxu1 %v1058_v22 }
  0x3b   : > { %952 = vmatpush3.bf16.msra.mxu0 %v1057_v23 }
  0x3c   : > { %953 = vmatprep.subr.bf16.mxu0 %v1059_v24 }
  0x3d   : > { %990 = vmatpush3.bf16.msra.mxu1 %v1058_v22 }
  0x3e   : > { %991 = vmatprep.subr.bf16.mxu1 %v1061_v25 }
  0x3f   : > { %954 = vmatpush3.bf16.msra.mxu0 %v1060_v26 }
  0x40   : > { %955 = vmatprep.subr.bf16.mxu0 %v1062_v27 }
  0x41   : > { %992 = vmatpush3.bf16.msra.mxu1 %v1061_v25 }
  0x42   : > { %993 = vmatprep.subr.bf16.mxu1 %v1064_v29 }
  0x43   : > { %956 = vmatpush3.bf16.msra.mxu0 %v1063_v28 }
  0x44   : > { %957 = vmatprep.subr.bf16.mxu0 %v1065_v30 }
  0x45   : > { %994 = vmatpush3.bf16.msra.mxu1 %v1064_v29 }
  0x46   : > { %995 = vmatprep.subr.bf16.mxu1 %v1067_v31 }
  0x47   : > { %958 = vmatpush3.bf16.msra.mxu0 %v1066_v34 }
  0x49   : > { %996 = vmatpush3.bf16.msra.mxu1 %v1067_v31 }
  0x4a   : > { %615 = vmatmul.mubr.bf16.vlgmr.msra.gmra.mrb[0].mxu0 %v1068_v35 }
  0x4b   : > { %622 = vmatprep.mubr.bf16.mxu0 %v1073_v36 }
  0x4c   : > { %998 = vmatmul.mubr.bf16.vlgmr.msra.gmra.mrb[0].mxu1 %v1072_v37 }
  0x52   : > { %623 = vmatmul.mubr.bf16.gmra.mrb[4].mxu0 %v1075_v38 }
 0x11d   : > { %v959_v39 = vpop.f32.mrb[0].mxu0 }
 0x11e   : > { %v960_v40 = vpop.f32.mrb[1].mxu0 }
 0x11f   : > { %v961_v41 = vadd.f32 %v960_v40, %v959_v39  ;;  %v962_v42 = vpop.f32.mrb[2].mxu0  ;;  %v999_v43 = vpop.f32.mrb[0].mxu1 }
 0x120   : > { %v963_v44 = vpop.f32.mrb[3].mxu0  ;;  %v665_v46 = vpop.f32.mrb[1].mxu1 }
 0x121   : > { %v964_v47 = vadd.f32 %v963_v44, %v962_v42  ;;  %v666_v48 = vadd.f32 %v961_v41, %v665_v46  ;;  %v1000_v49 = vpop.f32.mrb[2].mxu1 }
 0x122   : > { %v668_v51 = vpop.f32.mrb[3].mxu1 }
 0x123   : > { %v680_v52 = vadd.f32 %v666_v48, %v346_v45  ;;  %v669_v53 = vadd.f32 %v964_v47, %v668_v51 }
 0x125   : > { %684 = vst [vmem:[#allocation2] sm:$0xff] %v680_v52  ;;  %v681_v54 = vadd.f32 %v669_v53, %v347_v50  ;;  %v965_v55 = vpop.f32.mrb[4].mxu0 }
 0x126   : > { %v966_v56 = vpop.f32.mrb[5].mxu0 }
 0x127   : > { %685 = vst [vmem:[#allocation2 + $0x8] sm:$0xff] %v681_v54  ;;  %v967_v57 = vadd.f32 %v966_v56, %v965_v55  ;;  %v968_v58 = vpop.f32.mrb[6].mxu0 }
 0x128   : > { %v969_v60 = vpop.f32.mrb[7].mxu0 }
 0x129   : > { %v674_v61 = vadd.f32 %v999_v43, %v967_v57  ;;  %v970_v62 = vadd.f32 %v969_v60, %v968_v58  ;;  %691 = sbr.rel (%p916_p11) target bundleno = 320 (0x140), region = 70 }
 0x12b   : > { %v682_v0 = vadd.f32 %v674_v61, %v348_v59  ;;  %v677_v1 = vadd.f32 %v1000_v49, %v970_v62 }
 0x12c   : > { %v692_v3 = vld [vmem:[#allocation2] sm:$0xff] (!%p916_p11) }
 0x12d   : > { %686 = vst [vmem:[#allocation2 + $0x10] sm:$0xff] %v682_v0  ;;  %v683_v2 = vadd.f32 %v677_v1, %v349_v63  ;;  %v703_v6 = vmul.f32 (!%p916_p11), %v917_v5, %v692_v3 }
 0x12e   : > { %v693_v4 = vld [vmem:[#allocation2 + $0x8] sm:$0xff] (!%p916_p11) }
 0x12f   : > { %687 = vst [vmem:[#allocation2 + $0x18] sm:$0xff] %v683_v2  ;;  %v704_v7 = vmul.f32 (!%p916_p11), %v917_v5, %v693_v4  ;;  %v714_v13 = vadd.f32 (!%p916_p11), %v918_v8, %v703_v6 }
 0x131   : > { %v715_v14 = vadd.f32 %v918_v8, %v704_v7  ;;  %v718_v17 = vmax.f32 %v714_v13, 0.0 }
 0x133   : > { %v719_v18 = vmax.f32 %v715_v14, 0.0 }
 0x134   : > { %v694_v9 = vld [vmem:[#allocation2 + $0x10] sm:$0xff] }
 0x135   : > { %v705_v11 = vmul.f32 %v917_v5, %v694_v9  ;;  %v935_v21 = vpack.c.bf16 %v719_v18, %v718_v17 }
 0x136   : > { %v695_v10 = vld [vmem:[#allocation2 + $0x18] sm:$0xff] }
 0x137   : > { %v706_v12 = vmul.f32 %v917_v5, %v695_v10  ;;  %v716_v15 = vadd.f32 %v918_v8, %v705_v11  ;;  %936 = vst [vmem:[%s1259_s4] sm:$0xff] %v935_v21  }
 0x139   : > { %v717_v16 = vadd.f32 %v918_v8, %v706_v12  ;;  %v720_v19 = vmax.f32 %v716_v15, 0.0 }
 0x13b   : > { %v721_v20 = vmax.f32 %v717_v16, 0.0 }
 0x13d   : > { %v940_v22 = vpack.c.bf16 %v721_v20, %v720_v19 }
 0x13f   : > { %942 = vst [vmem:[%s1259_s4 + $0x8] sm:$0xff] %v940_v22  }
 0x140 PF: > { %s14_s19 = sadd.s32 1, %s1114_s19   ;;  %s1260_s15 = smov %s1102_s16 }
 0x141   : > { %p11_p12 = scmp.ge.s32.totalorder %s14_s19, 5   ;;  %s1261_s16 = smov %s1177_s23 }
 0x142   : > { %s1262_s17 = smov %s1110_s18  ;;  %s1263_s18 = smov %s1265_s20 }
 0x143   :  { %13 = sbr.rel (!%p11_p12) target bundleno = 3 (0x3), region = 120 }

// kernel: resnet18_forward.31
= control target key start
LH: loop header
LB: loop body
LE: loop exit
PB: predicated region body
PF: predicated region fallthrough
CT: control target
= control target key end

     0   :  { %s1247_s18 = smov 0   ;;  %s1249_s19 = smov 0   ;;  %s1366_s0 = inlined_call_operand.vmem [shape: bf16[32,1152], index: 0, kind: input, shape index: {}]   ;;  %s1367_s1 = inlined_call_operand.vmem [shape: bf16[1152,128], index: 1, kind: input, shape index: {}]   ;;  %s1368_s2 = inlined_call_operand.vmem [shape: f32[1,128], index: 2, kind: input, shape index: {}]   ;;  %s1369_s3 = inlined_call_operand.vmem [shape: f32[1,128], index: 3, kind: input, shape index: {}]   ;;  %s1370_s4 = inlined_call_operand.vmem [shape: bf16[32,128], index: 4, kind: input, shape index: {}]   ;;  %s1371_s5 = inlined_call_operand.vmem [shape: bf16[32,128], index: 5, kind: output, shape index: {}]  }
   0x1   :  { %s1251_s20 = smov 0   ;;  %s1253_s21 = smov 0  }
   0x2   :  { %s1255_s22 = smov 0  }
   0x3 LB: > { %s27_s23 = sadd.s32 1, %s1210_s21  ;;  %p50_p1 = scmp.ne.s32.totalorder %s1202_s19, %s1198_s18  ;;  %s1214_s22 = sphi %s1255_s22, %s15_s22   ;;  %s1210_s21 = sphi %s1253_s21, %s1375_s21   ;;  %s1206_s20 = sphi %s1251_s20, %s1374_s20   ;;  %s1202_s19 = sphi %s1249_s19, %s1373_s19   ;;  %s1198_s18 = sphi %s1247_s18, %s1372_s18  }
   0x4   : > { %p28_p0 = scmp.ge.s32.totalorder %s27_s23, 3  ;;  %p51_p2 = scmp.eq.s32.totalorder %s1214_s22, 0 }
   0x5   : > { %s43_s25 = sadd.s32 1, %s1202_s19  ;;  %p964_p5 = scmp.ge.s32.totalorder %s1214_s22, 3 }
   0x6   : > { %s1377_s23 = smov (%p28_p0, %s27_s23), 0  ;;  %p52_p3 = por %p51_p2, %p50_p1 }
   0x7   : > { %s39_s24 = ssub.s32 %s1210_s21, %s1377_s23  ;;  %236 = sbr.rel (%p964_p5) target bundleno = 23 (0x17), region = 28 }
   0x8   : > { %p41_p4 = scmp.eq.s32.totalorder %s39_s24, 0 }
   0xa   : > { %s1282_s26 = scalar_select %p41_p4, %s1202_s19, %s43_s25  }
   0xe   : > { %239 = sbr.rel (!%p52_p3) target bundleno = 23 (0x17), region = 32  ;;  %s241_s27 = sand.u32 (%p52_p3), 1, %s1202_s19  }
   0xf   : > { %s1018_s28 = smul.u32 (%p52_p3), 12, %s1210_s21 }
  0x10   : > { %s1101_s29 = smul.u32 (%p52_p3), 48, %s241_s27 }
  0x11   : > { %s249_s7 = scalar_lea.vmem (%p52_p3), %s1366_s0, %s1018_s28 }
  0x12   : > { %v264_v0 = vld [vmem:[%s249_s7] sm:$0xff] (%p52_p3)  ;;  %v268_v2 = vld [vmem:[%s249_s7 + $0x48] sm:$0xff] (%p52_p3)  ;;  %s243_s8 = scalar_lea.vmem (%p52_p3), [#allocation3], %s1101_s29  ;;  %v970_v6 = vld [vmem:[%s249_s7 + $0x50] sm:$0xf] (%p52_p3) }
  0x13   : > { %v266_v1 = vld [vmem:[%s249_s7 + $0x24] sm:$0xff] (%p52_p3)  ;;  %265 = vst [vmem:[%s243_s8] sm:$0xff] (%p52_p3), %v264_v0  ;;  %269 = vst [vmem:[%s243_s8 + $0x18] sm:$0xff] (%p52_p3), %v268_v2  ;;  %v270_v3 = vld [vmem:[%s249_s7 + $0x6c] sm:$0xff] (%p52_p3) }
  0x14   : > { %267 = vst [vmem:[%s243_s8 + $0xc] sm:$0xff] (%p52_p3), %v266_v1  ;;  %v966_v4 = vld [vmem:[%s249_s7 + $0x8] sm:$0xf] (%p52_p3)  ;;  %v968_v5 = vld [vmem:[%s249_s7 + $0x2c] sm:$0xf] (%p52_p3)  ;;  %271 = vst [vmem:[%s243_s8 + $0x24] sm:$0xff] (%p52_p3), %v270_v3 }
  0x15   : > { %967 = vst [vmem:[%s243_s8 + $0x8] sm:$0xf] %v966_v4  ;;  %969 = vst [vmem:[%s243_s8 + $0x14] sm:$0xf] %v968_v5  ;;  %v972_v7 = vld [vmem:[%s249_s7 + $0x74] sm:$0xf] }
  0x16   : > { %971 = vst [vmem:[%s243_s8 + $0x20] sm:$0xf] %v970_v6  ;;  %973 = vst [vmem:[%s243_s8 + $0x2c] sm:$0xf] %v972_v7 }
  0x17 PF: > { %p974_p6 = scmp.ge.s32.totalorder %s1214_s22, 1  ;;  %p303_p7 = scmp.lt.s32.totalorder %s1214_s22, 4 }
  0x19   : > { %p304_p8 = pnand %p974_p6, %p303_p7 }
  0x1a   : > { %s310_s9 = sand.u32 (!%p304_p8), 1, %s1198_s18   ;;  %s364_s10 = smul.u32 (!%p304_p8), 48, %s1206_s20 }
  0x1b   : > { %307 = sbr.rel (%p304_p8) target bundleno = 322 (0x142), region = 62  ;;  %p976_p10 = scmp.ne.s32.totalorder (!%p304_p8), %s1206_s20, 0 }
  0x1c   : > { %s1102_s11 = smul.u32 (!%p304_p8), 48, %s310_s9  ;;  %p365_p9 = scmp.lt.s32.totalorder (!%p304_p8), %s364_s10, 143 }
  0x1e   : > { %s1299_s16 = scalar_lea.vmem (!%p304_p8), [#allocation3], %s1102_s11 }
  0x22   : > { %s1379_s10 = smov (!%p365_p9, %s364_s10), 143  ;;  %401 = sbr.rel (%p976_p10) target bundleno = 41 (0x29), region = 70 }
  0x23   : > { %s975_s12 = sshll.u32 %s1379_s10, 2  ;;  %v1216_v8 = vmov (!%p976_p10), 0.0  }
  0x24   : > { %s1297_s15 = scalar_lea.vmem %s1367_s1, %s975_s12  ;;  %402 = vst [vmem:[#allocation2] sm:$0xff] (!%p976_p10), %v1216_v8  ;;  %403 = vst [vmem:[#allocation2 + $0x8] sm:$0xff] (!%p976_p10), %v1216_v8 }
  0x25   : > { %404 = vst [vmem:[#allocation2 + $0x10] sm:$0xff] (!%p976_p10), %v1216_v8  ;;  %405 = vst [vmem:[#allocation2 + $0x18] sm:$0xff] (!%p976_p10), %v1216_v8 }
  0x29 PF: > { %v1144_v9 = vld [vmem:[%s1297_s15 + $0x40] sm:$0xff]   ;;  %v1147_v12 = vld [vmem:[%s1297_s15 + $0x48] sm:$0xff]   ;;  %v1150_v15 = vld [vmem:[%s1297_s15 + $0x50] sm:$0xff]   ;;  %p1007_p11 = scmp.ne.s32.totalorder %s1206_s20, 2 }
  0x2a   : > { %v1145_v10 = vld [vmem:[%s1297_s15] sm:$0xff]   ;;  %1043 = vmatprep.subr.bf16.mxu0 %v1144_v9  ;;  %v1148_v13 = vld [vmem:[%s1297_s15 + $0x8] sm:$0xff]   ;;  %v1151_v16 = vld [vmem:[%s1297_s15 + $0x10] sm:$0xff]  }
  0x2b   : > { %v1146_v11 = vld [vmem:[%s1297_s15 + $0x80] sm:$0xff]   ;;  %1044 = vmatpush3.bf16.msra.mxu0 %v1145_v10  ;;  %v1149_v14 = vld [vmem:[%s1297_s15 + $0x88] sm:$0xff]   ;;  %v1152_v17 = vld [vmem:[%s1297_s15 + $0x90] sm:$0xff]  }
  0x2c   : > { %1081 = vmatprep.subr.bf16.mxu1 %v1146_v11  ;;  %1045 = vmatprep.subr.bf16.mxu0 %v1147_v12  ;;  %v1153_v18 = vld [vmem:[%s1297_s15 + $0x58] sm:$0xff]   ;;  %v1156_v21 = vld [vmem:[%s1297_s15 + $0x60] sm:$0xff]   ;;  %v1159_v24 = vld [vmem:[%s1297_s15 + $0x68] sm:$0xff]  }
  0x2d   : > { %1082 = vmatpush3.bf16.msra.mxu1 %v1146_v11  ;;  %v1154_v19 = vld [vmem:[%s1297_s15 + $0x18] sm:$0xff]   ;;  %v1158_v22 = vld [vmem:[%s1297_s15 + $0xa0] sm:$0xff]   ;;  %v1161_v25 = vld [vmem:[%s1297_s15 + $0xa8] sm:$0xff]  }
  0x2e   : > { %1083 = vmatprep.subr.bf16.mxu1 %v1149_v14  ;;  %v1155_v20 = vld [vmem:[%s1297_s15 + $0x98] sm:$0xff]   ;;  %v1157_v23 = vld [vmem:[%s1297_s15 + $0x20] sm:$0xff]   ;;  %v1160_v26 = vld [vmem:[%s1297_s15 + $0x28] sm:$0xff]  }
  0x2f   : > { %1046 = vmatpush3.bf16.msra.mxu0 %v1148_v13  ;;  %v1162_v27 = vld [vmem:[%s1297_s15 + $0x70] sm:$0xff]   ;;  %v1165_v30 = vld [vmem:[%s1297_s15 + $0x78] sm:$0xff]   ;;  %v406_v45 = vld [vmem:[#allocation2] sm:$0xff] }
  0x30   : > { %1047 = vmatprep.subr.bf16.mxu0 %v1150_v15  ;;  %v1163_v28 = vld [vmem:[%s1297_s15 + $0x30] sm:$0xff]   ;;  %v1167_v31 = vld [vmem:[%s1297_s15 + $0xb8] sm:$0xff]   ;;  %v407_v50 = vld [vmem:[#allocation2 + $0x8] sm:$0xff] }
  0x31   : > { %1084 = vmatpush3.bf16.msra.mxu1 %v1149_v14  ;;  %v1164_v29 = vld [vmem:[%s1297_s15 + $0xb0] sm:$0xff]   ;;  %v1166_v34 = vld [vmem:[%s1297_s15 + $0x38] sm:$0xff]   ;;  %v1008_v5 = vld [vmem:[%s1368_s2] ss:$0 sm:$0xff] (!%p1007_p11) }
  0x32   : > { %1085 = vmatprep.subr.bf16.mxu1 %v1152_v17  ;;  %v1170_v32 = vld [vmem:[%s1299_s16 + $0x4] ss:$12 sps:$4 sm:$0xff]   ;;  %v1171_v33 = vld [vmem:[%s1299_s16 + $0x8] ss:$12 sps:$4 sm:$0xff]   ;;  %v1168_v35 = vld [vmem:[%s1299_s16] ss:$12 sps:$4 sm:$0xff]  }
  0x33   : > { %1048 = vmatpush3.bf16.msra.mxu0 %v1151_v16  ;;  %674 = vmatprep.mubr.bf16.mxu0 %v1170_v32  ;;  %v1173_v36 = vld [vmem:[%s1299_s16 + $0x1c] ss:$12 sps:$4 sm:$0xff]   ;;  %v1172_v37 = vld [vmem:[%s1299_s16 + $0x20] ss:$12 sps:$4 sm:$0xff]   ;;  %v1175_v38 = vld [vmem:[%s1299_s16 + $0x18] ss:$12 sps:$4 sm:$0xff]  }
  0x34   : > { %1049 = vmatprep.subr.bf16.mxu0 %v1153_v18  ;;  %1097 = vmatprep.mubr.bf16.mxu1 %v1171_v33  ;;  %v408_v59 = vld [vmem:[#allocation2 + $0x10] sm:$0xff]  ;;  %v409_v63 = vld [vmem:[#allocation2 + $0x18] sm:$0xff]  ;;  %v1009_v8 = vld [vmem:[%s1369_s3] ss:$0 sm:$0xff] (!%p1007_p11) }
  0x35   : > { %1086 = vmatpush3.bf16.msra.mxu1 %v1152_v17  ;;  %v1024_v9 = vld [vmem:[%s1370_s4] sm:$0xff] (!%p1007_p11)   ;;  %v1041_v15 = vld [vmem:[%s1370_s4 + $0x8] sm:$0xff] (!%p1007_p11)  }
  0x36   : > { %1087 = vmatprep.subr.bf16.mxu1 %v1155_v20  ;;  %v1025_v11 = vunpack.c.l.bf16 (!%p1007_p11), %v1024_v9  ;;  %v1026_v12 = vunpack.c.h.bf16 (!%p1007_p11), %v1024_v9 }
  0x37   : > { %1050 = vmatpush3.bf16.msra.mxu0 %v1154_v19  ;;  %v1029_v19 = vunpack.c.l.bf16 (!%p1007_p11), %v1041_v15 }
  0x38   : > { %1051 = vmatprep.subr.bf16.mxu0 %v1156_v21  ;;  %v1030_v21 = vunpack.c.h.bf16 (!%p1007_p11), %v1041_v15 }
  0x39   : > { %1088 = vmatpush3.bf16.msra.mxu1 %v1155_v20 }
  0x3a   : > { %1089 = vmatprep.subr.bf16.mxu1 %v1158_v22 }
  0x3b   : > { %1052 = vmatpush3.bf16.msra.mxu0 %v1157_v23 }
  0x3c   : > { %1053 = vmatprep.subr.bf16.mxu0 %v1159_v24 }
  0x3d   : > { %1090 = vmatpush3.bf16.msra.mxu1 %v1158_v22 }
  0x3e   : > { %1091 = vmatprep.subr.bf16.mxu1 %v1161_v25 }
  0x3f   : > { %1054 = vmatpush3.bf16.msra.mxu0 %v1160_v26 }
  0x40   : > { %1055 = vmatprep.subr.bf16.mxu0 %v1162_v27 }
  0x41   : > { %1092 = vmatpush3.bf16.msra.mxu1 %v1161_v25 }
  0x42   : > { %1093 = vmatprep.subr.bf16.mxu1 %v1164_v29 }
  0x43   : > { %1056 = vmatpush3.bf16.msra.mxu0 %v1163_v28 }
  0x44   : > { %1057 = vmatprep.subr.bf16.mxu0 %v1165_v30 }
  0x45   : > { %1094 = vmatpush3.bf16.msra.mxu1 %v1164_v29 }
  0x46   : > { %1095 = vmatprep.subr.bf16.mxu1 %v1167_v31 }
  0x47   : > { %1058 = vmatpush3.bf16.msra.mxu0 %v1166_v34 }
  0x49   : > { %1096 = vmatpush3.bf16.msra.mxu1 %v1167_v31 }
  0x4a   : > { %675 = vmatmul.mubr.bf16.vlgmr.msra.gmra.mrb[0].mxu0 %v1168_v35 }
  0x4b   : > { %682 = vmatprep.mubr.bf16.mxu0 %v1173_v36 }
  0x4c   : > { %1098 = vmatmul.mubr.bf16.vlgmr.msra.gmra.mrb[0].mxu1 %v1172_v37 }
  0x52   : > { %683 = vmatmul.mubr.bf16.gmra.mrb[4].mxu0 %v1175_v38 }
 0x11d   : > { %v1059_v39 = vpop.f32.mrb[0].mxu0 }
 0x11e   : > { %v1060_v40 = vpop.f32.mrb[1].mxu0 }
 0x11f   : > { %v1061_v41 = vadd.f32 %v1060_v40, %v1059_v39  ;;  %v1062_v42 = vpop.f32.mrb[2].mxu0  ;;  %v1099_v43 = vpop.f32.mrb[0].mxu1 }
 0x120   : > { %v1063_v44 = vpop.f32.mrb[3].mxu0  ;;  %v725_v46 = vpop.f32.mrb[1].mxu1 }
 0x121   : > { %v1064_v47 = vadd.f32 %v1063_v44, %v1062_v42  ;;  %v726_v48 = vadd.f32 %v1061_v41, %v725_v46  ;;  %v1100_v49 = vpop.f32.mrb[2].mxu1 }
 0x122   : > { %v728_v51 = vpop.f32.mrb[3].mxu1 }
 0x123   : > { %v740_v52 = vadd.f32 %v726_v48, %v406_v45  ;;  %v729_v53 = vadd.f32 %v1064_v47, %v728_v51 }
 0x125   : > { %744 = vst [vmem:[#allocation2] sm:$0xff] %v740_v52  ;;  %v741_v54 = vadd.f32 %v729_v53, %v407_v50  ;;  %v1065_v55 = vpop.f32.mrb[4].mxu0 }
 0x126   : > { %v1066_v56 = vpop.f32.mrb[5].mxu0 }
 0x127   : > { %745 = vst [vmem:[#allocation2 + $0x8] sm:$0xff] %v741_v54  ;;  %v1067_v57 = vadd.f32 %v1066_v56, %v1065_v55  ;;  %v1068_v58 = vpop.f32.mrb[6].mxu0 }
 0x128   : > { %v1069_v60 = vpop.f32.mrb[7].mxu0 }
 0x129   : > { %v734_v61 = vadd.f32 %v1099_v43, %v1067_v57  ;;  %v1070_v62 = vadd.f32 %v1069_v60, %v1068_v58  ;;  %751 = sbr.rel (%p1007_p11) target bundleno = 322 (0x142), region = 74 }
 0x12b   : > { %v742_v0 = vadd.f32 %v734_v61, %v408_v59  ;;  %v737_v1 = vadd.f32 %v1100_v49, %v1070_v62 }
 0x12c   : > { %v752_v3 = vld [vmem:[#allocation2] sm:$0xff] (!%p1007_p11) }
 0x12d   : > { %746 = vst [vmem:[#allocation2 + $0x10] sm:$0xff] %v742_v0  ;;  %v743_v2 = vadd.f32 %v737_v1, %v409_v63  ;;  %v763_v6 = vmul.f32 (!%p1007_p11), %v1008_v5, %v752_v3 }
 0x12e   : > { %v753_v4 = vld [vmem:[#allocation2 + $0x8] sm:$0xff] (!%p1007_p11) }
 0x12f   : > { %747 = vst [vmem:[#allocation2 + $0x18] sm:$0xff] %v743_v2  ;;  %v764_v7 = vmul.f32 (!%p1007_p11), %v1008_v5, %v753_v4  ;;  %v774_v16 = vadd.f32 (!%p1007_p11), %v1009_v8, %v763_v6 }
 0x131   : > { %v775_v17 = vadd.f32 %v1009_v8, %v764_v7  ;;  %v786_v22 = vadd.f32 %v1025_v11, %v774_v16 }
 0x133   : > { %v787_v23 = vadd.f32 %v1026_v12, %v775_v17  ;;  %v790_v26 = vmax.f32 %v786_v22, 0.0 }
 0x134   : > { %v754_v10 = vld [vmem:[#allocation2 + $0x10] sm:$0xff] }
 0x135   : > { %v765_v14 = vmul.f32 %v1008_v5, %v754_v10  ;;  %v791_v27 = vmax.f32 %v787_v23, 0.0 }
 0x136   : > { %v755_v13 = vld [vmem:[#allocation2 + $0x18] sm:$0xff] }
 0x137   : > { %v766_v18 = vmul.f32 %v1008_v5, %v755_v13  ;;  %v776_v20 = vadd.f32 %v1009_v8, %v765_v14  ;;  %v1034_v30 = vpack.c.bf16 %v791_v27, %v790_v26 }
 0x139   : > { %v777_v24 = vadd.f32 %v1009_v8, %v766_v18  ;;  %v788_v25 = vadd.f32 %v1029_v19, %v776_v20  ;;  %1035 = vst [vmem:[%s1371_s5] sm:$0xff] %v1034_v30  }
 0x13b   : > { %v789_v28 = vadd.f32 %v1030_v21, %v777_v24  ;;  %v792_v29 = vmax.f32 %v788_v25, 0.0 }
 0x13d   : > { %v793_v31 = vmax.f32 %v789_v28, 0.0 }
 0x13f   : > { %v1039_v32 = vpack.c.bf16 %v793_v31, %v792_v29 }
 0x141   : > { %1042 = vst [vmem:[%s1371_s5 + $0x8] sm:$0xff] %v1039_v32  }
 0x142 PF: > { %s15_s22 = sadd.s32 1, %s1214_s22   ;;  %s1372_s18 = smov %s1202_s19 }
 0x143   : > { %p12_p12 = scmp.ge.s32.totalorder %s15_s22, 5   ;;  %s1373_s19 = smov %s1282_s26 }
 0x144   : > { %s1374_s20 = smov %s1210_s21  ;;  %s1375_s21 = smov %s1377_s23 }
 0x145   :  { %14 = sbr.rel (!%p12_p12) target bundleno = 3 (0x3), region = 127 }

// kernel: resnet18_forward.34
= control target key start
LH: loop header
LB: loop body
LE: loop exit
PB: predicated region body
PF: predicated region fallthrough
CT: control target
= control target key end

     0   :  { %s1114_s15 = smov 0   ;;  %s1116_s16 = smov 0   ;;  %s1216_s0 = inlined_call_operand.vmem [shape: bf16[8,1152], index: 0, kind: input, shape index: {}]   ;;  %s1217_s1 = inlined_call_operand.vmem [shape: bf16[1152,256], index: 1, kind: input, shape index: {}]   ;;  %s1218_s2 = inlined_call_operand.vmem [shape: f32[1,256], index: 2, kind: input, shape index: {}]   ;;  %s1219_s3 = inlined_call_operand.vmem [shape: f32[1,256], index: 3, kind: input, shape index: {}]   ;;  %s1220_s4 = inlined_call_operand.vmem [shape: bf16[8,256], index: 4, kind: output, shape index: {}]  }
   0x1   :  { %s1118_s17 = smov 0  }
   0x2 LB: > { %s26_s18 = sadd.s32 1, %s1081_s16  ;;  %p898_p0 = scmp.ge.s32.totalorder %s1085_s17, 1  ;;  %s1085_s17 = sphi %s1118_s17, %s14_s17   ;;  %s1081_s16 = sphi %s1116_s16, %s1222_s16   ;;  %s1077_s15 = sphi %s1114_s15, %s1221_s15  }
   0x3   : > { %p27_p1 = scmp.ge.s32.totalorder %s26_s18, 3  ;;  %p229_p2 = scmp.lt.s32.totalorder %s1085_s17, 4 }
   0x5   : > { %s1224_s18 = smov (%p27_p1, %s26_s18), 0  ;;  %p230_p3 = pnand %p898_p0, %p229_p2 }
   0x6   : > { %s281_s19 = smul.u32 (!%p230_p3), 3, %s1077_s15  ;;  %p902_p6 = scmp.ne.s32.totalorder (!%p230_p3), %s1077_s15, 0 }
   0x7   : > { %233 = sbr.rel (%p230_p3) target bundleno = 323 (0x143), region = 36 }
   0x8   : > { %s291_s20 = smul.u32 (!%p230_p3), 48, %s1077_s15  ;;  %p284_p4 = scmp.lt.s32.totalorder (!%p230_p3), %s281_s19, 8 }
   0xa   : > { %p293_p5 = scmp.lt.s32.totalorder (!%p230_p3), %s291_s20, 143 }
   0xe   : > { %s1226_s19 = smov (!%p284_p4, %s281_s19), 8  ;;  %s1228_s20 = smov (!%p293_p5, %s291_s20), 143 }
   0xf   : > { %s899_s21 = sshll.u32 %s1226_s19, 2  ;;  %s960_s25 = sshll.u32 %s1228_s20, 3  ;;  %v1087_v0 = vmov (!%p902_p6), 0.0  }
  0x10   : > { %s1139_s24 = scalar_lea.vmem %s1216_s0, %s899_s21  ;;  %s1144_s28 = scalar_lea.vmem %s1217_s1, %s960_s25  ;;  %328 = vst [vmem:[#allocation2] sm:$0xff] (!%p902_p6), %v1087_v0  ;;  %329 = vst [vmem:[#allocation2 + $0x8] sm:$0xff] (!%p902_p6), %v1087_v0 }
  0x11   : > { %327 = sbr.rel (%p902_p6) target bundleno = 24 (0x18), region = 40 }
  0x18 PF: > { %v988_v1 = vld [vmem:[%s1144_s28 + $0x4] ss:$8 sps:$4 sm:$0xff]   ;;  %v990_v2 = vld [vmem:[%s1144_s28] ss:$8 sps:$4 sm:$0xff]   ;;  %v1088_v3 = vmov 0   ;;  %p954_p7 = scmp.ne.s32.totalorder %s1077_s15, 2 }
  0x19   : > { %706 = vmatprep.mubr.bf16.mxu1 %v1088_v3  ;;  %633 = vmatprep.subr.bf16.mxu0 %v988_v1  ;;  %v991_v4 = vld [vmem:[%s1144_s28 + $0x14] ss:$8 sps:$4 sm:$0xff]   ;;  %v993_v5 = vld [vmem:[%s1144_s28 + $0x10] ss:$8 sps:$4 sm:$0xff]   ;;  %v994_v6 = vld [vmem:[%s1144_s28 + $0x24] ss:$8 sps:$4 sm:$0xff]  }
  0x1a   : > { %634 = vmatpush1.bf16.msra.mxu0 %v990_v2  ;;  %v996_v7 = vld [vmem:[%s1144_s28 + $0x20] ss:$8 sps:$4 sm:$0xff]   ;;  %v997_v8 = vld [vmem:[%s1144_s28 + $0x34] ss:$8 sps:$4 sm:$0xff]   ;;  %v999_v9 = vld [vmem:[%s1144_s28 + $0x30] ss:$8 sps:$4 sm:$0xff]  }
  0x1b   : > { %635 = vmatprep.subr.bf16.mxu0 %v991_v4  ;;  %v1012_v10 = vld [vmem:[%s1144_s28 + $0x104] ss:$8 sps:$4 sm:$0xff]   ;;  %v1014_v11 = vld [vmem:[%s1144_s28 + $0x100] ss:$8 sps:$4 sm:$0xff]   ;;  %v1018_v13 = vld [vmem:[%s1144_s28 + $0x114] ss:$8 sps:$4 sm:$0xff]   ;;  %v727_v4 = vlaneseq (!%p954_p7) }
  0x1c   : > { %v1000_v12 = vld [vmem:[%s1144_s28 + $0x44] ss:$8 sps:$4 sm:$0xff]   ;;  %674 = vmatprep.subr.bf16.mxu1 %v1012_v10  ;;  %v1020_v14 = vld [vmem:[%s1144_s28 + $0x110] ss:$8 sps:$4 sm:$0xff]   ;;  %v1002_v15 = vld [vmem:[%s1144_s28 + $0x40] ss:$8 sps:$4 sm:$0xff]  }
  0x1d   : > { %675 = vmatpush1.bf16.msra.mxu1 %v1014_v11  ;;  %v1003_v16 = vld [vmem:[%s1144_s28 + $0x54] ss:$8 sps:$4 sm:$0xff]   ;;  %v1024_v17 = vld [vmem:[%s1144_s28 + $0x124] ss:$8 sps:$4 sm:$0xff]   ;;  %v1026_v18 = vld [vmem:[%s1144_s28 + $0x120] ss:$8 sps:$4 sm:$0xff]  }
  0x1e   : > { %636 = vmatpush1.bf16.msra.mxu0 %v993_v5  ;;  %676 = vmatprep.subr.bf16.mxu1 %v1018_v13  ;;  %v1005_v19 = vld [vmem:[%s1144_s28 + $0x50] ss:$8 sps:$4 sm:$0xff]   ;;  %v1030_v20 = vld [vmem:[%s1144_s28 + $0x134] ss:$8 sps:$4 sm:$0xff]   ;;  %v1006_v21 = vld [vmem:[%s1144_s28 + $0x64] ss:$8 sps:$4 sm:$0xff]  }
  0x1f   : > { %637 = vmatprep.subr.bf16.mxu0 %v994_v6  ;;  %v1032_v22 = vld [vmem:[%s1144_s28 + $0x130] ss:$8 sps:$4 sm:$0xff]   ;;  %v1008_v23 = vld [vmem:[%s1144_s28 + $0x60] ss:$8 sps:$4 sm:$0xff]   ;;  %v1036_v24 = vld [vmem:[%s1144_s28 + $0x144] ss:$8 sps:$4 sm:$0xff]  }
  0x20   : > { %v1009_v25 = vld [vmem:[%s1144_s28 + $0x74] ss:$8 sps:$4 sm:$0xff]   ;;  %v1038_v26 = vld [vmem:[%s1144_s28 + $0x140] ss:$8 sps:$4 sm:$0xff]   ;;  %v1011_v27 = vld [vmem:[%s1144_s28 + $0x70] ss:$8 sps:$4 sm:$0xff]  }
  0x21   : > { %677 = vmatpush1.bf16.msra.mxu1 %v1020_v14  ;;  %v1042_v28 = vld [vmem:[%s1144_s28 + $0x154] ss:$8 sps:$4 sm:$0xff]   ;;  %v1015_v29 = vld [vmem:[%s1144_s28 + $0x84] ss:$8 sps:$4 sm:$0xff]   ;;  %v1044_v30 = vld [vmem:[%s1144_s28 + $0x150] ss:$8 sps:$4 sm:$0xff]  }
  0x22   : > { %638 = vmatpush1.bf16.msra.mxu0 %v996_v7  ;;  %678 = vmatprep.subr.bf16.mxu1 %v1024_v17  ;;  %v1017_v31 = vld [vmem:[%s1144_s28 + $0x80] ss:$8 sps:$4 sm:$0xff]   ;;  %v1048_v32 = vld [vmem:[%s1144_s28 + $0x164] ss:$8 sps:$4 sm:$0xff]   ;;  %v1021_v33 = vld [vmem:[%s1144_s28 + $0x94] ss:$8 sps:$4 sm:$0xff]  }
  0x23   : > { %639 = vmatprep.subr.bf16.mxu0 %v997_v8  ;;  %v332_v34 = vld [vmem:[%s1139_s24] sm:$0xff]  ;;  %v1023_v37 = vld [vmem:[%s1144_s28 + $0x90] ss:$8 sps:$4 sm:$0xff]   ;;  %v1054_v38 = vld [vmem:[%s1144_s28 + $0x174] ss:$8 sps:$4 sm:$0xff]   ;;  %v728_v5 = vshrl.u32 (!%p954_p7), %v727_v4, 7 }
  0x24   : > { %v904_v35 = vcombine.high %v332_v34, %v332_v34  ;;  %v1050_v36 = vld [vmem:[%s1144_s28 + $0x160] ss:$8 sps:$4 sm:$0xff]   ;;  %v1027_v39 = vld [vmem:[%s1144_s28 + $0xa4] ss:$8 sps:$4 sm:$0xff]   ;;  %v1056_v40 = vld [vmem:[%s1144_s28 + $0x170] ss:$8 sps:$4 sm:$0xff]   ;;  %v903_v53 = vcombine.low %v332_v34, %v332_v34 }
  0x25   : > { %679 = vmatpush1.bf16.msra.mxu1 %v1026_v18  ;;  %v1029_v41 = vld [vmem:[%s1144_s28 + $0xa0] ss:$8 sps:$4 sm:$0xff]   ;;  %v1033_v42 = vld [vmem:[%s1144_s28 + $0xb4] ss:$8 sps:$4 sm:$0xff]   ;;  %v1035_v44 = vld [vmem:[%s1144_s28 + $0xb0] ss:$8 sps:$4 sm:$0xff]  }
  0x26   : > { %640 = vmatpush1.bf16.msra.mxu0 %v999_v9  ;;  %680 = vmatprep.subr.bf16.mxu1 %v1030_v20  ;;  %v1060_v43 = vld [vmem:[%s1139_s24 + $0x8] ss:$0 sps:$4 sm:$0xff]   ;;  %v1039_v45 = vld [vmem:[%s1144_s28 + $0xc4] ss:$8 sps:$4 sm:$0xff]   ;;  %v1045_v47 = vld [vmem:[%s1144_s28 + $0xd4] ss:$8 sps:$4 sm:$0xff]  }
  0x27   : > { %641 = vmatprep.subr.bf16.mxu0 %v1000_v12  ;;  %665 = vmatprep.mubr.bf16.mxu0 %v904_v35  ;;  %v1041_v46 = vld [vmem:[%s1144_s28 + $0xc0] ss:$8 sps:$4 sm:$0xff]   ;;  %v1047_v48 = vld [vmem:[%s1144_s28 + $0xd0] ss:$8 sps:$4 sm:$0xff]   ;;  %v1051_v49 = vld [vmem:[%s1144_s28 + $0xe4] ss:$8 sps:$4 sm:$0xff]  }
  0x28   : > { %v1053_v50 = vld [vmem:[%s1144_s28 + $0xe0] ss:$8 sps:$4 sm:$0xff]   ;;  %v1057_v51 = vld [vmem:[%s1144_s28 + $0xf4] ss:$8 sps:$4 sm:$0xff]   ;;  %v1059_v52 = vld [vmem:[%s1144_s28 + $0xf0] ss:$8 sps:$4 sm:$0xff]  }
  0x29   : > { %681 = vmatpush1.bf16.msra.mxu1 %v1032_v22  ;;  %v330_v58 = vld [vmem:[#allocation2] sm:$0xff]  ;;  %v331_v61 = vld [vmem:[#allocation2 + $0x8] sm:$0xff]  ;;  %v729_v8 = vsub.s32 (!%p954_p7), 0, %v728_v5  ;;  %v733_v9 = vsub.s32 (!%p954_p7), 1, %v728_v5 }
  0x2a   : > { %642 = vmatpush1.bf16.msra.mxu0 %v1002_v15  ;;  %682 = vmatprep.subr.bf16.mxu1 %v1036_v24  ;;  %v725_v6 = vld [vmem:[%s1218_s2] sm:$0x3] (!%p954_p7) }
  0x2b   : > { %643 = vmatprep.subr.bf16.mxu0 %v1003_v16  ;;  %v739_v7 = vld [vmem:[%s1219_s3] sm:$0x3] (!%p954_p7)  ;;  %v730_v12 = vrot.slane (!%p954_p7), %v725_v6, %v729_v8  ;;  %v734_v13 = vrot.slane (!%p954_p7), %v725_v6, %v733_v9 }
  0x2c   : > { %v744_v14 = vrot.slane (!%p954_p7), %v739_v7, %v729_v8  ;;  %v748_v15 = vrot.slane (!%p954_p7), %v739_v7, %v733_v9 }
  0x2d   : > { %683 = vmatpush1.bf16.msra.mxu1 %v1038_v26 }
  0x2e   : > { %644 = vmatpush1.bf16.msra.mxu0 %v1005_v19  ;;  %684 = vmatprep.subr.bf16.mxu1 %v1042_v28 }
  0x2f   : > { %645 = vmatprep.subr.bf16.mxu0 %v1006_v21 }
  0x31   : > { %685 = vmatpush1.bf16.msra.mxu1 %v1044_v30 }
  0x32   : > { %646 = vmatpush1.bf16.msra.mxu0 %v1008_v23  ;;  %686 = vmatprep.subr.bf16.mxu1 %v1048_v32 }
  0x33   : > { %647 = vmatprep.subr.bf16.mxu0 %v1009_v25 }
  0x35   : > { %687 = vmatpush1.bf16.msra.mxu1 %v1050_v36 }
  0x36   : > { %648 = vmatpush1.bf16.msra.mxu0 %v1011_v27  ;;  %688 = vmatprep.subr.bf16.mxu1 %v1054_v38 }
  0x37   : > { %649 = vmatprep.subr.bf16.mxu0 %v1015_v29 }
  0x39   : > { %689 = vmatpush1.bf16.msra.mxu1 %v1056_v40 }
  0x3a   : > { %650 = vmatpush1.bf16.msra.mxu0 %v1017_v31 }
  0x3b   : > { %651 = vmatprep.subr.bf16.mxu0 %v1021_v33 }
  0x3c   : > { %707 = vmatmul.mubr.bf16.vlgmr.msra.gmra.mrb[0].mxu1 %v1060_v43 }
  0x3e   : > { %652 = vmatpush1.bf16.msra.mxu0 %v1023_v37 }
  0x3f   : > { %653 = vmatprep.subr.bf16.mxu0 %v1027_v39 }
  0x42   : > { %654 = vmatpush1.bf16.msra.mxu0 %v1029_v41 }
  0x43   : > { %655 = vmatprep.subr.bf16.mxu0 %v1033_v42 }
  0x46   : > { %656 = vmatpush1.bf16.msra.mxu0 %v1035_v44 }
  0x47   : > { %657 = vmatprep.subr.bf16.mxu0 %v1039_v45 }
  0x4a   : > { %658 = vmatpush1.bf16.msra.mxu0 %v1041_v46 }
  0x4b   : > { %659 = vmatprep.subr.bf16.mxu0 %v1045_v47 }
  0x4e   : > { %660 = vmatpush1.bf16.msra.mxu0 %v1047_v48 }
  0x4f   : > { %661 = vmatprep.subr.bf16.mxu0 %v1051_v49 }
  0x52   : > { %662 = vmatpush1.bf16.msra.mxu0 %v1053_v50 }
  0x53   : > { %663 = vmatprep.subr.bf16.mxu0 %v1057_v51 }
  0x56   : > { %664 = vmatpush1.bf16.msra.mxu0 %v1059_v52 }
  0x59   : > { %666 = vmatmul.mubr.bf16.vlgmr.msra.gmra.mrb[0].mxu0 %v903_v53 }
 0x10f   : > { %v708_v54 = vpop.f32.mrb[0].mxu1 }
 0x110   : > { %v710_v55 = vpop.f32.mrb[1].mxu1 }
 0x111   : > { %v712_v56 = vpop.f32.mrb[2].mxu1 }
 0x112   : > { %v713_v57 = vpop.f32.mrb[3].mxu1 }
 0x12c   : > { %v667_v59 = vpop.f32.mrb[0].mxu0  ;;  %722 = sbr.rel (%p954_p7) target bundleno = 323 (0x143), region = 44 }
 0x12d   : > { %v709_v60 = vadd.f32 %v708_v54, %v667_v59  ;;  %v669_v62 = vpop.f32.mrb[1].mxu0 }
 0x12e   : > { %v711_v63 = vadd.f32 %v710_v55, %v669_v62  ;;  %v671_v0 = vpop.f32.mrb[2].mxu0 }
 0x12f   : > { %v715_v1 = vadd.f32 %v709_v60, %v330_v58  ;;  %v672_v2 = vpop.f32.mrb[3].mxu0 }
 0x130   : > { %v716_v3 = vadd.f32 %v711_v63, %v331_v61 }
 0x131   : > { %717 = vst [vmem:[#allocation2] sm:$0xff] %v715_v1 }
 0x132   : > { %718 = vst [vmem:[#allocation2 + $0x8] sm:$0xff] %v716_v3 }
 0x138   : > { %v723_v10 = vld [vmem:[#allocation2] sm:$0xff] }
 0x139   : > { %v724_v11 = vld [vmem:[#allocation2 + $0x8] sm:$0xff]  ;;  %v737_v16 = vmul.f32 %v730_v12, %v723_v10 }
 0x13a   : > { %v738_v17 = vmul.f32 %v734_v13, %v724_v11 }
 0x13b   : > { %v751_v18 = vadd.f32 %v744_v14, %v737_v16 }
 0x13c   : > { %v752_v19 = vadd.f32 %v748_v15, %v738_v17 }
 0x13d   : > { %v753_v20 = vmax.f32 %v751_v18, 0.0 }
 0x13e   : > { %v754_v21 = vmax.f32 %v752_v19, 0.0 }
 0x140   : > { %v961_v22 = vpack.c.bf16 %v754_v21, %v753_v20 }
 0x142   : > { %763 = vst [vmem:[%s1220_s4] sm:$0xff] %v961_v22 }
 0x143 PF: > { %s14_s17 = sadd.s32 1, %s1085_s17   ;;  %s1221_s15 = smov %s1081_s16 }
 0x144   : > { %p11_p8 = scmp.ge.s32.totalorder %s14_s17, 5   ;;  %s1222_s16 = smov %s1224_s18 }
 0x146   :  { %13 = sbr.rel (!%p11_p8) target bundleno = 2 (0x2), region = 83 }

// kernel: resnet18_forward.35
= control target key start
LH: loop header
LB: loop body
LE: loop exit
PB: predicated region body
PF: predicated region fallthrough
CT: control target
= control target key end

     0   :  { %v257_v1 = vmov 0   ;;  %v175_v18 = vlaneseq  ;;  %s343_s1 = inlined_call_operand.vmem [shape: bf16[128,256], index: 1, kind: input, shape index: {}]   ;;  %s344_s0 = inlined_call_operand.vmem [shape: bf16[8,128], index: 0, kind: input, shape index: {}]   ;;  %s345_s2 = inlined_call_operand.vmem [shape: f32[1,256], index: 2, kind: input, shape index: {}]   ;;  %s346_s3 = inlined_call_operand.vmem [shape: f32[1,256], index: 3, kind: input, shape index: {}]   ;;  %s347_s4 = inlined_call_operand.vmem [shape: bf16[8,256], index: 4, kind: output, shape index: {}]  }
   0x1   :  { %v233_v0 = vld [vmem:[%s343_s1 + $0x4] ss:$8 sps:$4 sm:$0xff]   ;;  %155 = vmatprep.mubr.bf16.mxu0 %v257_v1  ;;  %v235_v2 = vld [vmem:[%s343_s1] ss:$8 sps:$4 sm:$0xff]   ;;  %v236_v3 = vld [vmem:[%s343_s1 + $0x14] ss:$8 sps:$4 sm:$0xff]  }
   0x2   :  { %123 = vmatprep.subr.bf16.mxu0 %v233_v0  ;;  %v238_v4 = vld [vmem:[%s343_s1 + $0x10] ss:$8 sps:$4 sm:$0xff]   ;;  %v239_v5 = vld [vmem:[%s343_s1 + $0x24] ss:$8 sps:$4 sm:$0xff]   ;;  %v241_v6 = vld [vmem:[%s343_s1 + $0x20] ss:$8 sps:$4 sm:$0xff]  }
   0x3   :  { %124 = vmatpush1.bf16.msra.mxu0 %v235_v2  ;;  %v242_v7 = vld [vmem:[%s343_s1 + $0x34] ss:$8 sps:$4 sm:$0xff]   ;;  %v244_v8 = vld [vmem:[%s343_s1 + $0x30] ss:$8 sps:$4 sm:$0xff]   ;;  %v245_v9 = vld [vmem:[%s343_s1 + $0x44] ss:$8 sps:$4 sm:$0xff]  }
   0x4   :  { %125 = vmatprep.subr.bf16.mxu0 %v236_v3  ;;  %v247_v10 = vld [vmem:[%s343_s1 + $0x40] ss:$8 sps:$4 sm:$0xff]   ;;  %v248_v11 = vld [vmem:[%s343_s1 + $0x54] ss:$8 sps:$4 sm:$0xff]   ;;  %v250_v12 = vld [vmem:[%s343_s1 + $0x50] ss:$8 sps:$4 sm:$0xff]  }
   0x5   :  { %v251_v13 = vld [vmem:[%s343_s1 + $0x64] ss:$8 sps:$4 sm:$0xff]   ;;  %v253_v14 = vld [vmem:[%s343_s1 + $0x60] ss:$8 sps:$4 sm:$0xff]   ;;  %v254_v15 = vld [vmem:[%s343_s1 + $0x74] ss:$8 sps:$4 sm:$0xff]  }
   0x6   :  { %v256_v16 = vld [vmem:[%s343_s1 + $0x70] ss:$8 sps:$4 sm:$0xff]   ;;  %v26_v17 = vld [vmem:[%s344_s0] sm:$0xf]  ;;  %v176_v19 = vshrl.u32 %v175_v18, 7 }
   0x7   :  { %126 = vmatpush1.bf16.msra.mxu0 %v238_v4  ;;  %v173_v21 = vld [vmem:[%s345_s2] sm:$0x3] }
   0x8   :  { %127 = vmatprep.subr.bf16.mxu0 %v239_v5  ;;  %v177_v20 = vsub.s32 0, %v176_v19  ;;  %v181_v22 = vsub.s32 1, %v176_v19  ;;  %v187_v23 = vld [vmem:[%s346_s3] sm:$0x3] }
   0xa   :  { %v178_v24 = vrot.slane %v173_v21, %v177_v20  ;;  %v182_v25 = vrot.slane %v173_v21, %v181_v22  ;;  %v192_v26 = vrot.slane %v187_v23, %v177_v20  ;;  %v196_v28 = vrot.slane %v187_v23, %v181_v22 }
   0xb   :  { %128 = vmatpush1.bf16.msra.mxu0 %v241_v6 }
   0xc   :  { %129 = vmatprep.subr.bf16.mxu0 %v242_v7 }
   0xf   :  { %130 = vmatpush1.bf16.msra.mxu0 %v244_v8 }
  0x10   :  { %131 = vmatprep.subr.bf16.mxu0 %v245_v9 }
  0x13   :  { %132 = vmatpush1.bf16.msra.mxu0 %v247_v10 }
  0x14   :  { %133 = vmatprep.subr.bf16.mxu0 %v248_v11 }
  0x17   :  { %134 = vmatpush1.bf16.msra.mxu0 %v250_v12 }
  0x18   :  { %135 = vmatprep.subr.bf16.mxu0 %v251_v13 }
  0x1b   :  { %136 = vmatpush1.bf16.msra.mxu0 %v253_v14 }
  0x1c   :  { %137 = vmatprep.subr.bf16.mxu0 %v254_v15 }
  0x1f   :  { %138 = vmatpush1.bf16.msra.mxu0 %v256_v16 }
  0x22   :  { %156 = vmatmul.mubr.bf16.vlgmr.msra.gmra.mrb[0].mxu0 %v26_v17 }
  0xf5   :  { %v157_v27 = vpop.f32.mrb[0].mxu0 }
  0xf6   :  { %v185_v29 = vmul.f32 %v178_v24, %v157_v27  ;;  %v159_v30 = vpop.f32.mrb[1].mxu0 }
  0xf7   :  { %v186_v31 = vmul.f32 %v182_v25, %v159_v30  ;;  %v161_v32 = vpop.f32.mrb[2].mxu0 }
  0xf8   :  { %v199_v33 = vadd.f32 %v192_v26, %v185_v29  ;;  %v162_v34 = vpop.f32.mrb[3].mxu0 }
  0xf9   :  { %v200_v35 = vadd.f32 %v196_v28, %v186_v31 }
  0xfb   :  { %v231_v36 = vpack.c.bf16 %v200_v35, %v199_v33 }
  0xfd   :  { %209 = vst [vmem:[%s347_s4] sm:$0xff] %v231_v36 }

// kernel: resnet18_forward.37
= control target key start
LH: loop header
LB: loop body
LE: loop exit
PB: predicated region body
PF: predicated region fallthrough
CT: control target
= control target key end

     0   :  { %s1114_s15 = smov 0   ;;  %s1116_s16 = smov 0   ;;  %s1216_s0 = inlined_call_operand.vmem [shape: bf16[8,2304], index: 0, kind: input, shape index: {}]   ;;  %s1217_s1 = inlined_call_operand.vmem [shape: bf16[2304,256], index: 1, kind: input, shape index: {}]   ;;  %s1218_s2 = inlined_call_operand.vmem [shape: f32[1,256], index: 2, kind: input, shape index: {}]   ;;  %s1219_s3 = inlined_call_operand.vmem [shape: f32[1,256], index: 3, kind: input, shape index: {}]   ;;  %s1220_s4 = inlined_call_operand.vmem [shape: bf16[8,256], index: 4, kind: output, shape index: {}]  }
   0x1   :  { %s1118_s17 = smov 0  }
   0x2 LB: > { %s26_s18 = sadd.s32 1, %s1081_s16  ;;  %p898_p0 = scmp.ge.s32.totalorder %s1085_s17, 1  ;;  %s1085_s17 = sphi %s1118_s17, %s14_s17   ;;  %s1081_s16 = sphi %s1116_s16, %s1222_s16   ;;  %s1077_s15 = sphi %s1114_s15, %s1221_s15  }
   0x3   : > { %p27_p1 = scmp.ge.s32.totalorder %s26_s18, 6  ;;  %p229_p2 = scmp.lt.s32.totalorder %s1085_s17, 7 }
   0x5   : > { %s1224_s18 = smov (%p27_p1, %s26_s18), 0  ;;  %p230_p3 = pnand %p898_p0, %p229_p2 }
   0x6   : > { %s281_s19 = smul.u32 (!%p230_p3), 3, %s1077_s15  ;;  %p902_p6 = scmp.ne.s32.totalorder (!%p230_p3), %s1077_s15, 0 }
   0x7   : > { %233 = sbr.rel (%p230_p3) target bundleno = 323 (0x143), region = 36 }
   0x8   : > { %s291_s20 = smul.u32 (!%p230_p3), 48, %s1077_s15  ;;  %p284_p4 = scmp.lt.s32.totalorder (!%p230_p3), %s281_s19, 17 }
   0xa   : > { %p293_p5 = scmp.lt.s32.totalorder (!%p230_p3), %s291_s20, 287 }
   0xe   : > { %s1226_s19 = smov (!%p284_p4, %s281_s19), 17  ;;  %s1228_s20 = smov (!%p293_p5, %s291_s20), 287 }
   0xf   : > { %s899_s21 = sshll.u32 %s1226_s19, 2  ;;  %s960_s25 = sshll.u32 %s1228_s20, 3  ;;  %v1087_v0 = vmov (!%p902_p6), 0.0  }
  0x10   : > { %s1139_s24 = scalar_lea.vmem %s1216_s0, %s899_s21  ;;  %s1144_s28 = scalar_lea.vmem %s1217_s1, %s960_s25  ;;  %328 = vst [vmem:[#allocation2] sm:$0xff] (!%p902_p6), %v1087_v0  ;;  %329 = vst [vmem:[#allocation2 + $0x8] sm:$0xff] (!%p902_p6), %v1087_v0 }
  0x11   : > { %327 = sbr.rel (%p902_p6) target bundleno = 24 (0x18), region = 40 }
  0x18 PF: > { %v988_v1 = vld [vmem:[%s1144_s28 + $0x4] ss:$8 sps:$4 sm:$0xff]   ;;  %v990_v2 = vld [vmem:[%s1144_s28] ss:$8 sps:$4 sm:$0xff]   ;;  %v1088_v3 = vmov 0   ;;  %p954_p7 = scmp.ne.s32.totalorder %s1077_s15, 5 }
  0x19   : > { %706 = vmatprep.mubr.bf16.mxu1 %v1088_v3  ;;  %633 = vmatprep.subr.bf16.mxu0 %v988_v1  ;;  %v991_v4 = vld [vmem:[%s1144_s28 + $0x14] ss:$8 sps:$4 sm:$0xff]   ;;  %v993_v5 = vld [vmem:[%s1144_s28 + $0x10] ss:$8 sps:$4 sm:$0xff]   ;;  %v994_v6 = vld [vmem:[%s1144_s28 + $0x24] ss:$8 sps:$4 sm:$0xff]  }
  0x1a   : > { %634 = vmatpush1.bf16.msra.mxu0 %v990_v2  ;;  %v996_v7 = vld [vmem:[%s1144_s28 + $0x20] ss:$8 sps:$4 sm:$0xff]   ;;  %v997_v8 = vld [vmem:[%s1144_s28 + $0x34] ss:$8 sps:$4 sm:$0xff]   ;;  %v999_v9 = vld [vmem:[%s1144_s28 + $0x30] ss:$8 sps:$4 sm:$0xff]  }
  0x1b   : > { %635 = vmatprep.subr.bf16.mxu0 %v991_v4  ;;  %v1012_v10 = vld [vmem:[%s1144_s28 + $0x104] ss:$8 sps:$4 sm:$0xff]   ;;  %v1014_v11 = vld [vmem:[%s1144_s28 + $0x100] ss:$8 sps:$4 sm:$0xff]   ;;  %v1018_v13 = vld [vmem:[%s1144_s28 + $0x114] ss:$8 sps:$4 sm:$0xff]   ;;  %v727_v4 = vlaneseq (!%p954_p7) }
  0x1c   : > { %v1000_v12 = vld [vmem:[%s1144_s28 + $0x44] ss:$8 sps:$4 sm:$0xff]   ;;  %674 = vmatprep.subr.bf16.mxu1 %v1012_v10  ;;  %v1020_v14 = vld [vmem:[%s1144_s28 + $0x110] ss:$8 sps:$4 sm:$0xff]   ;;  %v1002_v15 = vld [vmem:[%s1144_s28 + $0x40] ss:$8 sps:$4 sm:$0xff]  }
  0x1d   : > { %675 = vmatpush1.bf16.msra.mxu1 %v1014_v11  ;;  %v1003_v16 = vld [vmem:[%s1144_s28 + $0x54] ss:$8 sps:$4 sm:$0xff]   ;;  %v1024_v17 = vld [vmem:[%s1144_s28 + $0x124] ss:$8 sps:$4 sm:$0xff]   ;;  %v1026_v18 = vld [vmem:[%s1144_s28 + $0x120] ss:$8 sps:$4 sm:$0xff]  }
  0x1e   : > { %636 = vmatpush1.bf16.msra.mxu0 %v993_v5  ;;  %676 = vmatprep.subr.bf16.mxu1 %v1018_v13  ;;  %v1005_v19 = vld [vmem:[%s1144_s28 + $0x50] ss:$8 sps:$4 sm:$0xff]   ;;  %v1030_v20 = vld [vmem:[%s1144_s28 + $0x134] ss:$8 sps:$4 sm:$0xff]   ;;  %v1006_v21 = vld [vmem:[%s1144_s28 + $0x64] ss:$8 sps:$4 sm:$0xff]  }
  0x1f   : > { %637 = vmatprep.subr.bf16.mxu0 %v994_v6  ;;  %v1032_v22 = vld [vmem:[%s1144_s28 + $0x130] ss:$8 sps:$4 sm:$0xff]   ;;  %v1008_v23 = vld [vmem:[%s1144_s28 + $0x60] ss:$8 sps:$4 sm:$0xff]   ;;  %v1036_v24 = vld [vmem:[%s1144_s28 + $0x144] ss:$8 sps:$4 sm:$0xff]  }
  0x20   : > { %v1009_v25 = vld [vmem:[%s1144_s28 + $0x74] ss:$8 sps:$4 sm:$0xff]   ;;  %v1038_v26 = vld [vmem:[%s1144_s28 + $0x140] ss:$8 sps:$4 sm:$0xff]   ;;  %v1011_v27 = vld [vmem:[%s1144_s28 + $0x70] ss:$8 sps:$4 sm:$0xff]  }
  0x21   : > { %677 = vmatpush1.bf16.msra.mxu1 %v1020_v14  ;;  %v1042_v28 = vld [vmem:[%s1144_s28 + $0x154] ss:$8 sps:$4 sm:$0xff]   ;;  %v1015_v29 = vld [vmem:[%s1144_s28 + $0x84] ss:$8 sps:$4 sm:$0xff]   ;;  %v1044_v30 = vld [vmem:[%s1144_s28 + $0x150] ss:$8 sps:$4 sm:$0xff]  }
  0x22   : > { %638 = vmatpush1.bf16.msra.mxu0 %v996_v7  ;;  %678 = vmatprep.subr.bf16.mxu1 %v1024_v17  ;;  %v1017_v31 = vld [vmem:[%s1144_s28 + $0x80] ss:$8 sps:$4 sm:$0xff]   ;;  %v1048_v32 = vld [vmem:[%s1144_s28 + $0x164] ss:$8 sps:$4 sm:$0xff]   ;;  %v1021_v33 = vld [vmem:[%s1144_s28 + $0x94] ss:$8 sps:$4 sm:$0xff]  }
  0x23   : > { %639 = vmatprep.subr.bf16.mxu0 %v997_v8  ;;  %v332_v34 = vld [vmem:[%s1139_s24] sm:$0xff]  ;;  %v1023_v37 = vld [vmem:[%s1144_s28 + $0x90] ss:$8 sps:$4 sm:$0xff]   ;;  %v1054_v38 = vld [vmem:[%s1144_s28 + $0x174] ss:$8 sps:$4 sm:$0xff]   ;;  %v728_v5 = vshrl.u32 (!%p954_p7), %v727_v4, 7 }
  0x24   : > { %v904_v35 = vcombine.high %v332_v34, %v332_v34  ;;  %v1050_v36 = vld [vmem:[%s1144_s28 + $0x160] ss:$8 sps:$4 sm:$0xff]   ;;  %v1027_v39 = vld [vmem:[%s1144_s28 + $0xa4] ss:$8 sps:$4 sm:$0xff]   ;;  %v1056_v40 = vld [vmem:[%s1144_s28 + $0x170] ss:$8 sps:$4 sm:$0xff]   ;;  %v903_v53 = vcombine.low %v332_v34, %v332_v34 }
  0x25   : > { %679 = vmatpush1.bf16.msra.mxu1 %v1026_v18  ;;  %v1029_v41 = vld [vmem:[%s1144_s28 + $0xa0] ss:$8 sps:$4 sm:$0xff]   ;;  %v1033_v42 = vld [vmem:[%s1144_s28 + $0xb4] ss:$8 sps:$4 sm:$0xff]   ;;  %v1035_v44 = vld [vmem:[%s1144_s28 + $0xb0] ss:$8 sps:$4 sm:$0xff]  }
  0x26   : > { %640 = vmatpush1.bf16.msra.mxu0 %v999_v9  ;;  %680 = vmatprep.subr.bf16.mxu1 %v1030_v20  ;;  %v1060_v43 = vld [vmem:[%s1139_s24 + $0x8] ss:$0 sps:$4 sm:$0xff]   ;;  %v1039_v45 = vld [vmem:[%s1144_s28 + $0xc4] ss:$8 sps:$4 sm:$0xff]   ;;  %v1045_v47 = vld [vmem:[%s1144_s28 + $0xd4] ss:$8 sps:$4 sm:$0xff]  }
  0x27   : > { %641 = vmatprep.subr.bf16.mxu0 %v1000_v12  ;;  %665 = vmatprep.mubr.bf16.mxu0 %v904_v35  ;;  %v1041_v46 = vld [vmem:[%s1144_s28 + $0xc0] ss:$8 sps:$4 sm:$0xff]   ;;  %v1047_v48 = vld [vmem:[%s1144_s28 + $0xd0] ss:$8 sps:$4 sm:$0xff]   ;;  %v1051_v49 = vld [vmem:[%s1144_s28 + $0xe4] ss:$8 sps:$4 sm:$0xff]  }
  0x28   : > { %v1053_v50 = vld [vmem:[%s1144_s28 + $0xe0] ss:$8 sps:$4 sm:$0xff]   ;;  %v1057_v51 = vld [vmem:[%s1144_s28 + $0xf4] ss:$8 sps:$4 sm:$0xff]   ;;  %v1059_v52 = vld [vmem:[%s1144_s28 + $0xf0] ss:$8 sps:$4 sm:$0xff]  }
  0x29   : > { %681 = vmatpush1.bf16.msra.mxu1 %v1032_v22  ;;  %v330_v58 = vld [vmem:[#allocation2] sm:$0xff]  ;;  %v331_v61 = vld [vmem:[#allocation2 + $0x8] sm:$0xff]  ;;  %v729_v8 = vsub.s32 (!%p954_p7), 0, %v728_v5  ;;  %v733_v9 = vsub.s32 (!%p954_p7), 1, %v728_v5 }
  0x2a   : > { %642 = vmatpush1.bf16.msra.mxu0 %v1002_v15  ;;  %682 = vmatprep.subr.bf16.mxu1 %v1036_v24  ;;  %v725_v6 = vld [vmem:[%s1218_s2] sm:$0x3] (!%p954_p7) }
  0x2b   : > { %643 = vmatprep.subr.bf16.mxu0 %v1003_v16  ;;  %v739_v7 = vld [vmem:[%s1219_s3] sm:$0x3] (!%p954_p7)  ;;  %v730_v12 = vrot.slane (!%p954_p7), %v725_v6, %v729_v8  ;;  %v734_v13 = vrot.slane (!%p954_p7), %v725_v6, %v733_v9 }
  0x2c   : > { %v744_v14 = vrot.slane (!%p954_p7), %v739_v7, %v729_v8  ;;  %v748_v15 = vrot.slane (!%p954_p7), %v739_v7, %v733_v9 }
  0x2d   : > { %683 = vmatpush1.bf16.msra.mxu1 %v1038_v26 }
  0x2e   : > { %644 = vmatpush1.bf16.msra.mxu0 %v1005_v19  ;;  %684 = vmatprep.subr.bf16.mxu1 %v1042_v28 }
  0x2f   : > { %645 = vmatprep.subr.bf16.mxu0 %v1006_v21 }
  0x31   : > { %685 = vmatpush1.bf16.msra.mxu1 %v1044_v30 }
  0x32   : > { %646 = vmatpush1.bf16.msra.mxu0 %v1008_v23  ;;  %686 = vmatprep.subr.bf16.mxu1 %v1048_v32 }
  0x33   : > { %647 = vmatprep.subr.bf16.mxu0 %v1009_v25 }
  0x35   : > { %687 = vmatpush1.bf16.msra.mxu1 %v1050_v36 }
  0x36   : > { %648 = vmatpush1.bf16.msra.mxu0 %v1011_v27  ;;  %688 = vmatprep.subr.bf16.mxu1 %v1054_v38 }
  0x37   : > { %649 = vmatprep.subr.bf16.mxu0 %v1015_v29 }
  0x39   : > { %689 = vmatpush1.bf16.msra.mxu1 %v1056_v40 }
  0x3a   : > { %650 = vmatpush1.bf16.msra.mxu0 %v1017_v31 }
  0x3b   : > { %651 = vmatprep.subr.bf16.mxu0 %v1021_v33 }
  0x3c   : > { %707 = vmatmul.mubr.bf16.vlgmr.msra.gmra.mrb[0].mxu1 %v1060_v43 }
  0x3e   : > { %652 = vmatpush1.bf16.msra.mxu0 %v1023_v37 }
  0x3f   : > { %653 = vmatprep.subr.bf16.mxu0 %v1027_v39 }
  0x42   : > { %654 = vmatpush1.bf16.msra.mxu0 %v1029_v41 }
  0x43   : > { %655 = vmatprep.subr.bf16.mxu0 %v1033_v42 }
  0x46   : > { %656 = vmatpush1.bf16.msra.mxu0 %v1035_v44 }
  0x47   : > { %657 = vmatprep.subr.bf16.mxu0 %v1039_v45 }
  0x4a   : > { %658 = vmatpush1.bf16.msra.mxu0 %v1041_v46 }
  0x4b   : > { %659 = vmatprep.subr.bf16.mxu0 %v1045_v47 }
  0x4e   : > { %660 = vmatpush1.bf16.msra.mxu0 %v1047_v48 }
  0x4f   : > { %661 = vmatprep.subr.bf16.mxu0 %v1051_v49 }
  0x52   : > { %662 = vmatpush1.bf16.msra.mxu0 %v1053_v50 }
  0x53   : > { %663 = vmatprep.subr.bf16.mxu0 %v1057_v51 }
  0x56   : > { %664 = vmatpush1.bf16.msra.mxu0 %v1059_v52 }
  0x59   : > { %666 = vmatmul.mubr.bf16.vlgmr.msra.gmra.mrb[0].mxu0 %v903_v53 }
 0x10f   : > { %v708_v54 = vpop.f32.mrb[0].mxu1 }
 0x110   : > { %v710_v55 = vpop.f32.mrb[1].mxu1 }
 0x111   : > { %v712_v56 = vpop.f32.mrb[2].mxu1 }
 0x112   : > { %v713_v57 = vpop.f32.mrb[3].mxu1 }
 0x12c   : > { %v667_v59 = vpop.f32.mrb[0].mxu0  ;;  %722 = sbr.rel (%p954_p7) target bundleno = 323 (0x143), region = 44 }
 0x12d   : > { %v709_v60 = vadd.f32 %v708_v54, %v667_v59  ;;  %v669_v62 = vpop.f32.mrb[1].mxu0 }
 0x12e   : > { %v711_v63 = vadd.f32 %v710_v55, %v669_v62  ;;  %v671_v0 = vpop.f32.mrb[2].mxu0 }
 0x12f   : > { %v715_v1 = vadd.f32 %v709_v60, %v330_v58  ;;  %v672_v2 = vpop.f32.mrb[3].mxu0 }
 0x130   : > { %v716_v3 = vadd.f32 %v711_v63, %v331_v61 }
 0x131   : > { %717 = vst [vmem:[#allocation2] sm:$0xff] %v715_v1 }
 0x132   : > { %718 = vst [vmem:[#allocation2 + $0x8] sm:$0xff] %v716_v3 }
 0x138   : > { %v723_v10 = vld [vmem:[#allocation2] sm:$0xff] }
 0x139   : > { %v724_v11 = vld [vmem:[#allocation2 + $0x8] sm:$0xff]  ;;  %v737_v16 = vmul.f32 %v730_v12, %v723_v10 }
 0x13a   : > { %v738_v17 = vmul.f32 %v734_v13, %v724_v11 }
 0x13b   : > { %v751_v18 = vadd.f32 %v744_v14, %v737_v16 }
 0x13c   : > { %v752_v19 = vadd.f32 %v748_v15, %v738_v17 }
 0x13d   : > { %v753_v20 = vmax.f32 %v751_v18, 0.0 }
 0x13e   : > { %v754_v21 = vmax.f32 %v752_v19, 0.0 }
 0x140   : > { %v961_v22 = vpack.c.bf16 %v754_v21, %v753_v20 }
 0x142   : > { %763 = vst [vmem:[%s1220_s4] sm:$0xff] %v961_v22 }
 0x143 PF: > { %s14_s17 = sadd.s32 1, %s1085_s17   ;;  %s1221_s15 = smov %s1081_s16 }
 0x144   : > { %p11_p8 = scmp.ge.s32.totalorder %s14_s17, 8   ;;  %s1222_s16 = smov %s1224_s18 }
 0x146   :  { %13 = sbr.rel (!%p11_p8) target bundleno = 2 (0x2), region = 83 }

// kernel: resnet18_forward.36
= control target key start
LH: loop header
LB: loop body
LE: loop exit
PB: predicated region body
PF: predicated region fallthrough
CT: control target
= control target key end

     0   :  { %s1209_s18 = smov 0   ;;  %s1211_s19 = smov 0   ;;  %s1314_s0 = inlined_call_operand.vmem [shape: bf16[8,2304], index: 0, kind: input, shape index: {}]   ;;  %s1315_s1 = inlined_call_operand.vmem [shape: bf16[2304,256], index: 1, kind: input, shape index: {}]   ;;  %s1316_s2 = inlined_call_operand.vmem [shape: f32[1,256], index: 2, kind: input, shape index: {}]   ;;  %s1317_s3 = inlined_call_operand.vmem [shape: f32[1,256], index: 3, kind: input, shape index: {}]   ;;  %s1318_s4 = inlined_call_operand.vmem [shape: bf16[8,256], index: 4, kind: input, shape index: {}]   ;;  %s1319_s5 = inlined_call_operand.vmem [shape: bf16[8,256], index: 5, kind: output, shape index: {}]  }
   0x1   :  { %s1213_s20 = smov 0  }
   0x2 LB: > { %s27_s21 = sadd.s32 1, %s1171_s19  ;;  %p988_p0 = scmp.ge.s32.totalorder %s1175_s20, 1  ;;  %s1175_s20 = sphi %s1213_s20, %s15_s20   ;;  %s1171_s19 = sphi %s1211_s19, %s1321_s19   ;;  %s1167_s18 = sphi %s1209_s18, %s1320_s18  }
   0x3   : > { %p28_p1 = scmp.ge.s32.totalorder %s27_s21, 6  ;;  %p271_p2 = scmp.lt.s32.totalorder %s1175_s20, 7 }
   0x5   : > { %s1323_s21 = smov (%p28_p1, %s27_s21), 0  ;;  %p272_p3 = pnand %p988_p0, %p271_p2 }
   0x6   : > { %s334_s22 = smul.u32 (!%p272_p3), 3, %s1167_s18  ;;  %p992_p6 = scmp.ne.s32.totalorder (!%p272_p3), %s1167_s18, 0 }
   0x7   : > { %275 = sbr.rel (%p272_p3) target bundleno = 325 (0x145), region = 40 }
   0x8   : > { %s344_s23 = smul.u32 (!%p272_p3), 48, %s1167_s18  ;;  %p337_p4 = scmp.lt.s32.totalorder (!%p272_p3), %s334_s22, 17 }
   0xa   : > { %p346_p5 = scmp.lt.s32.totalorder (!%p272_p3), %s344_s23, 287 }
   0xe   : > { %s1325_s22 = smov (!%p337_p4, %s334_s22), 17  ;;  %s1327_s23 = smov (!%p346_p5, %s344_s23), 287 }
   0xf   : > { %s989_s24 = sshll.u32 %s1325_s22, 2  ;;  %s1050_s28 = sshll.u32 %s1327_s23, 3  ;;  %v1177_v0 = vmov (!%p992_p6), 0.0  }
  0x10   : > { %s1234_s27 = scalar_lea.vmem %s1314_s0, %s989_s24  ;;  %s1239_s6 = scalar_lea.vmem %s1315_s1, %s1050_s28  ;;  %391 = vst [vmem:[#allocation2] sm:$0xff] (!%p992_p6), %v1177_v0  ;;  %392 = vst [vmem:[#allocation2 + $0x8] sm:$0xff] (!%p992_p6), %v1177_v0 }
  0x11   : > { %390 = sbr.rel (%p992_p6) target bundleno = 24 (0x18), region = 44 }
  0x18 PF: > { %v1078_v1 = vld [vmem:[%s1239_s6 + $0x4] ss:$8 sps:$4 sm:$0xff]   ;;  %v1080_v2 = vld [vmem:[%s1239_s6] ss:$8 sps:$4 sm:$0xff]   ;;  %v1178_v3 = vmov 0   ;;  %p1044_p7 = scmp.ne.s32.totalorder %s1167_s18, 5 }
  0x19   : > { %769 = vmatprep.mubr.bf16.mxu1 %v1178_v3  ;;  %696 = vmatprep.subr.bf16.mxu0 %v1078_v1  ;;  %v1081_v4 = vld [vmem:[%s1239_s6 + $0x14] ss:$8 sps:$4 sm:$0xff]   ;;  %v1083_v5 = vld [vmem:[%s1239_s6 + $0x10] ss:$8 sps:$4 sm:$0xff]   ;;  %v1084_v6 = vld [vmem:[%s1239_s6 + $0x24] ss:$8 sps:$4 sm:$0xff]  }
  0x1a   : > { %697 = vmatpush1.bf16.msra.mxu0 %v1080_v2  ;;  %v1086_v7 = vld [vmem:[%s1239_s6 + $0x20] ss:$8 sps:$4 sm:$0xff]   ;;  %v1087_v8 = vld [vmem:[%s1239_s6 + $0x34] ss:$8 sps:$4 sm:$0xff]   ;;  %v1089_v9 = vld [vmem:[%s1239_s6 + $0x30] ss:$8 sps:$4 sm:$0xff]  }
  0x1b   : > { %698 = vmatprep.subr.bf16.mxu0 %v1081_v4  ;;  %v1102_v10 = vld [vmem:[%s1239_s6 + $0x104] ss:$8 sps:$4 sm:$0xff]   ;;  %v1104_v11 = vld [vmem:[%s1239_s6 + $0x100] ss:$8 sps:$4 sm:$0xff]   ;;  %v1108_v13 = vld [vmem:[%s1239_s6 + $0x114] ss:$8 sps:$4 sm:$0xff]   ;;  %v790_v4 = vlaneseq (!%p1044_p7) }
  0x1c   : > { %v1090_v12 = vld [vmem:[%s1239_s6 + $0x44] ss:$8 sps:$4 sm:$0xff]   ;;  %737 = vmatprep.subr.bf16.mxu1 %v1102_v10  ;;  %v1110_v14 = vld [vmem:[%s1239_s6 + $0x110] ss:$8 sps:$4 sm:$0xff]   ;;  %v1092_v15 = vld [vmem:[%s1239_s6 + $0x40] ss:$8 sps:$4 sm:$0xff]  }
  0x1d   : > { %738 = vmatpush1.bf16.msra.mxu1 %v1104_v11  ;;  %v1093_v16 = vld [vmem:[%s1239_s6 + $0x54] ss:$8 sps:$4 sm:$0xff]   ;;  %v1114_v17 = vld [vmem:[%s1239_s6 + $0x124] ss:$8 sps:$4 sm:$0xff]   ;;  %v1116_v18 = vld [vmem:[%s1239_s6 + $0x120] ss:$8 sps:$4 sm:$0xff]  }
  0x1e   : > { %699 = vmatpush1.bf16.msra.mxu0 %v1083_v5  ;;  %739 = vmatprep.subr.bf16.mxu1 %v1108_v13  ;;  %v1095_v19 = vld [vmem:[%s1239_s6 + $0x50] ss:$8 sps:$4 sm:$0xff]   ;;  %v1120_v20 = vld [vmem:[%s1239_s6 + $0x134] ss:$8 sps:$4 sm:$0xff]   ;;  %v1096_v21 = vld [vmem:[%s1239_s6 + $0x64] ss:$8 sps:$4 sm:$0xff]  }
  0x1f   : > { %700 = vmatprep.subr.bf16.mxu0 %v1084_v6  ;;  %v1122_v22 = vld [vmem:[%s1239_s6 + $0x130] ss:$8 sps:$4 sm:$0xff]   ;;  %v1098_v23 = vld [vmem:[%s1239_s6 + $0x60] ss:$8 sps:$4 sm:$0xff]   ;;  %v1126_v24 = vld [vmem:[%s1239_s6 + $0x144] ss:$8 sps:$4 sm:$0xff]  }
  0x20   : > { %v1099_v25 = vld [vmem:[%s1239_s6 + $0x74] ss:$8 sps:$4 sm:$0xff]   ;;  %v1128_v26 = vld [vmem:[%s1239_s6 + $0x140] ss:$8 sps:$4 sm:$0xff]   ;;  %v1101_v27 = vld [vmem:[%s1239_s6 + $0x70] ss:$8 sps:$4 sm:$0xff]  }
  0x21   : > { %740 = vmatpush1.bf16.msra.mxu1 %v1110_v14  ;;  %v1132_v28 = vld [vmem:[%s1239_s6 + $0x154] ss:$8 sps:$4 sm:$0xff]   ;;  %v1105_v29 = vld [vmem:[%s1239_s6 + $0x84] ss:$8 sps:$4 sm:$0xff]   ;;  %v1134_v30 = vld [vmem:[%s1239_s6 + $0x150] ss:$8 sps:$4 sm:$0xff]  }
  0x22   : > { %701 = vmatpush1.bf16.msra.mxu0 %v1086_v7  ;;  %741 = vmatprep.subr.bf16.mxu1 %v1114_v17  ;;  %v1107_v31 = vld [vmem:[%s1239_s6 + $0x80] ss:$8 sps:$4 sm:$0xff]   ;;  %v1138_v32 = vld [vmem:[%s1239_s6 + $0x164] ss:$8 sps:$4 sm:$0xff]   ;;  %v1111_v33 = vld [vmem:[%s1239_s6 + $0x94] ss:$8 sps:$4 sm:$0xff]  }
  0x23   : > { %702 = vmatprep.subr.bf16.mxu0 %v1087_v8  ;;  %v395_v34 = vld [vmem:[%s1234_s27] sm:$0xff]  ;;  %v1113_v37 = vld [vmem:[%s1239_s6 + $0x90] ss:$8 sps:$4 sm:$0xff]   ;;  %v1144_v38 = vld [vmem:[%s1239_s6 + $0x174] ss:$8 sps:$4 sm:$0xff]   ;;  %v791_v5 = vshrl.u32 (!%p1044_p7), %v790_v4, 7 }
  0x24   : > { %v994_v35 = vcombine.high %v395_v34, %v395_v34  ;;  %v1140_v36 = vld [vmem:[%s1239_s6 + $0x160] ss:$8 sps:$4 sm:$0xff]   ;;  %v1117_v39 = vld [vmem:[%s1239_s6 + $0xa4] ss:$8 sps:$4 sm:$0xff]   ;;  %v1146_v40 = vld [vmem:[%s1239_s6 + $0x170] ss:$8 sps:$4 sm:$0xff]   ;;  %v993_v53 = vcombine.low %v395_v34, %v395_v34 }
  0x25   : > { %742 = vmatpush1.bf16.msra.mxu1 %v1116_v18  ;;  %v1119_v41 = vld [vmem:[%s1239_s6 + $0xa0] ss:$8 sps:$4 sm:$0xff]   ;;  %v1123_v42 = vld [vmem:[%s1239_s6 + $0xb4] ss:$8 sps:$4 sm:$0xff]   ;;  %v1125_v44 = vld [vmem:[%s1239_s6 + $0xb0] ss:$8 sps:$4 sm:$0xff]  }
  0x26   : > { %703 = vmatpush1.bf16.msra.mxu0 %v1089_v9  ;;  %743 = vmatprep.subr.bf16.mxu1 %v1120_v20  ;;  %v1150_v43 = vld [vmem:[%s1234_s27 + $0x8] ss:$0 sps:$4 sm:$0xff]   ;;  %v1129_v45 = vld [vmem:[%s1239_s6 + $0xc4] ss:$8 sps:$4 sm:$0xff]   ;;  %v1135_v47 = vld [vmem:[%s1239_s6 + $0xd4] ss:$8 sps:$4 sm:$0xff]  }
  0x27   : > { %704 = vmatprep.subr.bf16.mxu0 %v1090_v12  ;;  %728 = vmatprep.mubr.bf16.mxu0 %v994_v35  ;;  %v1131_v46 = vld [vmem:[%s1239_s6 + $0xc0] ss:$8 sps:$4 sm:$0xff]   ;;  %v1137_v48 = vld [vmem:[%s1239_s6 + $0xd0] ss:$8 sps:$4 sm:$0xff]   ;;  %v1141_v49 = vld [vmem:[%s1239_s6 + $0xe4] ss:$8 sps:$4 sm:$0xff]  }
  0x28   : > { %v1143_v50 = vld [vmem:[%s1239_s6 + $0xe0] ss:$8 sps:$4 sm:$0xff]   ;;  %v1147_v51 = vld [vmem:[%s1239_s6 + $0xf4] ss:$8 sps:$4 sm:$0xff]   ;;  %v1149_v52 = vld [vmem:[%s1239_s6 + $0xf0] ss:$8 sps:$4 sm:$0xff]  }
  0x29   : > { %744 = vmatpush1.bf16.msra.mxu1 %v1122_v22  ;;  %v393_v58 = vld [vmem:[#allocation2] sm:$0xff]  ;;  %v394_v61 = vld [vmem:[#allocation2 + $0x8] sm:$0xff]  ;;  %v792_v8 = vsub.s32 (!%p1044_p7), 0, %v791_v5  ;;  %v796_v9 = vsub.s32 (!%p1044_p7), 1, %v791_v5 }
  0x2a   : > { %705 = vmatpush1.bf16.msra.mxu0 %v1092_v15  ;;  %745 = vmatprep.subr.bf16.mxu1 %v1126_v24  ;;  %v788_v6 = vld [vmem:[%s1316_s2] sm:$0x3] (!%p1044_p7) }
  0x2b   : > { %706 = vmatprep.subr.bf16.mxu0 %v1093_v16  ;;  %v802_v7 = vld [vmem:[%s1317_s3] sm:$0x3] (!%p1044_p7)  ;;  %v793_v13 = vrot.slane (!%p1044_p7), %v788_v6, %v792_v8  ;;  %v797_v14 = vrot.slane (!%p1044_p7), %v788_v6, %v796_v9 }
  0x2c   : > { %v816_v12 = vld [vmem:[%s1318_s4] sm:$0xff] (!%p1044_p7)  ;;  %v807_v15 = vrot.slane (!%p1044_p7), %v802_v7, %v792_v8  ;;  %v811_v16 = vrot.slane (!%p1044_p7), %v802_v7, %v796_v9 }
  0x2d   : > { %746 = vmatpush1.bf16.msra.mxu1 %v1128_v26  ;;  %v818_v20 = vunpack.c.h.bf16 (!%p1044_p7), %v816_v12 }
  0x2e   : > { %707 = vmatpush1.bf16.msra.mxu0 %v1095_v19  ;;  %747 = vmatprep.subr.bf16.mxu1 %v1132_v28  ;;  %v817_v19 = vunpack.c.l.bf16 (!%p1044_p7), %v816_v12 }
  0x2f   : > { %708 = vmatprep.subr.bf16.mxu0 %v1096_v21 }
  0x31   : > { %748 = vmatpush1.bf16.msra.mxu1 %v1134_v30 }
  0x32   : > { %709 = vmatpush1.bf16.msra.mxu0 %v1098_v23  ;;  %749 = vmatprep.subr.bf16.mxu1 %v1138_v32 }
  0x33   : > { %710 = vmatprep.subr.bf16.mxu0 %v1099_v25 }
  0x35   : > { %750 = vmatpush1.bf16.msra.mxu1 %v1140_v36 }
  0x36   : > { %711 = vmatpush1.bf16.msra.mxu0 %v1101_v27  ;;  %751 = vmatprep.subr.bf16.mxu1 %v1144_v38 }
  0x37   : > { %712 = vmatprep.subr.bf16.mxu0 %v1105_v29 }
  0x39   : > { %752 = vmatpush1.bf16.msra.mxu1 %v1146_v40 }
  0x3a   : > { %713 = vmatpush1.bf16.msra.mxu0 %v1107_v31 }
  0x3b   : > { %714 = vmatprep.subr.bf16.mxu0 %v1111_v33 }
  0x3c   : > { %770 = vmatmul.mubr.bf16.vlgmr.msra.gmra.mrb[0].mxu1 %v1150_v43 }
  0x3e   : > { %715 = vmatpush1.bf16.msra.mxu0 %v1113_v37 }
  0x3f   : > { %716 = vmatprep.subr.bf16.mxu0 %v1117_v39 }
  0x42   : > { %717 = vmatpush1.bf16.msra.mxu0 %v1119_v41 }
  0x43   : > { %718 = vmatprep.subr.bf16.mxu0 %v1123_v42 }
  0x46   : > { %719 = vmatpush1.bf16.msra.mxu0 %v1125_v44 }
  0x47   : > { %720 = vmatprep.subr.bf16.mxu0 %v1129_v45 }
  0x4a   : > { %721 = vmatpush1.bf16.msra.mxu0 %v1131_v46 }
  0x4b   : > { %722 = vmatprep.subr.bf16.mxu0 %v1135_v47 }
  0x4e   : > { %723 = vmatpush1.bf16.msra.mxu0 %v1137_v48 }
  0x4f   : > { %724 = vmatprep.subr.bf16.mxu0 %v1141_v49 }
  0x52   : > { %725 = vmatpush1.bf16.msra.mxu0 %v1143_v50 }
  0x53   : > { %726 = vmatprep.subr.bf16.mxu0 %v1147_v51 }
  0x56   : > { %727 = vmatpush1.bf16.msra.mxu0 %v1149_v52 }
  0x59   : > { %729 = vmatmul.mubr.bf16.vlgmr.msra.gmra.mrb[0].mxu0 %v993_v53 }
 0x10f   : > { %v771_v54 = vpop.f32.mrb[0].mxu1 }
 0x110   : > { %v773_v55 = vpop.f32.mrb[1].mxu1 }
 0x111   : > { %v775_v56 = vpop.f32.mrb[2].mxu1 }
 0x112   : > { %v776_v57 = vpop.f32.mrb[3].mxu1 }
 0x12c   : > { %v730_v59 = vpop.f32.mrb[0].mxu0  ;;  %785 = sbr.rel (%p1044_p7) target bundleno = 325 (0x145), region = 48 }
 0x12d   : > { %v772_v60 = vadd.f32 %v771_v54, %v730_v59  ;;  %v732_v62 = vpop.f32.mrb[1].mxu0 }
 0x12e   : > { %v774_v63 = vadd.f32 %v773_v55, %v732_v62  ;;  %v734_v0 = vpop.f32.mrb[2].mxu0 }
 0x12f   : > { %v778_v1 = vadd.f32 %v772_v60, %v393_v58  ;;  %v735_v2 = vpop.f32.mrb[3].mxu0 }
 0x130   : > { %v779_v3 = vadd.f32 %v774_v63, %v394_v61 }
 0x131   : > { %780 = vst [vmem:[#allocation2] sm:$0xff] %v778_v1 }
 0x132   : > { %781 = vst [vmem:[#allocation2 + $0x8] sm:$0xff] %v779_v3 }
 0x138   : > { %v786_v10 = vld [vmem:[#allocation2] sm:$0xff] }
 0x139   : > { %v787_v11 = vld [vmem:[#allocation2 + $0x8] sm:$0xff]  ;;  %v800_v17 = vmul.f32 %v793_v13, %v786_v10 }
 0x13a   : > { %v801_v18 = vmul.f32 %v797_v14, %v787_v11 }
 0x13b   : > { %v814_v21 = vadd.f32 %v807_v15, %v800_v17 }
 0x13c   : > { %v815_v22 = vadd.f32 %v811_v16, %v801_v18 }
 0x13d   : > { %v819_v23 = vadd.f32 %v817_v19, %v814_v21 }
 0x13e   : > { %v820_v24 = vadd.f32 %v818_v20, %v815_v22 }
 0x13f   : > { %v821_v25 = vmax.f32 %v819_v23, 0.0 }
 0x140   : > { %v822_v26 = vmax.f32 %v820_v24, 0.0 }
 0x142   : > { %v1051_v27 = vpack.c.bf16 %v822_v26, %v821_v25 }
 0x144   : > { %831 = vst [vmem:[%s1319_s5] sm:$0xff] %v1051_v27 }
 0x145 PF: > { %s15_s20 = sadd.s32 1, %s1175_s20   ;;  %s1320_s18 = smov %s1171_s19 }
 0x146   : > { %p12_p8 = scmp.ge.s32.totalorder %s15_s20, 8   ;;  %s1321_s19 = smov %s1323_s21 }
 0x148   :  { %14 = sbr.rel (!%p12_p8) target bundleno = 2 (0x2), region = 90 }

// kernel: resnet18_forward.40
= control target key start
LH: loop header
LB: loop body
LE: loop exit
PB: predicated region body
PF: predicated region fallthrough
CT: control target
= control target key end

     0   :  { %s1103_s15 = smov 0   ;;  %s1105_s16 = smov 0   ;;  %s1285_s0 = inlined_call_operand.vmem [shape: bf16[8,256], index: 0, kind: input, shape index: {}]   ;;  %s1286_s1 = inlined_call_operand.vmem [shape: bf16[256,512], index: 1, kind: input, shape index: {}]   ;;  %s1287_s2 = inlined_call_operand.vmem [shape: f32[1,512], index: 2, kind: input, shape index: {}]   ;;  %s1288_s3 = inlined_call_operand.vmem [shape: f32[1,512], index: 3, kind: input, shape index: {}]   ;;  %s1289_s4 = inlined_call_operand.vmem [shape: bf16[8,512], index: 4, kind: output, shape index: {}]  }
   0x1   :  { %s1107_s17 = smov 0   ;;  %s1109_s18 = smov 0  }
   0x2   :  { %s1111_s19 = smov 0  }
   0x3 LB: > { %s29_s20 = sadd.s32 1, %s1072_s18  ;;  %p77_p1 = scmp.ne.s32.totalorder %s1064_s16, %s1060_s15  ;;  %s1076_s19 = sphi %s1111_s19, %s14_s19   ;;  %s1072_s18 = sphi %s1109_s18, %s1293_s18   ;;  %s1068_s17 = sphi %s1107_s17, %s1292_s17   ;;  %s1064_s16 = sphi %s1105_s16, %s1291_s16   ;;  %s1060_s15 = sphi %s1103_s15, %s1290_s15  }
   0x4   : > { %p31_p0 = scmp.ge.s32.totalorder %s29_s20, 2  ;;  %p78_p2 = scmp.eq.s32.totalorder %s1076_s19, 0 }
   0x5   : > { %s70_s22 = sadd.s32 1, %s1064_s16  ;;  %p899_p5 = scmp.ge.s32.totalorder %s1076_s19, 2 }
   0x6   : > { %s1295_s20 = smov (%p31_p0, %s29_s20), 0  ;;  %p79_p3 = por %p78_p2, %p77_p1 }
   0x7   : > { %s66_s21 = ssub.s32 %s1072_s18, %s1295_s20  ;;  %196 = sbr.rel (%p899_p5) target bundleno = 34 (0x22), region = 20 }
   0x8   : > { %p68_p4 = scmp.eq.s32.totalorder %s66_s21, 0 }
   0xa   : > { %s1138_s23 = scalar_select %p68_p4, %s1064_s16, %s70_s22  }
   0xe   : > { %199 = sbr.rel (!%p79_p3) target bundleno = 34 (0x22), region = 24  ;;  %s201_s24 = sand.u32 (%p79_p3), 1, %s1064_s16  }
   0xf   : > { %s946_s25 = sshll.u32 (%p79_p3), %s1072_s18, 3  ;;  %s900_s26 = sshll.u32 (%p79_p3), %s201_s24, 8 }
  0x10   : > { %s1146_s29 = scalar_lea.vmem (%p79_p3), %s1286_s1, %s946_s25  ;;  %s1151_s30 = scalar_lea.vmem (%p79_p3), [#allocation3], %s900_s26 }
  0x11   : > { %v299_v0 = vld [vmem:[%s1146_s29] sm:$0xff] (%p79_p3)  ;;  %v301_v1 = vld [vmem:[%s1146_s29 + $0x10] sm:$0xff] (%p79_p3) }
  0x12   : > { %v303_v2 = vld [vmem:[%s1146_s29 + $0x20] sm:$0xff] (%p79_p3)  ;;  %300 = vst [vmem:[%s1151_s30] sm:$0xff] (%p79_p3), %v299_v0  ;;  %302 = vst [vmem:[%s1151_s30 + $0x8] sm:$0xff] (%p79_p3), %v301_v1  ;;  %v305_v3 = vld [vmem:[%s1146_s29 + $0x30] sm:$0xff] (%p79_p3) }
  0x13   : > { %304 = vst [vmem:[%s1151_s30 + $0x10] sm:$0xff] (%p79_p3), %v303_v2  ;;  %v307_v4 = vld [vmem:[%s1146_s29 + $0x40] sm:$0xff] (%p79_p3)  ;;  %v309_v5 = vld [vmem:[%s1146_s29 + $0x50] sm:$0xff] (%p79_p3)  ;;  %306 = vst [vmem:[%s1151_s30 + $0x18] sm:$0xff] (%p79_p3), %v305_v3 }
  0x14   : > { %308 = vst [vmem:[%s1151_s30 + $0x20] sm:$0xff] (%p79_p3), %v307_v4  ;;  %310 = vst [vmem:[%s1151_s30 + $0x28] sm:$0xff] (%p79_p3), %v309_v5  ;;  %v311_v6 = vld [vmem:[%s1146_s29 + $0x60] sm:$0xff] (%p79_p3)  ;;  %v313_v7 = vld [vmem:[%s1146_s29 + $0x70] sm:$0xff] (%p79_p3) }
  0x15   : > { %v315_v8 = vld [vmem:[%s1146_s29 + $0x80] sm:$0xff]  ;;  %312 = vst [vmem:[%s1151_s30 + $0x30] sm:$0xff] %v311_v6  ;;  %314 = vst [vmem:[%s1151_s30 + $0x38] sm:$0xff] %v313_v7  ;;  %v317_v9 = vld [vmem:[%s1146_s29 + $0x90] sm:$0xff] }
  0x16   : > { %316 = vst [vmem:[%s1151_s30 + $0x40] sm:$0xff] %v315_v8  ;;  %v319_v10 = vld [vmem:[%s1146_s29 + $0xa0] sm:$0xff]  ;;  %v321_v11 = vld [vmem:[%s1146_s29 + $0xb0] sm:$0xff]  ;;  %318 = vst [vmem:[%s1151_s30 + $0x48] sm:$0xff] %v317_v9 }
  0x17   : > { %320 = vst [vmem:[%s1151_s30 + $0x50] sm:$0xff] %v319_v10  ;;  %322 = vst [vmem:[%s1151_s30 + $0x58] sm:$0xff] %v321_v11  ;;  %v323_v12 = vld [vmem:[%s1146_s29 + $0xc0] sm:$0xff]  ;;  %v325_v13 = vld [vmem:[%s1146_s29 + $0xd0] sm:$0xff] }
  0x18   : > { %v327_v14 = vld [vmem:[%s1146_s29 + $0xe0] sm:$0xff]  ;;  %324 = vst [vmem:[%s1151_s30 + $0x60] sm:$0xff] %v323_v12  ;;  %326 = vst [vmem:[%s1151_s30 + $0x68] sm:$0xff] %v325_v13  ;;  %v329_v15 = vld [vmem:[%s1146_s29 + $0xf0] sm:$0xff] }
  0x19   : > { %328 = vst [vmem:[%s1151_s30 + $0x70] sm:$0xff] %v327_v14  ;;  %v331_v16 = vld [vmem:[%s1146_s29 + $0x100] sm:$0xff]  ;;  %v333_v17 = vld [vmem:[%s1146_s29 + $0x110] sm:$0xff]  ;;  %330 = vst [vmem:[%s1151_s30 + $0x78] sm:$0xff] %v329_v15 }
  0x1a   : > { %332 = vst [vmem:[%s1151_s30 + $0x80] sm:$0xff] %v331_v16  ;;  %334 = vst [vmem:[%s1151_s30 + $0x88] sm:$0xff] %v333_v17  ;;  %v335_v18 = vld [vmem:[%s1146_s29 + $0x120] sm:$0xff]  ;;  %v337_v19 = vld [vmem:[%s1146_s29 + $0x130] sm:$0xff] }
  0x1b   : > { %v339_v20 = vld [vmem:[%s1146_s29 + $0x140] sm:$0xff]  ;;  %336 = vst [vmem:[%s1151_s30 + $0x90] sm:$0xff] %v335_v18  ;;  %338 = vst [vmem:[%s1151_s30 + $0x98] sm:$0xff] %v337_v19  ;;  %v341_v21 = vld [vmem:[%s1146_s29 + $0x150] sm:$0xff] }
  0x1c   : > { %340 = vst [vmem:[%s1151_s30 + $0xa0] sm:$0xff] %v339_v20  ;;  %v343_v22 = vld [vmem:[%s1146_s29 + $0x160] sm:$0xff]  ;;  %v345_v23 = vld [vmem:[%s1146_s29 + $0x170] sm:$0xff]  ;;  %342 = vst [vmem:[%s1151_s30 + $0xa8] sm:$0xff] %v341_v21 }
  0x1d   : > { %344 = vst [vmem:[%s1151_s30 + $0xb0] sm:$0xff] %v343_v22  ;;  %346 = vst [vmem:[%s1151_s30 + $0xb8] sm:$0xff] %v345_v23  ;;  %v347_v24 = vld [vmem:[%s1146_s29 + $0x180] sm:$0xff]  ;;  %v349_v25 = vld [vmem:[%s1146_s29 + $0x190] sm:$0xff] }
  0x1e   : > { %v351_v26 = vld [vmem:[%s1146_s29 + $0x1a0] sm:$0xff]  ;;  %348 = vst [vmem:[%s1151_s30 + $0xc0] sm:$0xff] %v347_v24  ;;  %350 = vst [vmem:[%s1151_s30 + $0xc8] sm:$0xff] %v349_v25  ;;  %v353_v27 = vld [vmem:[%s1146_s29 + $0x1b0] sm:$0xff] }
  0x1f   : > { %352 = vst [vmem:[%s1151_s30 + $0xd0] sm:$0xff] %v351_v26  ;;  %v355_v28 = vld [vmem:[%s1146_s29 + $0x1c0] sm:$0xff]  ;;  %v357_v29 = vld [vmem:[%s1146_s29 + $0x1d0] sm:$0xff]  ;;  %354 = vst [vmem:[%s1151_s30 + $0xd8] sm:$0xff] %v353_v27 }
  0x20   : > { %356 = vst [vmem:[%s1151_s30 + $0xe0] sm:$0xff] %v355_v28  ;;  %358 = vst [vmem:[%s1151_s30 + $0xe8] sm:$0xff] %v357_v29  ;;  %v359_v30 = vld [vmem:[%s1146_s29 + $0x1e0] sm:$0xff]  ;;  %v361_v31 = vld [vmem:[%s1146_s29 + $0x1f0] sm:$0xff] }
  0x21   : > { %360 = vst [vmem:[%s1151_s30 + $0xf0] sm:$0xff] %v359_v30  ;;  %362 = vst [vmem:[%s1151_s30 + $0xf8] sm:$0xff] %v361_v31 }
  0x22 PF: > { %p903_p6 = scmp.ge.s32.totalorder %s1076_s19, 1  ;;  %p383_p7 = scmp.lt.s32.totalorder %s1076_s19, 3 }
  0x24   : > { %p384_p8 = pnand %p903_p6, %p383_p7 }
  0x25   : > { %s390_s5 = sand.u32 (!%p384_p8), 1, %s1060_s15   ;;  %v1220_v32 = vld [vmem:[%s1285_s0] sm:$0xff] (!%p384_p8)  ;;  %s905_s10 = sshll.u32 (!%p384_p8), %s1068_s17, 1  ;;  %v728_v3 = vlaneseq (!%p384_p8) }
  0x26   : > { %387 = sbr.rel (%p384_p8) target bundleno = 325 (0x145), region = 70  ;;  %s904_s8 = sshll.u32 (!%p384_p8), %s390_s5, 8  ;;  %v910_v33 = vcombine.high (!%p384_p8), %v1220_v32, %v1220_v32  ;;  %v909_v2 = vcombine.low (!%p384_p8), %v1220_v32, %v1220_v32 }
  0x27   : > { %s1224_s9 = scalar_lea.vmem (!%p384_p8), [#allocation3], %s904_s8  ;;  %p449_p9 = scmp.lt.s32.totalorder (!%p384_p8), %s905_s10, 3  ;;  %v729_v4 = vshrl.u32 (!%p384_p8), %v728_v3, 7 }
  0x28   : > { %v988_v34 = vld [vmem:[%s1224_s9 + $0x4] ss:$8 sps:$4 sm:$0xff] (!%p384_p8)   ;;  %708 = vmatprep.mubr.bf16.mxu0 (!%p384_p8), %v910_v33  ;;  %v990_v35 = vld [vmem:[%s1224_s9] ss:$8 sps:$4 sm:$0xff] (!%p384_p8)   ;;  %v991_v36 = vld [vmem:[%s1224_s9 + $0x14] ss:$8 sps:$4 sm:$0xff] (!%p384_p8)  }
  0x29   : > { %676 = vmatprep.subr.bf16.mxu0 (!%p384_p8), %v988_v34  ;;  %v993_v37 = vld [vmem:[%s1224_s9 + $0x10] ss:$8 sps:$4 sm:$0xff] (!%p384_p8)   ;;  %v994_v38 = vld [vmem:[%s1224_s9 + $0x24] ss:$8 sps:$4 sm:$0xff] (!%p384_p8)   ;;  %v996_v39 = vld [vmem:[%s1224_s9 + $0x20] ss:$8 sps:$4 sm:$0xff] (!%p384_p8)  }
  0x2a   : > { %677 = vmatpush1.bf16.msra.mxu0 (!%p384_p8), %v990_v35  ;;  %v997_v40 = vld [vmem:[%s1224_s9 + $0x34] ss:$8 sps:$4 sm:$0xff] (!%p384_p8)   ;;  %v999_v41 = vld [vmem:[%s1224_s9 + $0x30] ss:$8 sps:$4 sm:$0xff] (!%p384_p8)   ;;  %v1000_v42 = vld [vmem:[%s1224_s9 + $0x44] ss:$8 sps:$4 sm:$0xff] (!%p384_p8)  }
  0x2b   : > { %678 = vmatprep.subr.bf16.mxu0 (!%p384_p8), %v991_v36  ;;  %v1002_v43 = vld [vmem:[%s1224_s9 + $0x40] ss:$8 sps:$4 sm:$0xff] (!%p384_p8)   ;;  %v1003_v44 = vld [vmem:[%s1224_s9 + $0x54] ss:$8 sps:$4 sm:$0xff] (!%p384_p8)   ;;  %v1005_v45 = vld [vmem:[%s1224_s9 + $0x50] ss:$8 sps:$4 sm:$0xff] (!%p384_p8)  }
  0x2c   : > { %v1006_v46 = vld [vmem:[%s1224_s9 + $0x64] ss:$8 sps:$4 sm:$0xff] (!%p384_p8)   ;;  %v1008_v47 = vld [vmem:[%s1224_s9 + $0x60] ss:$8 sps:$4 sm:$0xff] (!%p384_p8)   ;;  %v1009_v48 = vld [vmem:[%s1224_s9 + $0x74] ss:$8 sps:$4 sm:$0xff] (!%p384_p8)  }
  0x2d   : > { %v1011_v49 = vld [vmem:[%s1224_s9 + $0x70] ss:$8 sps:$4 sm:$0xff]   ;;  %v1012_v50 = vld [vmem:[%s1224_s9 + $0x84] ss:$8 sps:$4 sm:$0xff]   ;;  %v1014_v51 = vld [vmem:[%s1224_s9 + $0x80] ss:$8 sps:$4 sm:$0xff]  }
  0x2e   : > { %679 = vmatpush1.bf16.msra.mxu0 %v993_v37  ;;  %v1015_v52 = vld [vmem:[%s1224_s9 + $0x94] ss:$8 sps:$4 sm:$0xff]   ;;  %v1017_v53 = vld [vmem:[%s1224_s9 + $0x90] ss:$8 sps:$4 sm:$0xff]   ;;  %v1018_v54 = vld [vmem:[%s1224_s9 + $0xa4] ss:$8 sps:$4 sm:$0xff]  }
  0x2f   : > { %680 = vmatprep.subr.bf16.mxu0 %v994_v38  ;;  %v1020_v55 = vld [vmem:[%s1224_s9 + $0xa0] ss:$8 sps:$4 sm:$0xff]   ;;  %v1021_v56 = vld [vmem:[%s1224_s9 + $0xb4] ss:$8 sps:$4 sm:$0xff]   ;;  %v1023_v57 = vld [vmem:[%s1224_s9 + $0xb0] ss:$8 sps:$4 sm:$0xff]  }
  0x30   : > { %v1024_v58 = vld [vmem:[%s1224_s9 + $0xc4] ss:$8 sps:$4 sm:$0xff]   ;;  %v1026_v59 = vld [vmem:[%s1224_s9 + $0xc0] ss:$8 sps:$4 sm:$0xff]   ;;  %v1027_v60 = vld [vmem:[%s1224_s9 + $0xd4] ss:$8 sps:$4 sm:$0xff]  }
  0x31   : > { %v1029_v61 = vld [vmem:[%s1224_s9 + $0xd0] ss:$8 sps:$4 sm:$0xff]   ;;  %v1030_v62 = vld [vmem:[%s1224_s9 + $0xe4] ss:$8 sps:$4 sm:$0xff]   ;;  %v1032_v63 = vld [vmem:[%s1224_s9 + $0xe0] ss:$8 sps:$4 sm:$0xff]  }
  0x32   : > { %681 = vmatpush1.bf16.msra.mxu0 %v996_v39  ;;  %v1033_v0 = vld [vmem:[%s1224_s9 + $0xf4] ss:$8 sps:$4 sm:$0xff]   ;;  %v1035_v1 = vld [vmem:[%s1224_s9 + $0xf0] ss:$8 sps:$4 sm:$0xff]   ;;  %s1297_s10 = smov (!%p449_p9, %s905_s10), 3  ;;  %v730_v5 = vsub.s32 0, %v729_v4 }
  0x33   : > { %682 = vmatprep.subr.bf16.mxu0 %v997_v40  ;;  %s451_s13 = scalar_lea.vmem %s1287_s2, %s1297_s10  ;;  %s456_s21 = scalar_lea.vmem %s1288_s3, %s1297_s10  ;;  %v734_v7 = vsub.s32 1, %v729_v4 }
  0x34   : > { %v726_v6 = vld [vmem:[%s451_s13] sm:$0x3]  ;;  %s908_s17 = sshll.u32 %s1297_s10, 2 }
  0x35   : > { %v740_v8 = vld [vmem:[%s456_s21] sm:$0x3]  ;;  %v731_v9 = vrot.slane %v726_v6, %v730_v5  ;;  %v735_v10 = vrot.slane %v726_v6, %v734_v7  ;;  %s466_s25 = scalar_lea.vmem %s1289_s4, %s908_s17 }
  0x36   : > { %683 = vmatpush1.bf16.msra.mxu0 %v999_v41  ;;  %v745_v11 = vrot.slane %v740_v8, %v730_v5  ;;  %v749_v13 = vrot.slane %v740_v8, %v734_v7 }
  0x37   : > { %684 = vmatprep.subr.bf16.mxu0 %v1000_v42 }
  0x3a   : > { %685 = vmatpush1.bf16.msra.mxu0 %v1002_v43 }
  0x3b   : > { %686 = vmatprep.subr.bf16.mxu0 %v1003_v44 }
  0x3e   : > { %687 = vmatpush1.bf16.msra.mxu0 %v1005_v45 }
  0x3f   : > { %688 = vmatprep.subr.bf16.mxu0 %v1006_v46 }
  0x42   : > { %689 = vmatpush1.bf16.msra.mxu0 %v1008_v47 }
  0x43   : > { %690 = vmatprep.subr.bf16.mxu0 %v1009_v48 }
  0x46   : > { %691 = vmatpush1.bf16.msra.mxu0 %v1011_v49 }
  0x47   : > { %692 = vmatprep.subr.bf16.mxu0 %v1012_v50 }
  0x4a   : > { %693 = vmatpush1.bf16.msra.mxu0 %v1014_v51 }
  0x4b   : > { %694 = vmatprep.subr.bf16.mxu0 %v1015_v52 }
  0x4e   : > { %695 = vmatpush1.bf16.msra.mxu0 %v1017_v53 }
  0x4f   : > { %696 = vmatprep.subr.bf16.mxu0 %v1018_v54 }
  0x52   : > { %697 = vmatpush1.bf16.msra.mxu0 %v1020_v55 }
  0x53   : > { %698 = vmatprep.subr.bf16.mxu0 %v1021_v56 }
  0x56   : > { %699 = vmatpush1.bf16.msra.mxu0 %v1023_v57 }
  0x57   : > { %700 = vmatprep.subr.bf16.mxu0 %v1024_v58 }
  0x5a   : > { %701 = vmatpush1.bf16.msra.mxu0 %v1026_v59 }
  0x5b   : > { %702 = vmatprep.subr.bf16.mxu0 %v1027_v60 }
  0x5e   : > { %703 = vmatpush1.bf16.msra.mxu0 %v1029_v61 }
  0x5f   : > { %704 = vmatprep.subr.bf16.mxu0 %v1030_v62 }
  0x62   : > { %705 = vmatpush1.bf16.msra.mxu0 %v1032_v63 }
  0x63   : > { %706 = vmatprep.subr.bf16.mxu0 %v1033_v0 }
  0x66   : > { %707 = vmatpush1.bf16.msra.mxu0 %v1035_v1 }
  0x69   : > { %709 = vmatmul.mubr.bf16.vlgmr.msra.gmra.mrb[0].mxu0 %v909_v2 }
 0x13c   : > { %v710_v12 = vpop.f32.mrb[0].mxu0 }
 0x13d   : > { %v738_v14 = vmul.f32 %v731_v9, %v710_v12  ;;  %v712_v15 = vpop.f32.mrb[1].mxu0 }
 0x13e   : > { %v739_v16 = vmul.f32 %v735_v10, %v712_v15  ;;  %v714_v17 = vpop.f32.mrb[2].mxu0 }
 0x13f   : > { %v752_v18 = vadd.f32 %v745_v11, %v738_v14  ;;  %v715_v19 = vpop.f32.mrb[3].mxu0 }
 0x140   : > { %v753_v20 = vadd.f32 %v749_v13, %v739_v16 }
 0x142   : > { %v947_v21 = vpack.c.bf16 %v753_v20, %v752_v18 }
 0x144   : > { %762 = vst [vmem:[%s466_s25] sm:$0xff] %v947_v21 }
 0x145 PF: > { %s14_s19 = sadd.s32 1, %s1076_s19   ;;  %s1290_s15 = smov %s1064_s16 }
 0x146   : > { %p11_p10 = scmp.ge.s32.totalorder %s14_s19, 4   ;;  %s1291_s16 = smov %s1138_s23 }
 0x147   : > { %s1292_s17 = smov %s1072_s18  ;;  %s1293_s18 = smov %s1295_s20 }
 0x148   :  { %13 = sbr.rel (!%p11_p10) target bundleno = 3 (0x3), region = 126 }

// kernel: resnet18_forward.39
= control target key start
LH: loop header
LB: loop body
LE: loop exit
PB: predicated region body
PF: predicated region fallthrough
CT: control target
= control target key end

     0   :  { %s1394_s15 = smov 0   ;;  %s1396_s16 = smov 0   ;;  %s1666_s0 = inlined_call_operand.vmem [shape: bf16[8,2304], index: 0, kind: input, shape index: {}]   ;;  %s1667_s1 = inlined_call_operand.vmem [shape: bf16[2304,512], index: 1, kind: input, shape index: {}]   ;;  %s1668_s2 = inlined_call_operand.vmem [shape: f32[1,512], index: 2, kind: input, shape index: {}]   ;;  %s1669_s3 = inlined_call_operand.vmem [shape: f32[1,512], index: 3, kind: input, shape index: {}]   ;;  %s1670_s4 = inlined_call_operand.vmem [shape: bf16[8,512], index: 4, kind: output, shape index: {}]  }
   0x1   :  { %s1398_s17 = smov 0   ;;  %s1400_s18 = smov 0  }
   0x2   :  { %s1402_s19 = smov 0   ;;  %s1404_s20 = smov 0  }
   0x3   :  { %s1406_s21 = smov 0  }
   0x4 LB: > { %s26_s22 = sadd.s32 1, %s1357_s19  ;;  %s29_s23 = sadd.s32 1, %s1361_s20  ;;  %s1365_s21 = sphi %s1406_s21, %s14_s21   ;;  %s1361_s20 = sphi %s1404_s20, %s1676_s20   ;;  %s1357_s19 = sphi %s1402_s19, %s1675_s19   ;;  %s1353_s18 = sphi %s1400_s18, %s1674_s18   ;;  %s1349_s17 = sphi %s1398_s17, %s1673_s17   ;;  %s1345_s16 = sphi %s1396_s16, %s1672_s16   ;;  %s1341_s15 = sphi %s1394_s15, %s1671_s15  }
   0x5   : > { %p27_p0 = scmp.ge.s32.totalorder %s26_s22, 6  ;;  %p77_p1 = scmp.ne.s32.totalorder %s1345_s16, %s1341_s15 }
   0x6   : > { %p78_p2 = scmp.eq.s32.totalorder %s1365_s21, 0  ;;  %s70_s27 = sadd.s32 1, %s1345_s16 }
   0x7   : > { %s1678_s22 = smov (%p27_p0, %s26_s22), 0  ;;  %s1680_s23 = smov (!%p27_p0, %s29_s23), %s1361_s20 }
   0x8   : > { %p79_p3 = por %p78_p2, %p77_p1  ;;  %p31_p4 = scmp.ge.s32.totalorder %s1680_s23, 2 }
   0x9   : > { %s65_s24 = ssub.s32 %s1357_s19, %s1678_s22  ;;  %p1108_p6 = scmp.ge.s32.totalorder %s1365_s21, 12 }
   0xa   : > { %s1682_s23 = smov (%p31_p4, %s1680_s23), 0 }
   0xb   : > { %s66_s25 = ssub.s32 %s1361_s20, %s1682_s23  ;;  %183 = sbr.rel (%p1108_p6) target bundleno = 50 (0x32), region = 16 }
   0xc   : > { %s67_s26 = sor.u32 %s66_s25, %s65_s24 }
   0xd   : > { %p68_p5 = scmp.eq.s32.totalorder %s67_s26, 0 }
   0xf   : > { %s1445_s28 = scalar_select %p68_p5, %s1345_s16, %s70_s27  }
  0x12   : > { %199 = sbr.rel (!%p79_p3) target bundleno = 50 (0x32), region = 24  ;;  %s201_s29 = sand.u32 (%p79_p3), 1, %s1345_s16  }
  0x13   : > { %s1176_s30 = smul.u32 (%p79_p3), 384, %s201_s29  ;;  %s1109_s5 = sshll.u32 (%p79_p3), %s1361_s20, 1 }
  0x14   : > { %s1174_s6 = smul.u32 (%p79_p3), 192, %s1357_s19 }
  0x15   : > { %s1459_s12 = scalar_lea.vmem (%p79_p3), [#allocation3], %s1176_s30 }
  0x16   : > { %s207_s7 = sadd.s32 (%p79_p3), %s1174_s6, %s1109_s5 }
  0x17   : > { %s1111_s8 = sshll.u32 (%p79_p3), %s207_s7, 2 }
  0x18   : > { %s1454_s11 = scalar_lea.vmem (%p79_p3), %s1667_s1, %s1111_s8 }
  0x19   : > { %v331_v0 = vld [vmem:[%s1454_s11] sm:$0xff]  ;;  %v333_v1 = vld [vmem:[%s1454_s11 + $0x10] sm:$0xff] }
  0x1a   : > { %v335_v2 = vld [vmem:[%s1454_s11 + $0x20] sm:$0xff]  ;;  %332 = vst [vmem:[%s1459_s12] sm:$0xff] %v331_v0  ;;  %334 = vst [vmem:[%s1459_s12 + $0x8] sm:$0xff] %v333_v1  ;;  %v337_v3 = vld [vmem:[%s1454_s11 + $0x30] sm:$0xff] }
  0x1b   : > { %336 = vst [vmem:[%s1459_s12 + $0x10] sm:$0xff] %v335_v2  ;;  %v339_v4 = vld [vmem:[%s1454_s11 + $0x40] sm:$0xff]  ;;  %v341_v5 = vld [vmem:[%s1454_s11 + $0x50] sm:$0xff]  ;;  %338 = vst [vmem:[%s1459_s12 + $0x18] sm:$0xff] %v337_v3 }
  0x1c   : > { %340 = vst [vmem:[%s1459_s12 + $0x20] sm:$0xff] %v339_v4  ;;  %342 = vst [vmem:[%s1459_s12 + $0x28] sm:$0xff] %v341_v5  ;;  %v343_v6 = vld [vmem:[%s1454_s11 + $0x60] sm:$0xff]  ;;  %v345_v7 = vld [vmem:[%s1454_s11 + $0x70] sm:$0xff] }
  0x1d   : > { %v347_v8 = vld [vmem:[%s1454_s11 + $0x80] sm:$0xff]  ;;  %344 = vst [vmem:[%s1459_s12 + $0x30] sm:$0xff] %v343_v6  ;;  %346 = vst [vmem:[%s1459_s12 + $0x38] sm:$0xff] %v345_v7  ;;  %v349_v9 = vld [vmem:[%s1454_s11 + $0x90] sm:$0xff] }
  0x1e   : > { %348 = vst [vmem:[%s1459_s12 + $0x40] sm:$0xff] %v347_v8  ;;  %v351_v10 = vld [vmem:[%s1454_s11 + $0xa0] sm:$0xff]  ;;  %v353_v11 = vld [vmem:[%s1454_s11 + $0xb0] sm:$0xff]  ;;  %350 = vst [vmem:[%s1459_s12 + $0x48] sm:$0xff] %v349_v9 }
  0x1f   : > { %352 = vst [vmem:[%s1459_s12 + $0x50] sm:$0xff] %v351_v10  ;;  %354 = vst [vmem:[%s1459_s12 + $0x58] sm:$0xff] %v353_v11  ;;  %v355_v12 = vld [vmem:[%s1454_s11 + $0xc0] sm:$0xff]  ;;  %v357_v13 = vld [vmem:[%s1454_s11 + $0xd0] sm:$0xff] }
  0x20   : > { %v359_v14 = vld [vmem:[%s1454_s11 + $0xe0] sm:$0xff]  ;;  %356 = vst [vmem:[%s1459_s12 + $0x60] sm:$0xff] %v355_v12  ;;  %358 = vst [vmem:[%s1459_s12 + $0x68] sm:$0xff] %v357_v13  ;;  %v361_v15 = vld [vmem:[%s1454_s11 + $0xf0] sm:$0xff] }
  0x21   : > { %360 = vst [vmem:[%s1459_s12 + $0x70] sm:$0xff] %v359_v14  ;;  %v363_v16 = vld [vmem:[%s1454_s11 + $0x100] sm:$0xff]  ;;  %v365_v17 = vld [vmem:[%s1454_s11 + $0x110] sm:$0xff]  ;;  %362 = vst [vmem:[%s1459_s12 + $0x78] sm:$0xff] %v361_v15 }
  0x22   : > { %364 = vst [vmem:[%s1459_s12 + $0x80] sm:$0xff] %v363_v16  ;;  %366 = vst [vmem:[%s1459_s12 + $0x88] sm:$0xff] %v365_v17  ;;  %v367_v18 = vld [vmem:[%s1454_s11 + $0x120] sm:$0xff]  ;;  %v369_v19 = vld [vmem:[%s1454_s11 + $0x130] sm:$0xff] }
  0x23   : > { %v371_v20 = vld [vmem:[%s1454_s11 + $0x140] sm:$0xff]  ;;  %368 = vst [vmem:[%s1459_s12 + $0x90] sm:$0xff] %v367_v18  ;;  %370 = vst [vmem:[%s1459_s12 + $0x98] sm:$0xff] %v369_v19  ;;  %v373_v21 = vld [vmem:[%s1454_s11 + $0x150] sm:$0xff] }
  0x24   : > { %372 = vst [vmem:[%s1459_s12 + $0xa0] sm:$0xff] %v371_v20  ;;  %v375_v22 = vld [vmem:[%s1454_s11 + $0x160] sm:$0xff]  ;;  %v377_v23 = vld [vmem:[%s1454_s11 + $0x170] sm:$0xff]  ;;  %374 = vst [vmem:[%s1459_s12 + $0xa8] sm:$0xff] %v373_v21 }
  0x25   : > { %376 = vst [vmem:[%s1459_s12 + $0xb0] sm:$0xff] %v375_v22  ;;  %378 = vst [vmem:[%s1459_s12 + $0xb8] sm:$0xff] %v377_v23  ;;  %v379_v24 = vld [vmem:[%s1454_s11 + $0x180] sm:$0xff]  ;;  %v381_v25 = vld [vmem:[%s1454_s11 + $0x190] sm:$0xff] }
  0x26   : > { %v383_v26 = vld [vmem:[%s1454_s11 + $0x1a0] sm:$0xff]  ;;  %380 = vst [vmem:[%s1459_s12 + $0xc0] sm:$0xff] %v379_v24  ;;  %382 = vst [vmem:[%s1459_s12 + $0xc8] sm:$0xff] %v381_v25  ;;  %v385_v27 = vld [vmem:[%s1454_s11 + $0x1b0] sm:$0xff] }
  0x27   : > { %384 = vst [vmem:[%s1459_s12 + $0xd0] sm:$0xff] %v383_v26  ;;  %v387_v28 = vld [vmem:[%s1454_s11 + $0x1c0] sm:$0xff]  ;;  %v389_v29 = vld [vmem:[%s1454_s11 + $0x1d0] sm:$0xff]  ;;  %386 = vst [vmem:[%s1459_s12 + $0xd8] sm:$0xff] %v385_v27 }
  0x28   : > { %388 = vst [vmem:[%s1459_s12 + $0xe0] sm:$0xff] %v387_v28  ;;  %390 = vst [vmem:[%s1459_s12 + $0xe8] sm:$0xff] %v389_v29  ;;  %v391_v30 = vld [vmem:[%s1454_s11 + $0x1e0] sm:$0xff]  ;;  %v393_v31 = vld [vmem:[%s1454_s11 + $0x1f0] sm:$0xff] }
  0x29   : > { %v395_v32 = vld [vmem:[%s1454_s11 + $0x200] sm:$0xff]  ;;  %392 = vst [vmem:[%s1459_s12 + $0xf0] sm:$0xff] %v391_v30  ;;  %394 = vst [vmem:[%s1459_s12 + $0xf8] sm:$0xff] %v393_v31  ;;  %v397_v33 = vld [vmem:[%s1454_s11 + $0x210] sm:$0xff] }
  0x2a   : > { %396 = vst [vmem:[%s1459_s12 + $0x100] sm:$0xff] %v395_v32  ;;  %v399_v34 = vld [vmem:[%s1454_s11 + $0x220] sm:$0xff]  ;;  %v401_v35 = vld [vmem:[%s1454_s11 + $0x230] sm:$0xff]  ;;  %398 = vst [vmem:[%s1459_s12 + $0x108] sm:$0xff] %v397_v33 }
  0x2b   : > { %400 = vst [vmem:[%s1459_s12 + $0x110] sm:$0xff] %v399_v34  ;;  %402 = vst [vmem:[%s1459_s12 + $0x118] sm:$0xff] %v401_v35  ;;  %v403_v36 = vld [vmem:[%s1454_s11 + $0x240] sm:$0xff]  ;;  %v405_v37 = vld [vmem:[%s1454_s11 + $0x250] sm:$0xff] }
  0x2c   : > { %v407_v38 = vld [vmem:[%s1454_s11 + $0x260] sm:$0xff]  ;;  %404 = vst [vmem:[%s1459_s12 + $0x120] sm:$0xff] %v403_v36  ;;  %406 = vst [vmem:[%s1459_s12 + $0x128] sm:$0xff] %v405_v37  ;;  %v409_v39 = vld [vmem:[%s1454_s11 + $0x270] sm:$0xff] }
  0x2d   : > { %408 = vst [vmem:[%s1459_s12 + $0x130] sm:$0xff] %v407_v38  ;;  %v411_v40 = vld [vmem:[%s1454_s11 + $0x280] sm:$0xff]  ;;  %v413_v41 = vld [vmem:[%s1454_s11 + $0x290] sm:$0xff]  ;;  %410 = vst [vmem:[%s1459_s12 + $0x138] sm:$0xff] %v409_v39 }
  0x2e   : > { %412 = vst [vmem:[%s1459_s12 + $0x140] sm:$0xff] %v411_v40  ;;  %414 = vst [vmem:[%s1459_s12 + $0x148] sm:$0xff] %v413_v41  ;;  %v415_v42 = vld [vmem:[%s1454_s11 + $0x2a0] sm:$0xff]  ;;  %v417_v43 = vld [vmem:[%s1454_s11 + $0x2b0] sm:$0xff] }
  0x2f   : > { %v419_v44 = vld [vmem:[%s1454_s11 + $0x2c0] sm:$0xff]  ;;  %416 = vst [vmem:[%s1459_s12 + $0x150] sm:$0xff] %v415_v42  ;;  %418 = vst [vmem:[%s1459_s12 + $0x158] sm:$0xff] %v417_v43  ;;  %v421_v45 = vld [vmem:[%s1454_s11 + $0x2d0] sm:$0xff] }
  0x30   : > { %420 = vst [vmem:[%s1459_s12 + $0x160] sm:$0xff] %v419_v44  ;;  %v423_v46 = vld [vmem:[%s1454_s11 + $0x2e0] sm:$0xff]  ;;  %v425_v47 = vld [vmem:[%s1454_s11 + $0x2f0] sm:$0xff]  ;;  %422 = vst [vmem:[%s1459_s12 + $0x168] sm:$0xff] %v421_v45 }
  0x31   : > { %424 = vst [vmem:[%s1459_s12 + $0x170] sm:$0xff] %v423_v46  ;;  %426 = vst [vmem:[%s1459_s12 + $0x178] sm:$0xff] %v425_v47 }
  0x32 PF: > { %p1112_p7 = scmp.ge.s32.totalorder %s1365_s21, 1  ;;  %p447_p8 = scmp.lt.s32.totalorder %s1365_s21, 13 }
  0x34   : > { %p448_p9 = pnand %p1112_p7, %p447_p8 }
  0x35   : > { %s454_s13 = sand.u32 (!%p448_p9), 1, %s1341_s15   ;;  %s500_s14 = smul.u32 (!%p448_p9), 3, %s1349_s17 }
  0x36   : > { %451 = sbr.rel (%p448_p9) target bundleno = 370 (0x172), region = 70  ;;  %s1114_s25 = sshll.u32 (!%p448_p9), %s1353_s18, 1 }
  0x37   : > { %s1177_s24 = smul.u32 (!%p448_p9), 384, %s454_s13  ;;  %p503_p10 = scmp.lt.s32.totalorder (!%p448_p9), %s500_s14, 17 }
  0x38   : > { %p513_p11 = scmp.lt.s32.totalorder (!%p448_p9), %s1114_s25, 3  ;;  %p1118_p12 = scmp.ne.s32.totalorder (!%p448_p9), %s1349_s17, 0 }
  0x39   : > { %s1580_s13 = scalar_lea.vmem (!%p448_p9), [#allocation3], %s1177_s24 }
  0x3d   : > { %s1684_s14 = smov (!%p503_p10, %s500_s14), 17  ;;  %s1686_s25 = smov (!%p513_p11, %s1114_s25), 3 }
  0x3e   : > { %s1113_s26 = sshll.u32 %s1684_s14, 2  ;;  %s515_s15 = scalar_lea.vmem %s1668_s2, %s1686_s25  ;;  %v1367_v48 = vmov (!%p1118_p12), 0.0  }
  0x3f   : > { %s1564_s30 = scalar_lea.vmem %s1666_s0, %s1113_s26  ;;  %s520_s8 = scalar_lea.vmem %s1669_s3, %s1686_s25  ;;  %537 = vst [vmem:[#allocation2] sm:$0xff] (!%p1118_p12), %v1367_v48  ;;  %538 = vst [vmem:[#allocation2 + $0x8] sm:$0xff] (!%p1118_p12), %v1367_v48 }
  0x40   : > { %s1117_s9 = sshll.u32 %s1686_s25, 2  ;;  %536 = sbr.rel (%p1118_p12) target bundleno = 71 (0x47), region = 78 }
  0x41   : > { %s1578_s12 = scalar_lea.vmem %s1670_s4, %s1117_s9 }
  0x47 PF: > { %v1236_v49 = vld [vmem:[%s1580_s13 + $0x4] ss:$8 sps:$4 sm:$0xff]   ;;  %v1238_v50 = vld [vmem:[%s1580_s13] ss:$8 sps:$4 sm:$0xff]   ;;  %v1368_v51 = vmov 0   ;;  %v541_v18 = vld [vmem:[%s1564_s30] sm:$0xff] }
  0x48   : > { %915 = vmatprep.mubr.bf16.mxu1 %v1368_v51  ;;  %842 = vmatprep.subr.bf16.mxu0 %v1236_v49  ;;  %v1239_v52 = vld [vmem:[%s1580_s13 + $0x14] ss:$8 sps:$4 sm:$0xff]   ;;  %v1241_v53 = vld [vmem:[%s1580_s13 + $0x10] ss:$8 sps:$4 sm:$0xff]   ;;  %v1242_v54 = vld [vmem:[%s1580_s13 + $0x24] ss:$8 sps:$4 sm:$0xff]   ;;  %v1120_v19 = vcombine.high %v541_v18, %v541_v18  ;;  %v1119_v37 = vcombine.low %v541_v18, %v541_v18 }
  0x49   : > { %843 = vmatpush1.bf16.msra.mxu0 %v1238_v50  ;;  %v1244_v55 = vld [vmem:[%s1580_s13 + $0x20] ss:$8 sps:$4 sm:$0xff]   ;;  %v1245_v56 = vld [vmem:[%s1580_s13 + $0x34] ss:$8 sps:$4 sm:$0xff]   ;;  %v1247_v57 = vld [vmem:[%s1580_s13 + $0x30] ss:$8 sps:$4 sm:$0xff]  }
  0x4a   : > { %844 = vmatprep.subr.bf16.mxu0 %v1239_v52  ;;  %v1260_v58 = vld [vmem:[%s1580_s13 + $0x104] ss:$8 sps:$4 sm:$0xff]   ;;  %v1262_v59 = vld [vmem:[%s1580_s13 + $0x100] ss:$8 sps:$4 sm:$0xff]   ;;  %v1266_v61 = vld [vmem:[%s1580_s13 + $0x114] ss:$8 sps:$4 sm:$0xff]   ;;  %874 = vmatprep.mubr.bf16.mxu0 %v1120_v19 }
  0x4b   : > { %v1248_v60 = vld [vmem:[%s1580_s13 + $0x44] ss:$8 sps:$4 sm:$0xff]   ;;  %883 = vmatprep.subr.bf16.mxu1 %v1260_v58  ;;  %v1268_v62 = vld [vmem:[%s1580_s13 + $0x110] ss:$8 sps:$4 sm:$0xff]   ;;  %v1250_v63 = vld [vmem:[%s1580_s13 + $0x40] ss:$8 sps:$4 sm:$0xff]  }
  0x4c   : > { %884 = vmatpush1.bf16.msra.mxu1 %v1262_v59  ;;  %v1251_v0 = vld [vmem:[%s1580_s13 + $0x54] ss:$8 sps:$4 sm:$0xff]   ;;  %v1272_v1 = vld [vmem:[%s1580_s13 + $0x124] ss:$8 sps:$4 sm:$0xff]   ;;  %v1274_v2 = vld [vmem:[%s1580_s13 + $0x120] ss:$8 sps:$4 sm:$0xff]  }
  0x4d   : > { %845 = vmatpush1.bf16.msra.mxu0 %v1241_v53  ;;  %885 = vmatprep.subr.bf16.mxu1 %v1266_v61  ;;  %v1253_v3 = vld [vmem:[%s1580_s13 + $0x50] ss:$8 sps:$4 sm:$0xff]   ;;  %v1278_v4 = vld [vmem:[%s1580_s13 + $0x134] ss:$8 sps:$4 sm:$0xff]   ;;  %v1254_v5 = vld [vmem:[%s1580_s13 + $0x64] ss:$8 sps:$4 sm:$0xff]  }
  0x4e   : > { %846 = vmatprep.subr.bf16.mxu0 %v1242_v54  ;;  %v1280_v6 = vld [vmem:[%s1580_s13 + $0x130] ss:$8 sps:$4 sm:$0xff]   ;;  %v1256_v7 = vld [vmem:[%s1580_s13 + $0x60] ss:$8 sps:$4 sm:$0xff]   ;;  %v1284_v8 = vld [vmem:[%s1580_s13 + $0x144] ss:$8 sps:$4 sm:$0xff]  }
  0x4f   : > { %v1257_v9 = vld [vmem:[%s1580_s13 + $0x74] ss:$8 sps:$4 sm:$0xff]   ;;  %v1286_v10 = vld [vmem:[%s1580_s13 + $0x140] ss:$8 sps:$4 sm:$0xff]   ;;  %v1259_v11 = vld [vmem:[%s1580_s13 + $0x70] ss:$8 sps:$4 sm:$0xff]  }
  0x50   : > { %886 = vmatpush1.bf16.msra.mxu1 %v1268_v62  ;;  %v1290_v12 = vld [vmem:[%s1580_s13 + $0x154] ss:$8 sps:$4 sm:$0xff]   ;;  %v1263_v13 = vld [vmem:[%s1580_s13 + $0x84] ss:$8 sps:$4 sm:$0xff]   ;;  %v1292_v14 = vld [vmem:[%s1580_s13 + $0x150] ss:$8 sps:$4 sm:$0xff]  }
  0x51   : > { %847 = vmatpush1.bf16.msra.mxu0 %v1244_v55  ;;  %887 = vmatprep.subr.bf16.mxu1 %v1272_v1  ;;  %v1265_v15 = vld [vmem:[%s1580_s13 + $0x80] ss:$8 sps:$4 sm:$0xff]   ;;  %v1296_v16 = vld [vmem:[%s1580_s13 + $0x164] ss:$8 sps:$4 sm:$0xff]   ;;  %v1269_v17 = vld [vmem:[%s1580_s13 + $0x94] ss:$8 sps:$4 sm:$0xff]  }
  0x52   : > { %848 = vmatprep.subr.bf16.mxu0 %v1245_v56  ;;  %v1298_v20 = vld [vmem:[%s1580_s13 + $0x160] ss:$8 sps:$4 sm:$0xff]   ;;  %v1271_v21 = vld [vmem:[%s1580_s13 + $0x90] ss:$8 sps:$4 sm:$0xff]   ;;  %v1302_v22 = vld [vmem:[%s1580_s13 + $0x174] ss:$8 sps:$4 sm:$0xff]  }
  0x53   : > { %v1275_v23 = vld [vmem:[%s1580_s13 + $0xa4] ss:$8 sps:$4 sm:$0xff]   ;;  %v1304_v24 = vld [vmem:[%s1580_s13 + $0x170] ss:$8 sps:$4 sm:$0xff]   ;;  %v1277_v25 = vld [vmem:[%s1580_s13 + $0xa0] ss:$8 sps:$4 sm:$0xff]  }
  0x54   : > { %888 = vmatpush1.bf16.msra.mxu1 %v1274_v2  ;;  %v1281_v26 = vld [vmem:[%s1580_s13 + $0xb4] ss:$8 sps:$4 sm:$0xff]   ;;  %v1308_v27 = vld [vmem:[%s1564_s30 + $0x8] ss:$0 sps:$4 sm:$0xff]   ;;  %v1287_v29 = vld [vmem:[%s1580_s13 + $0xc4] ss:$8 sps:$4 sm:$0xff]  }
  0x55   : > { %849 = vmatpush1.bf16.msra.mxu0 %v1247_v57  ;;  %889 = vmatprep.subr.bf16.mxu1 %v1278_v4  ;;  %v1283_v28 = vld [vmem:[%s1580_s13 + $0xb0] ss:$8 sps:$4 sm:$0xff]   ;;  %v1289_v30 = vld [vmem:[%s1580_s13 + $0xc0] ss:$8 sps:$4 sm:$0xff]   ;;  %v1293_v31 = vld [vmem:[%s1580_s13 + $0xd4] ss:$8 sps:$4 sm:$0xff]  }
  0x56   : > { %850 = vmatprep.subr.bf16.mxu0 %v1248_v60  ;;  %v1295_v32 = vld [vmem:[%s1580_s13 + $0xd0] ss:$8 sps:$4 sm:$0xff]   ;;  %v1299_v33 = vld [vmem:[%s1580_s13 + $0xe4] ss:$8 sps:$4 sm:$0xff]   ;;  %v1301_v34 = vld [vmem:[%s1580_s13 + $0xe0] ss:$8 sps:$4 sm:$0xff]  }
  0x57   : > { %v1305_v35 = vld [vmem:[%s1580_s13 + $0xf4] ss:$8 sps:$4 sm:$0xff]   ;;  %v1307_v36 = vld [vmem:[%s1580_s13 + $0xf0] ss:$8 sps:$4 sm:$0xff]   ;;  %p1170_p13 = scmp.ne.s32.totalorder %s1349_s17, 5 }
  0x58   : > { %890 = vmatpush1.bf16.msra.mxu1 %v1280_v6  ;;  %v539_v42 = vld [vmem:[#allocation2] sm:$0xff]  ;;  %v540_v45 = vld [vmem:[#allocation2 + $0x8] sm:$0xff]  ;;  %v936_v52 = vlaneseq (!%p1170_p13) }
  0x59   : > { %851 = vmatpush1.bf16.msra.mxu0 %v1250_v63  ;;  %891 = vmatprep.subr.bf16.mxu1 %v1284_v8  ;;  %v934_v54 = vld [vmem:[%s515_s15] sm:$0x3] (!%p1170_p13) }
  0x5a   : > { %852 = vmatprep.subr.bf16.mxu0 %v1251_v0  ;;  %v937_v53 = vshrl.u32 (!%p1170_p13), %v936_v52, 7  ;;  %v948_v55 = vld [vmem:[%s520_s8] sm:$0x3] (!%p1170_p13) }
  0x5c   : > { %892 = vmatpush1.bf16.msra.mxu1 %v1286_v10  ;;  %v938_v56 = vsub.s32 (!%p1170_p13), 0, %v937_v53  ;;  %v942_v57 = vsub.s32 (!%p1170_p13), 1, %v937_v53 }
  0x5d   : > { %853 = vmatpush1.bf16.msra.mxu0 %v1253_v3  ;;  %893 = vmatprep.subr.bf16.mxu1 %v1290_v12 }
  0x5e   : > { %854 = vmatprep.subr.bf16.mxu0 %v1254_v5  ;;  %v939_v60 = vrot.slane (!%p1170_p13), %v934_v54, %v938_v56  ;;  %v943_v61 = vrot.slane (!%p1170_p13), %v934_v54, %v942_v57  ;;  %v953_v62 = vrot.slane (!%p1170_p13), %v948_v55, %v938_v56  ;;  %v957_v63 = vrot.slane (!%p1170_p13), %v948_v55, %v942_v57 }
  0x60   : > { %894 = vmatpush1.bf16.msra.mxu1 %v1292_v14 }
  0x61   : > { %855 = vmatpush1.bf16.msra.mxu0 %v1256_v7  ;;  %895 = vmatprep.subr.bf16.mxu1 %v1296_v16 }
  0x62   : > { %856 = vmatprep.subr.bf16.mxu0 %v1257_v9 }
  0x64   : > { %896 = vmatpush1.bf16.msra.mxu1 %v1298_v20 }
  0x65   : > { %857 = vmatpush1.bf16.msra.mxu0 %v1259_v11  ;;  %897 = vmatprep.subr.bf16.mxu1 %v1302_v22 }
  0x66   : > { %858 = vmatprep.subr.bf16.mxu0 %v1263_v13 }
  0x68   : > { %898 = vmatpush1.bf16.msra.mxu1 %v1304_v24 }
  0x69   : > { %859 = vmatpush1.bf16.msra.mxu0 %v1265_v15 }
  0x6a   : > { %860 = vmatprep.subr.bf16.mxu0 %v1269_v17 }
  0x6b   : > { %916 = vmatmul.mubr.bf16.vlgmr.msra.gmra.mrb[0].mxu1 %v1308_v27 }
  0x6d   : > { %861 = vmatpush1.bf16.msra.mxu0 %v1271_v21 }
  0x6e   : > { %862 = vmatprep.subr.bf16.mxu0 %v1275_v23 }
  0x71   : > { %863 = vmatpush1.bf16.msra.mxu0 %v1277_v25 }
  0x72   : > { %864 = vmatprep.subr.bf16.mxu0 %v1281_v26 }
  0x75   : > { %865 = vmatpush1.bf16.msra.mxu0 %v1283_v28 }
  0x76   : > { %866 = vmatprep.subr.bf16.mxu0 %v1287_v29 }
  0x79   : > { %867 = vmatpush1.bf16.msra.mxu0 %v1289_v30 }
  0x7a   : > { %868 = vmatprep.subr.bf16.mxu0 %v1293_v31 }
  0x7d   : > { %869 = vmatpush1.bf16.msra.mxu0 %v1295_v32 }
  0x7e   : > { %870 = vmatprep.subr.bf16.mxu0 %v1299_v33 }
  0x81   : > { %871 = vmatpush1.bf16.msra.mxu0 %v1301_v34 }
  0x82   : > { %872 = vmatprep.subr.bf16.mxu0 %v1305_v35 }
  0x85   : > { %873 = vmatpush1.bf16.msra.mxu0 %v1307_v36 }
  0x88   : > { %875 = vmatmul.mubr.bf16.vlgmr.msra.gmra.mrb[0].mxu0 %v1119_v37 }
 0x13e   : > { %v917_v38 = vpop.f32.mrb[0].mxu1 }
 0x13f   : > { %v919_v39 = vpop.f32.mrb[1].mxu1 }
 0x140   : > { %v921_v40 = vpop.f32.mrb[2].mxu1 }
 0x141   : > { %v922_v41 = vpop.f32.mrb[3].mxu1 }
 0x15b   : > { %v876_v43 = vpop.f32.mrb[0].mxu0  ;;  %931 = sbr.rel (%p1170_p13) target bundleno = 370 (0x172), region = 82 }
 0x15c   : > { %v918_v44 = vadd.f32 %v917_v38, %v876_v43  ;;  %v878_v46 = vpop.f32.mrb[1].mxu0 }
 0x15d   : > { %v920_v47 = vadd.f32 %v919_v39, %v878_v46  ;;  %v880_v48 = vpop.f32.mrb[2].mxu0 }
 0x15e   : > { %v924_v49 = vadd.f32 %v918_v44, %v539_v42  ;;  %v881_v50 = vpop.f32.mrb[3].mxu0 }
 0x15f   : > { %v925_v51 = vadd.f32 %v920_v47, %v540_v45 }
 0x160   : > { %926 = vst [vmem:[#allocation2] sm:$0xff] %v924_v49 }
 0x161   : > { %927 = vst [vmem:[#allocation2 + $0x8] sm:$0xff] %v925_v51 }
 0x167   : > { %v932_v58 = vld [vmem:[#allocation2] sm:$0xff] }
 0x168   : > { %v933_v59 = vld [vmem:[#allocation2 + $0x8] sm:$0xff]  ;;  %v946_v0 = vmul.f32 %v939_v60, %v932_v58 }
 0x169   : > { %v947_v1 = vmul.f32 %v943_v61, %v933_v59 }
 0x16a   : > { %v960_v2 = vadd.f32 %v953_v62, %v946_v0 }
 0x16b   : > { %v961_v3 = vadd.f32 %v957_v63, %v947_v1 }
 0x16c   : > { %v962_v4 = vmax.f32 %v960_v2, 0.0 }
 0x16d   : > { %v963_v5 = vmax.f32 %v961_v3, 0.0 }
 0x16f   : > { %v1175_v6 = vpack.c.bf16 %v963_v5, %v962_v4 }
 0x171   : > { %972 = vst [vmem:[%s1578_s12] sm:$0xff] %v1175_v6 }
 0x172 PF: > { %s14_s21 = sadd.s32 1, %s1365_s21   ;;  %s1671_s15 = smov %s1345_s16 }
 0x173   : > { %p11_p0 = scmp.ge.s32.totalorder %s14_s21, 14   ;;  %s1672_s16 = smov %s1445_s28 }
 0x174   : > { %s1673_s17 = smov %s1357_s19  ;;  %s1674_s18 = smov %s1361_s20 }
 0x175   : > { %s1675_s19 = smov %s1678_s22  ;;  %s1676_s20 = smov %s1682_s23 }
 0x176   :  { %13 = sbr.rel (!%p11_p0) target bundleno = 4 (0x4), region = 126 }

// kernel: resnet18_forward.41
= control target key start
LH: loop header
LB: loop body
LE: loop exit
PB: predicated region body
PF: predicated region fallthrough
CT: control target
= control target key end

     0   :  { %s1691_s18 = smov 0   ;;  %s1693_s19 = smov 0   ;;  %s2017_s0 = inlined_call_operand.vmem [shape: bf16[8,4608], index: 0, kind: input, shape index: {}]   ;;  %s2018_s1 = inlined_call_operand.vmem [shape: bf16[4608,512], index: 1, kind: input, shape index: {}]   ;;  %s2019_s2 = inlined_call_operand.vmem [shape: f32[1,512], index: 2, kind: input, shape index: {}]   ;;  %s2020_s3 = inlined_call_operand.vmem [shape: f32[1,512], index: 3, kind: input, shape index: {}]   ;;  %s2021_s4 = inlined_call_operand.vmem [shape: bf16[8,512], index: 4, kind: input, shape index: {}]   ;;  %s2022_s5 = inlined_call_operand.vmem [shape: bf16[8,512], index: 5, kind: output, shape index: {}]  }
   0x1   :  { %s1695_s20 = smov 0   ;;  %s1697_s21 = smov 0  }
   0x2   :  { %s1699_s22 = smov 0   ;;  %s1701_s23 = smov 0  }
   0x3   :  { %s1703_s24 = smov 0  }
   0x4 LB: > { %s27_s25 = sadd.s32 1, %s1650_s22  ;;  %s30_s26 = sadd.s32 1, %s1654_s23  ;;  %s1658_s24 = sphi %s1703_s24, %s15_s24   ;;  %s1654_s23 = sphi %s1701_s23, %s2028_s23   ;;  %s1650_s22 = sphi %s1699_s22, %s2027_s22   ;;  %s1646_s21 = sphi %s1697_s21, %s2026_s21   ;;  %s1642_s20 = sphi %s1695_s20, %s2025_s20   ;;  %s1638_s19 = sphi %s1693_s19, %s2024_s19   ;;  %s1634_s18 = sphi %s1691_s18, %s2023_s18  }
   0x5   : > { %p28_p0 = scmp.ge.s32.totalorder %s27_s25, 9  ;;  %p78_p1 = scmp.ne.s32.totalorder %s1638_s19, %s1634_s18 }
   0x6   : > { %p79_p2 = scmp.eq.s32.totalorder %s1658_s24, 0  ;;  %s71_s30 = sadd.s32 1, %s1638_s19 }
   0x7   : > { %s2030_s25 = smov (%p28_p0, %s27_s25), 0  ;;  %s2032_s26 = smov (!%p28_p0, %s30_s26), %s1654_s23 }
   0x8   : > { %p80_p3 = por %p79_p2, %p78_p1  ;;  %p32_p4 = scmp.ge.s32.totalorder %s2032_s26, 2 }
   0x9   : > { %s66_s27 = ssub.s32 %s1650_s22, %s2030_s25  ;;  %p1356_p6 = scmp.ge.s32.totalorder %s1658_s24, 18 }
   0xa   : > { %s2034_s26 = smov (%p32_p4, %s2032_s26), 0 }
   0xb   : > { %s67_s28 = ssub.s32 %s1654_s23, %s2034_s26  ;;  %212 = sbr.rel (%p1356_p6) target bundleno = 57 (0x39), region = 16 }
   0xc   : > { %s68_s29 = sor.u32 %s67_s28, %s66_s27 }
   0xd   : > { %p69_p5 = scmp.eq.s32.totalorder %s68_s29, 0 }
   0xf   : > { %s1742_s6 = scalar_select %p69_p5, %s1638_s19, %s71_s30  }
  0x12   : > { %228 = sbr.rel (!%p80_p3) target bundleno = 57 (0x39), region = 24  ;;  %s230_s7 = sand.u32 (%p80_p3), 1, %s1638_s19  }
  0x13   : > { %s1359_s8 = sshll.u32 (%p80_p3), %s1654_s23, 1  ;;  %s1357_s9 = sshll.u32 (%p80_p3), %s230_s7, 9 }
  0x14   : > { %s1445_s10 = sshll.u32 (%p80_p3), %s1650_s22, 8  ;;  %s1756_s16 = scalar_lea.vmem (%p80_p3), [#allocation3], %s1357_s9 }
  0x15   : > { %s236_s11 = sadd.s32 (%p80_p3), %s1445_s10, %s1359_s8 }
  0x16   : > { %s1361_s12 = sshll.u32 (%p80_p3), %s236_s11, 2 }
  0x17   : > { %s1751_s15 = scalar_lea.vmem (%p80_p3), %s2018_s1, %s1361_s12 }
  0x18   : > { %v392_v0 = vld [vmem:[%s1751_s15] sm:$0xff] (%p80_p3)  ;;  %v394_v1 = vld [vmem:[%s1751_s15 + $0x10] sm:$0xff] (%p80_p3) }
  0x19   : > { %v396_v2 = vld [vmem:[%s1751_s15 + $0x20] sm:$0xff]  ;;  %393 = vst [vmem:[%s1756_s16] sm:$0xff] %v392_v0  ;;  %395 = vst [vmem:[%s1756_s16 + $0x8] sm:$0xff] %v394_v1  ;;  %v398_v3 = vld [vmem:[%s1751_s15 + $0x30] sm:$0xff] }
  0x1a   : > { %397 = vst [vmem:[%s1756_s16 + $0x10] sm:$0xff] %v396_v2  ;;  %v400_v4 = vld [vmem:[%s1751_s15 + $0x40] sm:$0xff]  ;;  %v402_v5 = vld [vmem:[%s1751_s15 + $0x50] sm:$0xff]  ;;  %399 = vst [vmem:[%s1756_s16 + $0x18] sm:$0xff] %v398_v3 }
  0x1b   : > { %401 = vst [vmem:[%s1756_s16 + $0x20] sm:$0xff] %v400_v4  ;;  %403 = vst [vmem:[%s1756_s16 + $0x28] sm:$0xff] %v402_v5  ;;  %v404_v6 = vld [vmem:[%s1751_s15 + $0x60] sm:$0xff]  ;;  %v406_v7 = vld [vmem:[%s1751_s15 + $0x70] sm:$0xff] }
  0x1c   : > { %v408_v8 = vld [vmem:[%s1751_s15 + $0x80] sm:$0xff]  ;;  %405 = vst [vmem:[%s1756_s16 + $0x30] sm:$0xff] %v404_v6  ;;  %407 = vst [vmem:[%s1756_s16 + $0x38] sm:$0xff] %v406_v7  ;;  %v410_v9 = vld [vmem:[%s1751_s15 + $0x90] sm:$0xff] }
  0x1d   : > { %409 = vst [vmem:[%s1756_s16 + $0x40] sm:$0xff] %v408_v8  ;;  %v412_v10 = vld [vmem:[%s1751_s15 + $0xa0] sm:$0xff]  ;;  %v414_v11 = vld [vmem:[%s1751_s15 + $0xb0] sm:$0xff]  ;;  %411 = vst [vmem:[%s1756_s16 + $0x48] sm:$0xff] %v410_v9 }
  0x1e   : > { %413 = vst [vmem:[%s1756_s16 + $0x50] sm:$0xff] %v412_v10  ;;  %415 = vst [vmem:[%s1756_s16 + $0x58] sm:$0xff] %v414_v11  ;;  %v416_v12 = vld [vmem:[%s1751_s15 + $0xc0] sm:$0xff]  ;;  %v418_v13 = vld [vmem:[%s1751_s15 + $0xd0] sm:$0xff] }
  0x1f   : > { %v420_v14 = vld [vmem:[%s1751_s15 + $0xe0] sm:$0xff]  ;;  %417 = vst [vmem:[%s1756_s16 + $0x60] sm:$0xff] %v416_v12  ;;  %419 = vst [vmem:[%s1756_s16 + $0x68] sm:$0xff] %v418_v13  ;;  %v422_v15 = vld [vmem:[%s1751_s15 + $0xf0] sm:$0xff] }
  0x20   : > { %421 = vst [vmem:[%s1756_s16 + $0x70] sm:$0xff] %v420_v14  ;;  %v424_v16 = vld [vmem:[%s1751_s15 + $0x100] sm:$0xff]  ;;  %v426_v17 = vld [vmem:[%s1751_s15 + $0x110] sm:$0xff]  ;;  %423 = vst [vmem:[%s1756_s16 + $0x78] sm:$0xff] %v422_v15 }
  0x21   : > { %425 = vst [vmem:[%s1756_s16 + $0x80] sm:$0xff] %v424_v16  ;;  %427 = vst [vmem:[%s1756_s16 + $0x88] sm:$0xff] %v426_v17  ;;  %v428_v18 = vld [vmem:[%s1751_s15 + $0x120] sm:$0xff]  ;;  %v430_v19 = vld [vmem:[%s1751_s15 + $0x130] sm:$0xff] }
  0x22   : > { %v432_v20 = vld [vmem:[%s1751_s15 + $0x140] sm:$0xff]  ;;  %429 = vst [vmem:[%s1756_s16 + $0x90] sm:$0xff] %v428_v18  ;;  %431 = vst [vmem:[%s1756_s16 + $0x98] sm:$0xff] %v430_v19  ;;  %v434_v21 = vld [vmem:[%s1751_s15 + $0x150] sm:$0xff] }
  0x23   : > { %433 = vst [vmem:[%s1756_s16 + $0xa0] sm:$0xff] %v432_v20  ;;  %v436_v22 = vld [vmem:[%s1751_s15 + $0x160] sm:$0xff]  ;;  %v438_v23 = vld [vmem:[%s1751_s15 + $0x170] sm:$0xff]  ;;  %435 = vst [vmem:[%s1756_s16 + $0xa8] sm:$0xff] %v434_v21 }
  0x24   : > { %437 = vst [vmem:[%s1756_s16 + $0xb0] sm:$0xff] %v436_v22  ;;  %439 = vst [vmem:[%s1756_s16 + $0xb8] sm:$0xff] %v438_v23  ;;  %v440_v24 = vld [vmem:[%s1751_s15 + $0x180] sm:$0xff]  ;;  %v442_v25 = vld [vmem:[%s1751_s15 + $0x190] sm:$0xff] }
  0x25   : > { %v444_v26 = vld [vmem:[%s1751_s15 + $0x1a0] sm:$0xff]  ;;  %441 = vst [vmem:[%s1756_s16 + $0xc0] sm:$0xff] %v440_v24  ;;  %443 = vst [vmem:[%s1756_s16 + $0xc8] sm:$0xff] %v442_v25  ;;  %v446_v27 = vld [vmem:[%s1751_s15 + $0x1b0] sm:$0xff] }
  0x26   : > { %445 = vst [vmem:[%s1756_s16 + $0xd0] sm:$0xff] %v444_v26  ;;  %v448_v28 = vld [vmem:[%s1751_s15 + $0x1c0] sm:$0xff]  ;;  %v450_v29 = vld [vmem:[%s1751_s15 + $0x1d0] sm:$0xff]  ;;  %447 = vst [vmem:[%s1756_s16 + $0xd8] sm:$0xff] %v446_v27 }
  0x27   : > { %449 = vst [vmem:[%s1756_s16 + $0xe0] sm:$0xff] %v448_v28  ;;  %451 = vst [vmem:[%s1756_s16 + $0xe8] sm:$0xff] %v450_v29  ;;  %v452_v30 = vld [vmem:[%s1751_s15 + $0x1e0] sm:$0xff]  ;;  %v454_v31 = vld [vmem:[%s1751_s15 + $0x1f0] sm:$0xff] }
  0x28   : > { %v456_v32 = vld [vmem:[%s1751_s15 + $0x200] sm:$0xff]  ;;  %453 = vst [vmem:[%s1756_s16 + $0xf0] sm:$0xff] %v452_v30  ;;  %455 = vst [vmem:[%s1756_s16 + $0xf8] sm:$0xff] %v454_v31  ;;  %v458_v33 = vld [vmem:[%s1751_s15 + $0x210] sm:$0xff] }
  0x29   : > { %457 = vst [vmem:[%s1756_s16 + $0x100] sm:$0xff] %v456_v32  ;;  %v460_v34 = vld [vmem:[%s1751_s15 + $0x220] sm:$0xff]  ;;  %v462_v35 = vld [vmem:[%s1751_s15 + $0x230] sm:$0xff]  ;;  %459 = vst [vmem:[%s1756_s16 + $0x108] sm:$0xff] %v458_v33 }
  0x2a   : > { %461 = vst [vmem:[%s1756_s16 + $0x110] sm:$0xff] %v460_v34  ;;  %463 = vst [vmem:[%s1756_s16 + $0x118] sm:$0xff] %v462_v35  ;;  %v464_v36 = vld [vmem:[%s1751_s15 + $0x240] sm:$0xff]  ;;  %v466_v37 = vld [vmem:[%s1751_s15 + $0x250] sm:$0xff] }
  0x2b   : > { %v468_v38 = vld [vmem:[%s1751_s15 + $0x260] sm:$0xff]  ;;  %465 = vst [vmem:[%s1756_s16 + $0x120] sm:$0xff] %v464_v36  ;;  %467 = vst [vmem:[%s1756_s16 + $0x128] sm:$0xff] %v466_v37  ;;  %v470_v39 = vld [vmem:[%s1751_s15 + $0x270] sm:$0xff] }
  0x2c   : > { %469 = vst [vmem:[%s1756_s16 + $0x130] sm:$0xff] %v468_v38  ;;  %v472_v40 = vld [vmem:[%s1751_s15 + $0x280] sm:$0xff]  ;;  %v474_v41 = vld [vmem:[%s1751_s15 + $0x290] sm:$0xff]  ;;  %471 = vst [vmem:[%s1756_s16 + $0x138] sm:$0xff] %v470_v39 }
  0x2d   : > { %473 = vst [vmem:[%s1756_s16 + $0x140] sm:$0xff] %v472_v40  ;;  %475 = vst [vmem:[%s1756_s16 + $0x148] sm:$0xff] %v474_v41  ;;  %v476_v42 = vld [vmem:[%s1751_s15 + $0x2a0] sm:$0xff]  ;;  %v478_v43 = vld [vmem:[%s1751_s15 + $0x2b0] sm:$0xff] }
  0x2e   : > { %v480_v44 = vld [vmem:[%s1751_s15 + $0x2c0] sm:$0xff]  ;;  %477 = vst [vmem:[%s1756_s16 + $0x150] sm:$0xff] %v476_v42  ;;  %479 = vst [vmem:[%s1756_s16 + $0x158] sm:$0xff] %v478_v43  ;;  %v482_v45 = vld [vmem:[%s1751_s15 + $0x2d0] sm:$0xff] }
  0x2f   : > { %481 = vst [vmem:[%s1756_s16 + $0x160] sm:$0xff] %v480_v44  ;;  %v484_v46 = vld [vmem:[%s1751_s15 + $0x2e0] sm:$0xff]  ;;  %v486_v47 = vld [vmem:[%s1751_s15 + $0x2f0] sm:$0xff]  ;;  %483 = vst [vmem:[%s1756_s16 + $0x168] sm:$0xff] %v482_v45 }
  0x30   : > { %485 = vst [vmem:[%s1756_s16 + $0x170] sm:$0xff] %v484_v46  ;;  %487 = vst [vmem:[%s1756_s16 + $0x178] sm:$0xff] %v486_v47  ;;  %v488_v48 = vld [vmem:[%s1751_s15 + $0x300] sm:$0xff]  ;;  %v490_v49 = vld [vmem:[%s1751_s15 + $0x310] sm:$0xff] }
  0x31   : > { %v492_v50 = vld [vmem:[%s1751_s15 + $0x320] sm:$0xff]  ;;  %489 = vst [vmem:[%s1756_s16 + $0x180] sm:$0xff] %v488_v48  ;;  %491 = vst [vmem:[%s1756_s16 + $0x188] sm:$0xff] %v490_v49  ;;  %v494_v51 = vld [vmem:[%s1751_s15 + $0x330] sm:$0xff] }
  0x32   : > { %493 = vst [vmem:[%s1756_s16 + $0x190] sm:$0xff] %v492_v50  ;;  %v496_v52 = vld [vmem:[%s1751_s15 + $0x340] sm:$0xff]  ;;  %v498_v53 = vld [vmem:[%s1751_s15 + $0x350] sm:$0xff]  ;;  %495 = vst [vmem:[%s1756_s16 + $0x198] sm:$0xff] %v494_v51 }
  0x33   : > { %497 = vst [vmem:[%s1756_s16 + $0x1a0] sm:$0xff] %v496_v52  ;;  %499 = vst [vmem:[%s1756_s16 + $0x1a8] sm:$0xff] %v498_v53  ;;  %v500_v54 = vld [vmem:[%s1751_s15 + $0x360] sm:$0xff]  ;;  %v502_v55 = vld [vmem:[%s1751_s15 + $0x370] sm:$0xff] }
  0x34   : > { %v504_v56 = vld [vmem:[%s1751_s15 + $0x380] sm:$0xff]  ;;  %501 = vst [vmem:[%s1756_s16 + $0x1b0] sm:$0xff] %v500_v54  ;;  %503 = vst [vmem:[%s1756_s16 + $0x1b8] sm:$0xff] %v502_v55  ;;  %v506_v57 = vld [vmem:[%s1751_s15 + $0x390] sm:$0xff] }
  0x35   : > { %505 = vst [vmem:[%s1756_s16 + $0x1c0] sm:$0xff] %v504_v56  ;;  %v508_v58 = vld [vmem:[%s1751_s15 + $0x3a0] sm:$0xff]  ;;  %v510_v59 = vld [vmem:[%s1751_s15 + $0x3b0] sm:$0xff]  ;;  %507 = vst [vmem:[%s1756_s16 + $0x1c8] sm:$0xff] %v506_v57 }
  0x36   : > { %509 = vst [vmem:[%s1756_s16 + $0x1d0] sm:$0xff] %v508_v58  ;;  %511 = vst [vmem:[%s1756_s16 + $0x1d8] sm:$0xff] %v510_v59  ;;  %v512_v60 = vld [vmem:[%s1751_s15 + $0x3c0] sm:$0xff]  ;;  %v514_v61 = vld [vmem:[%s1751_s15 + $0x3d0] sm:$0xff] }
  0x37   : > { %v516_v62 = vld [vmem:[%s1751_s15 + $0x3e0] sm:$0xff]  ;;  %513 = vst [vmem:[%s1756_s16 + $0x1e0] sm:$0xff] %v512_v60  ;;  %515 = vst [vmem:[%s1756_s16 + $0x1e8] sm:$0xff] %v514_v61  ;;  %v518_v63 = vld [vmem:[%s1751_s15 + $0x3f0] sm:$0xff] }
  0x38   : > { %517 = vst [vmem:[%s1756_s16 + $0x1f0] sm:$0xff] %v516_v62  ;;  %519 = vst [vmem:[%s1756_s16 + $0x1f8] sm:$0xff] %v518_v63 }
  0x39 PF: > { %p1362_p7 = scmp.ge.s32.totalorder %s1658_s24, 1  ;;  %p553_p8 = scmp.lt.s32.totalorder %s1658_s24, 19 }
  0x3b   : > { %p554_p9 = pnand %p1362_p7, %p553_p8 }
  0x3c   : > { %s560_s17 = sand.u32 (!%p554_p9), 1, %s1634_s18   ;;  %s1364_s27 = sshll.u32 (!%p554_p9), %s1642_s20, 2 }
  0x3d   : > { %557 = sbr.rel (%p554_p9) target bundleno = 380 (0x17c), region = 74  ;;  %s1363_s28 = sshll.u32 (!%p554_p9), %s560_s17, 9 }
  0x3e   : > { %p620_p10 = scmp.lt.s32.totalorder (!%p554_p9), %s1364_s27, 35  ;;  %s1366_s29 = sshll.u32 (!%p554_p9), %s1646_s21, 1 }
  0x3f   : > { %p630_p11 = scmp.lt.s32.totalorder (!%p554_p9), %s1366_s29, 3  ;;  %s1914_s8 = scalar_lea.vmem (!%p554_p9), [#allocation3], %s1363_s28 }
  0x40   : > { %p1372_p12 = scmp.ne.s32.totalorder (!%p554_p9), %s1642_s20, 0 }
  0x44   : > { %s2036_s27 = smov (!%p620_p10, %s1364_s27), 35  ;;  %s2038_s29 = smov (!%p630_p11, %s1366_s29), 3 }
  0x45   : > { %s1365_s30 = sshll.u32 %s2036_s27, 2  ;;  %s632_s18 = scalar_lea.vmem %s2019_s2, %s2038_s29  ;;  %v1660_v0 = vmov (!%p1372_p12), 0.0  }
  0x46   : > { %s1891_s9 = scalar_lea.vmem %s2017_s0, %s1365_s30  ;;  %s637_s21 = scalar_lea.vmem %s2020_s3, %s2038_s29  ;;  %663 = vst [vmem:[#allocation2] sm:$0xff] (!%p1372_p12), %v1660_v0  ;;  %664 = vst [vmem:[#allocation2 + $0x8] sm:$0xff] (!%p1372_p12), %v1660_v0 }
  0x47   : > { %s1369_s14 = sshll.u32 %s2038_s29, 2  ;;  %662 = sbr.rel (%p1372_p12) target bundleno = 78 (0x4e), region = 82 }
  0x48   : > { %s1907_s17 = scalar_lea.vmem %s2021_s4, %s1369_s14  ;;  %s1912_s7 = scalar_lea.vmem %s2022_s5, %s1369_s14 }
  0x4e PF: > { %v1504_v1 = vld [vmem:[%s1914_s8 + $0x4] ss:$8 sps:$4 sm:$0xff]   ;;  %v1508_v3 = vld [vmem:[%s1914_s8] ss:$8 sps:$4 sm:$0xff]   ;;  %v1510_v5 = vld [vmem:[%s1914_s8 + $0x14] ss:$8 sps:$4 sm:$0xff]  }
  0x4f   : > { %v1506_v2 = vld [vmem:[%s1914_s8 + $0x104] ss:$8 sps:$4 sm:$0xff]   ;;  %1067 = vmatprep.subr.bf16.mxu0 %v1504_v1  ;;  %v1509_v4 = vld [vmem:[%s1914_s8 + $0x100] ss:$8 sps:$4 sm:$0xff]   ;;  %v1512_v6 = vld [vmem:[%s1914_s8 + $0x114] ss:$8 sps:$4 sm:$0xff]  }
  0x50   : > { %1108 = vmatprep.subr.bf16.mxu1 %v1506_v2  ;;  %1068 = vmatpush1.bf16.msra.mxu0 %v1508_v3  ;;  %v1514_v7 = vld [vmem:[%s1914_s8 + $0x10] ss:$8 sps:$4 sm:$0xff]   ;;  %v1516_v9 = vld [vmem:[%s1914_s8 + $0x24] ss:$8 sps:$4 sm:$0xff]   ;;  %v1520_v11 = vld [vmem:[%s1914_s8 + $0x20] ss:$8 sps:$4 sm:$0xff]  }
  0x51   : > { %1109 = vmatpush1.bf16.msra.mxu1 %v1509_v4  ;;  %1069 = vmatprep.subr.bf16.mxu0 %v1510_v5  ;;  %v1515_v8 = vld [vmem:[%s1914_s8 + $0x110] ss:$8 sps:$4 sm:$0xff]   ;;  %v1518_v10 = vld [vmem:[%s1914_s8 + $0x124] ss:$8 sps:$4 sm:$0xff]   ;;  %v1521_v12 = vld [vmem:[%s1914_s8 + $0x120] ss:$8 sps:$4 sm:$0xff]  }
  0x52   : > { %1110 = vmatprep.subr.bf16.mxu1 %v1512_v6  ;;  %v1522_v13 = vld [vmem:[%s1914_s8 + $0x34] ss:$8 sps:$4 sm:$0xff]   ;;  %v1526_v15 = vld [vmem:[%s1914_s8 + $0x30] ss:$8 sps:$4 sm:$0xff]   ;;  %v1528_v17 = vld [vmem:[%s1914_s8 + $0x44] ss:$8 sps:$4 sm:$0xff]  }
  0x53   : > { %v1524_v14 = vld [vmem:[%s1914_s8 + $0x134] ss:$8 sps:$4 sm:$0xff]   ;;  %v1527_v16 = vld [vmem:[%s1914_s8 + $0x130] ss:$8 sps:$4 sm:$0xff]   ;;  %v1530_v18 = vld [vmem:[%s1914_s8 + $0x144] ss:$8 sps:$4 sm:$0xff]  }
  0x54   : > { %1070 = vmatpush1.bf16.msra.mxu0 %v1514_v7  ;;  %v1532_v19 = vld [vmem:[%s1914_s8 + $0x40] ss:$8 sps:$4 sm:$0xff]   ;;  %v1534_v21 = vld [vmem:[%s1914_s8 + $0x54] ss:$8 sps:$4 sm:$0xff]   ;;  %v1538_v23 = vld [vmem:[%s1914_s8 + $0x50] ss:$8 sps:$4 sm:$0xff]  }
  0x55   : > { %1111 = vmatpush1.bf16.msra.mxu1 %v1515_v8  ;;  %1071 = vmatprep.subr.bf16.mxu0 %v1516_v9  ;;  %v1533_v20 = vld [vmem:[%s1914_s8 + $0x140] ss:$8 sps:$4 sm:$0xff]   ;;  %v1536_v22 = vld [vmem:[%s1914_s8 + $0x154] ss:$8 sps:$4 sm:$0xff]   ;;  %v1539_v24 = vld [vmem:[%s1914_s8 + $0x150] ss:$8 sps:$4 sm:$0xff]  }
  0x56   : > { %1112 = vmatprep.subr.bf16.mxu1 %v1518_v10  ;;  %v1540_v25 = vld [vmem:[%s1914_s8 + $0x64] ss:$8 sps:$4 sm:$0xff]   ;;  %v1544_v27 = vld [vmem:[%s1914_s8 + $0x60] ss:$8 sps:$4 sm:$0xff]   ;;  %v1546_v29 = vld [vmem:[%s1914_s8 + $0x74] ss:$8 sps:$4 sm:$0xff]  }
  0x57   : > { %v1542_v26 = vld [vmem:[%s1914_s8 + $0x164] ss:$8 sps:$4 sm:$0xff]   ;;  %v1545_v28 = vld [vmem:[%s1914_s8 + $0x160] ss:$8 sps:$4 sm:$0xff]   ;;  %v1548_v30 = vld [vmem:[%s1914_s8 + $0x174] ss:$8 sps:$4 sm:$0xff]  }
  0x58   : > { %1072 = vmatpush1.bf16.msra.mxu0 %v1520_v11  ;;  %v1550_v31 = vld [vmem:[%s1914_s8 + $0x70] ss:$8 sps:$4 sm:$0xff]   ;;  %v1552_v33 = vld [vmem:[%s1914_s8 + $0x84] ss:$8 sps:$4 sm:$0xff]   ;;  %v1556_v35 = vld [vmem:[%s1914_s8 + $0x80] ss:$8 sps:$4 sm:$0xff]  }
  0x59   : > { %1113 = vmatpush1.bf16.msra.mxu1 %v1521_v12  ;;  %1073 = vmatprep.subr.bf16.mxu0 %v1522_v13  ;;  %v1551_v32 = vld [vmem:[%s1914_s8 + $0x170] ss:$8 sps:$4 sm:$0xff]   ;;  %v1554_v34 = vld [vmem:[%s1914_s8 + $0x184] ss:$8 sps:$4 sm:$0xff]   ;;  %v1557_v36 = vld [vmem:[%s1914_s8 + $0x180] ss:$8 sps:$4 sm:$0xff]  }
  0x5a   : > { %1114 = vmatprep.subr.bf16.mxu1 %v1524_v14  ;;  %v1558_v37 = vld [vmem:[%s1914_s8 + $0x94] ss:$8 sps:$4 sm:$0xff]   ;;  %v1562_v39 = vld [vmem:[%s1914_s8 + $0x90] ss:$8 sps:$4 sm:$0xff]   ;;  %v1564_v41 = vld [vmem:[%s1914_s8 + $0xa4] ss:$8 sps:$4 sm:$0xff]  }
  0x5b   : > { %v1560_v38 = vld [vmem:[%s1914_s8 + $0x194] ss:$8 sps:$4 sm:$0xff]   ;;  %v1563_v40 = vld [vmem:[%s1914_s8 + $0x190] ss:$8 sps:$4 sm:$0xff]   ;;  %v1566_v42 = vld [vmem:[%s1914_s8 + $0x1a4] ss:$8 sps:$4 sm:$0xff]  }
  0x5c   : > { %1074 = vmatpush1.bf16.msra.mxu0 %v1526_v15  ;;  %v1568_v43 = vld [vmem:[%s1914_s8 + $0xa0] ss:$8 sps:$4 sm:$0xff]   ;;  %v1570_v45 = vld [vmem:[%s1914_s8 + $0xb4] ss:$8 sps:$4 sm:$0xff]   ;;  %v1574_v50 = vld [vmem:[%s1914_s8 + $0xb0] ss:$8 sps:$4 sm:$0xff]  }
  0x5d   : > { %1115 = vmatpush1.bf16.msra.mxu1 %v1527_v16  ;;  %1075 = vmatprep.subr.bf16.mxu0 %v1528_v17  ;;  %v1569_v44 = vld [vmem:[%s1914_s8 + $0x1a0] ss:$8 sps:$4 sm:$0xff]   ;;  %v1572_v46 = vld [vmem:[%s1914_s8 + $0x1b4] ss:$8 sps:$4 sm:$0xff]   ;;  %v1575_v51 = vld [vmem:[%s1914_s8 + $0x1b0] ss:$8 sps:$4 sm:$0xff]  }
  0x5e   : > { %1116 = vmatprep.subr.bf16.mxu1 %v1530_v18  ;;  %v667_v47 = vld [vmem:[%s1891_s9] sm:$0xff]  ;;  %v668_v49 = vld [vmem:[%s1891_s9 + $0x8] sm:$0xff]  ;;  %v1576_v53 = vld [vmem:[%s1914_s8 + $0xc4] ss:$8 sps:$4 sm:$0xff]   ;;  %p1441_p13 = scmp.ne.s32.totalorder %s1642_s20, 8 }
  0x5f   : > { %v1374_v48 = vcombine.high %v667_v47, %v667_v47  ;;  %v1376_v52 = vcombine.high %v668_v49, %v668_v49  ;;  %v1578_v54 = vld [vmem:[%s1914_s8 + $0x1c4] ss:$8 sps:$4 sm:$0xff]   ;;  %v1580_v55 = vld [vmem:[%s1914_s8 + $0xc0] ss:$8 sps:$4 sm:$0xff]   ;;  %v1582_v57 = vld [vmem:[%s1914_s8 + $0xd4] ss:$8 sps:$4 sm:$0xff]   ;;  %v1373_v5 = vcombine.low %v667_v47, %v667_v47  ;;  %v1375_v6 = vcombine.low %v668_v49, %v668_v49 }
  0x60   : > { %1076 = vmatpush1.bf16.msra.mxu0 %v1532_v19  ;;  %v1581_v56 = vld [vmem:[%s1914_s8 + $0x1c0] ss:$8 sps:$4 sm:$0xff]   ;;  %v1584_v58 = vld [vmem:[%s1914_s8 + $0x1d4] ss:$8 sps:$4 sm:$0xff]   ;;  %v1586_v59 = vld [vmem:[%s1914_s8 + $0xd0] ss:$8 sps:$4 sm:$0xff]  }
  0x61   : > { %1117 = vmatpush1.bf16.msra.mxu1 %v1533_v20  ;;  %1077 = vmatprep.subr.bf16.mxu0 %v1534_v21  ;;  %v1587_v60 = vld [vmem:[%s1914_s8 + $0x1d0] ss:$8 sps:$4 sm:$0xff]   ;;  %v1588_v61 = vld [vmem:[%s1914_s8 + $0xe4] ss:$8 sps:$4 sm:$0xff]   ;;  %v1592_v63 = vld [vmem:[%s1914_s8 + $0xe0] ss:$8 sps:$4 sm:$0xff]   ;;  %v1161_v21 = vlaneseq (!%p1441_p13) }
  0x62   : > { %1118 = vmatprep.subr.bf16.mxu1 %v1536_v22  ;;  %1099 = vmatprep.mubr.bf16.mxu0 %v1374_v48  ;;  %v1590_v62 = vld [vmem:[%s1914_s8 + $0x1e4] ss:$8 sps:$4 sm:$0xff]   ;;  %v1593_v0 = vld [vmem:[%s1914_s8 + $0x1e0] ss:$8 sps:$4 sm:$0xff]   ;;  %v1594_v1 = vld [vmem:[%s1914_s8 + $0xf4] ss:$8 sps:$4 sm:$0xff]  }
  0x63   : > { %1140 = vmatprep.mubr.bf16.mxu1 %v1376_v52  ;;  %v1596_v2 = vld [vmem:[%s1914_s8 + $0x1f4] ss:$8 sps:$4 sm:$0xff]   ;;  %v1598_v3 = vld [vmem:[%s1914_s8 + $0xf0] ss:$8 sps:$4 sm:$0xff]   ;;  %v1162_v22 = vshrl.u32 (!%p1441_p13), %v1161_v21, 7 }
  0x64   : > { %1078 = vmatpush1.bf16.msra.mxu0 %v1538_v23  ;;  %v1599_v4 = vld [vmem:[%s1914_s8 + $0x1f0] ss:$8 sps:$4 sm:$0xff]  }
  0x65   : > { %1119 = vmatpush1.bf16.msra.mxu1 %v1539_v24  ;;  %1079 = vmatprep.subr.bf16.mxu0 %v1540_v25  ;;  %v665_v8 = vld [vmem:[#allocation2] sm:$0xff]  ;;  %v666_v12 = vld [vmem:[#allocation2 + $0x8] sm:$0xff]  ;;  %v1163_v25 = vsub.s32 (!%p1441_p13), 0, %v1162_v22 }
  0x66   : > { %1120 = vmatprep.subr.bf16.mxu1 %v1542_v26  ;;  %v1159_v23 = vld [vmem:[%s632_s18] sm:$0x3] (!%p1441_p13)  ;;  %v1167_v26 = vsub.s32 (!%p1441_p13), 1, %v1162_v22 }
  0x67   : > { %v1173_v24 = vld [vmem:[%s637_s21] sm:$0x3] (!%p1441_p13) }
  0x68   : > { %1080 = vmatpush1.bf16.msra.mxu0 %v1544_v27 }
  0x69   : > { %1121 = vmatpush1.bf16.msra.mxu1 %v1545_v28  ;;  %1081 = vmatprep.subr.bf16.mxu0 %v1546_v29  ;;  %v1187_v29 = vld [vmem:[%s1907_s17] sm:$0xff] (!%p1441_p13) }
  0x6a   : > { %1122 = vmatprep.subr.bf16.mxu1 %v1548_v30  ;;  %v1164_v30 = vrot.slane (!%p1441_p13), %v1159_v23, %v1163_v25 }
  0x6c   : > { %1082 = vmatpush1.bf16.msra.mxu0 %v1550_v31  ;;  %v1168_v31 = vrot.slane (!%p1441_p13), %v1159_v23, %v1167_v26 }
  0x6d   : > { %1123 = vmatpush1.bf16.msra.mxu1 %v1551_v32  ;;  %1083 = vmatprep.subr.bf16.mxu0 %v1552_v33  ;;  %v1178_v32 = vrot.slane (!%p1441_p13), %v1173_v24, %v1163_v25  ;;  %v1182_v33 = vrot.slane (!%p1441_p13), %v1173_v24, %v1167_v26 }
  0x6e   : > { %1124 = vmatprep.subr.bf16.mxu1 %v1554_v34 }
  0x70   : > { %1084 = vmatpush1.bf16.msra.mxu0 %v1556_v35 }
  0x71   : > { %1125 = vmatpush1.bf16.msra.mxu1 %v1557_v36  ;;  %1085 = vmatprep.subr.bf16.mxu0 %v1558_v37  ;;  %v1188_v36 = vunpack.c.l.bf16 (!%p1441_p13), %v1187_v29  ;;  %v1189_v37 = vunpack.c.h.bf16 (!%p1441_p13), %v1187_v29 }
  0x72   : > { %1126 = vmatprep.subr.bf16.mxu1 %v1560_v38 }
  0x74   : > { %1086 = vmatpush1.bf16.msra.mxu0 %v1562_v39 }
  0x75   : > { %1127 = vmatpush1.bf16.msra.mxu1 %v1563_v40  ;;  %1087 = vmatprep.subr.bf16.mxu0 %v1564_v41 }
  0x76   : > { %1128 = vmatprep.subr.bf16.mxu1 %v1566_v42 }
  0x78   : > { %1088 = vmatpush1.bf16.msra.mxu0 %v1568_v43 }
  0x79   : > { %1129 = vmatpush1.bf16.msra.mxu1 %v1569_v44  ;;  %1089 = vmatprep.subr.bf16.mxu0 %v1570_v45 }
  0x7a   : > { %1130 = vmatprep.subr.bf16.mxu1 %v1572_v46 }
  0x7c   : > { %1090 = vmatpush1.bf16.msra.mxu0 %v1574_v50 }
  0x7d   : > { %1131 = vmatpush1.bf16.msra.mxu1 %v1575_v51  ;;  %1091 = vmatprep.subr.bf16.mxu0 %v1576_v53 }
  0x7e   : > { %1132 = vmatprep.subr.bf16.mxu1 %v1578_v54 }
  0x80   : > { %1092 = vmatpush1.bf16.msra.mxu0 %v1580_v55 }
  0x81   : > { %1133 = vmatpush1.bf16.msra.mxu1 %v1581_v56  ;;  %1093 = vmatprep.subr.bf16.mxu0 %v1582_v57 }
  0x82   : > { %1134 = vmatprep.subr.bf16.mxu1 %v1584_v58 }
  0x84   : > { %1094 = vmatpush1.bf16.msra.mxu0 %v1586_v59 }
  0x85   : > { %1135 = vmatpush1.bf16.msra.mxu1 %v1587_v60  ;;  %1095 = vmatprep.subr.bf16.mxu0 %v1588_v61 }
  0x86   : > { %1136 = vmatprep.subr.bf16.mxu1 %v1590_v62 }
  0x88   : > { %1096 = vmatpush1.bf16.msra.mxu0 %v1592_v63 }
  0x89   : > { %1137 = vmatpush1.bf16.msra.mxu1 %v1593_v0  ;;  %1097 = vmatprep.subr.bf16.mxu0 %v1594_v1 }
  0x8a   : > { %1138 = vmatprep.subr.bf16.mxu1 %v1596_v2 }
  0x8c   : > { %1098 = vmatpush1.bf16.msra.mxu0 %v1598_v3 }
  0x8d   : > { %1139 = vmatpush1.bf16.msra.mxu1 %v1599_v4 }
  0x8f   : > { %1100 = vmatmul.mubr.bf16.vlgmr.msra.gmra.mrb[0].mxu0 %v1373_v5 }
  0x90   : > { %1141 = vmatmul.mubr.bf16.vlgmr.msra.gmra.mrb[0].mxu1 %v1375_v6 }
 0x162   : > { %v1101_v7 = vpop.f32.mrb[0].mxu0 }
 0x163   : > { %v1142_v9 = vpop.f32.mrb[0].mxu1  ;;  %v1103_v11 = vpop.f32.mrb[1].mxu0  ;;  %1156 = sbr.rel (%p1441_p13) target bundleno = 380 (0x17c), region = 86 }
 0x164   : > { %v1143_v10 = vadd.f32 %v1142_v9, %v1101_v7  ;;  %v1144_v13 = vpop.f32.mrb[1].mxu1  ;;  %v1105_v15 = vpop.f32.mrb[2].mxu0 }
 0x165   : > { %v1145_v14 = vadd.f32 %v1144_v13, %v1103_v11  ;;  %v1146_v16 = vpop.f32.mrb[2].mxu1  ;;  %v1106_v18 = vpop.f32.mrb[3].mxu0 }
 0x166   : > { %v1149_v17 = vadd.f32 %v1143_v10, %v665_v8  ;;  %v1147_v19 = vpop.f32.mrb[3].mxu1 }
 0x167   : > { %v1150_v20 = vadd.f32 %v1145_v14, %v666_v12 }
 0x168   : > { %1151 = vst [vmem:[#allocation2] sm:$0xff] %v1149_v17 }
 0x169   : > { %1152 = vst [vmem:[#allocation2 + $0x8] sm:$0xff] %v1150_v20 }
 0x16f   : > { %v1157_v27 = vld [vmem:[#allocation2] sm:$0xff] }
 0x170   : > { %v1158_v28 = vld [vmem:[#allocation2 + $0x8] sm:$0xff]  ;;  %v1171_v34 = vmul.f32 %v1164_v30, %v1157_v27 }
 0x171   : > { %v1172_v35 = vmul.f32 %v1168_v31, %v1158_v28 }
 0x172   : > { %v1185_v38 = vadd.f32 %v1178_v32, %v1171_v34 }
 0x173   : > { %v1186_v39 = vadd.f32 %v1182_v33, %v1172_v35 }
 0x174   : > { %v1190_v40 = vadd.f32 %v1188_v36, %v1185_v38 }
 0x175   : > { %v1191_v41 = vadd.f32 %v1189_v37, %v1186_v39 }
 0x176   : > { %v1192_v42 = vmax.f32 %v1190_v40, 0.0 }
 0x177   : > { %v1193_v43 = vmax.f32 %v1191_v41, 0.0 }
 0x179   : > { %v1446_v44 = vpack.c.bf16 %v1193_v43, %v1192_v42 }
 0x17b   : > { %1202 = vst [vmem:[%s1912_s7] sm:$0xff] %v1446_v44 }
 0x17c PF: > { %s15_s24 = sadd.s32 1, %s1658_s24   ;;  %s2023_s18 = smov %s1638_s19 }
 0x17d   : > { %p12_p0 = scmp.ge.s32.totalorder %s15_s24, 20   ;;  %s2024_s19 = smov %s1742_s6 }
 0x17e   : > { %s2025_s20 = smov %s1650_s22  ;;  %s2026_s21 = smov %s1654_s23 }
 0x17f   : > { %s2027_s22 = smov %s2030_s25  ;;  %s2028_s23 = smov %s2034_s26 }
 0x180   :  { %14 = sbr.rel (!%p12_p0) target bundleno = 4 (0x4), region = 133 }

// kernel: resnet18_forward.42
= control target key start
LH: loop header
LB: loop body
LE: loop exit
PB: predicated region body
PF: predicated region fallthrough
CT: control target
= control target key end

     0   :  { %s1598_s15 = smov 0   ;;  %s1600_s16 = smov 0   ;;  %s1918_s0 = inlined_call_operand.vmem [shape: bf16[8,4608], index: 0, kind: input, shape index: {}]   ;;  %s1919_s1 = inlined_call_operand.vmem [shape: bf16[4608,512], index: 1, kind: input, shape index: {}]   ;;  %s1920_s2 = inlined_call_operand.vmem [shape: f32[1,512], index: 2, kind: input, shape index: {}]   ;;  %s1921_s3 = inlined_call_operand.vmem [shape: f32[1,512], index: 3, kind: input, shape index: {}]   ;;  %s1922_s4 = inlined_call_operand.vmem [shape: bf16[8,512], index: 4, kind: output, shape index: {}]  }
   0x1   :  { %s1602_s17 = smov 0   ;;  %s1604_s18 = smov 0  }
   0x2   :  { %s1606_s19 = smov 0   ;;  %s1608_s20 = smov 0  }
   0x3   :  { %s1610_s21 = smov 0  }
   0x4 LB: > { %s26_s22 = sadd.s32 1, %s1562_s19  ;;  %s29_s23 = sadd.s32 1, %s1566_s20  ;;  %s1570_s21 = sphi %s1610_s21, %s14_s21   ;;  %s1566_s20 = sphi %s1608_s20, %s1928_s20   ;;  %s1562_s19 = sphi %s1606_s19, %s1927_s19   ;;  %s1558_s18 = sphi %s1604_s18, %s1926_s18   ;;  %s1554_s17 = sphi %s1602_s17, %s1925_s17   ;;  %s1550_s16 = sphi %s1600_s16, %s1924_s16   ;;  %s1546_s15 = sphi %s1598_s15, %s1923_s15  }
   0x5   : > { %p27_p0 = scmp.ge.s32.totalorder %s26_s22, 9  ;;  %p77_p1 = scmp.ne.s32.totalorder %s1550_s16, %s1546_s15 }
   0x6   : > { %p78_p2 = scmp.eq.s32.totalorder %s1570_s21, 0  ;;  %s70_s27 = sadd.s32 1, %s1550_s16 }
   0x7   : > { %s1930_s22 = smov (%p27_p0, %s26_s22), 0  ;;  %s1932_s23 = smov (!%p27_p0, %s29_s23), %s1566_s20 }
   0x8   : > { %p79_p3 = por %p78_p2, %p77_p1  ;;  %p31_p4 = scmp.ge.s32.totalorder %s1932_s23, 2 }
   0x9   : > { %s65_s24 = ssub.s32 %s1562_s19, %s1930_s22  ;;  %p1270_p6 = scmp.ge.s32.totalorder %s1570_s21, 18 }
   0xa   : > { %s1934_s23 = smov (%p31_p4, %s1932_s23), 0 }
   0xb   : > { %s66_s25 = ssub.s32 %s1566_s20, %s1934_s23  ;;  %183 = sbr.rel (%p1270_p6) target bundleno = 57 (0x39), region = 16 }
   0xc   : > { %s67_s26 = sor.u32 %s66_s25, %s65_s24 }
   0xd   : > { %p68_p5 = scmp.eq.s32.totalorder %s67_s26, 0 }
   0xf   : > { %s1649_s28 = scalar_select %p68_p5, %s1550_s16, %s70_s27  }
  0x12   : > { %199 = sbr.rel (!%p79_p3) target bundleno = 57 (0x39), region = 24  ;;  %s201_s29 = sand.u32 (%p79_p3), 1, %s1550_s16  }
  0x13   : > { %s1273_s30 = sshll.u32 (%p79_p3), %s1566_s20, 1  ;;  %s1271_s5 = sshll.u32 (%p79_p3), %s201_s29, 9 }
  0x14   : > { %s1357_s6 = sshll.u32 (%p79_p3), %s1562_s19, 8  ;;  %s1663_s12 = scalar_lea.vmem (%p79_p3), [#allocation3], %s1271_s5 }
  0x15   : > { %s207_s7 = sadd.s32 (%p79_p3), %s1357_s6, %s1273_s30 }
  0x16   : > { %s1275_s8 = sshll.u32 (%p79_p3), %s207_s7, 2 }
  0x17   : > { %s1658_s11 = scalar_lea.vmem (%p79_p3), %s1919_s1, %s1275_s8 }
  0x18   : > { %v363_v0 = vld [vmem:[%s1658_s11] sm:$0xff] (%p79_p3)  ;;  %v365_v1 = vld [vmem:[%s1658_s11 + $0x10] sm:$0xff] (%p79_p3) }
  0x19   : > { %v367_v2 = vld [vmem:[%s1658_s11 + $0x20] sm:$0xff]  ;;  %364 = vst [vmem:[%s1663_s12] sm:$0xff] %v363_v0  ;;  %366 = vst [vmem:[%s1663_s12 + $0x8] sm:$0xff] %v365_v1  ;;  %v369_v3 = vld [vmem:[%s1658_s11 + $0x30] sm:$0xff] }
  0x1a   : > { %368 = vst [vmem:[%s1663_s12 + $0x10] sm:$0xff] %v367_v2  ;;  %v371_v4 = vld [vmem:[%s1658_s11 + $0x40] sm:$0xff]  ;;  %v373_v5 = vld [vmem:[%s1658_s11 + $0x50] sm:$0xff]  ;;  %370 = vst [vmem:[%s1663_s12 + $0x18] sm:$0xff] %v369_v3 }
  0x1b   : > { %372 = vst [vmem:[%s1663_s12 + $0x20] sm:$0xff] %v371_v4  ;;  %374 = vst [vmem:[%s1663_s12 + $0x28] sm:$0xff] %v373_v5  ;;  %v375_v6 = vld [vmem:[%s1658_s11 + $0x60] sm:$0xff]  ;;  %v377_v7 = vld [vmem:[%s1658_s11 + $0x70] sm:$0xff] }
  0x1c   : > { %v379_v8 = vld [vmem:[%s1658_s11 + $0x80] sm:$0xff]  ;;  %376 = vst [vmem:[%s1663_s12 + $0x30] sm:$0xff] %v375_v6  ;;  %378 = vst [vmem:[%s1663_s12 + $0x38] sm:$0xff] %v377_v7  ;;  %v381_v9 = vld [vmem:[%s1658_s11 + $0x90] sm:$0xff] }
  0x1d   : > { %380 = vst [vmem:[%s1663_s12 + $0x40] sm:$0xff] %v379_v8  ;;  %v383_v10 = vld [vmem:[%s1658_s11 + $0xa0] sm:$0xff]  ;;  %v385_v11 = vld [vmem:[%s1658_s11 + $0xb0] sm:$0xff]  ;;  %382 = vst [vmem:[%s1663_s12 + $0x48] sm:$0xff] %v381_v9 }
  0x1e   : > { %384 = vst [vmem:[%s1663_s12 + $0x50] sm:$0xff] %v383_v10  ;;  %386 = vst [vmem:[%s1663_s12 + $0x58] sm:$0xff] %v385_v11  ;;  %v387_v12 = vld [vmem:[%s1658_s11 + $0xc0] sm:$0xff]  ;;  %v389_v13 = vld [vmem:[%s1658_s11 + $0xd0] sm:$0xff] }
  0x1f   : > { %v391_v14 = vld [vmem:[%s1658_s11 + $0xe0] sm:$0xff]  ;;  %388 = vst [vmem:[%s1663_s12 + $0x60] sm:$0xff] %v387_v12  ;;  %390 = vst [vmem:[%s1663_s12 + $0x68] sm:$0xff] %v389_v13  ;;  %v393_v15 = vld [vmem:[%s1658_s11 + $0xf0] sm:$0xff] }
  0x20   : > { %392 = vst [vmem:[%s1663_s12 + $0x70] sm:$0xff] %v391_v14  ;;  %v395_v16 = vld [vmem:[%s1658_s11 + $0x100] sm:$0xff]  ;;  %v397_v17 = vld [vmem:[%s1658_s11 + $0x110] sm:$0xff]  ;;  %394 = vst [vmem:[%s1663_s12 + $0x78] sm:$0xff] %v393_v15 }
  0x21   : > { %396 = vst [vmem:[%s1663_s12 + $0x80] sm:$0xff] %v395_v16  ;;  %398 = vst [vmem:[%s1663_s12 + $0x88] sm:$0xff] %v397_v17  ;;  %v399_v18 = vld [vmem:[%s1658_s11 + $0x120] sm:$0xff]  ;;  %v401_v19 = vld [vmem:[%s1658_s11 + $0x130] sm:$0xff] }
  0x22   : > { %v403_v20 = vld [vmem:[%s1658_s11 + $0x140] sm:$0xff]  ;;  %400 = vst [vmem:[%s1663_s12 + $0x90] sm:$0xff] %v399_v18  ;;  %402 = vst [vmem:[%s1663_s12 + $0x98] sm:$0xff] %v401_v19  ;;  %v405_v21 = vld [vmem:[%s1658_s11 + $0x150] sm:$0xff] }
  0x23   : > { %404 = vst [vmem:[%s1663_s12 + $0xa0] sm:$0xff] %v403_v20  ;;  %v407_v22 = vld [vmem:[%s1658_s11 + $0x160] sm:$0xff]  ;;  %v409_v23 = vld [vmem:[%s1658_s11 + $0x170] sm:$0xff]  ;;  %406 = vst [vmem:[%s1663_s12 + $0xa8] sm:$0xff] %v405_v21 }
  0x24   : > { %408 = vst [vmem:[%s1663_s12 + $0xb0] sm:$0xff] %v407_v22  ;;  %410 = vst [vmem:[%s1663_s12 + $0xb8] sm:$0xff] %v409_v23  ;;  %v411_v24 = vld [vmem:[%s1658_s11 + $0x180] sm:$0xff]  ;;  %v413_v25 = vld [vmem:[%s1658_s11 + $0x190] sm:$0xff] }
  0x25   : > { %v415_v26 = vld [vmem:[%s1658_s11 + $0x1a0] sm:$0xff]  ;;  %412 = vst [vmem:[%s1663_s12 + $0xc0] sm:$0xff] %v411_v24  ;;  %414 = vst [vmem:[%s1663_s12 + $0xc8] sm:$0xff] %v413_v25  ;;  %v417_v27 = vld [vmem:[%s1658_s11 + $0x1b0] sm:$0xff] }
  0x26   : > { %416 = vst [vmem:[%s1663_s12 + $0xd0] sm:$0xff] %v415_v26  ;;  %v419_v28 = vld [vmem:[%s1658_s11 + $0x1c0] sm:$0xff]  ;;  %v421_v29 = vld [vmem:[%s1658_s11 + $0x1d0] sm:$0xff]  ;;  %418 = vst [vmem:[%s1663_s12 + $0xd8] sm:$0xff] %v417_v27 }
  0x27   : > { %420 = vst [vmem:[%s1663_s12 + $0xe0] sm:$0xff] %v419_v28  ;;  %422 = vst [vmem:[%s1663_s12 + $0xe8] sm:$0xff] %v421_v29  ;;  %v423_v30 = vld [vmem:[%s1658_s11 + $0x1e0] sm:$0xff]  ;;  %v425_v31 = vld [vmem:[%s1658_s11 + $0x1f0] sm:$0xff] }
  0x28   : > { %v427_v32 = vld [vmem:[%s1658_s11 + $0x200] sm:$0xff]  ;;  %424 = vst [vmem:[%s1663_s12 + $0xf0] sm:$0xff] %v423_v30  ;;  %426 = vst [vmem:[%s1663_s12 + $0xf8] sm:$0xff] %v425_v31  ;;  %v429_v33 = vld [vmem:[%s1658_s11 + $0x210] sm:$0xff] }
  0x29   : > { %428 = vst [vmem:[%s1663_s12 + $0x100] sm:$0xff] %v427_v32  ;;  %v431_v34 = vld [vmem:[%s1658_s11 + $0x220] sm:$0xff]  ;;  %v433_v35 = vld [vmem:[%s1658_s11 + $0x230] sm:$0xff]  ;;  %430 = vst [vmem:[%s1663_s12 + $0x108] sm:$0xff] %v429_v33 }
  0x2a   : > { %432 = vst [vmem:[%s1663_s12 + $0x110] sm:$0xff] %v431_v34  ;;  %434 = vst [vmem:[%s1663_s12 + $0x118] sm:$0xff] %v433_v35  ;;  %v435_v36 = vld [vmem:[%s1658_s11 + $0x240] sm:$0xff]  ;;  %v437_v37 = vld [vmem:[%s1658_s11 + $0x250] sm:$0xff] }
  0x2b   : > { %v439_v38 = vld [vmem:[%s1658_s11 + $0x260] sm:$0xff]  ;;  %436 = vst [vmem:[%s1663_s12 + $0x120] sm:$0xff] %v435_v36  ;;  %438 = vst [vmem:[%s1663_s12 + $0x128] sm:$0xff] %v437_v37  ;;  %v441_v39 = vld [vmem:[%s1658_s11 + $0x270] sm:$0xff] }
  0x2c   : > { %440 = vst [vmem:[%s1663_s12 + $0x130] sm:$0xff] %v439_v38  ;;  %v443_v40 = vld [vmem:[%s1658_s11 + $0x280] sm:$0xff]  ;;  %v445_v41 = vld [vmem:[%s1658_s11 + $0x290] sm:$0xff]  ;;  %442 = vst [vmem:[%s1663_s12 + $0x138] sm:$0xff] %v441_v39 }
  0x2d   : > { %444 = vst [vmem:[%s1663_s12 + $0x140] sm:$0xff] %v443_v40  ;;  %446 = vst [vmem:[%s1663_s12 + $0x148] sm:$0xff] %v445_v41  ;;  %v447_v42 = vld [vmem:[%s1658_s11 + $0x2a0] sm:$0xff]  ;;  %v449_v43 = vld [vmem:[%s1658_s11 + $0x2b0] sm:$0xff] }
  0x2e   : > { %v451_v44 = vld [vmem:[%s1658_s11 + $0x2c0] sm:$0xff]  ;;  %448 = vst [vmem:[%s1663_s12 + $0x150] sm:$0xff] %v447_v42  ;;  %450 = vst [vmem:[%s1663_s12 + $0x158] sm:$0xff] %v449_v43  ;;  %v453_v45 = vld [vmem:[%s1658_s11 + $0x2d0] sm:$0xff] }
  0x2f   : > { %452 = vst [vmem:[%s1663_s12 + $0x160] sm:$0xff] %v451_v44  ;;  %v455_v46 = vld [vmem:[%s1658_s11 + $0x2e0] sm:$0xff]  ;;  %v457_v47 = vld [vmem:[%s1658_s11 + $0x2f0] sm:$0xff]  ;;  %454 = vst [vmem:[%s1663_s12 + $0x168] sm:$0xff] %v453_v45 }
  0x30   : > { %456 = vst [vmem:[%s1663_s12 + $0x170] sm:$0xff] %v455_v46  ;;  %458 = vst [vmem:[%s1663_s12 + $0x178] sm:$0xff] %v457_v47  ;;  %v459_v48 = vld [vmem:[%s1658_s11 + $0x300] sm:$0xff]  ;;  %v461_v49 = vld [vmem:[%s1658_s11 + $0x310] sm:$0xff] }
  0x31   : > { %v463_v50 = vld [vmem:[%s1658_s11 + $0x320] sm:$0xff]  ;;  %460 = vst [vmem:[%s1663_s12 + $0x180] sm:$0xff] %v459_v48  ;;  %462 = vst [vmem:[%s1663_s12 + $0x188] sm:$0xff] %v461_v49  ;;  %v465_v51 = vld [vmem:[%s1658_s11 + $0x330] sm:$0xff] }
  0x32   : > { %464 = vst [vmem:[%s1663_s12 + $0x190] sm:$0xff] %v463_v50  ;;  %v467_v52 = vld [vmem:[%s1658_s11 + $0x340] sm:$0xff]  ;;  %v469_v53 = vld [vmem:[%s1658_s11 + $0x350] sm:$0xff]  ;;  %466 = vst [vmem:[%s1663_s12 + $0x198] sm:$0xff] %v465_v51 }
  0x33   : > { %468 = vst [vmem:[%s1663_s12 + $0x1a0] sm:$0xff] %v467_v52  ;;  %470 = vst [vmem:[%s1663_s12 + $0x1a8] sm:$0xff] %v469_v53  ;;  %v471_v54 = vld [vmem:[%s1658_s11 + $0x360] sm:$0xff]  ;;  %v473_v55 = vld [vmem:[%s1658_s11 + $0x370] sm:$0xff] }
  0x34   : > { %v475_v56 = vld [vmem:[%s1658_s11 + $0x380] sm:$0xff]  ;;  %472 = vst [vmem:[%s1663_s12 + $0x1b0] sm:$0xff] %v471_v54  ;;  %474 = vst [vmem:[%s1663_s12 + $0x1b8] sm:$0xff] %v473_v55  ;;  %v477_v57 = vld [vmem:[%s1658_s11 + $0x390] sm:$0xff] }
  0x35   : > { %476 = vst [vmem:[%s1663_s12 + $0x1c0] sm:$0xff] %v475_v56  ;;  %v479_v58 = vld [vmem:[%s1658_s11 + $0x3a0] sm:$0xff]  ;;  %v481_v59 = vld [vmem:[%s1658_s11 + $0x3b0] sm:$0xff]  ;;  %478 = vst [vmem:[%s1663_s12 + $0x1c8] sm:$0xff] %v477_v57 }
  0x36   : > { %480 = vst [vmem:[%s1663_s12 + $0x1d0] sm:$0xff] %v479_v58  ;;  %482 = vst [vmem:[%s1663_s12 + $0x1d8] sm:$0xff] %v481_v59  ;;  %v483_v60 = vld [vmem:[%s1658_s11 + $0x3c0] sm:$0xff]  ;;  %v485_v61 = vld [vmem:[%s1658_s11 + $0x3d0] sm:$0xff] }
  0x37   : > { %v487_v62 = vld [vmem:[%s1658_s11 + $0x3e0] sm:$0xff]  ;;  %484 = vst [vmem:[%s1663_s12 + $0x1e0] sm:$0xff] %v483_v60  ;;  %486 = vst [vmem:[%s1663_s12 + $0x1e8] sm:$0xff] %v485_v61  ;;  %v489_v63 = vld [vmem:[%s1658_s11 + $0x3f0] sm:$0xff] }
  0x38   : > { %488 = vst [vmem:[%s1663_s12 + $0x1f0] sm:$0xff] %v487_v62  ;;  %490 = vst [vmem:[%s1663_s12 + $0x1f8] sm:$0xff] %v489_v63 }
  0x39 PF: > { %p1276_p7 = scmp.ge.s32.totalorder %s1570_s21, 1  ;;  %p511_p8 = scmp.lt.s32.totalorder %s1570_s21, 19 }
  0x3b   : > { %p512_p9 = pnand %p1276_p7, %p511_p8 }
  0x3c   : > { %s518_s13 = sand.u32 (!%p512_p9), 1, %s1546_s15   ;;  %s1278_s14 = sshll.u32 (!%p512_p9), %s1554_s17, 2 }
  0x3d   : > { %515 = sbr.rel (%p512_p9) target bundleno = 378 (0x17a), region = 70  ;;  %s1277_s24 = sshll.u32 (!%p512_p9), %s518_s13, 9 }
  0x3e   : > { %p567_p10 = scmp.lt.s32.totalorder (!%p512_p9), %s1278_s14, 35  ;;  %s1280_s25 = sshll.u32 (!%p512_p9), %s1558_s18, 1 }
  0x3f   : > { %p577_p11 = scmp.lt.s32.totalorder (!%p512_p9), %s1280_s25, 3  ;;  %s1816_s13 = scalar_lea.vmem (!%p512_p9), [#allocation3], %s1277_s24 }
  0x40   : > { %p1284_p12 = scmp.ne.s32.totalorder (!%p512_p9), %s1554_s17, 0 }
  0x44   : > { %s1936_s14 = smov (!%p567_p10, %s1278_s14), 35  ;;  %s1938_s25 = smov (!%p577_p11, %s1280_s25), 3 }
  0x45   : > { %s1279_s26 = sshll.u32 %s1936_s14, 2  ;;  %s579_s15 = scalar_lea.vmem %s1920_s2, %s1938_s25  ;;  %v1572_v0 = vmov (!%p1284_p12), 0.0  }
  0x46   : > { %s1798_s30 = scalar_lea.vmem %s1918_s0, %s1279_s26  ;;  %s584_s18 = scalar_lea.vmem %s1921_s3, %s1938_s25  ;;  %600 = vst [vmem:[#allocation2] sm:$0xff] (!%p1284_p12), %v1572_v0  ;;  %601 = vst [vmem:[#allocation2 + $0x8] sm:$0xff] (!%p1284_p12), %v1572_v0 }
  0x47   : > { %s1283_s9 = sshll.u32 %s1938_s25, 2  ;;  %599 = sbr.rel (%p1284_p12) target bundleno = 78 (0x4e), region = 78 }
  0x48   : > { %s1814_s12 = scalar_lea.vmem %s1922_s4, %s1283_s9 }
  0x4e PF: > { %v1416_v1 = vld [vmem:[%s1816_s13 + $0x4] ss:$8 sps:$4 sm:$0xff]   ;;  %v1420_v3 = vld [vmem:[%s1816_s13] ss:$8 sps:$4 sm:$0xff]   ;;  %v1422_v5 = vld [vmem:[%s1816_s13 + $0x14] ss:$8 sps:$4 sm:$0xff]  }
  0x4f   : > { %v1418_v2 = vld [vmem:[%s1816_s13 + $0x104] ss:$8 sps:$4 sm:$0xff]   ;;  %1004 = vmatprep.subr.bf16.mxu0 %v1416_v1  ;;  %v1421_v4 = vld [vmem:[%s1816_s13 + $0x100] ss:$8 sps:$4 sm:$0xff]   ;;  %v1424_v6 = vld [vmem:[%s1816_s13 + $0x114] ss:$8 sps:$4 sm:$0xff]  }
  0x50   : > { %1045 = vmatprep.subr.bf16.mxu1 %v1418_v2  ;;  %1005 = vmatpush1.bf16.msra.mxu0 %v1420_v3  ;;  %v1426_v7 = vld [vmem:[%s1816_s13 + $0x10] ss:$8 sps:$4 sm:$0xff]   ;;  %v1428_v9 = vld [vmem:[%s1816_s13 + $0x24] ss:$8 sps:$4 sm:$0xff]   ;;  %v1432_v11 = vld [vmem:[%s1816_s13 + $0x20] ss:$8 sps:$4 sm:$0xff]  }
  0x51   : > { %1046 = vmatpush1.bf16.msra.mxu1 %v1421_v4  ;;  %1006 = vmatprep.subr.bf16.mxu0 %v1422_v5  ;;  %v1427_v8 = vld [vmem:[%s1816_s13 + $0x110] ss:$8 sps:$4 sm:$0xff]   ;;  %v1430_v10 = vld [vmem:[%s1816_s13 + $0x124] ss:$8 sps:$4 sm:$0xff]   ;;  %v1433_v12 = vld [vmem:[%s1816_s13 + $0x120] ss:$8 sps:$4 sm:$0xff]  }
  0x52   : > { %1047 = vmatprep.subr.bf16.mxu1 %v1424_v6  ;;  %v1434_v13 = vld [vmem:[%s1816_s13 + $0x34] ss:$8 sps:$4 sm:$0xff]   ;;  %v1438_v15 = vld [vmem:[%s1816_s13 + $0x30] ss:$8 sps:$4 sm:$0xff]   ;;  %v1440_v17 = vld [vmem:[%s1816_s13 + $0x44] ss:$8 sps:$4 sm:$0xff]  }
  0x53   : > { %v1436_v14 = vld [vmem:[%s1816_s13 + $0x134] ss:$8 sps:$4 sm:$0xff]   ;;  %v1439_v16 = vld [vmem:[%s1816_s13 + $0x130] ss:$8 sps:$4 sm:$0xff]   ;;  %v1442_v18 = vld [vmem:[%s1816_s13 + $0x144] ss:$8 sps:$4 sm:$0xff]  }
  0x54   : > { %1007 = vmatpush1.bf16.msra.mxu0 %v1426_v7  ;;  %v1444_v19 = vld [vmem:[%s1816_s13 + $0x40] ss:$8 sps:$4 sm:$0xff]   ;;  %v1446_v21 = vld [vmem:[%s1816_s13 + $0x54] ss:$8 sps:$4 sm:$0xff]   ;;  %v1450_v23 = vld [vmem:[%s1816_s13 + $0x50] ss:$8 sps:$4 sm:$0xff]  }
  0x55   : > { %1048 = vmatpush1.bf16.msra.mxu1 %v1427_v8  ;;  %1008 = vmatprep.subr.bf16.mxu0 %v1428_v9  ;;  %v1445_v20 = vld [vmem:[%s1816_s13 + $0x140] ss:$8 sps:$4 sm:$0xff]   ;;  %v1448_v22 = vld [vmem:[%s1816_s13 + $0x154] ss:$8 sps:$4 sm:$0xff]   ;;  %v1451_v24 = vld [vmem:[%s1816_s13 + $0x150] ss:$8 sps:$4 sm:$0xff]  }
  0x56   : > { %1049 = vmatprep.subr.bf16.mxu1 %v1430_v10  ;;  %v1452_v25 = vld [vmem:[%s1816_s13 + $0x64] ss:$8 sps:$4 sm:$0xff]   ;;  %v1456_v27 = vld [vmem:[%s1816_s13 + $0x60] ss:$8 sps:$4 sm:$0xff]   ;;  %v1458_v29 = vld [vmem:[%s1816_s13 + $0x74] ss:$8 sps:$4 sm:$0xff]  }
  0x57   : > { %v1454_v26 = vld [vmem:[%s1816_s13 + $0x164] ss:$8 sps:$4 sm:$0xff]   ;;  %v1457_v28 = vld [vmem:[%s1816_s13 + $0x160] ss:$8 sps:$4 sm:$0xff]   ;;  %v1460_v30 = vld [vmem:[%s1816_s13 + $0x174] ss:$8 sps:$4 sm:$0xff]  }
  0x58   : > { %1009 = vmatpush1.bf16.msra.mxu0 %v1432_v11  ;;  %v1462_v31 = vld [vmem:[%s1816_s13 + $0x70] ss:$8 sps:$4 sm:$0xff]   ;;  %v1464_v33 = vld [vmem:[%s1816_s13 + $0x84] ss:$8 sps:$4 sm:$0xff]   ;;  %v1468_v35 = vld [vmem:[%s1816_s13 + $0x80] ss:$8 sps:$4 sm:$0xff]  }
  0x59   : > { %1050 = vmatpush1.bf16.msra.mxu1 %v1433_v12  ;;  %1010 = vmatprep.subr.bf16.mxu0 %v1434_v13  ;;  %v1463_v32 = vld [vmem:[%s1816_s13 + $0x170] ss:$8 sps:$4 sm:$0xff]   ;;  %v1466_v34 = vld [vmem:[%s1816_s13 + $0x184] ss:$8 sps:$4 sm:$0xff]   ;;  %v1469_v36 = vld [vmem:[%s1816_s13 + $0x180] ss:$8 sps:$4 sm:$0xff]  }
  0x5a   : > { %1051 = vmatprep.subr.bf16.mxu1 %v1436_v14  ;;  %v1470_v37 = vld [vmem:[%s1816_s13 + $0x94] ss:$8 sps:$4 sm:$0xff]   ;;  %v1474_v39 = vld [vmem:[%s1816_s13 + $0x90] ss:$8 sps:$4 sm:$0xff]   ;;  %v1476_v41 = vld [vmem:[%s1816_s13 + $0xa4] ss:$8 sps:$4 sm:$0xff]  }
  0x5b   : > { %v1472_v38 = vld [vmem:[%s1816_s13 + $0x194] ss:$8 sps:$4 sm:$0xff]   ;;  %v1475_v40 = vld [vmem:[%s1816_s13 + $0x190] ss:$8 sps:$4 sm:$0xff]   ;;  %v1478_v42 = vld [vmem:[%s1816_s13 + $0x1a4] ss:$8 sps:$4 sm:$0xff]  }
  0x5c   : > { %1011 = vmatpush1.bf16.msra.mxu0 %v1438_v15  ;;  %v1480_v43 = vld [vmem:[%s1816_s13 + $0xa0] ss:$8 sps:$4 sm:$0xff]   ;;  %v1482_v45 = vld [vmem:[%s1816_s13 + $0xb4] ss:$8 sps:$4 sm:$0xff]   ;;  %v1486_v50 = vld [vmem:[%s1816_s13 + $0xb0] ss:$8 sps:$4 sm:$0xff]  }
  0x5d   : > { %1052 = vmatpush1.bf16.msra.mxu1 %v1439_v16  ;;  %1012 = vmatprep.subr.bf16.mxu0 %v1440_v17  ;;  %v1481_v44 = vld [vmem:[%s1816_s13 + $0x1a0] ss:$8 sps:$4 sm:$0xff]   ;;  %v1484_v46 = vld [vmem:[%s1816_s13 + $0x1b4] ss:$8 sps:$4 sm:$0xff]   ;;  %v1487_v51 = vld [vmem:[%s1816_s13 + $0x1b0] ss:$8 sps:$4 sm:$0xff]  }
  0x5e   : > { %1053 = vmatprep.subr.bf16.mxu1 %v1442_v18  ;;  %v604_v47 = vld [vmem:[%s1798_s30] sm:$0xff]  ;;  %v605_v49 = vld [vmem:[%s1798_s30 + $0x8] sm:$0xff]  ;;  %v1488_v53 = vld [vmem:[%s1816_s13 + $0xc4] ss:$8 sps:$4 sm:$0xff]   ;;  %p1353_p13 = scmp.ne.s32.totalorder %s1554_s17, 8 }
  0x5f   : > { %v1286_v48 = vcombine.high %v604_v47, %v604_v47  ;;  %v1288_v52 = vcombine.high %v605_v49, %v605_v49  ;;  %v1490_v54 = vld [vmem:[%s1816_s13 + $0x1c4] ss:$8 sps:$4 sm:$0xff]   ;;  %v1492_v55 = vld [vmem:[%s1816_s13 + $0xc0] ss:$8 sps:$4 sm:$0xff]   ;;  %v1494_v57 = vld [vmem:[%s1816_s13 + $0xd4] ss:$8 sps:$4 sm:$0xff]   ;;  %v1285_v5 = vcombine.low %v604_v47, %v604_v47  ;;  %v1287_v6 = vcombine.low %v605_v49, %v605_v49 }
  0x60   : > { %1013 = vmatpush1.bf16.msra.mxu0 %v1444_v19  ;;  %v1493_v56 = vld [vmem:[%s1816_s13 + $0x1c0] ss:$8 sps:$4 sm:$0xff]   ;;  %v1496_v58 = vld [vmem:[%s1816_s13 + $0x1d4] ss:$8 sps:$4 sm:$0xff]   ;;  %v1498_v59 = vld [vmem:[%s1816_s13 + $0xd0] ss:$8 sps:$4 sm:$0xff]  }
  0x61   : > { %1054 = vmatpush1.bf16.msra.mxu1 %v1445_v20  ;;  %1014 = vmatprep.subr.bf16.mxu0 %v1446_v21  ;;  %v1499_v60 = vld [vmem:[%s1816_s13 + $0x1d0] ss:$8 sps:$4 sm:$0xff]   ;;  %v1500_v61 = vld [vmem:[%s1816_s13 + $0xe4] ss:$8 sps:$4 sm:$0xff]   ;;  %v1504_v63 = vld [vmem:[%s1816_s13 + $0xe0] ss:$8 sps:$4 sm:$0xff]   ;;  %v1098_v21 = vlaneseq (!%p1353_p13) }
  0x62   : > { %1055 = vmatprep.subr.bf16.mxu1 %v1448_v22  ;;  %1036 = vmatprep.mubr.bf16.mxu0 %v1286_v48  ;;  %v1502_v62 = vld [vmem:[%s1816_s13 + $0x1e4] ss:$8 sps:$4 sm:$0xff]   ;;  %v1505_v0 = vld [vmem:[%s1816_s13 + $0x1e0] ss:$8 sps:$4 sm:$0xff]   ;;  %v1506_v1 = vld [vmem:[%s1816_s13 + $0xf4] ss:$8 sps:$4 sm:$0xff]  }
  0x63   : > { %1077 = vmatprep.mubr.bf16.mxu1 %v1288_v52  ;;  %v1508_v2 = vld [vmem:[%s1816_s13 + $0x1f4] ss:$8 sps:$4 sm:$0xff]   ;;  %v1510_v3 = vld [vmem:[%s1816_s13 + $0xf0] ss:$8 sps:$4 sm:$0xff]   ;;  %v1099_v22 = vshrl.u32 (!%p1353_p13), %v1098_v21, 7 }
  0x64   : > { %1015 = vmatpush1.bf16.msra.mxu0 %v1450_v23  ;;  %v1511_v4 = vld [vmem:[%s1816_s13 + $0x1f0] ss:$8 sps:$4 sm:$0xff]  }
  0x65   : > { %1056 = vmatpush1.bf16.msra.mxu1 %v1451_v24  ;;  %1016 = vmatprep.subr.bf16.mxu0 %v1452_v25  ;;  %v602_v8 = vld [vmem:[#allocation2] sm:$0xff]  ;;  %v603_v12 = vld [vmem:[#allocation2 + $0x8] sm:$0xff]  ;;  %v1100_v25 = vsub.s32 (!%p1353_p13), 0, %v1099_v22 }
  0x66   : > { %1057 = vmatprep.subr.bf16.mxu1 %v1454_v26  ;;  %v1096_v23 = vld [vmem:[%s579_s15] sm:$0x3] (!%p1353_p13)  ;;  %v1104_v26 = vsub.s32 (!%p1353_p13), 1, %v1099_v22 }
  0x67   : > { %v1110_v24 = vld [vmem:[%s584_s18] sm:$0x3] (!%p1353_p13) }
  0x68   : > { %1017 = vmatpush1.bf16.msra.mxu0 %v1456_v27 }
  0x69   : > { %1058 = vmatpush1.bf16.msra.mxu1 %v1457_v28  ;;  %1018 = vmatprep.subr.bf16.mxu0 %v1458_v29  ;;  %v1101_v29 = vrot.slane (!%p1353_p13), %v1096_v23, %v1100_v25 }
  0x6a   : > { %1059 = vmatprep.subr.bf16.mxu1 %v1460_v30  ;;  %v1105_v30 = vrot.slane (!%p1353_p13), %v1096_v23, %v1104_v26 }
  0x6c   : > { %1019 = vmatpush1.bf16.msra.mxu0 %v1462_v31  ;;  %v1115_v31 = vrot.slane (!%p1353_p13), %v1110_v24, %v1100_v25 }
  0x6d   : > { %1060 = vmatpush1.bf16.msra.mxu1 %v1463_v32  ;;  %1020 = vmatprep.subr.bf16.mxu0 %v1464_v33  ;;  %v1119_v32 = vrot.slane (!%p1353_p13), %v1110_v24, %v1104_v26 }
  0x6e   : > { %1061 = vmatprep.subr.bf16.mxu1 %v1466_v34 }
  0x70   : > { %1021 = vmatpush1.bf16.msra.mxu0 %v1468_v35 }
  0x71   : > { %1062 = vmatpush1.bf16.msra.mxu1 %v1469_v36  ;;  %1022 = vmatprep.subr.bf16.mxu0 %v1470_v37 }
  0x72   : > { %1063 = vmatprep.subr.bf16.mxu1 %v1472_v38 }
  0x74   : > { %1023 = vmatpush1.bf16.msra.mxu0 %v1474_v39 }
  0x75   : > { %1064 = vmatpush1.bf16.msra.mxu1 %v1475_v40  ;;  %1024 = vmatprep.subr.bf16.mxu0 %v1476_v41 }
  0x76   : > { %1065 = vmatprep.subr.bf16.mxu1 %v1478_v42 }
  0x78   : > { %1025 = vmatpush1.bf16.msra.mxu0 %v1480_v43 }
  0x79   : > { %1066 = vmatpush1.bf16.msra.mxu1 %v1481_v44  ;;  %1026 = vmatprep.subr.bf16.mxu0 %v1482_v45 }
  0x7a   : > { %1067 = vmatprep.subr.bf16.mxu1 %v1484_v46 }
  0x7c   : > { %1027 = vmatpush1.bf16.msra.mxu0 %v1486_v50 }
  0x7d   : > { %1068 = vmatpush1.bf16.msra.mxu1 %v1487_v51  ;;  %1028 = vmatprep.subr.bf16.mxu0 %v1488_v53 }
  0x7e   : > { %1069 = vmatprep.subr.bf16.mxu1 %v1490_v54 }
  0x80   : > { %1029 = vmatpush1.bf16.msra.mxu0 %v1492_v55 }
  0x81   : > { %1070 = vmatpush1.bf16.msra.mxu1 %v1493_v56  ;;  %1030 = vmatprep.subr.bf16.mxu0 %v1494_v57 }
  0x82   : > { %1071 = vmatprep.subr.bf16.mxu1 %v1496_v58 }
  0x84   : > { %1031 = vmatpush1.bf16.msra.mxu0 %v1498_v59 }
  0x85   : > { %1072 = vmatpush1.bf16.msra.mxu1 %v1499_v60  ;;  %1032 = vmatprep.subr.bf16.mxu0 %v1500_v61 }
  0x86   : > { %1073 = vmatprep.subr.bf16.mxu1 %v1502_v62 }
  0x88   : > { %1033 = vmatpush1.bf16.msra.mxu0 %v1504_v63 }
  0x89   : > { %1074 = vmatpush1.bf16.msra.mxu1 %v1505_v0  ;;  %1034 = vmatprep.subr.bf16.mxu0 %v1506_v1 }
  0x8a   : > { %1075 = vmatprep.subr.bf16.mxu1 %v1508_v2 }
  0x8c   : > { %1035 = vmatpush1.bf16.msra.mxu0 %v1510_v3 }
  0x8d   : > { %1076 = vmatpush1.bf16.msra.mxu1 %v1511_v4 }
  0x8f   : > { %1037 = vmatmul.mubr.bf16.vlgmr.msra.gmra.mrb[0].mxu0 %v1285_v5 }
  0x90   : > { %1078 = vmatmul.mubr.bf16.vlgmr.msra.gmra.mrb[0].mxu1 %v1287_v6 }
 0x162   : > { %v1038_v7 = vpop.f32.mrb[0].mxu0 }
 0x163   : > { %v1079_v9 = vpop.f32.mrb[0].mxu1  ;;  %v1040_v11 = vpop.f32.mrb[1].mxu0  ;;  %1093 = sbr.rel (%p1353_p13) target bundleno = 378 (0x17a), region = 82 }
 0x164   : > { %v1080_v10 = vadd.f32 %v1079_v9, %v1038_v7  ;;  %v1081_v13 = vpop.f32.mrb[1].mxu1  ;;  %v1042_v15 = vpop.f32.mrb[2].mxu0 }
 0x165   : > { %v1082_v14 = vadd.f32 %v1081_v13, %v1040_v11  ;;  %v1083_v16 = vpop.f32.mrb[2].mxu1  ;;  %v1043_v18 = vpop.f32.mrb[3].mxu0 }
 0x166   : > { %v1086_v17 = vadd.f32 %v1080_v10, %v602_v8  ;;  %v1084_v19 = vpop.f32.mrb[3].mxu1 }
 0x167   : > { %v1087_v20 = vadd.f32 %v1082_v14, %v603_v12 }
 0x168   : > { %1088 = vst [vmem:[#allocation2] sm:$0xff] %v1086_v17 }
 0x169   : > { %1089 = vst [vmem:[#allocation2 + $0x8] sm:$0xff] %v1087_v20 }
 0x16f   : > { %v1094_v27 = vld [vmem:[#allocation2] sm:$0xff] }
 0x170   : > { %v1095_v28 = vld [vmem:[#allocation2 + $0x8] sm:$0xff]  ;;  %v1108_v33 = vmul.f32 %v1101_v29, %v1094_v27 }
 0x171   : > { %v1109_v34 = vmul.f32 %v1105_v30, %v1095_v28 }
 0x172   : > { %v1122_v35 = vadd.f32 %v1115_v31, %v1108_v33 }
 0x173   : > { %v1123_v36 = vadd.f32 %v1119_v32, %v1109_v34 }
 0x174   : > { %v1124_v37 = vmax.f32 %v1122_v35, 0.0 }
 0x175   : > { %v1125_v38 = vmax.f32 %v1123_v36, 0.0 }
 0x177   : > { %v1358_v39 = vpack.c.bf16 %v1125_v38, %v1124_v37 }
 0x179   : > { %1134 = vst [vmem:[%s1814_s12] sm:$0xff] %v1358_v39 }
 0x17a PF: > { %s14_s21 = sadd.s32 1, %s1570_s21   ;;  %s1923_s15 = smov %s1550_s16 }
 0x17b   : > { %p11_p0 = scmp.ge.s32.totalorder %s14_s21, 20   ;;  %s1924_s16 = smov %s1649_s28 }
 0x17c   : > { %s1925_s17 = smov %s1562_s19  ;;  %s1926_s18 = smov %s1566_s20 }
 0x17d   : > { %s1927_s19 = smov %s1930_s22  ;;  %s1928_s20 = smov %s1934_s23 }
 0x17e   :  { %13 = sbr.rel (!%p11_p0) target bundleno = 4 (0x4), region = 126 }

// kernel: resnet18_forward.44
= control target key start
LH: loop header
LB: loop body
LE: loop exit
PB: predicated region body
PF: predicated region fallthrough
CT: control target
= control target key end

     0   :  { %s1558_s15 = smov 0   ;;  %s1560_s16 = smov 0   ;;  %s1845_s0 = inlined_call_operand.vmem [shape: bf16[8,512], index: 0, kind: input, shape index: {}]   ;;  %s1846_s1 = inlined_call_operand.vmem [shape: bf16[512,1024], index: 1, kind: input, shape index: {}]   ;;  %s1847_s2 = inlined_call_operand.vmem [shape: f32[1,1024], index: 2, kind: input, shape index: {}]   ;;  %s1848_s3 = inlined_call_operand.vmem [shape: f32[1,1024], index: 3, kind: input, shape index: {}]   ;;  %s1849_s4 = inlined_call_operand.vmem [shape: bf16[8,1024], index: 4, kind: output, shape index: {}]  }
   0x1   :  { %s1562_s17 = smov 0   ;;  %s1564_s18 = smov 0  }
   0x2   :  { %s1566_s19 = smov 0  }
   0x3 LB: > { %s29_s20 = sadd.s32 1, %s1527_s18  ;;  %p77_p1 = scmp.ne.s32.totalorder %s1519_s16, %s1515_s15  ;;  %s1531_s19 = sphi %s1566_s19, %s14_s19   ;;  %s1527_s18 = sphi %s1564_s18, %s1853_s18   ;;  %s1523_s17 = sphi %s1562_s17, %s1852_s17   ;;  %s1519_s16 = sphi %s1560_s16, %s1851_s16   ;;  %s1515_s15 = sphi %s1558_s15, %s1850_s15  }
   0x4   : > { %p31_p0 = scmp.ge.s32.totalorder %s29_s20, 4  ;;  %p78_p2 = scmp.eq.s32.totalorder %s1531_s19, 0 }
   0x5   : > { %s70_s22 = sadd.s32 1, %s1519_s16  ;;  %p1268_p5 = scmp.ge.s32.totalorder %s1531_s19, 4 }
   0x6   : > { %s1855_s20 = smov (%p31_p0, %s29_s20), 0  ;;  %p79_p3 = por %p78_p2, %p77_p1 }
   0x7   : > { %s66_s21 = ssub.s32 %s1527_s18, %s1855_s20  ;;  %196 = sbr.rel (%p1268_p5) target bundleno = 82 (0x52), region = 20 }
   0x8   : > { %p68_p4 = scmp.eq.s32.totalorder %s66_s21, 0 }
   0xa   : > { %s1593_s23 = scalar_select %p68_p4, %s1519_s16, %s70_s22  }
   0xe   : > { %199 = sbr.rel (!%p79_p3) target bundleno = 82 (0x52), region = 24  ;;  %s201_s24 = sand.u32 (%p79_p3), 1, %s1519_s16  }
   0xf   : > { %s1349_s25 = sshll.u32 (%p79_p3), %s1527_s18, 3  ;;  %s1269_s26 = sshll.u32 (%p79_p3), %s201_s24, 9 }
  0x10   : > { %s1601_s29 = scalar_lea.vmem (%p79_p3), %s1846_s1, %s1349_s25  ;;  %s1606_s30 = scalar_lea.vmem (%p79_p3), [#allocation3], %s1269_s26 }
  0x11   : > { %v363_v0 = vld [vmem:[%s1601_s29] sm:$0xff] (%p79_p3) }
  0x12   : > { %v365_v1 = vld [vmem:[%s1601_s29 + $0x20] sm:$0xff] (%p79_p3)  ;;  %364 = vst [vmem:[%s1606_s30] sm:$0xff] (%p79_p3), %v363_v0 }
  0x13   : > { %v367_v2 = vld [vmem:[%s1601_s29 + $0x40] sm:$0xff] (%p79_p3)  ;;  %366 = vst [vmem:[%s1606_s30 + $0x8] sm:$0xff] (%p79_p3), %v365_v1 }
  0x14   : > { %368 = vst [vmem:[%s1606_s30 + $0x10] sm:$0xff] (%p79_p3), %v367_v2  ;;  %v369_v3 = vld [vmem:[%s1601_s29 + $0x60] sm:$0xff] (%p79_p3) }
  0x15   : > { %v371_v4 = vld [vmem:[%s1601_s29 + $0x80] sm:$0xff]  ;;  %370 = vst [vmem:[%s1606_s30 + $0x18] sm:$0xff] %v369_v3 }
  0x16   : > { %v373_v5 = vld [vmem:[%s1601_s29 + $0xa0] sm:$0xff]  ;;  %372 = vst [vmem:[%s1606_s30 + $0x20] sm:$0xff] %v371_v4 }
  0x17   : > { %374 = vst [vmem:[%s1606_s30 + $0x28] sm:$0xff] %v373_v5  ;;  %v375_v6 = vld [vmem:[%s1601_s29 + $0xc0] sm:$0xff] }
  0x18   : > { %v377_v7 = vld [vmem:[%s1601_s29 + $0xe0] sm:$0xff]  ;;  %376 = vst [vmem:[%s1606_s30 + $0x30] sm:$0xff] %v375_v6 }
  0x19   : > { %v379_v8 = vld [vmem:[%s1601_s29 + $0x100] sm:$0xff]  ;;  %378 = vst [vmem:[%s1606_s30 + $0x38] sm:$0xff] %v377_v7 }
  0x1a   : > { %380 = vst [vmem:[%s1606_s30 + $0x40] sm:$0xff] %v379_v8  ;;  %v381_v9 = vld [vmem:[%s1601_s29 + $0x120] sm:$0xff] }
  0x1b   : > { %v383_v10 = vld [vmem:[%s1601_s29 + $0x140] sm:$0xff]  ;;  %382 = vst [vmem:[%s1606_s30 + $0x48] sm:$0xff] %v381_v9 }
  0x1c   : > { %v385_v11 = vld [vmem:[%s1601_s29 + $0x160] sm:$0xff]  ;;  %384 = vst [vmem:[%s1606_s30 + $0x50] sm:$0xff] %v383_v10 }
  0x1d   : > { %386 = vst [vmem:[%s1606_s30 + $0x58] sm:$0xff] %v385_v11  ;;  %v387_v12 = vld [vmem:[%s1601_s29 + $0x180] sm:$0xff] }
  0x1e   : > { %v389_v13 = vld [vmem:[%s1601_s29 + $0x1a0] sm:$0xff]  ;;  %388 = vst [vmem:[%s1606_s30 + $0x60] sm:$0xff] %v387_v12 }
  0x1f   : > { %v391_v14 = vld [vmem:[%s1601_s29 + $0x1c0] sm:$0xff]  ;;  %390 = vst [vmem:[%s1606_s30 + $0x68] sm:$0xff] %v389_v13 }
  0x20   : > { %392 = vst [vmem:[%s1606_s30 + $0x70] sm:$0xff] %v391_v14  ;;  %v393_v15 = vld [vmem:[%s1601_s29 + $0x1e0] sm:$0xff] }
  0x21   : > { %v395_v16 = vld [vmem:[%s1601_s29 + $0x200] sm:$0xff]  ;;  %394 = vst [vmem:[%s1606_s30 + $0x78] sm:$0xff] %v393_v15 }
  0x22   : > { %v397_v17 = vld [vmem:[%s1601_s29 + $0x220] sm:$0xff]  ;;  %396 = vst [vmem:[%s1606_s30 + $0x80] sm:$0xff] %v395_v16 }
  0x23   : > { %398 = vst [vmem:[%s1606_s30 + $0x88] sm:$0xff] %v397_v17  ;;  %v399_v18 = vld [vmem:[%s1601_s29 + $0x240] sm:$0xff] }
  0x24   : > { %v401_v19 = vld [vmem:[%s1601_s29 + $0x260] sm:$0xff]  ;;  %400 = vst [vmem:[%s1606_s30 + $0x90] sm:$0xff] %v399_v18 }
  0x25   : > { %v403_v20 = vld [vmem:[%s1601_s29 + $0x280] sm:$0xff]  ;;  %402 = vst [vmem:[%s1606_s30 + $0x98] sm:$0xff] %v401_v19 }
  0x26   : > { %404 = vst [vmem:[%s1606_s30 + $0xa0] sm:$0xff] %v403_v20  ;;  %v405_v21 = vld [vmem:[%s1601_s29 + $0x2a0] sm:$0xff] }
  0x27   : > { %v407_v22 = vld [vmem:[%s1601_s29 + $0x2c0] sm:$0xff]  ;;  %406 = vst [vmem:[%s1606_s30 + $0xa8] sm:$0xff] %v405_v21 }
  0x28   : > { %v409_v23 = vld [vmem:[%s1601_s29 + $0x2e0] sm:$0xff]  ;;  %408 = vst [vmem:[%s1606_s30 + $0xb0] sm:$0xff] %v407_v22 }
  0x29   : > { %410 = vst [vmem:[%s1606_s30 + $0xb8] sm:$0xff] %v409_v23  ;;  %v411_v24 = vld [vmem:[%s1601_s29 + $0x300] sm:$0xff] }
  0x2a   : > { %v413_v25 = vld [vmem:[%s1601_s29 + $0x320] sm:$0xff]  ;;  %412 = vst [vmem:[%s1606_s30 + $0xc0] sm:$0xff] %v411_v24 }
  0x2b   : > { %v415_v26 = vld [vmem:[%s1601_s29 + $0x340] sm:$0xff]  ;;  %414 = vst [vmem:[%s1606_s30 + $0xc8] sm:$0xff] %v413_v25 }
  0x2c   : > { %416 = vst [vmem:[%s1606_s30 + $0xd0] sm:$0xff] %v415_v26  ;;  %v417_v27 = vld [vmem:[%s1601_s29 + $0x360] sm:$0xff] }
  0x2d   : > { %v419_v28 = vld [vmem:[%s1601_s29 + $0x380] sm:$0xff]  ;;  %418 = vst [vmem:[%s1606_s30 + $0xd8] sm:$0xff] %v417_v27 }
  0x2e   : > { %v421_v29 = vld [vmem:[%s1601_s29 + $0x3a0] sm:$0xff]  ;;  %420 = vst [vmem:[%s1606_s30 + $0xe0] sm:$0xff] %v419_v28 }
  0x2f   : > { %422 = vst [vmem:[%s1606_s30 + $0xe8] sm:$0xff] %v421_v29  ;;  %v423_v30 = vld [vmem:[%s1601_s29 + $0x3c0] sm:$0xff] }
  0x30   : > { %v425_v31 = vld [vmem:[%s1601_s29 + $0x3e0] sm:$0xff]  ;;  %424 = vst [vmem:[%s1606_s30 + $0xf0] sm:$0xff] %v423_v30 }
  0x31   : > { %v427_v32 = vld [vmem:[%s1601_s29 + $0x400] sm:$0xff]  ;;  %426 = vst [vmem:[%s1606_s30 + $0xf8] sm:$0xff] %v425_v31 }
  0x32   : > { %428 = vst [vmem:[%s1606_s30 + $0x100] sm:$0xff] %v427_v32  ;;  %v429_v33 = vld [vmem:[%s1601_s29 + $0x420] sm:$0xff] }
  0x33   : > { %v431_v34 = vld [vmem:[%s1601_s29 + $0x440] sm:$0xff]  ;;  %430 = vst [vmem:[%s1606_s30 + $0x108] sm:$0xff] %v429_v33 }
  0x34   : > { %v433_v35 = vld [vmem:[%s1601_s29 + $0x460] sm:$0xff]  ;;  %432 = vst [vmem:[%s1606_s30 + $0x110] sm:$0xff] %v431_v34 }
  0x35   : > { %434 = vst [vmem:[%s1606_s30 + $0x118] sm:$0xff] %v433_v35  ;;  %v435_v36 = vld [vmem:[%s1601_s29 + $0x480] sm:$0xff] }
  0x36   : > { %v437_v37 = vld [vmem:[%s1601_s29 + $0x4a0] sm:$0xff]  ;;  %436 = vst [vmem:[%s1606_s30 + $0x120] sm:$0xff] %v435_v36 }
  0x37   : > { %v439_v38 = vld [vmem:[%s1601_s29 + $0x4c0] sm:$0xff]  ;;  %438 = vst [vmem:[%s1606_s30 + $0x128] sm:$0xff] %v437_v37 }
  0x38   : > { %440 = vst [vmem:[%s1606_s30 + $0x130] sm:$0xff] %v439_v38  ;;  %v441_v39 = vld [vmem:[%s1601_s29 + $0x4e0] sm:$0xff] }
  0x39   : > { %v443_v40 = vld [vmem:[%s1601_s29 + $0x500] sm:$0xff]  ;;  %442 = vst [vmem:[%s1606_s30 + $0x138] sm:$0xff] %v441_v39 }
  0x3a   : > { %v445_v41 = vld [vmem:[%s1601_s29 + $0x520] sm:$0xff]  ;;  %444 = vst [vmem:[%s1606_s30 + $0x140] sm:$0xff] %v443_v40 }
  0x3b   : > { %446 = vst [vmem:[%s1606_s30 + $0x148] sm:$0xff] %v445_v41  ;;  %v447_v42 = vld [vmem:[%s1601_s29 + $0x540] sm:$0xff] }
  0x3c   : > { %v449_v43 = vld [vmem:[%s1601_s29 + $0x560] sm:$0xff]  ;;  %448 = vst [vmem:[%s1606_s30 + $0x150] sm:$0xff] %v447_v42 }
  0x3d   : > { %v451_v44 = vld [vmem:[%s1601_s29 + $0x580] sm:$0xff]  ;;  %450 = vst [vmem:[%s1606_s30 + $0x158] sm:$0xff] %v449_v43 }
  0x3e   : > { %452 = vst [vmem:[%s1606_s30 + $0x160] sm:$0xff] %v451_v44  ;;  %v453_v45 = vld [vmem:[%s1601_s29 + $0x5a0] sm:$0xff] }
  0x3f   : > { %v455_v46 = vld [vmem:[%s1601_s29 + $0x5c0] sm:$0xff]  ;;  %454 = vst [vmem:[%s1606_s30 + $0x168] sm:$0xff] %v453_v45 }
  0x40   : > { %v457_v47 = vld [vmem:[%s1601_s29 + $0x5e0] sm:$0xff]  ;;  %456 = vst [vmem:[%s1606_s30 + $0x170] sm:$0xff] %v455_v46 }
  0x41   : > { %458 = vst [vmem:[%s1606_s30 + $0x178] sm:$0xff] %v457_v47  ;;  %v459_v48 = vld [vmem:[%s1601_s29 + $0x600] sm:$0xff] }
  0x42   : > { %v461_v49 = vld [vmem:[%s1601_s29 + $0x620] sm:$0xff]  ;;  %460 = vst [vmem:[%s1606_s30 + $0x180] sm:$0xff] %v459_v48 }
  0x43   : > { %v463_v50 = vld [vmem:[%s1601_s29 + $0x640] sm:$0xff]  ;;  %462 = vst [vmem:[%s1606_s30 + $0x188] sm:$0xff] %v461_v49 }
  0x44   : > { %464 = vst [vmem:[%s1606_s30 + $0x190] sm:$0xff] %v463_v50  ;;  %v465_v51 = vld [vmem:[%s1601_s29 + $0x660] sm:$0xff] }
  0x45   : > { %v467_v52 = vld [vmem:[%s1601_s29 + $0x680] sm:$0xff]  ;;  %466 = vst [vmem:[%s1606_s30 + $0x198] sm:$0xff] %v465_v51 }
  0x46   : > { %v469_v53 = vld [vmem:[%s1601_s29 + $0x6a0] sm:$0xff]  ;;  %468 = vst [vmem:[%s1606_s30 + $0x1a0] sm:$0xff] %v467_v52 }
  0x47   : > { %470 = vst [vmem:[%s1606_s30 + $0x1a8] sm:$0xff] %v469_v53  ;;  %v471_v54 = vld [vmem:[%s1601_s29 + $0x6c0] sm:$0xff] }
  0x48   : > { %v473_v55 = vld [vmem:[%s1601_s29 + $0x6e0] sm:$0xff]  ;;  %472 = vst [vmem:[%s1606_s30 + $0x1b0] sm:$0xff] %v471_v54 }
  0x49   : > { %v475_v56 = vld [vmem:[%s1601_s29 + $0x700] sm:$0xff]  ;;  %474 = vst [vmem:[%s1606_s30 + $0x1b8] sm:$0xff] %v473_v55 }
  0x4a   : > { %476 = vst [vmem:[%s1606_s30 + $0x1c0] sm:$0xff] %v475_v56  ;;  %v477_v57 = vld [vmem:[%s1601_s29 + $0x720] sm:$0xff] }
  0x4b   : > { %v479_v58 = vld [vmem:[%s1601_s29 + $0x740] sm:$0xff]  ;;  %478 = vst [vmem:[%s1606_s30 + $0x1c8] sm:$0xff] %v477_v57 }
  0x4c   : > { %v481_v59 = vld [vmem:[%s1601_s29 + $0x760] sm:$0xff]  ;;  %480 = vst [vmem:[%s1606_s30 + $0x1d0] sm:$0xff] %v479_v58 }
  0x4d   : > { %482 = vst [vmem:[%s1606_s30 + $0x1d8] sm:$0xff] %v481_v59  ;;  %v483_v60 = vld [vmem:[%s1601_s29 + $0x780] sm:$0xff] }
  0x4e   : > { %v485_v61 = vld [vmem:[%s1601_s29 + $0x7a0] sm:$0xff]  ;;  %484 = vst [vmem:[%s1606_s30 + $0x1e0] sm:$0xff] %v483_v60 }
  0x4f   : > { %v487_v62 = vld [vmem:[%s1601_s29 + $0x7c0] sm:$0xff]  ;;  %486 = vst [vmem:[%s1606_s30 + $0x1e8] sm:$0xff] %v485_v61 }
  0x50   : > { %488 = vst [vmem:[%s1606_s30 + $0x1f0] sm:$0xff] %v487_v62  ;;  %v489_v63 = vld [vmem:[%s1601_s29 + $0x7e0] sm:$0xff] }
  0x51   : > { %490 = vst [vmem:[%s1606_s30 + $0x1f8] sm:$0xff] %v489_v63 }
  0x52 PF: > { %p1272_p6 = scmp.ge.s32.totalorder %s1531_s19, 1  ;;  %p511_p7 = scmp.lt.s32.totalorder %s1531_s19, 5 }
  0x54   : > { %p512_p8 = pnand %p1272_p6, %p511_p7 }
  0x55   : > { %s518_s5 = sand.u32 (!%p512_p8), 1, %s1515_s15   ;;  %v1739_v0 = vld [vmem:[%s1845_s0] sm:$0xff] (!%p512_p8)  ;;  %v1744_v1 = vld [vmem:[%s1845_s0 + $0x8] sm:$0xff] (!%p512_p8)  ;;  %s1274_s12 = sshll.u32 (!%p512_p8), %s1523_s17, 1 }
  0x56   : > { %515 = sbr.rel (%p512_p8) target bundleno = 376 (0x178), region = 70  ;;  %s1273_s10 = sshll.u32 (!%p512_p8), %s518_s5, 9  ;;  %v1279_v2 = vcombine.high (!%p512_p8), %v1739_v0, %v1739_v0  ;;  %v1281_v3 = vcombine.high (!%p512_p8), %v1744_v1, %v1744_v1 }
  0x57   : > { %s1750_s11 = scalar_lea.vmem (!%p512_p8), [#allocation3], %s1273_s10  ;;  %p577_p9 = scmp.lt.s32.totalorder (!%p512_p8), %s1274_s12, 7 }
  0x58   : > { %v1393_v4 = vld [vmem:[%s1750_s11 + $0x4] ss:$8 sps:$4 sm:$0xff] (!%p512_p8)   ;;  %1036 = vmatprep.mubr.bf16.mxu1 (!%p512_p8), %v1279_v2  ;;  %1077 = vmatprep.mubr.bf16.mxu0 (!%p512_p8), %v1281_v3  ;;  %v1397_v6 = vld [vmem:[%s1750_s11] ss:$8 sps:$4 sm:$0xff] (!%p512_p8)   ;;  %v1399_v8 = vld [vmem:[%s1750_s11 + $0x14] ss:$8 sps:$4 sm:$0xff] (!%p512_p8)  }
  0x59   : > { %v1395_v5 = vld [vmem:[%s1750_s11 + $0x104] ss:$8 sps:$4 sm:$0xff] (!%p512_p8)   ;;  %1004 = vmatprep.subr.bf16.mxu1 (!%p512_p8), %v1393_v4  ;;  %v1398_v7 = vld [vmem:[%s1750_s11 + $0x100] ss:$8 sps:$4 sm:$0xff] (!%p512_p8)   ;;  %v1401_v9 = vld [vmem:[%s1750_s11 + $0x114] ss:$8 sps:$4 sm:$0xff] (!%p512_p8)  }
  0x5a   : > { %1045 = vmatprep.subr.bf16.mxu0 (!%p512_p8), %v1395_v5  ;;  %1005 = vmatpush1.bf16.msra.mxu1 (!%p512_p8), %v1397_v6  ;;  %v1403_v10 = vld [vmem:[%s1750_s11 + $0x10] ss:$8 sps:$4 sm:$0xff] (!%p512_p8)   ;;  %v1405_v12 = vld [vmem:[%s1750_s11 + $0x24] ss:$8 sps:$4 sm:$0xff] (!%p512_p8)   ;;  %v1409_v14 = vld [vmem:[%s1750_s11 + $0x20] ss:$8 sps:$4 sm:$0xff] (!%p512_p8)   ;;  %v1278_v6 = vcombine.low (!%p512_p8), %v1739_v0, %v1739_v0 }
  0x5b   : > { %1046 = vmatpush1.bf16.msra.mxu0 (!%p512_p8), %v1398_v7  ;;  %1006 = vmatprep.subr.bf16.mxu1 (!%p512_p8), %v1399_v8  ;;  %v1404_v11 = vld [vmem:[%s1750_s11 + $0x110] ss:$8 sps:$4 sm:$0xff] (!%p512_p8)   ;;  %v1407_v13 = vld [vmem:[%s1750_s11 + $0x124] ss:$8 sps:$4 sm:$0xff] (!%p512_p8)   ;;  %v1410_v15 = vld [vmem:[%s1750_s11 + $0x120] ss:$8 sps:$4 sm:$0xff] (!%p512_p8)   ;;  %v1280_v7 = vcombine.low (!%p512_p8), %v1744_v1, %v1744_v1  ;;  %v1097_v8 = vlaneseq (!%p512_p8) }
  0x5c   : > { %1047 = vmatprep.subr.bf16.mxu0 (!%p512_p8), %v1401_v9  ;;  %v1411_v16 = vld [vmem:[%s1750_s11 + $0x34] ss:$8 sps:$4 sm:$0xff] (!%p512_p8)   ;;  %v1415_v18 = vld [vmem:[%s1750_s11 + $0x30] ss:$8 sps:$4 sm:$0xff] (!%p512_p8)   ;;  %v1417_v20 = vld [vmem:[%s1750_s11 + $0x44] ss:$8 sps:$4 sm:$0xff] (!%p512_p8)  }
  0x5d   : > { %v1413_v17 = vld [vmem:[%s1750_s11 + $0x134] ss:$8 sps:$4 sm:$0xff]   ;;  %v1416_v19 = vld [vmem:[%s1750_s11 + $0x130] ss:$8 sps:$4 sm:$0xff]   ;;  %v1419_v21 = vld [vmem:[%s1750_s11 + $0x144] ss:$8 sps:$4 sm:$0xff]  }
  0x5e   : > { %1007 = vmatpush1.bf16.msra.mxu1 %v1403_v10  ;;  %v1421_v22 = vld [vmem:[%s1750_s11 + $0x40] ss:$8 sps:$4 sm:$0xff]   ;;  %v1423_v24 = vld [vmem:[%s1750_s11 + $0x54] ss:$8 sps:$4 sm:$0xff]   ;;  %v1427_v26 = vld [vmem:[%s1750_s11 + $0x50] ss:$8 sps:$4 sm:$0xff]  }
  0x5f   : > { %1048 = vmatpush1.bf16.msra.mxu0 %v1404_v11  ;;  %1008 = vmatprep.subr.bf16.mxu1 %v1405_v12  ;;  %v1422_v23 = vld [vmem:[%s1750_s11 + $0x140] ss:$8 sps:$4 sm:$0xff]   ;;  %v1425_v25 = vld [vmem:[%s1750_s11 + $0x154] ss:$8 sps:$4 sm:$0xff]   ;;  %v1428_v27 = vld [vmem:[%s1750_s11 + $0x150] ss:$8 sps:$4 sm:$0xff]  }
  0x60   : > { %1049 = vmatprep.subr.bf16.mxu0 %v1407_v13  ;;  %v1429_v28 = vld [vmem:[%s1750_s11 + $0x64] ss:$8 sps:$4 sm:$0xff]   ;;  %v1433_v30 = vld [vmem:[%s1750_s11 + $0x60] ss:$8 sps:$4 sm:$0xff]   ;;  %v1435_v32 = vld [vmem:[%s1750_s11 + $0x74] ss:$8 sps:$4 sm:$0xff]  }
  0x61   : > { %v1431_v29 = vld [vmem:[%s1750_s11 + $0x164] ss:$8 sps:$4 sm:$0xff]   ;;  %v1434_v31 = vld [vmem:[%s1750_s11 + $0x160] ss:$8 sps:$4 sm:$0xff]   ;;  %v1437_v33 = vld [vmem:[%s1750_s11 + $0x174] ss:$8 sps:$4 sm:$0xff]  }
  0x62   : > { %1009 = vmatpush1.bf16.msra.mxu1 %v1409_v14  ;;  %v1439_v34 = vld [vmem:[%s1750_s11 + $0x70] ss:$8 sps:$4 sm:$0xff]   ;;  %v1441_v36 = vld [vmem:[%s1750_s11 + $0x84] ss:$8 sps:$4 sm:$0xff]   ;;  %v1445_v38 = vld [vmem:[%s1750_s11 + $0x80] ss:$8 sps:$4 sm:$0xff]  }
  0x63   : > { %1050 = vmatpush1.bf16.msra.mxu0 %v1410_v15  ;;  %1010 = vmatprep.subr.bf16.mxu1 %v1411_v16  ;;  %v1440_v35 = vld [vmem:[%s1750_s11 + $0x170] ss:$8 sps:$4 sm:$0xff]   ;;  %v1443_v37 = vld [vmem:[%s1750_s11 + $0x184] ss:$8 sps:$4 sm:$0xff]   ;;  %v1446_v39 = vld [vmem:[%s1750_s11 + $0x180] ss:$8 sps:$4 sm:$0xff]  }
  0x64   : > { %1051 = vmatprep.subr.bf16.mxu0 %v1413_v17  ;;  %v1447_v40 = vld [vmem:[%s1750_s11 + $0x94] ss:$8 sps:$4 sm:$0xff]   ;;  %v1451_v42 = vld [vmem:[%s1750_s11 + $0x90] ss:$8 sps:$4 sm:$0xff]   ;;  %v1453_v44 = vld [vmem:[%s1750_s11 + $0xa4] ss:$8 sps:$4 sm:$0xff]  }
  0x65   : > { %v1449_v41 = vld [vmem:[%s1750_s11 + $0x194] ss:$8 sps:$4 sm:$0xff]   ;;  %v1452_v43 = vld [vmem:[%s1750_s11 + $0x190] ss:$8 sps:$4 sm:$0xff]   ;;  %v1455_v45 = vld [vmem:[%s1750_s11 + $0x1a4] ss:$8 sps:$4 sm:$0xff]  }
  0x66   : > { %1011 = vmatpush1.bf16.msra.mxu1 %v1415_v18  ;;  %v1457_v46 = vld [vmem:[%s1750_s11 + $0xa0] ss:$8 sps:$4 sm:$0xff]   ;;  %v1459_v48 = vld [vmem:[%s1750_s11 + $0xb4] ss:$8 sps:$4 sm:$0xff]   ;;  %v1463_v50 = vld [vmem:[%s1750_s11 + $0xb0] ss:$8 sps:$4 sm:$0xff]  }
  0x67   : > { %1052 = vmatpush1.bf16.msra.mxu0 %v1416_v19  ;;  %1012 = vmatprep.subr.bf16.mxu1 %v1417_v20  ;;  %v1458_v47 = vld [vmem:[%s1750_s11 + $0x1a0] ss:$8 sps:$4 sm:$0xff]   ;;  %v1461_v49 = vld [vmem:[%s1750_s11 + $0x1b4] ss:$8 sps:$4 sm:$0xff]   ;;  %v1464_v51 = vld [vmem:[%s1750_s11 + $0x1b0] ss:$8 sps:$4 sm:$0xff]  }
  0x68   : > { %1053 = vmatprep.subr.bf16.mxu0 %v1419_v21  ;;  %v1465_v52 = vld [vmem:[%s1750_s11 + $0xc4] ss:$8 sps:$4 sm:$0xff]   ;;  %v1469_v54 = vld [vmem:[%s1750_s11 + $0xc0] ss:$8 sps:$4 sm:$0xff]   ;;  %v1471_v56 = vld [vmem:[%s1750_s11 + $0xd4] ss:$8 sps:$4 sm:$0xff]  }
  0x69   : > { %v1467_v53 = vld [vmem:[%s1750_s11 + $0x1c4] ss:$8 sps:$4 sm:$0xff]   ;;  %v1470_v55 = vld [vmem:[%s1750_s11 + $0x1c0] ss:$8 sps:$4 sm:$0xff]   ;;  %v1473_v57 = vld [vmem:[%s1750_s11 + $0x1d4] ss:$8 sps:$4 sm:$0xff]  }
  0x6a   : > { %1013 = vmatpush1.bf16.msra.mxu1 %v1421_v22  ;;  %v1475_v58 = vld [vmem:[%s1750_s11 + $0xd0] ss:$8 sps:$4 sm:$0xff]   ;;  %v1477_v60 = vld [vmem:[%s1750_s11 + $0xe4] ss:$8 sps:$4 sm:$0xff]   ;;  %v1481_v62 = vld [vmem:[%s1750_s11 + $0xe0] ss:$8 sps:$4 sm:$0xff]  }
  0x6b   : > { %1054 = vmatpush1.bf16.msra.mxu0 %v1422_v23  ;;  %1014 = vmatprep.subr.bf16.mxu1 %v1423_v24  ;;  %v1476_v59 = vld [vmem:[%s1750_s11 + $0x1d0] ss:$8 sps:$4 sm:$0xff]   ;;  %v1479_v61 = vld [vmem:[%s1750_s11 + $0x1e4] ss:$8 sps:$4 sm:$0xff]   ;;  %v1482_v63 = vld [vmem:[%s1750_s11 + $0x1e0] ss:$8 sps:$4 sm:$0xff]  }
  0x6c   : > { %1055 = vmatprep.subr.bf16.mxu0 %v1425_v25  ;;  %v1483_v2 = vld [vmem:[%s1750_s11 + $0xf4] ss:$8 sps:$4 sm:$0xff]   ;;  %v1487_v4 = vld [vmem:[%s1750_s11 + $0xf0] ss:$8 sps:$4 sm:$0xff]   ;;  %s1857_s12 = smov (!%p577_p9, %s1274_s12), 7  ;;  %v1098_v9 = vshrl.u32 %v1097_v8, 7 }
  0x6d   : > { %v1485_v3 = vld [vmem:[%s1750_s11 + $0x1f4] ss:$8 sps:$4 sm:$0xff]   ;;  %v1488_v5 = vld [vmem:[%s1750_s11 + $0x1f0] ss:$8 sps:$4 sm:$0xff]   ;;  %s579_s15 = scalar_lea.vmem %s1847_s2, %s1857_s12  ;;  %s584_s24 = scalar_lea.vmem %s1848_s3, %s1857_s12 }
  0x6e   : > { %1015 = vmatpush1.bf16.msra.mxu1 %v1427_v26  ;;  %v1099_v0 = vsub.s32 0, %v1098_v9  ;;  %v1095_v10 = vld [vmem:[%s579_s15] sm:$0x3]  ;;  %v1103_v1 = vsub.s32 1, %v1098_v9  ;;  %s1277_s17 = sshll.u32 %s1857_s12, 2 }
  0x6f   : > { %1056 = vmatpush1.bf16.msra.mxu0 %v1428_v27  ;;  %1016 = vmatprep.subr.bf16.mxu1 %v1429_v28  ;;  %v1109_v11 = vld [vmem:[%s584_s24] sm:$0x3]  ;;  %s594_s27 = scalar_lea.vmem %s1849_s4, %s1277_s17 }
  0x70   : > { %1057 = vmatprep.subr.bf16.mxu0 %v1431_v29  ;;  %v1100_v12 = vrot.slane %v1095_v10, %v1099_v0  ;;  %v1104_v15 = vrot.slane %v1095_v10, %v1103_v1  ;;  %v1114_v17 = vrot.slane %v1109_v11, %v1099_v0  ;;  %v1118_v21 = vrot.slane %v1109_v11, %v1103_v1 }
  0x72   : > { %1017 = vmatpush1.bf16.msra.mxu1 %v1433_v30 }
  0x73   : > { %1058 = vmatpush1.bf16.msra.mxu0 %v1434_v31  ;;  %1018 = vmatprep.subr.bf16.mxu1 %v1435_v32 }
  0x74   : > { %1059 = vmatprep.subr.bf16.mxu0 %v1437_v33 }
  0x76   : > { %1019 = vmatpush1.bf16.msra.mxu1 %v1439_v34 }
  0x77   : > { %1060 = vmatpush1.bf16.msra.mxu0 %v1440_v35  ;;  %1020 = vmatprep.subr.bf16.mxu1 %v1441_v36 }
  0x78   : > { %1061 = vmatprep.subr.bf16.mxu0 %v1443_v37 }
  0x7a   : > { %1021 = vmatpush1.bf16.msra.mxu1 %v1445_v38 }
  0x7b   : > { %1062 = vmatpush1.bf16.msra.mxu0 %v1446_v39  ;;  %1022 = vmatprep.subr.bf16.mxu1 %v1447_v40 }
  0x7c   : > { %1063 = vmatprep.subr.bf16.mxu0 %v1449_v41 }
  0x7e   : > { %1023 = vmatpush1.bf16.msra.mxu1 %v1451_v42 }
  0x7f   : > { %1064 = vmatpush1.bf16.msra.mxu0 %v1452_v43  ;;  %1024 = vmatprep.subr.bf16.mxu1 %v1453_v44 }
  0x80   : > { %1065 = vmatprep.subr.bf16.mxu0 %v1455_v45 }
  0x82   : > { %1025 = vmatpush1.bf16.msra.mxu1 %v1457_v46 }
  0x83   : > { %1066 = vmatpush1.bf16.msra.mxu0 %v1458_v47  ;;  %1026 = vmatprep.subr.bf16.mxu1 %v1459_v48 }
  0x84   : > { %1067 = vmatprep.subr.bf16.mxu0 %v1461_v49 }
  0x86   : > { %1027 = vmatpush1.bf16.msra.mxu1 %v1463_v50 }
  0x87   : > { %1068 = vmatpush1.bf16.msra.mxu0 %v1464_v51  ;;  %1028 = vmatprep.subr.bf16.mxu1 %v1465_v52 }
  0x88   : > { %1069 = vmatprep.subr.bf16.mxu0 %v1467_v53 }
  0x8a   : > { %1029 = vmatpush1.bf16.msra.mxu1 %v1469_v54 }
  0x8b   : > { %1070 = vmatpush1.bf16.msra.mxu0 %v1470_v55  ;;  %1030 = vmatprep.subr.bf16.mxu1 %v1471_v56 }
  0x8c   : > { %1071 = vmatprep.subr.bf16.mxu0 %v1473_v57 }
  0x8e   : > { %1031 = vmatpush1.bf16.msra.mxu1 %v1475_v58 }
  0x8f   : > { %1072 = vmatpush1.bf16.msra.mxu0 %v1476_v59  ;;  %1032 = vmatprep.subr.bf16.mxu1 %v1477_v60 }
  0x90   : > { %1073 = vmatprep.subr.bf16.mxu0 %v1479_v61 }
  0x92   : > { %1033 = vmatpush1.bf16.msra.mxu1 %v1481_v62 }
  0x93   : > { %1074 = vmatpush1.bf16.msra.mxu0 %v1482_v63  ;;  %1034 = vmatprep.subr.bf16.mxu1 %v1483_v2 }
  0x94   : > { %1075 = vmatprep.subr.bf16.mxu0 %v1485_v3 }
  0x96   : > { %1035 = vmatpush1.bf16.msra.mxu1 %v1487_v4 }
  0x97   : > { %1076 = vmatpush1.bf16.msra.mxu0 %v1488_v5 }
  0x99   : > { %1037 = vmatmul.mubr.bf16.vlgmr.msra.gmra.mrb[0].mxu1 %v1278_v6 }
  0x9a   : > { %1078 = vmatmul.mubr.bf16.vlgmr.msra.gmra.mrb[0].mxu0 %v1280_v7 }
 0x16c   : > { %v1038_v13 = vpop.f32.mrb[0].mxu1 }
 0x16d   : > { %v1079_v14 = vpop.f32.mrb[0].mxu0  ;;  %v1040_v18 = vpop.f32.mrb[1].mxu1 }
 0x16e   : > { %v1080_v16 = vadd.f32 %v1079_v14, %v1038_v13  ;;  %v1081_v19 = vpop.f32.mrb[1].mxu0  ;;  %v1042_v22 = vpop.f32.mrb[2].mxu1 }
 0x16f   : > { %v1082_v20 = vadd.f32 %v1081_v19, %v1040_v18  ;;  %v1083_v23 = vpop.f32.mrb[2].mxu0  ;;  %v1043_v25 = vpop.f32.mrb[3].mxu1 }
 0x170   : > { %v1107_v24 = vmul.f32 %v1100_v12, %v1080_v16  ;;  %v1084_v26 = vpop.f32.mrb[3].mxu0 }
 0x171   : > { %v1108_v27 = vmul.f32 %v1104_v15, %v1082_v20 }
 0x172   : > { %v1121_v28 = vadd.f32 %v1114_v17, %v1107_v24 }
 0x173   : > { %v1122_v29 = vadd.f32 %v1118_v21, %v1108_v27 }
 0x175   : > { %v1350_v30 = vpack.c.bf16 %v1122_v29, %v1121_v28 }
 0x177   : > { %1131 = vst [vmem:[%s594_s27] sm:$0xff] %v1350_v30 }
 0x178 PF: > { %s14_s19 = sadd.s32 1, %s1531_s19   ;;  %s1850_s15 = smov %s1519_s16 }
 0x179   : > { %p11_p10 = scmp.ge.s32.totalorder %s14_s19, 6   ;;  %s1851_s16 = smov %s1593_s23 }
 0x17a   : > { %s1852_s17 = smov %s1527_s18  ;;  %s1853_s18 = smov %s1855_s20 }
 0x17b   :  { %13 = sbr.rel (!%p11_p10) target bundleno = 3 (0x3), region = 126 }

// kernel: resnet18_forward.45
= control target key start
LH: loop header
LB: loop body
LE: loop exit
PB: predicated region body
PF: predicated region fallthrough
CT: control target
= control target key end

     0   :  { %s1008_s15 = smov 0   ;;  %s1010_s16 = smov 0   ;;  %s1094_s0 = inlined_call_operand.vmem [shape: bf16[8,1024], index: 0, kind: input, shape index: {}]   ;;  %s1095_s1 = inlined_call_operand.vmem [shape: bf16[1024,128], index: 1, kind: input, shape index: {}]   ;;  %s1096_s2 = inlined_call_operand.vmem [shape: f32[1,128], index: 2, kind: input, shape index: {}]   ;;  %s1097_s3 = inlined_call_operand.vmem [shape: f32[1,128], index: 3, kind: input, shape index: {}]   ;;  %s1098_s4 = inlined_call_operand.vmem [shape: f32[8,128], index: 4, kind: output, shape index: {}]  }
   0x1   :  { %s1012_s17 = smov 0  }
   0x2 LB: > { %s26_s18 = sadd.s32 1, %s976_s16  ;;  %p805_p0 = scmp.ge.s32.totalorder %s980_s17, 1  ;;  %s980_s17 = sphi %s1012_s17, %s14_s17   ;;  %s976_s16 = sphi %s1010_s16, %s1100_s16   ;;  %s972_s15 = sphi %s1008_s15, %s1099_s15  }
   0x3   : > { %p27_p1 = scmp.ge.s32.totalorder %s26_s18, 2  ;;  %p222_p2 = scmp.lt.s32.totalorder %s980_s17, 3 }
   0x5   : > { %s1102_s18 = smov (%p27_p1, %s26_s18), 0  ;;  %p223_p3 = pnand %p805_p0, %p222_p2 }
   0x6   : > { %s806_s19 = sshll.u32 (!%p223_p3), %s972_s15, 2  ;;  %s808_s20 = sshll.u32 (!%p223_p3), %s972_s15, 6 }
   0x7   : > { %226 = sbr.rel (%p223_p3) target bundleno = 291 (0x123), region = 36  ;;  %p271_p4 = scmp.lt.s32.totalorder (!%p223_p3), %s806_s19, 7 }
   0x8   : > { %p279_p5 = scmp.lt.s32.totalorder (!%p223_p3), %s808_s20, 127  ;;  %p810_p6 = scmp.ne.s32.totalorder (!%p223_p3), %s972_s15, 0 }
   0xe   : > { %s1104_s19 = smov (!%p271_p4, %s806_s19), 7  ;;  %s1106_s20 = smov (!%p279_p5, %s808_s20), 127 }
   0xf   : > { %s807_s21 = sshll.u32 %s1104_s19, 2  ;;  %s809_s25 = sshll.u32 %s1106_s20, 2  ;;  %v982_v0 = vmov (!%p810_p6), 0.0  }
  0x10   : > { %s1033_s24 = scalar_lea.vmem %s1094_s0, %s807_s21  ;;  %s1038_s28 = scalar_lea.vmem %s1095_s1, %s809_s25  ;;  %305 = vst [vmem:[#allocation2] sm:$0xff] (!%p810_p6), %v982_v0 }
  0x11   : > { %304 = sbr.rel (%p810_p6) target bundleno = 24 (0x18), region = 40 }
  0x18 PF: > { %v922_v1 = vld [vmem:[%s1038_s28 + $0x40] sm:$0xff]   ;;  %v926_v5 = vld [vmem:[%s1038_s28 + $0x48] sm:$0xff]   ;;  %v930_v9 = vld [vmem:[%s1038_s28 + $0x50] sm:$0xff]   ;;  %p847_p7 = scmp.ne.s32.totalorder %s972_s15, 1 }
  0x19   : > { %v923_v2 = vld [vmem:[%s1038_s28 + $0xc0] sm:$0xff]   ;;  %853 = vmatprep.subr.bf16.mxu0 %v922_v1  ;;  %v927_v6 = vld [vmem:[%s1038_s28 + $0xc8] sm:$0xff]   ;;  %v931_v10 = vld [vmem:[%s1038_s28 + $0xd0] sm:$0xff]  }
  0x1a   : > { %v924_v3 = vld [vmem:[%s1038_s28] sm:$0xff]   ;;  %875 = vmatprep.subr.bf16.mxu1 %v923_v2  ;;  %v928_v7 = vld [vmem:[%s1038_s28 + $0x8] sm:$0xff]   ;;  %v932_v11 = vld [vmem:[%s1038_s28 + $0x10] sm:$0xff]  }
  0x1b   : > { %v925_v4 = vld [vmem:[%s1038_s28 + $0x80] sm:$0xff]   ;;  %854 = vmatpush3.bf16.msra.mxu0 %v924_v3  ;;  %v929_v8 = vld [vmem:[%s1038_s28 + $0x88] sm:$0xff]   ;;  %v933_v12 = vld [vmem:[%s1038_s28 + $0x90] sm:$0xff]  }
  0x1c   : > { %876 = vmatpush3.bf16.msra.mxu1 %v925_v4  ;;  %855 = vmatprep.subr.bf16.mxu0 %v926_v5  ;;  %v934_v13 = vld [vmem:[%s1038_s28 + $0x58] sm:$0xff]   ;;  %v938_v17 = vld [vmem:[%s1038_s28 + $0x60] sm:$0xff]   ;;  %v942_v21 = vld [vmem:[%s1038_s28 + $0x68] sm:$0xff]  }
  0x1d   : > { %877 = vmatprep.subr.bf16.mxu1 %v927_v6  ;;  %v935_v14 = vld [vmem:[%s1038_s28 + $0xd8] sm:$0xff]   ;;  %v939_v18 = vld [vmem:[%s1038_s28 + $0xe0] sm:$0xff]   ;;  %v943_v22 = vld [vmem:[%s1038_s28 + $0xe8] sm:$0xff]  }
  0x1e   : > { %v936_v15 = vld [vmem:[%s1038_s28 + $0x18] sm:$0xff]   ;;  %v940_v19 = vld [vmem:[%s1038_s28 + $0x20] sm:$0xff]   ;;  %v944_v23 = vld [vmem:[%s1038_s28 + $0x28] sm:$0xff]  }
  0x1f   : > { %856 = vmatpush3.bf16.msra.mxu0 %v928_v7  ;;  %v937_v16 = vld [vmem:[%s1038_s28 + $0x98] sm:$0xff]   ;;  %v941_v20 = vld [vmem:[%s1038_s28 + $0xa0] sm:$0xff]   ;;  %v945_v24 = vld [vmem:[%s1038_s28 + $0xa8] sm:$0xff]  }
  0x20   : > { %878 = vmatpush3.bf16.msra.mxu1 %v929_v8  ;;  %857 = vmatprep.subr.bf16.mxu0 %v930_v9  ;;  %v946_v25 = vld [vmem:[%s1038_s28 + $0x70] sm:$0xff]   ;;  %v950_v29 = vld [vmem:[%s1038_s28 + $0x78] sm:$0xff]   ;;  %v307_v33 = vld [vmem:[%s1033_s24] sm:$0xff] }
  0x21   : > { %879 = vmatprep.subr.bf16.mxu1 %v931_v10  ;;  %v947_v26 = vld [vmem:[%s1038_s28 + $0xf0] sm:$0xff]   ;;  %v951_v30 = vld [vmem:[%s1038_s28 + $0xf8] sm:$0xff]   ;;  %v308_v34 = vld [vmem:[%s1033_s24 + $0x8] sm:$0xff]  ;;  %v811_v35 = vcombine.low %v307_v33, %v307_v33  ;;  %v812_v36 = vcombine.high %v307_v33, %v307_v33 }
  0x22   : > { %v948_v27 = vld [vmem:[%s1038_s28 + $0x30] sm:$0xff]   ;;  %v952_v31 = vld [vmem:[%s1038_s28 + $0x38] sm:$0xff]   ;;  %v813_v37 = vcombine.low %v308_v34, %v308_v34  ;;  %v814_v38 = vcombine.high %v308_v34, %v308_v34  ;;  %v306_v47 = vld [vmem:[#allocation2] sm:$0xff] }
  0x23   : > { %858 = vmatpush3.bf16.msra.mxu0 %v932_v11  ;;  %v949_v28 = vld [vmem:[%s1038_s28 + $0xb0] sm:$0xff]   ;;  %v953_v32 = vld [vmem:[%s1038_s28 + $0xb8] sm:$0xff]   ;;  %611 = vmatprep.mubr.bf16.mxu0 %v812_v36  ;;  %v848_v53 = vld [vmem:[%s1096_s2] ss:$0 sm:$0xff] (!%p847_p7) }
  0x24   : > { %880 = vmatpush3.bf16.msra.mxu1 %v933_v12  ;;  %859 = vmatprep.subr.bf16.mxu0 %v934_v13  ;;  %v849_v54 = vld [vmem:[%s1097_s3] ss:$0 sm:$0xff] (!%p847_p7) }
  0x25   : > { %881 = vmatprep.subr.bf16.mxu1 %v935_v14  ;;  %651 = vmatprep.mubr.bf16.mxu1 %v814_v38 }
  0x27   : > { %860 = vmatpush3.bf16.msra.mxu0 %v936_v15 }
  0x28   : > { %882 = vmatpush3.bf16.msra.mxu1 %v937_v16  ;;  %861 = vmatprep.subr.bf16.mxu0 %v938_v17 }
  0x29   : > { %883 = vmatprep.subr.bf16.mxu1 %v939_v18 }
  0x2b   : > { %862 = vmatpush3.bf16.msra.mxu0 %v940_v19 }
  0x2c   : > { %884 = vmatpush3.bf16.msra.mxu1 %v941_v20  ;;  %863 = vmatprep.subr.bf16.mxu0 %v942_v21 }
  0x2d   : > { %885 = vmatprep.subr.bf16.mxu1 %v943_v22 }
  0x2f   : > { %864 = vmatpush3.bf16.msra.mxu0 %v944_v23 }
  0x30   : > { %886 = vmatpush3.bf16.msra.mxu1 %v945_v24  ;;  %865 = vmatprep.subr.bf16.mxu0 %v946_v25 }
  0x31   : > { %887 = vmatprep.subr.bf16.mxu1 %v947_v26 }
  0x33   : > { %866 = vmatpush3.bf16.msra.mxu0 %v948_v27 }
  0x34   : > { %888 = vmatpush3.bf16.msra.mxu1 %v949_v28  ;;  %867 = vmatprep.subr.bf16.mxu0 %v950_v29 }
  0x35   : > { %889 = vmatprep.subr.bf16.mxu1 %v951_v30 }
  0x37   : > { %868 = vmatpush3.bf16.msra.mxu0 %v952_v31 }
  0x38   : > { %890 = vmatpush3.bf16.msra.mxu1 %v953_v32 }
  0x3a   : > { %612 = vmatmul.mubr.bf16.vlgmr.msra.gmra.mrb[0].mxu0 %v811_v35 }
  0x3b   : > { %652 = vmatmul.mubr.bf16.vlgmr.msra.gmra.mrb[0].mxu1 %v813_v37 }
 0x10d   : > { %v869_v39 = vpop.f32.mrb[0].mxu0 }
 0x10e   : > { %v891_v40 = vpop.f32.mrb[0].mxu1  ;;  %v870_v41 = vpop.f32.mrb[1].mxu0 }
 0x10f   : > { %v892_v42 = vpop.f32.mrb[1].mxu1  ;;  %v871_v43 = vadd.f32 %v870_v41, %v869_v39  ;;  %v872_v45 = vpop.f32.mrb[2].mxu0 }
 0x110   : > { %v893_v44 = vadd.f32 %v892_v42, %v891_v40  ;;  %v894_v46 = vpop.f32.mrb[2].mxu1  ;;  %v873_v48 = vpop.f32.mrb[3].mxu0  ;;  %664 = sbr.rel (%p847_p7) target bundleno = 291 (0x123), region = 44 }
 0x111   : > { %v895_v49 = vpop.f32.mrb[3].mxu1 }
 0x112   : > { %v654_v50 = vadd.f32 %v893_v44, %v871_v43 }
 0x114   : > { %v659_v51 = vadd.f32 %v654_v50, %v306_v47 }
 0x116   : > { %660 = vst [vmem:[#allocation2] sm:$0xff] %v659_v51 }
 0x11d   : > { %v665_v52 = vld [vmem:[#allocation2] sm:$0xff] }
 0x11e   : > { %v673_v55 = vmul.f32 %v848_v53, %v665_v52 }
 0x120   : > { %v681_v56 = vadd.f32 %v849_v54, %v673_v55 }
 0x122   : > { %682 = vst [vmem:[%s1098_s4] sm:$0xff] %v681_v56 }
 0x123 PF: > { %s14_s17 = sadd.s32 1, %s980_s17   ;;  %s1099_s15 = smov %s976_s16 }
 0x124   : > { %p11_p8 = scmp.ge.s32.totalorder %s14_s17, 4   ;;  %s1100_s16 = smov %s1102_s18 }
 0x126   :  { %13 = sbr.rel (!%p11_p8) target bundleno = 2 (0x2), region = 83 }

</bundles_post_ra>
